<compile_context>
chip_gen: v5e
topology: v5e:2x2
jax: 0.10.0
libtpu: 0.0.40
codegen_flags: <defaults>
</compile_context>

<pallas_src>
import numpy as np
import jax
import jax.numpy as jnp
from jax.experimental import pallas as pl
from jax.experimental.pallas import tpu as pltpu


# --------------------------------------------------------------------------------------
# NumPy glue: neighbor search / sampling / grouping (faithful port of the torch helpers)
# --------------------------------------------------------------------------------------
def _get_neighbor_index_np(vertices, neighbor_num, is_backdis=False):
    # vertices: (B, N, 3)
    inner = np.einsum("bnc,bmc->bnm", vertices, vertices)
    quadratic = np.sum(vertices ** 2, axis=2)
    distance = -2.0 * inner + quadratic[:, None, :] + quadratic[:, :, None]
    order = np.argsort(distance, axis=-1)
    neighbor_index = order[:, :, 1:neighbor_num + 1]
    if is_backdis:
        return neighbor_index, distance
    return neighbor_index


def _index_points_np(points, idx):
    B = points.shape[0]
    bidx = np.arange(B).reshape((B,) + (1,) * (idx.ndim - 1))
    return points[bidx, idx]


def _farthest_point_sample_np(xyz, n_samples):
    # TODO(synk): torch version seeds the first centroid with torch.randint; we use a
    # deterministic start index 0 for reproducibility.
    B, N, _ = xyz.shape
    centroids = np.zeros((B, n_samples), dtype=np.int64)
    distance = np.full((B, N), 1e10, dtype=np.float32)
    farthest = np.zeros((B,), dtype=np.int64)
    batch_indices = np.arange(B)
    for i in range(n_samples):
        centroids[:, i] = farthest
        centroid = xyz[batch_indices, farthest, :].reshape(B, 1, 3)
        dist = np.sum((xyz - centroid) ** 2, -1)
        mask = dist < distance
        distance[mask] = dist[mask]
        farthest = np.argmax(distance, axis=-1)
    return centroids


def _surface_knn_np(points_all, k_near, n_stepk):
    ind_neighbor_all, all_dist = _get_neighbor_index_np(points_all, n_stepk, True)
    neighbor_index_max = np.argmax(all_dist, axis=-1)[..., None]  # (B, N, 1)
    new_neighinds = ind_neighbor_all.copy()
    num_ita = 0
    while True:
        n_cur = new_neighinds.shape[-1]
        indexed_all = [_index_points_np(ind_neighbor_all, new_neighinds[:, :, j])
                       for j in range(n_cur)]
        new_neighinds = np.concatenate(indexed_all, axis=-1)
        new_neighinds = np.sort(new_neighinds, axis=-1)
        duplicates = np.zeros(new_neighinds.shape, dtype=bool)
        duplicates[:, :, 1:] = new_neighinds[:, :, 1:] == new_neighinds[:, :, :-1]
        nmax = np.broadcast_to(neighbor_index_max, new_neighinds.shape)
        new_neighinds = np.where(duplicates, nmax, new_neighinds)
        dist_neighinds = np.take_along_axis(all_dist, new_neighinds, axis=-1)
        sort_dist = np.sort(dist_neighinds, axis=-1)
        sort_dist_maxind = np.argmax(sort_dist, axis=-1)
        valid_nnear = int(sort_dist_maxind.min()) + 1
        is_end_loop = False
        if valid_nnear >= k_near + 1:
            valid_nnear = k_near + 1
            is_end_loop = True
        sub = np.argsort(dist_neighinds, axis=-1)[:, :, :valid_nnear]
        new_neighinds = np.take_along_axis(new_neighinds, sub, axis=-1)
        new_neighinds = new_neighinds[:, :, 1:]
        if is_end_loop:
            break
        num_ita += 1
        if num_ita > 20:
            return _get_neighbor_index_np(points_all, k_near)
    return new_neighinds


def _sample_and_group_np(n_center, n_near, xyz, fea):
    # xyz: (B, N, 3), fea: (B, N, D) or None
    idx_surfknn_all = _surface_knn_np(xyz, n_near, 10)
    if n_center is None:
        new_xyz = xyz
        idx = idx_surfknn_all
        grouped_xyz = _index_points_np(xyz, idx_surfknn_all)
    else:
        fps_idx = _farthest_point_sample_np(xyz, n_center)
        new_xyz = _index_points_np(xyz, fps_idx)
        idx = _index_points_np(idx_surfknn_all, fps_idx)
        grouped_xyz = _index_points_np(xyz, idx)
    grouped_xyz_norm = grouped_xyz - new_xyz[:, :, None, :]
    if fea is not None:
        grouped_fea = _index_points_np(fea, idx)
        new_fea = np.concatenate([grouped_xyz_norm, grouped_fea], axis=-1)
    else:
        new_fea = grouped_xyz_norm
    return new_xyz, new_fea  # (B, S, 3), (B, S, K, 3+D)


# --------------------------------------------------------------------------------------
# Pallas kernel: shared-MLP (1x1 conv, BN folded) + ReLU on the VPU, then max over K
# --------------------------------------------------------------------------------------
def _round_up(x, m):
    return ((x + m - 1) // m) * m


def _resolve_compute_dtype(compute_dtype):
    if compute_dtype is not None:
        return compute_dtype
    try:
        kind = jax.devices()[0].device_kind.lower()
    except Exception:
        return jnp.float32
    if "v6" in kind or "v7" in kind:
        return jnp.bfloat16    # bf16-capable VPU: halve HBM bytes, accumulate in f32
    return jnp.float32         # v5e and older: keep f32


def _vmem_capacity_bytes():
    try:
        return int(pltpu.get_tpu_info().vmem_capacity_bytes)
    except Exception:
        return 64 << 20        # conservative fallback (v7x per-TensorCore VMEM)


def _make_mlp_max_kernel(K, tile_s, layer_dims, s_valid, mask_tail):
    c_in0 = layer_dims[0][0]

    def kernel(w_ref, x_ref, o_ref):
        # x_ref: (1, C_in, K, tile_s) block -- channels/K on outer axes, S on lanes.
        # w_ref: flat f32 SMEM vector of folded [w(Cout,Cin) | b(Cout)] per layer.
        xs = [x_ref[0, ci, :, :].astype(jnp.float32) for ci in range(c_in0)]
        off = 0
        for cin, cout in layer_dims:
            b_off = off + cin * cout
            ys = []
            for co in range(cout):
                acc = w_ref[off + co * cin] * xs[0]
                for ci in range(1, cin):
                    acc = acc + w_ref[off + co * cin + ci] * xs[ci]
                ys.append(jnp.maximum(acc + w_ref[b_off + co], 0.0))
            xs = ys
            off = b_off + cout
        # Max over the K grouped neighbors (sublane axis of each (K, tile_s) slab).
        pooled = jnp.concatenate(
            [jnp.max(y, axis=0, keepdims=True) for y in xs], axis=0)  # (C_last, tile_s)
        if mask_tail:
            # Zero the padded S columns so the padded output never holds relu(bias).
            col = jax.lax.broadcasted_iota(jnp.int32, pooled.shape, 1)
            s0 = pl.program_id(1) * tile_s
            pooled = jnp.where(col < (s_valid - s0), pooled, 0.0)
        o_ref[0] = pooled.astype(o_ref.dtype)

    return kernel


def sa_mlp_pallas(grouped_fea, params, compute_dtype=None, out_dtype=None):
    """grouped_fea: (B, S, K, C_in); params: list of (w[Cin,Cout], conv_b, bn_scale, bn_bias).

    Returns pooled features channel-first, (B, C_last, S), in `out_dtype`
    (defaults to the compute dtype: bf16 on v6e/v7x, f32 on v5e/older).
    """
    compute_dtype = _resolve_compute_dtype(compute_dtype)
    out_dtype = compute_dtype if out_dtype is None else out_dtype

    gf = np.asarray(grouped_fea, np.float32)
    B, S, K, C_in = gf.shape

    # Fold BN (eval mode) into the conv: relu((x@w + cb)*sc + bb) == relu(x@(w*sc) + (cb*sc+bb)).
    # Folded weights stay f32 (they are SMEM scalars); only activations are cast.
    layer_dims, flat = [], []
    for (w, cb, sc, bb) in params:
        w = np.asarray(w, np.float32)                     # (Cin, Cout)
        cb = np.asarray(cb, np.float32).reshape(-1)
        sc = np.asarray(sc, np.float32).reshape(-1)
        bb = np.asarray(bb, np.float32).reshape(-1)
        wf = (w * sc[None, :]).T                          # (Cout, Cin), BN folded
        bf = cb * sc + bb
        flat.append(wf.reshape(-1))
        flat.append(bf)
        layer_dims.append((w.shape[0], w.shape[1]))
    assert layer_dims[0][0] == C_in, "params[0] in_channels must match grouped features"
    w_flat = jnp.asarray(np.concatenate(flat), jnp.float32)
    c_last = layer_dims[-1][1]
    # TODO(synk): for large per-point MLPs (sum(Cin*Cout) in the many thousands), switch
    # this unrolled VPU path to an MXU dot formulation to bound trace/compile time.

    in_itemsize = np.dtype(compute_dtype).itemsize
    out_itemsize = np.dtype(out_dtype).itemsize

    # Honest per-tile VMEM estimate: double-buffered in/out blocks plus the per-layer
    # live set of f32 (K, tile_s) channel slabs (input channels + widest cin+cout layer).
    live_ch = C_in + max(ci + co for ci, co in layer_dims)

    def _need_bytes(t):
        in_t = C_in * K * t * in_itemsize
        out_t = c_last * t * out_itemsize
        live = live_ch * K * t * 4
        return 2 * in_t + 2 * out_t + live

    capacity = _vmem_capacity_bytes()
    budget = max(capacity // 3, 8 << 20)

    # Tile S (the lane axis). Either a single full-extent tile (no padding, any S), or
    # 128-multiple tiles sized to fit the VMEM budget with minimal tail padding.
    if S <= 8192 and _need_bytes(S) <= budget:
        tile_s, S_pad = S, S
    else:
        t_budget = 128
        for t in range(256, 8192 + 1, 128):
            if _need_bytes(t) <= budget:
                t_budget = t
            else:
                break
        n_tiles = -(-S // t_budget)
        tile_s = _round_up(-(-S // n_tiles), 128)
        S_pad = n_tiles * tile_s
    n_s_tiles = S_pad // tile_s
    mask_tail = S_pad != S

    # Device-side relayout of the compact grouped slab: (B,S,K,C) -> (B,C,K,S_pad).
    # Only the compact f32 array crosses host->device; transpose/cast/pad run on device.
    x = jnp.asarray(gf)
    x = jnp.transpose(x, (0, 3, 2, 1)).astype(compute_dtype)
    if mask_tail:
        x = jnp.pad(x, ((0, 0), (0, 0), (0, 0), (0, S_pad - S)))

    kernel = _make_mlp_max_kernel(K, tile_s, layer_dims, S, mask_tail)

    need = _need_bytes(tile_s) + (2 << 20)
    vmem_limit = int(min(max(2 * need, 32 << 20), capacity * 3 // 4))
    vmem_limit = max(vmem_limit, need)

    macs = sum(ci * co for ci, co in layer_dims)
    flops = 2 * B * S_pad * K * macs
    bytes_accessed = (B * C_in * K * S_pad * in_itemsize
                      + int(w_flat.size) * 4
                      + B * c_last * S_pad * out_itemsize)

    # TODO(synk): for very large K, move K to a third "arbitrary" grid axis with a
    # running-max VMEM accumulator (pl.when init/finalize) to keep tile_s large on v7x.
    out = pl.pallas_call(
        kernel,
        out_shape=jax.ShapeDtypeStruct((B, c_last, S_pad), out_dtype),
        grid=(B, n_s_tiles),
        in_specs=[
            pl.BlockSpec(memory_space=pltpu.MemorySpace.SMEM),               # folded params
            pl.BlockSpec((1, C_in, K, tile_s), lambda b, s: (b, 0, 0, s)),   # grouped slab
        ],
        out_specs=pl.BlockSpec((1, c_last, tile_s), lambda b, s: (b, 0, s)),
        compiler_params=pltpu.CompilerParams(
            dimension_semantics=("parallel", "parallel"),
            vmem_limit_bytes=vmem_limit),
        cost_estimate=pl.CostEstimate(flops=int(flops), transcendentals=0,
                                      bytes_accessed=int(bytes_accessed)),
    )(w_flat, x)

    return out[:, :, :S] if mask_tail else out


# --------------------------------------------------------------------------------------
# Full SA_Scratch forward
# --------------------------------------------------------------------------------------
def sa_scratch_forward(xyz, fea, params, n_center, n_near,
                       compute_dtype=None, out_dtype=None):
    """xyz: (B,3,N), fea: (B,D,N)  ->  new_xyz (B,3,S), new_fea (B,C_last,S)."""
    xyz_np = np.asarray(xyz).transpose(0, 2, 1)                              # (B, N, 3)
    fea_np = np.asarray(fea).transpose(0, 2, 1) if fea is not None else None
    new_xyz, grouped = _sample_and_group_np(n_center, n_near, xyz_np, fea_np)
    pooled = sa_mlp_pallas(grouped, params,
                           compute_dtype=compute_dtype, out_dtype=out_dtype)  # (B,C_last,S)
    new_xyz_out = jnp.asarray(new_xyz.transpose(0, 2, 1), jnp.float32)        # (B, 3, S)
    return new_xyz_out, pooled


def init_params(key, in_channel, mlp, eps=1e-5):
    """Deterministic Conv2d(1x1)+BatchNorm2d(eval) parameters, BN pre-reduced to scale/bias."""
    params = []
    last = in_channel
    for out_c in mlp:
        key, k1, k2, k3, k4 = jax.random.split(key, 5)
        bound = 1.0 / np.sqrt(last)
        w = jax.random.uniform(k1, (out_c, last), jnp.float32, -bound, bound)  # torch [Cout, Cin, 1, 1]
        b = jax.random.uniform(k2, (out_c,), jnp.float32, -bound, bound)
        gamma = jax.random.uniform(k3, (out_c,), jnp.float32, 0.5, 1.5)
        beta = jax.random.uniform(k4, (out_c,), jnp.float32, -0.1, 0.1)
        running_mean = jnp.zeros((out_c,), jnp.float32)
        running_var = jnp.ones((out_c,), jnp.float32)
        scale = gamma / jnp.sqrt(running_var + eps)
        bias = beta - running_mean * scale
        params.append((jnp.transpose(w), b, scale, bias))   # w stored as (Cin, Cout)
        last = out_c
    return params


def _reference_mlp_max(grouped_fea, params):
    # Un-folded module math in full f32 precision (BN applied after the conv).
    x = grouped_fea.astype(jnp.float32)
    for (w, cb, sc, bb) in params:
        x = jnp.einsum("bskc,cd->bskd", x, w,
                       precision=jax.lax.Precision.HIGHEST) + cb
        x = jnp.maximum(x * sc + bb, 0.0)
    return jnp.max(x, axis=2)    # (B, S, C_last)


if __name__ == "__main__":
    B, N, D = 2, 16, 3
    n_center, n_near = 8, 8          # S = 8 centers, K = 8 surface-KNN neighbors
    in_channel = 3 + D               # grouped features = [local xyz | fea]
    mlp = [16, 32]

    key = jax.random.PRNGKey(0)
    kx, kf = jax.random.split(key)
    xyz = jax.random.normal(kx, (B, 3, N), jnp.float32)
    fea = jax.random.normal(kf, (B, D, N), jnp.float32)

    params = init_params(jax.random.PRNGKey(42), in_channel, mlp)

    # Strict f32 path: check the Pallas hot path against a pure-JAX reference.
    new_xyz, new_fea = sa_scratch_forward(xyz, fea, params, n_center, n_near,
                                          compute_dtype=jnp.float32)
    jax.block_until_ready((new_xyz, new_fea))

    xyz_np = np.asarray(xyz).transpose(0, 2, 1)
    fea_np = np.asarray(fea).transpose(0, 2, 1)
    _, grouped = _sample_and_group_np(n_center, n_near, xyz_np, fea_np)
    ref = _reference_mlp_max(jnp.asarray(grouped, jnp.float32), params)      # (B, S, C)
    ref_cf = np.asarray(jnp.transpose(ref, (0, 2, 1)))                       # (B, C, S)
    np.testing.assert_allclose(np.asarray(new_fea), ref_cf, rtol=1e-4, atol=1e-4)

    # bf16 activation path (default on v6e/v7x): accuracy-check against the f32 reference.
    pooled_bf16 = sa_mlp_pallas(grouped, params, compute_dtype=jnp.bfloat16)  # (B, C, S)
    jax.block_until_ready(pooled_bf16)
    assert pooled_bf16.shape == ref_cf.shape
    np.testing.assert_allclose(np.asarray(pooled_bf16.astype(jnp.float32)), ref_cf,
                               rtol=5e-2, atol=5e-2)

    assert new_xyz.shape == (B, 3, n_center)
    assert new_fea.shape == (B, mlp[-1], n_center)
    print("KERNEL_OK")
</pallas_src>

<mosaic_0001>
module attributes {stable_mosaic.version = 11 : i64} {
  func.func @kernel(%arg0: i32, %arg1: i32, %arg2: memref<656xf32, #tpu.memory_space<smem>>, %arg3: memref<1x6x8x8xf32, #tpu.memory_space<vmem>>, %arg4: memref<1x32x8xf32, #tpu.memory_space<vmem>>) attributes {dimension_semantics = [#tpu.dimension_semantics<parallel>, #tpu.dimension_semantics<parallel>], iteration_bounds = array<i64: 2, 1>, scalar_prefetch = 0 : i64, scratch_operands = 0 : i64, tpu.core_type = #tpu.core_type<tc>, window_params = [{transform_indices = @transform_0, window_bounds = array<i64: 656>}, {transform_indices = @transform_1, window_bounds = array<i64: 1, 6, 8, 8>}, {transform_indices = @transform_2, window_bounds = array<i64: 1, 32, 8>}]} {
    %c0 = arith.constant 0 : index
    %c0_0 = arith.constant 0 : index
    %c0_1 = arith.constant 0 : index
    %c0_2 = arith.constant 0 : index
    %0 = vector.load %arg3[%c0, %c0_0, %c0_1, %c0_2] : memref<1x6x8x8xf32, #tpu.memory_space<vmem>>, vector<1x1x8x8xf32>
    %1 = vector.shape_cast %0 : vector<1x1x8x8xf32> to vector<8x8xf32>
    %c0_3 = arith.constant 0 : index
    %c1 = arith.constant 1 : index
    %c0_4 = arith.constant 0 : index
    %c0_5 = arith.constant 0 : index
    %2 = vector.load %arg3[%c0_3, %c1, %c0_4, %c0_5] : memref<1x6x8x8xf32, #tpu.memory_space<vmem>>, vector<1x1x8x8xf32>
    %3 = vector.shape_cast %2 : vector<1x1x8x8xf32> to vector<8x8xf32>
    %c0_6 = arith.constant 0 : index
    %c2 = arith.constant 2 : index
    %c0_7 = arith.constant 0 : index
    %c0_8 = arith.constant 0 : index
    %4 = vector.load %arg3[%c0_6, %c2, %c0_7, %c0_8] : memref<1x6x8x8xf32, #tpu.memory_space<vmem>>, vector<1x1x8x8xf32>
    %5 = vector.shape_cast %4 : vector<1x1x8x8xf32> to vector<8x8xf32>
    %c0_9 = arith.constant 0 : index
    %c3 = arith.constant 3 : index
    %c0_10 = arith.constant 0 : index
    %c0_11 = arith.constant 0 : index
    %6 = vector.load %arg3[%c0_9, %c3, %c0_10, %c0_11] : memref<1x6x8x8xf32, #tpu.memory_space<vmem>>, vector<1x1x8x8xf32>
    %7 = vector.shape_cast %6 : vector<1x1x8x8xf32> to vector<8x8xf32>
    %c0_12 = arith.constant 0 : index
    %c4 = arith.constant 4 : index
    %c0_13 = arith.constant 0 : index
    %c0_14 = arith.constant 0 : index
    %8 = vector.load %arg3[%c0_12, %c4, %c0_13, %c0_14] : memref<1x6x8x8xf32, #tpu.memory_space<vmem>>, vector<1x1x8x8xf32>
    %9 = vector.shape_cast %8 : vector<1x1x8x8xf32> to vector<8x8xf32>
    %c0_15 = arith.constant 0 : index
    %c5 = arith.constant 5 : index
    %c0_16 = arith.constant 0 : index
    %c0_17 = arith.constant 0 : index
    %10 = vector.load %arg3[%c0_15, %c5, %c0_16, %c0_17] : memref<1x6x8x8xf32, #tpu.memory_space<vmem>>, vector<1x1x8x8xf32>
    %11 = vector.shape_cast %10 : vector<1x1x8x8xf32> to vector<8x8xf32>
    %c0_18 = arith.constant 0 : index
    %12 = memref.load %arg2[%c0_18] : memref<656xf32, #tpu.memory_space<smem>>
    %13 = vector.broadcast %12 : f32 to vector<8x8xf32>
    %14 = arith.mulf %13, %1 : vector<8x8xf32>
    %c1_19 = arith.constant 1 : index
    %15 = memref.load %arg2[%c1_19] : memref<656xf32, #tpu.memory_space<smem>>
    %16 = vector.broadcast %15 : f32 to vector<8x8xf32>
    %17 = arith.mulf %16, %3 : vector<8x8xf32>
    %18 = arith.addf %14, %17 : vector<8x8xf32>
    %c2_20 = arith.constant 2 : index
    %19 = memref.load %arg2[%c2_20] : memref<656xf32, #tpu.memory_space<smem>>
    %20 = vector.broadcast %19 : f32 to vector<8x8xf32>
    %21 = arith.mulf %20, %5 : vector<8x8xf32>
    %22 = arith.addf %18, %21 : vector<8x8xf32>
    %c3_21 = arith.constant 3 : index
    %23 = memref.load %arg2[%c3_21] : memref<656xf32, #tpu.memory_space<smem>>
    %24 = vector.broadcast %23 : f32 to vector<8x8xf32>
    %25 = arith.mulf %24, %7 : vector<8x8xf32>
    %26 = arith.addf %22, %25 : vector<8x8xf32>
    %c4_22 = arith.constant 4 : index
    %27 = memref.load %arg2[%c4_22] : memref<656xf32, #tpu.memory_space<smem>>
    %28 = vector.broadcast %27 : f32 to vector<8x8xf32>
    %29 = arith.mulf %28, %9 : vector<8x8xf32>
    %30 = arith.addf %26, %29 : vector<8x8xf32>
    %c5_23 = arith.constant 5 : index
    %31 = memref.load %arg2[%c5_23] : memref<656xf32, #tpu.memory_space<smem>>
    %32 = vector.broadcast %31 : f32 to vector<8x8xf32>
    %33 = arith.mulf %32, %11 : vector<8x8xf32>
    %34 = arith.addf %30, %33 : vector<8x8xf32>
    %c96 = arith.constant 96 : index
    %35 = memref.load %arg2[%c96] : memref<656xf32, #tpu.memory_space<smem>>
    %36 = vector.broadcast %35 : f32 to vector<8x8xf32>
    %37 = arith.addf %34, %36 : vector<8x8xf32>
    %cst = arith.constant 0.000000e+00 : f32
    %38 = vector.broadcast %cst : f32 to vector<8x8xf32>
    %39 = arith.maximumf %37, %38 : vector<8x8xf32>
    %c6 = arith.constant 6 : index
    %40 = memref.load %arg2[%c6] : memref<656xf32, #tpu.memory_space<smem>>
    %41 = vector.broadcast %40 : f32 to vector<8x8xf32>
    %42 = arith.mulf %41, %1 : vector<8x8xf32>
    %c7 = arith.constant 7 : index
    %43 = memref.load %arg2[%c7] : memref<656xf32, #tpu.memory_space<smem>>
    %44 = vector.broadcast %43 : f32 to vector<8x8xf32>
    %45 = arith.mulf %44, %3 : vector<8x8xf32>
    %46 = arith.addf %42, %45 : vector<8x8xf32>
    %c8 = arith.constant 8 : index
    %47 = memref.load %arg2[%c8] : memref<656xf32, #tpu.memory_space<smem>>
    %48 = vector.broadcast %47 : f32 to vector<8x8xf32>
    %49 = arith.mulf %48, %5 : vector<8x8xf32>
    %50 = arith.addf %46, %49 : vector<8x8xf32>
    %c9 = arith.constant 9 : index
    %51 = memref.load %arg2[%c9] : memref<656xf32, #tpu.memory_space<smem>>
    %52 = vector.broadcast %51 : f32 to vector<8x8xf32>
    %53 = arith.mulf %52, %7 : vector<8x8xf32>
    %54 = arith.addf %50, %53 : vector<8x8xf32>
    %c10 = arith.constant 10 : index
    %55 = memref.load %arg2[%c10] : memref<656xf32, #tpu.memory_space<smem>>
    %56 = vector.broadcast %55 : f32 to vector<8x8xf32>
    %57 = arith.mulf %56, %9 : vector<8x8xf32>
    %58 = arith.addf %54, %57 : vector<8x8xf32>
    %c11 = arith.constant 11 : index
    %59 = memref.load %arg2[%c11] : memref<656xf32, #tpu.memory_space<smem>>
    %60 = vector.broadcast %59 : f32 to vector<8x8xf32>
    %61 = arith.mulf %60, %11 : vector<8x8xf32>
    %62 = arith.addf %58, %61 : vector<8x8xf32>
    %c97 = arith.constant 97 : index
    %63 = memref.load %arg2[%c97] : memref<656xf32, #tpu.memory_space<smem>>
    %64 = vector.broadcast %63 : f32 to vector<8x8xf32>
    %65 = arith.addf %62, %64 : vector<8x8xf32>
    %cst_24 = arith.constant 0.000000e+00 : f32
    %66 = vector.broadcast %cst_24 : f32 to vector<8x8xf32>
    %67 = arith.maximumf %65, %66 : vector<8x8xf32>
    %c12 = arith.constant 12 : index
    %68 = memref.load %arg2[%c12] : memref<656xf32, #tpu.memory_space<smem>>
    %69 = vector.broadcast %68 : f32 to vector<8x8xf32>
    %70 = arith.mulf %69, %1 : vector<8x8xf32>
    %c13 = arith.constant 13 : index
    %71 = memref.load %arg2[%c13] : memref<656xf32, #tpu.memory_space<smem>>
    %72 = vector.broadcast %71 : f32 to vector<8x8xf32>
    %73 = arith.mulf %72, %3 : vector<8x8xf32>
    %74 = arith.addf %70, %73 : vector<8x8xf32>
    %c14 = arith.constant 14 : index
    %75 = memref.load %arg2[%c14] : memref<656xf32, #tpu.memory_space<smem>>
    %76 = vector.broadcast %75 : f32 to vector<8x8xf32>
    %77 = arith.mulf %76, %5 : vector<8x8xf32>
    %78 = arith.addf %74, %77 : vector<8x8xf32>
    %c15 = arith.constant 15 : index
    %79 = memref.load %arg2[%c15] : memref<656xf32, #tpu.memory_space<smem>>
    %80 = vector.broadcast %79 : f32 to vector<8x8xf32>
    %81 = arith.mulf %80, %7 : vector<8x8xf32>
    %82 = arith.addf %78, %81 : vector<8x8xf32>
    %c16 = arith.constant 16 : index
    %83 = memref.load %arg2[%c16] : memref<656xf32, #tpu.memory_space<smem>>
    %84 = vector.broadcast %83 : f32 to vector<8x8xf32>
    %85 = arith.mulf %84, %9 : vector<8x8xf32>
    %86 = arith.addf %82, %85 : vector<8x8xf32>
    %c17 = arith.constant 17 : index
    %87 = memref.load %arg2[%c17] : memref<656xf32, #tpu.memory_space<smem>>
    %88 = vector.broadcast %87 : f32 to vector<8x8xf32>
    %89 = arith.mulf %88, %11 : vector<8x8xf32>
    %90 = arith.addf %86, %89 : vector<8x8xf32>
    %c98 = arith.constant 98 : index
    %91 = memref.load %arg2[%c98] : memref<656xf32, #tpu.memory_space<smem>>
    %92 = vector.broadcast %91 : f32 to vector<8x8xf32>
    %93 = arith.addf %90, %92 : vector<8x8xf32>
    %cst_25 = arith.constant 0.000000e+00 : f32
    %94 = vector.broadcast %cst_25 : f32 to vector<8x8xf32>
    %95 = arith.maximumf %93, %94 : vector<8x8xf32>
    %c18 = arith.constant 18 : index
    %96 = memref.load %arg2[%c18] : memref<656xf32, #tpu.memory_space<smem>>
    %97 = vector.broadcast %96 : f32 to vector<8x8xf32>
    %98 = arith.mulf %97, %1 : vector<8x8xf32>
    %c19 = arith.constant 19 : index
    %99 = memref.load %arg2[%c19] : memref<656xf32, #tpu.memory_space<smem>>
    %100 = vector.broadcast %99 : f32 to vector<8x8xf32>
    %101 = arith.mulf %100, %3 : vector<8x8xf32>
    %102 = arith.addf %98, %101 : vector<8x8xf32>
    %c20 = arith.constant 20 : index
    %103 = memref.load %arg2[%c20] : memref<656xf32, #tpu.memory_space<smem>>
    %104 = vector.broadcast %103 : f32 to vector<8x8xf32>
    %105 = arith.mulf %104, %5 : vector<8x8xf32>
    %106 = arith.addf %102, %105 : vector<8x8xf32>
    %c21 = arith.constant 21 : index
    %107 = memref.load %arg2[%c21] : memref<656xf32, #tpu.memory_space<smem>>
    %108 = vector.broadcast %107 : f32 to vector<8x8xf32>
    %109 = arith.mulf %108, %7 : vector<8x8xf32>
    %110 = arith.addf %106, %109 : vector<8x8xf32>
    %c22 = arith.constant 22 : index
    %111 = memref.load %arg2[%c22] : memref<656xf32, #tpu.memory_space<smem>>
    %112 = vector.broadcast %111 : f32 to vector<8x8xf32>
    %113 = arith.mulf %112, %9 : vector<8x8xf32>
    %114 = arith.addf %110, %113 : vector<8x8xf32>
    %c23 = arith.constant 23 : index
    %115 = memref.load %arg2[%c23] : memref<656xf32, #tpu.memory_space<smem>>
    %116 = vector.broadcast %115 : f32 to vector<8x8xf32>
    %117 = arith.mulf %116, %11 : vector<8x8xf32>
    %118 = arith.addf %114, %117 : vector<8x8xf32>
    %c99 = arith.constant 99 : index
    %119 = memref.load %arg2[%c99] : memref<656xf32, #tpu.memory_space<smem>>
    %120 = vector.broadcast %119 : f32 to vector<8x8xf32>
    %121 = arith.addf %118, %120 : vector<8x8xf32>
    %cst_26 = arith.constant 0.000000e+00 : f32
    %122 = vector.broadcast %cst_26 : f32 to vector<8x8xf32>
    %123 = arith.maximumf %121, %122 : vector<8x8xf32>
    %c24 = arith.constant 24 : index
    %124 = memref.load %arg2[%c24] : memref<656xf32, #tpu.memory_space<smem>>
    %125 = vector.broadcast %124 : f32 to vector<8x8xf32>
    %126 = arith.mulf %125, %1 : vector<8x8xf32>
    %c25 = arith.constant 25 : index
    %127 = memref.load %arg2[%c25] : memref<656xf32, #tpu.memory_space<smem>>
    %128 = vector.broadcast %127 : f32 to vector<8x8xf32>
    %129 = arith.mulf %128, %3 : vector<8x8xf32>
    %130 = arith.addf %126, %129 : vector<8x8xf32>
    %c26 = arith.constant 26 : index
    %131 = memref.load %arg2[%c26] : memref<656xf32, #tpu.memory_space<smem>>
    %132 = vector.broadcast %131 : f32 to vector<8x8xf32>
    %133 = arith.mulf %132, %5 : vector<8x8xf32>
    %134 = arith.addf %130, %133 : vector<8x8xf32>
    %c27 = arith.constant 27 : index
    %135 = memref.load %arg2[%c27] : memref<656xf32, #tpu.memory_space<smem>>
    %136 = vector.broadcast %135 : f32 to vector<8x8xf32>
    %137 = arith.mulf %136, %7 : vector<8x8xf32>
    %138 = arith.addf %134, %137 : vector<8x8xf32>
    %c28 = arith.constant 28 : index
    %139 = memref.load %arg2[%c28] : memref<656xf32, #tpu.memory_space<smem>>
    %140 = vector.broadcast %139 : f32 to vector<8x8xf32>
    %141 = arith.mulf %140, %9 : vector<8x8xf32>
    %142 = arith.addf %138, %141 : vector<8x8xf32>
    %c29 = arith.constant 29 : index
    %143 = memref.load %arg2[%c29] : memref<656xf32, #tpu.memory_space<smem>>
    %144 = vector.broadcast %143 : f32 to vector<8x8xf32>
    %145 = arith.mulf %144, %11 : vector<8x8xf32>
    %146 = arith.addf %142, %145 : vector<8x8xf32>
    %c100 = arith.constant 100 : index
    %147 = memref.load %arg2[%c100] : memref<656xf32, #tpu.memory_space<smem>>
    %148 = vector.broadcast %147 : f32 to vector<8x8xf32>
    %149 = arith.addf %146, %148 : vector<8x8xf32>
    %cst_27 = arith.constant 0.000000e+00 : f32
    %150 = vector.broadcast %cst_27 : f32 to vector<8x8xf32>
    %151 = arith.maximumf %149, %150 : vector<8x8xf32>
    %c30 = arith.constant 30 : index
    %152 = memref.load %arg2[%c30] : memref<656xf32, #tpu.memory_space<smem>>
    %153 = vector.broadcast %152 : f32 to vector<8x8xf32>
    %154 = arith.mulf %153, %1 : vector<8x8xf32>
    %c31 = arith.constant 31 : index
    %155 = memref.load %arg2[%c31] : memref<656xf32, #tpu.memory_space<smem>>
    %156 = vector.broadcast %155 : f32 to vector<8x8xf32>
    %157 = arith.mulf %156, %3 : vector<8x8xf32>
    %158 = arith.addf %154, %157 : vector<8x8xf32>
    %c32 = arith.constant 32 : index
    %159 = memref.load %arg2[%c32] : memref<656xf32, #tpu.memory_space<smem>>
    %160 = vector.broadcast %159 : f32 to vector<8x8xf32>
    %161 = arith.mulf %160, %5 : vector<8x8xf32>
    %162 = arith.addf %158, %161 : vector<8x8xf32>
    %c33 = arith.constant 33 : index
    %163 = memref.load %arg2[%c33] : memref<656xf32, #tpu.memory_space<smem>>
    %164 = vector.broadcast %163 : f32 to vector<8x8xf32>
    %165 = arith.mulf %164, %7 : vector<8x8xf32>
    %166 = arith.addf %162, %165 : vector<8x8xf32>
    %c34 = arith.constant 34 : index
    %167 = memref.load %arg2[%c34] : memref<656xf32, #tpu.memory_space<smem>>
    %168 = vector.broadcast %167 : f32 to vector<8x8xf32>
    %169 = arith.mulf %168, %9 : vector<8x8xf32>
    %170 = arith.addf %166, %169 : vector<8x8xf32>
    %c35 = arith.constant 35 : index
    %171 = memref.load %arg2[%c35] : memref<656xf32, #tpu.memory_space<smem>>
    %172 = vector.broadcast %171 : f32 to vector<8x8xf32>
    %173 = arith.mulf %172, %11 : vector<8x8xf32>
    %174 = arith.addf %170, %173 : vector<8x8xf32>
    %c101 = arith.constant 101 : index
    %175 = memref.load %arg2[%c101] : memref<656xf32, #tpu.memory_space<smem>>
    %176 = vector.broadcast %175 : f32 to vector<8x8xf32>
    %177 = arith.addf %174, %176 : vector<8x8xf32>
    %cst_28 = arith.constant 0.000000e+00 : f32
    %178 = vector.broadcast %cst_28 : f32 to vector<8x8xf32>
    %179 = arith.maximumf %177, %178 : vector<8x8xf32>
    %c36 = arith.constant 36 : index
    %180 = memref.load %arg2[%c36] : memref<656xf32, #tpu.memory_space<smem>>
    %181 = vector.broadcast %180 : f32 to vector<8x8xf32>
    %182 = arith.mulf %181, %1 : vector<8x8xf32>
    %c37 = arith.constant 37 : index
    %183 = memref.load %arg2[%c37] : memref<656xf32, #tpu.memory_space<smem>>
    %184 = vector.broadcast %183 : f32 to vector<8x8xf32>
    %185 = arith.mulf %184, %3 : vector<8x8xf32>
    %186 = arith.addf %182, %185 : vector<8x8xf32>
    %c38 = arith.constant 38 : index
    %187 = memref.load %arg2[%c38] : memref<656xf32, #tpu.memory_space<smem>>
    %188 = vector.broadcast %187 : f32 to vector<8x8xf32>
    %189 = arith.mulf %188, %5 : vector<8x8xf32>
    %190 = arith.addf %186, %189 : vector<8x8xf32>
    %c39 = arith.constant 39 : index
    %191 = memref.load %arg2[%c39] : memref<656xf32, #tpu.memory_space<smem>>
    %192 = vector.broadcast %191 : f32 to vector<8x8xf32>
    %193 = arith.mulf %192, %7 : vector<8x8xf32>
    %194 = arith.addf %190, %193 : vector<8x8xf32>
    %c40 = arith.constant 40 : index
    %195 = memref.load %arg2[%c40] : memref<656xf32, #tpu.memory_space<smem>>
    %196 = vector.broadcast %195 : f32 to vector<8x8xf32>
    %197 = arith.mulf %196, %9 : vector<8x8xf32>
    %198 = arith.addf %194, %197 : vector<8x8xf32>
    %c41 = arith.constant 41 : index
    %199 = memref.load %arg2[%c41] : memref<656xf32, #tpu.memory_space<smem>>
    %200 = vector.broadcast %199 : f32 to vector<8x8xf32>
    %201 = arith.mulf %200, %11 : vector<8x8xf32>
    %202 = arith.addf %198, %201 : vector<8x8xf32>
    %c102 = arith.constant 102 : index
    %203 = memref.load %arg2[%c102] : memref<656xf32, #tpu.memory_space<smem>>
    %204 = vector.broadcast %203 : f32 to vector<8x8xf32>
    %205 = arith.addf %202, %204 : vector<8x8xf32>
    %cst_29 = arith.constant 0.000000e+00 : f32
    %206 = vector.broadcast %cst_29 : f32 to vector<8x8xf32>
    %207 = arith.maximumf %205, %206 : vector<8x8xf32>
    %c42 = arith.constant 42 : index
    %208 = memref.load %arg2[%c42] : memref<656xf32, #tpu.memory_space<smem>>
    %209 = vector.broadcast %208 : f32 to vector<8x8xf32>
    %210 = arith.mulf %209, %1 : vector<8x8xf32>
    %c43 = arith.constant 43 : index
    %211 = memref.load %arg2[%c43] : memref<656xf32, #tpu.memory_space<smem>>
    %212 = vector.broadcast %211 : f32 to vector<8x8xf32>
    %213 = arith.mulf %212, %3 : vector<8x8xf32>
    %214 = arith.addf %210, %213 : vector<8x8xf32>
    %c44 = arith.constant 44 : index
    %215 = memref.load %arg2[%c44] : memref<656xf32, #tpu.memory_space<smem>>
    %216 = vector.broadcast %215 : f32 to vector<8x8xf32>
    %217 = arith.mulf %216, %5 : vector<8x8xf32>
    %218 = arith.addf %214, %217 : vector<8x8xf32>
    %c45 = arith.constant 45 : index
    %219 = memref.load %arg2[%c45] : memref<656xf32, #tpu.memory_space<smem>>
    %220 = vector.broadcast %219 : f32 to vector<8x8xf32>
    %221 = arith.mulf %220, %7 : vector<8x8xf32>
    %222 = arith.addf %218, %221 : vector<8x8xf32>
    %c46 = arith.constant 46 : index
    %223 = memref.load %arg2[%c46] : memref<656xf32, #tpu.memory_space<smem>>
    %224 = vector.broadcast %223 : f32 to vector<8x8xf32>
    %225 = arith.mulf %224, %9 : vector<8x8xf32>
    %226 = arith.addf %222, %225 : vector<8x8xf32>
    %c47 = arith.constant 47 : index
    %227 = memref.load %arg2[%c47] : memref<656xf32, #tpu.memory_space<smem>>
    %228 = vector.broadcast %227 : f32 to vector<8x8xf32>
    %229 = arith.mulf %228, %11 : vector<8x8xf32>
    %230 = arith.addf %226, %229 : vector<8x8xf32>
    %c103 = arith.constant 103 : index
    %231 = memref.load %arg2[%c103] : memref<656xf32, #tpu.memory_space<smem>>
    %232 = vector.broadcast %231 : f32 to vector<8x8xf32>
    %233 = arith.addf %230, %232 : vector<8x8xf32>
    %cst_30 = arith.constant 0.000000e+00 : f32
    %234 = vector.broadcast %cst_30 : f32 to vector<8x8xf32>
    %235 = arith.maximumf %233, %234 : vector<8x8xf32>
    %c48 = arith.constant 48 : index
    %236 = memref.load %arg2[%c48] : memref<656xf32, #tpu.memory_space<smem>>
    %237 = vector.broadcast %236 : f32 to vector<8x8xf32>
    %238 = arith.mulf %237, %1 : vector<8x8xf32>
    %c49 = arith.constant 49 : index
    %239 = memref.load %arg2[%c49] : memref<656xf32, #tpu.memory_space<smem>>
    %240 = vector.broadcast %239 : f32 to vector<8x8xf32>
    %241 = arith.mulf %240, %3 : vector<8x8xf32>
    %242 = arith.addf %238, %241 : vector<8x8xf32>
    %c50 = arith.constant 50 : index
    %243 = memref.load %arg2[%c50] : memref<656xf32, #tpu.memory_space<smem>>
    %244 = vector.broadcast %243 : f32 to vector<8x8xf32>
    %245 = arith.mulf %244, %5 : vector<8x8xf32>
    %246 = arith.addf %242, %245 : vector<8x8xf32>
    %c51 = arith.constant 51 : index
    %247 = memref.load %arg2[%c51] : memref<656xf32, #tpu.memory_space<smem>>
    %248 = vector.broadcast %247 : f32 to vector<8x8xf32>
    %249 = arith.mulf %248, %7 : vector<8x8xf32>
    %250 = arith.addf %246, %249 : vector<8x8xf32>
    %c52 = arith.constant 52 : index
    %251 = memref.load %arg2[%c52] : memref<656xf32, #tpu.memory_space<smem>>
    %252 = vector.broadcast %251 : f32 to vector<8x8xf32>
    %253 = arith.mulf %252, %9 : vector<8x8xf32>
    %254 = arith.addf %250, %253 : vector<8x8xf32>
    %c53 = arith.constant 53 : index
    %255 = memref.load %arg2[%c53] : memref<656xf32, #tpu.memory_space<smem>>
    %256 = vector.broadcast %255 : f32 to vector<8x8xf32>
    %257 = arith.mulf %256, %11 : vector<8x8xf32>
    %258 = arith.addf %254, %257 : vector<8x8xf32>
    %c104 = arith.constant 104 : index
    %259 = memref.load %arg2[%c104] : memref<656xf32, #tpu.memory_space<smem>>
    %260 = vector.broadcast %259 : f32 to vector<8x8xf32>
    %261 = arith.addf %258, %260 : vector<8x8xf32>
    %cst_31 = arith.constant 0.000000e+00 : f32
    %262 = vector.broadcast %cst_31 : f32 to vector<8x8xf32>
    %263 = arith.maximumf %261, %262 : vector<8x8xf32>
    %c54 = arith.constant 54 : index
    %264 = memref.load %arg2[%c54] : memref<656xf32, #tpu.memory_space<smem>>
    %265 = vector.broadcast %264 : f32 to vector<8x8xf32>
    %266 = arith.mulf %265, %1 : vector<8x8xf32>
    %c55 = arith.constant 55 : index
    %267 = memref.load %arg2[%c55] : memref<656xf32, #tpu.memory_space<smem>>
    %268 = vector.broadcast %267 : f32 to vector<8x8xf32>
    %269 = arith.mulf %268, %3 : vector<8x8xf32>
    %270 = arith.addf %266, %269 : vector<8x8xf32>
    %c56 = arith.constant 56 : index
    %271 = memref.load %arg2[%c56] : memref<656xf32, #tpu.memory_space<smem>>
    %272 = vector.broadcast %271 : f32 to vector<8x8xf32>
    %273 = arith.mulf %272, %5 : vector<8x8xf32>
    %274 = arith.addf %270, %273 : vector<8x8xf32>
    %c57 = arith.constant 57 : index
    %275 = memref.load %arg2[%c57] : memref<656xf32, #tpu.memory_space<smem>>
    %276 = vector.broadcast %275 : f32 to vector<8x8xf32>
    %277 = arith.mulf %276, %7 : vector<8x8xf32>
    %278 = arith.addf %274, %277 : vector<8x8xf32>
    %c58 = arith.constant 58 : index
    %279 = memref.load %arg2[%c58] : memref<656xf32, #tpu.memory_space<smem>>
    %280 = vector.broadcast %279 : f32 to vector<8x8xf32>
    %281 = arith.mulf %280, %9 : vector<8x8xf32>
    %282 = arith.addf %278, %281 : vector<8x8xf32>
    %c59 = arith.constant 59 : index
    %283 = memref.load %arg2[%c59] : memref<656xf32, #tpu.memory_space<smem>>
    %284 = vector.broadcast %283 : f32 to vector<8x8xf32>
    %285 = arith.mulf %284, %11 : vector<8x8xf32>
    %286 = arith.addf %282, %285 : vector<8x8xf32>
    %c105 = arith.constant 105 : index
    %287 = memref.load %arg2[%c105] : memref<656xf32, #tpu.memory_space<smem>>
    %288 = vector.broadcast %287 : f32 to vector<8x8xf32>
    %289 = arith.addf %286, %288 : vector<8x8xf32>
    %cst_32 = arith.constant 0.000000e+00 : f32
    %290 = vector.broadcast %cst_32 : f32 to vector<8x8xf32>
    %291 = arith.maximumf %289, %290 : vector<8x8xf32>
    %c60 = arith.constant 60 : index
    %292 = memref.load %arg2[%c60] : memref<656xf32, #tpu.memory_space<smem>>
    %293 = vector.broadcast %292 : f32 to vector<8x8xf32>
    %294 = arith.mulf %293, %1 : vector<8x8xf32>
    %c61 = arith.constant 61 : index
    %295 = memref.load %arg2[%c61] : memref<656xf32, #tpu.memory_space<smem>>
    %296 = vector.broadcast %295 : f32 to vector<8x8xf32>
    %297 = arith.mulf %296, %3 : vector<8x8xf32>
    %298 = arith.addf %294, %297 : vector<8x8xf32>
    %c62 = arith.constant 62 : index
    %299 = memref.load %arg2[%c62] : memref<656xf32, #tpu.memory_space<smem>>
    %300 = vector.broadcast %299 : f32 to vector<8x8xf32>
    %301 = arith.mulf %300, %5 : vector<8x8xf32>
    %302 = arith.addf %298, %301 : vector<8x8xf32>
    %c63 = arith.constant 63 : index
    %303 = memref.load %arg2[%c63] : memref<656xf32, #tpu.memory_space<smem>>
    %304 = vector.broadcast %303 : f32 to vector<8x8xf32>
    %305 = arith.mulf %304, %7 : vector<8x8xf32>
    %306 = arith.addf %302, %305 : vector<8x8xf32>
    %c64 = arith.constant 64 : index
    %307 = memref.load %arg2[%c64] : memref<656xf32, #tpu.memory_space<smem>>
    %308 = vector.broadcast %307 : f32 to vector<8x8xf32>
    %309 = arith.mulf %308, %9 : vector<8x8xf32>
    %310 = arith.addf %306, %309 : vector<8x8xf32>
    %c65 = arith.constant 65 : index
    %311 = memref.load %arg2[%c65] : memref<656xf32, #tpu.memory_space<smem>>
    %312 = vector.broadcast %311 : f32 to vector<8x8xf32>
    %313 = arith.mulf %312, %11 : vector<8x8xf32>
    %314 = arith.addf %310, %313 : vector<8x8xf32>
    %c106 = arith.constant 106 : index
    %315 = memref.load %arg2[%c106] : memref<656xf32, #tpu.memory_space<smem>>
    %316 = vector.broadcast %315 : f32 to vector<8x8xf32>
    %317 = arith.addf %314, %316 : vector<8x8xf32>
    %cst_33 = arith.constant 0.000000e+00 : f32
    %318 = vector.broadcast %cst_33 : f32 to vector<8x8xf32>
    %319 = arith.maximumf %317, %318 : vector<8x8xf32>
    %c66 = arith.constant 66 : index
    %320 = memref.load %arg2[%c66] : memref<656xf32, #tpu.memory_space<smem>>
    %321 = vector.broadcast %320 : f32 to vector<8x8xf32>
    %322 = arith.mulf %321, %1 : vector<8x8xf32>
    %c67 = arith.constant 67 : index
    %323 = memref.load %arg2[%c67] : memref<656xf32, #tpu.memory_space<smem>>
    %324 = vector.broadcast %323 : f32 to vector<8x8xf32>
    %325 = arith.mulf %324, %3 : vector<8x8xf32>
    %326 = arith.addf %322, %325 : vector<8x8xf32>
    %c68 = arith.constant 68 : index
    %327 = memref.load %arg2[%c68] : memref<656xf32, #tpu.memory_space<smem>>
    %328 = vector.broadcast %327 : f32 to vector<8x8xf32>
    %329 = arith.mulf %328, %5 : vector<8x8xf32>
    %330 = arith.addf %326, %329 : vector<8x8xf32>
    %c69 = arith.constant 69 : index
    %331 = memref.load %arg2[%c69] : memref<656xf32, #tpu.memory_space<smem>>
    %332 = vector.broadcast %331 : f32 to vector<8x8xf32>
    %333 = arith.mulf %332, %7 : vector<8x8xf32>
    %334 = arith.addf %330, %333 : vector<8x8xf32>
    %c70 = arith.constant 70 : index
    %335 = memref.load %arg2[%c70] : memref<656xf32, #tpu.memory_space<smem>>
    %336 = vector.broadcast %335 : f32 to vector<8x8xf32>
    %337 = arith.mulf %336, %9 : vector<8x8xf32>
    %338 = arith.addf %334, %337 : vector<8x8xf32>
    %c71 = arith.constant 71 : index
    %339 = memref.load %arg2[%c71] : memref<656xf32, #tpu.memory_space<smem>>
    %340 = vector.broadcast %339 : f32 to vector<8x8xf32>
    %341 = arith.mulf %340, %11 : vector<8x8xf32>
    %342 = arith.addf %338, %341 : vector<8x8xf32>
    %c107 = arith.constant 107 : index
    %343 = memref.load %arg2[%c107] : memref<656xf32, #tpu.memory_space<smem>>
    %344 = vector.broadcast %343 : f32 to vector<8x8xf32>
    %345 = arith.addf %342, %344 : vector<8x8xf32>
    %cst_34 = arith.constant 0.000000e+00 : f32
    %346 = vector.broadcast %cst_34 : f32 to vector<8x8xf32>
    %347 = arith.maximumf %345, %346 : vector<8x8xf32>
    %c72 = arith.constant 72 : index
    %348 = memref.load %arg2[%c72] : memref<656xf32, #tpu.memory_space<smem>>
    %349 = vector.broadcast %348 : f32 to vector<8x8xf32>
    %350 = arith.mulf %349, %1 : vector<8x8xf32>
    %c73 = arith.constant 73 : index
    %351 = memref.load %arg2[%c73] : memref<656xf32, #tpu.memory_space<smem>>
    %352 = vector.broadcast %351 : f32 to vector<8x8xf32>
    %353 = arith.mulf %352, %3 : vector<8x8xf32>
    %354 = arith.addf %350, %353 : vector<8x8xf32>
    %c74 = arith.constant 74 : index
    %355 = memref.load %arg2[%c74] : memref<656xf32, #tpu.memory_space<smem>>
    %356 = vector.broadcast %355 : f32 to vector<8x8xf32>
    %357 = arith.mulf %356, %5 : vector<8x8xf32>
    %358 = arith.addf %354, %357 : vector<8x8xf32>
    %c75 = arith.constant 75 : index
    %359 = memref.load %arg2[%c75] : memref<656xf32, #tpu.memory_space<smem>>
    %360 = vector.broadcast %359 : f32 to vector<8x8xf32>
    %361 = arith.mulf %360, %7 : vector<8x8xf32>
    %362 = arith.addf %358, %361 : vector<8x8xf32>
    %c76 = arith.constant 76 : index
    %363 = memref.load %arg2[%c76] : memref<656xf32, #tpu.memory_space<smem>>
    %364 = vector.broadcast %363 : f32 to vector<8x8xf32>
    %365 = arith.mulf %364, %9 : vector<8x8xf32>
    %366 = arith.addf %362, %365 : vector<8x8xf32>
    %c77 = arith.constant 77 : index
    %367 = memref.load %arg2[%c77] : memref<656xf32, #tpu.memory_space<smem>>
    %368 = vector.broadcast %367 : f32 to vector<8x8xf32>
    %369 = arith.mulf %368, %11 : vector<8x8xf32>
    %370 = arith.addf %366, %369 : vector<8x8xf32>
    %c108 = arith.constant 108 : index
    %371 = memref.load %arg2[%c108] : memref<656xf32, #tpu.memory_space<smem>>
    %372 = vector.broadcast %371 : f32 to vector<8x8xf32>
    %373 = arith.addf %370, %372 : vector<8x8xf32>
    %cst_35 = arith.constant 0.000000e+00 : f32
    %374 = vector.broadcast %cst_35 : f32 to vector<8x8xf32>
    %375 = arith.maximumf %373, %374 : vector<8x8xf32>
    %c78 = arith.constant 78 : index
    %376 = memref.load %arg2[%c78] : memref<656xf32, #tpu.memory_space<smem>>
    %377 = vector.broadcast %376 : f32 to vector<8x8xf32>
    %378 = arith.mulf %377, %1 : vector<8x8xf32>
    %c79 = arith.constant 79 : index
    %379 = memref.load %arg2[%c79] : memref<656xf32, #tpu.memory_space<smem>>
    %380 = vector.broadcast %379 : f32 to vector<8x8xf32>
    %381 = arith.mulf %380, %3 : vector<8x8xf32>
    %382 = arith.addf %378, %381 : vector<8x8xf32>
    %c80 = arith.constant 80 : index
    %383 = memref.load %arg2[%c80] : memref<656xf32, #tpu.memory_space<smem>>
    %384 = vector.broadcast %383 : f32 to vector<8x8xf32>
    %385 = arith.mulf %384, %5 : vector<8x8xf32>
    %386 = arith.addf %382, %385 : vector<8x8xf32>
    %c81 = arith.constant 81 : index
    %387 = memref.load %arg2[%c81] : memref<656xf32, #tpu.memory_space<smem>>
    %388 = vector.broadcast %387 : f32 to vector<8x8xf32>
    %389 = arith.mulf %388, %7 : vector<8x8xf32>
    %390 = arith.addf %386, %389 : vector<8x8xf32>
    %c82 = arith.constant 82 : index
    %391 = memref.load %arg2[%c82] : memref<656xf32, #tpu.memory_space<smem>>
    %392 = vector.broadcast %391 : f32 to vector<8x8xf32>
    %393 = arith.mulf %392, %9 : vector<8x8xf32>
    %394 = arith.addf %390, %393 : vector<8x8xf32>
    %c83 = arith.constant 83 : index
    %395 = memref.load %arg2[%c83] : memref<656xf32, #tpu.memory_space<smem>>
    %396 = vector.broadcast %395 : f32 to vector<8x8xf32>
    %397 = arith.mulf %396, %11 : vector<8x8xf32>
    %398 = arith.addf %394, %397 : vector<8x8xf32>
    %c109 = arith.constant 109 : index
    %399 = memref.load %arg2[%c109] : memref<656xf32, #tpu.memory_space<smem>>
    %400 = vector.broadcast %399 : f32 to vector<8x8xf32>
    %401 = arith.addf %398, %400 : vector<8x8xf32>
    %cst_36 = arith.constant 0.000000e+00 : f32
    %402 = vector.broadcast %cst_36 : f32 to vector<8x8xf32>
    %403 = arith.maximumf %401, %402 : vector<8x8xf32>
    %c84 = arith.constant 84 : index
    %404 = memref.load %arg2[%c84] : memref<656xf32, #tpu.memory_space<smem>>
    %405 = vector.broadcast %404 : f32 to vector<8x8xf32>
    %406 = arith.mulf %405, %1 : vector<8x8xf32>
    %c85 = arith.constant 85 : index
    %407 = memref.load %arg2[%c85] : memref<656xf32, #tpu.memory_space<smem>>
    %408 = vector.broadcast %407 : f32 to vector<8x8xf32>
    %409 = arith.mulf %408, %3 : vector<8x8xf32>
    %410 = arith.addf %406, %409 : vector<8x8xf32>
    %c86 = arith.constant 86 : index
    %411 = memref.load %arg2[%c86] : memref<656xf32, #tpu.memory_space<smem>>
    %412 = vector.broadcast %411 : f32 to vector<8x8xf32>
    %413 = arith.mulf %412, %5 : vector<8x8xf32>
    %414 = arith.addf %410, %413 : vector<8x8xf32>
    %c87 = arith.constant 87 : index
    %415 = memref.load %arg2[%c87] : memref<656xf32, #tpu.memory_space<smem>>
    %416 = vector.broadcast %415 : f32 to vector<8x8xf32>
    %417 = arith.mulf %416, %7 : vector<8x8xf32>
    %418 = arith.addf %414, %417 : vector<8x8xf32>
    %c88 = arith.constant 88 : index
    %419 = memref.load %arg2[%c88] : memref<656xf32, #tpu.memory_space<smem>>
    %420 = vector.broadcast %419 : f32 to vector<8x8xf32>
    %421 = arith.mulf %420, %9 : vector<8x8xf32>
    %422 = arith.addf %418, %421 : vector<8x8xf32>
    %c89 = arith.constant 89 : index
    %423 = memref.load %arg2[%c89] : memref<656xf32, #tpu.memory_space<smem>>
    %424 = vector.broadcast %423 : f32 to vector<8x8xf32>
    %425 = arith.mulf %424, %11 : vector<8x8xf32>
    %426 = arith.addf %422, %425 : vector<8x8xf32>
    %c110 = arith.constant 110 : index
    %427 = memref.load %arg2[%c110] : memref<656xf32, #tpu.memory_space<smem>>
    %428 = vector.broadcast %427 : f32 to vector<8x8xf32>
    %429 = arith.addf %426, %428 : vector<8x8xf32>
    %cst_37 = arith.constant 0.000000e+00 : f32
    %430 = vector.broadcast %cst_37 : f32 to vector<8x8xf32>
    %431 = arith.maximumf %429, %430 : vector<8x8xf32>
    %c90 = arith.constant 90 : index
    %432 = memref.load %arg2[%c90] : memref<656xf32, #tpu.memory_space<smem>>
    %433 = vector.broadcast %432 : f32 to vector<8x8xf32>
    %434 = arith.mulf %433, %1 : vector<8x8xf32>
    %c91 = arith.constant 91 : index
    %435 = memref.load %arg2[%c91] : memref<656xf32, #tpu.memory_space<smem>>
    %436 = vector.broadcast %435 : f32 to vector<8x8xf32>
    %437 = arith.mulf %436, %3 : vector<8x8xf32>
    %438 = arith.addf %434, %437 : vector<8x8xf32>
    %c92 = arith.constant 92 : index
    %439 = memref.load %arg2[%c92] : memref<656xf32, #tpu.memory_space<smem>>
    %440 = vector.broadcast %439 : f32 to vector<8x8xf32>
    %441 = arith.mulf %440, %5 : vector<8x8xf32>
    %442 = arith.addf %438, %441 : vector<8x8xf32>
    %c93 = arith.constant 93 : index
    %443 = memref.load %arg2[%c93] : memref<656xf32, #tpu.memory_space<smem>>
    %444 = vector.broadcast %443 : f32 to vector<8x8xf32>
    %445 = arith.mulf %444, %7 : vector<8x8xf32>
    %446 = arith.addf %442, %445 : vector<8x8xf32>
    %c94 = arith.constant 94 : index
    %447 = memref.load %arg2[%c94] : memref<656xf32, #tpu.memory_space<smem>>
    %448 = vector.broadcast %447 : f32 to vector<8x8xf32>
    %449 = arith.mulf %448, %9 : vector<8x8xf32>
    %450 = arith.addf %446, %449 : vector<8x8xf32>
    %c95 = arith.constant 95 : index
    %451 = memref.load %arg2[%c95] : memref<656xf32, #tpu.memory_space<smem>>
    %452 = vector.broadcast %451 : f32 to vector<8x8xf32>
    %453 = arith.mulf %452, %11 : vector<8x8xf32>
    %454 = arith.addf %450, %453 : vector<8x8xf32>
    %c111 = arith.constant 111 : index
    %455 = memref.load %arg2[%c111] : memref<656xf32, #tpu.memory_space<smem>>
    %456 = vector.broadcast %455 : f32 to vector<8x8xf32>
    %457 = arith.addf %454, %456 : vector<8x8xf32>
    %cst_38 = arith.constant 0.000000e+00 : f32
    %458 = vector.broadcast %cst_38 : f32 to vector<8x8xf32>
    %459 = arith.maximumf %457, %458 : vector<8x8xf32>
    %c112 = arith.constant 112 : index
    %460 = memref.load %arg2[%c112] : memref<656xf32, #tpu.memory_space<smem>>
    %461 = vector.broadcast %460 : f32 to vector<8x8xf32>
    %462 = arith.mulf %461, %39 : vector<8x8xf32>
    %c113 = arith.constant 113 : index
    %463 = memref.load %arg2[%c113] : memref<656xf32, #tpu.memory_space<smem>>
    %464 = vector.broadcast %463 : f32 to vector<8x8xf32>
    %465 = arith.mulf %464, %67 : vector<8x8xf32>
    %466 = arith.addf %462, %465 : vector<8x8xf32>
    %c114 = arith.constant 114 : index
    %467 = memref.load %arg2[%c114] : memref<656xf32, #tpu.memory_space<smem>>
    %468 = vector.broadcast %467 : f32 to vector<8x8xf32>
    %469 = arith.mulf %468, %95 : vector<8x8xf32>
    %470 = arith.addf %466, %469 : vector<8x8xf32>
    %c115 = arith.constant 115 : index
    %471 = memref.load %arg2[%c115] : memref<656xf32, #tpu.memory_space<smem>>
    %472 = vector.broadcast %471 : f32 to vector<8x8xf32>
    %473 = arith.mulf %472, %123 : vector<8x8xf32>
    %474 = arith.addf %470, %473 : vector<8x8xf32>
    %c116 = arith.constant 116 : index
    %475 = memref.load %arg2[%c116] : memref<656xf32, #tpu.memory_space<smem>>
    %476 = vector.broadcast %475 : f32 to vector<8x8xf32>
    %477 = arith.mulf %476, %151 : vector<8x8xf32>
    %478 = arith.addf %474, %477 : vector<8x8xf32>
    %c117 = arith.constant 117 : index
    %479 = memref.load %arg2[%c117] : memref<656xf32, #tpu.memory_space<smem>>
    %480 = vector.broadcast %479 : f32 to vector<8x8xf32>
    %481 = arith.mulf %480, %179 : vector<8x8xf32>
    %482 = arith.addf %478, %481 : vector<8x8xf32>
    %c118 = arith.constant 118 : index
    %483 = memref.load %arg2[%c118] : memref<656xf32, #tpu.memory_space<smem>>
    %484 = vector.broadcast %483 : f32 to vector<8x8xf32>
    %485 = arith.mulf %484, %207 : vector<8x8xf32>
    %486 = arith.addf %482, %485 : vector<8x8xf32>
    %c119 = arith.constant 119 : index
    %487 = memref.load %arg2[%c119] : memref<656xf32, #tpu.memory_space<smem>>
    %488 = vector.broadcast %487 : f32 to vector<8x8xf32>
    %489 = arith.mulf %488, %235 : vector<8x8xf32>
    %490 = arith.addf %486, %489 : vector<8x8xf32>
    %c120 = arith.constant 120 : index
    %491 = memref.load %arg2[%c120] : memref<656xf32, #tpu.memory_space<smem>>
    %492 = vector.broadcast %491 : f32 to vector<8x8xf32>
    %493 = arith.mulf %492, %263 : vector<8x8xf32>
    %494 = arith.addf %490, %493 : vector<8x8xf32>
    %c121 = arith.constant 121 : index
    %495 = memref.load %arg2[%c121] : memref<656xf32, #tpu.memory_space<smem>>
    %496 = vector.broadcast %495 : f32 to vector<8x8xf32>
    %497 = arith.mulf %496, %291 : vector<8x8xf32>
    %498 = arith.addf %494, %497 : vector<8x8xf32>
    %c122 = arith.constant 122 : index
    %499 = memref.load %arg2[%c122] : memref<656xf32, #tpu.memory_space<smem>>
    %500 = vector.broadcast %499 : f32 to vector<8x8xf32>
    %501 = arith.mulf %500, %319 : vector<8x8xf32>
    %502 = arith.addf %498, %501 : vector<8x8xf32>
    %c123 = arith.constant 123 : index
    %503 = memref.load %arg2[%c123] : memref<656xf32, #tpu.memory_space<smem>>
    %504 = vector.broadcast %503 : f32 to vector<8x8xf32>
    %505 = arith.mulf %504, %347 : vector<8x8xf32>
    %506 = arith.addf %502, %505 : vector<8x8xf32>
    %c124 = arith.constant 124 : index
    %507 = memref.load %arg2[%c124] : memref<656xf32, #tpu.memory_space<smem>>
    %508 = vector.broadcast %507 : f32 to vector<8x8xf32>
    %509 = arith.mulf %508, %375 : vector<8x8xf32>
    %510 = arith.addf %506, %509 : vector<8x8xf32>
    %c125 = arith.constant 125 : index
    %511 = memref.load %arg2[%c125] : memref<656xf32, #tpu.memory_space<smem>>
    %512 = vector.broadcast %511 : f32 to vector<8x8xf32>
    %513 = arith.mulf %512, %403 : vector<8x8xf32>
    %514 = arith.addf %510, %513 : vector<8x8xf32>
    %c126 = arith.constant 126 : index
    %515 = memref.load %arg2[%c126] : memref<656xf32, #tpu.memory_space<smem>>
    %516 = vector.broadcast %515 : f32 to vector<8x8xf32>
    %517 = arith.mulf %516, %431 : vector<8x8xf32>
    %518 = arith.addf %514, %517 : vector<8x8xf32>
    %c127 = arith.constant 127 : index
    %519 = memref.load %arg2[%c127] : memref<656xf32, #tpu.memory_space<smem>>
    %520 = vector.broadcast %519 : f32 to vector<8x8xf32>
    %521 = arith.mulf %520, %459 : vector<8x8xf32>
    %522 = arith.addf %518, %521 : vector<8x8xf32>
    %c624 = arith.constant 624 : index
    %523 = memref.load %arg2[%c624] : memref<656xf32, #tpu.memory_space<smem>>
    %524 = vector.broadcast %523 : f32 to vector<8x8xf32>
    %525 = arith.addf %522, %524 : vector<8x8xf32>
    %cst_39 = arith.constant 0.000000e+00 : f32
    %526 = vector.broadcast %cst_39 : f32 to vector<8x8xf32>
    %527 = arith.maximumf %525, %526 : vector<8x8xf32>
    %c128 = arith.constant 128 : index
    %528 = memref.load %arg2[%c128] : memref<656xf32, #tpu.memory_space<smem>>
    %529 = vector.broadcast %528 : f32 to vector<8x8xf32>
    %530 = arith.mulf %529, %39 : vector<8x8xf32>
    %c129 = arith.constant 129 : index
    %531 = memref.load %arg2[%c129] : memref<656xf32, #tpu.memory_space<smem>>
    %532 = vector.broadcast %531 : f32 to vector<8x8xf32>
    %533 = arith.mulf %532, %67 : vector<8x8xf32>
    %534 = arith.addf %530, %533 : vector<8x8xf32>
    %c130 = arith.constant 130 : index
    %535 = memref.load %arg2[%c130] : memref<656xf32, #tpu.memory_space<smem>>
    %536 = vector.broadcast %535 : f32 to vector<8x8xf32>
    %537 = arith.mulf %536, %95 : vector<8x8xf32>
    %538 = arith.addf %534, %537 : vector<8x8xf32>
    %c131 = arith.constant 131 : index
    %539 = memref.load %arg2[%c131] : memref<656xf32, #tpu.memory_space<smem>>
    %540 = vector.broadcast %539 : f32 to vector<8x8xf32>
    %541 = arith.mulf %540, %123 : vector<8x8xf32>
    %542 = arith.addf %538, %541 : vector<8x8xf32>
    %c132 = arith.constant 132 : index
    %543 = memref.load %arg2[%c132] : memref<656xf32, #tpu.memory_space<smem>>
    %544 = vector.broadcast %543 : f32 to vector<8x8xf32>
    %545 = arith.mulf %544, %151 : vector<8x8xf32>
    %546 = arith.addf %542, %545 : vector<8x8xf32>
    %c133 = arith.constant 133 : index
    %547 = memref.load %arg2[%c133] : memref<656xf32, #tpu.memory_space<smem>>
    %548 = vector.broadcast %547 : f32 to vector<8x8xf32>
    %549 = arith.mulf %548, %179 : vector<8x8xf32>
    %550 = arith.addf %546, %549 : vector<8x8xf32>
    %c134 = arith.constant 134 : index
    %551 = memref.load %arg2[%c134] : memref<656xf32, #tpu.memory_space<smem>>
    %552 = vector.broadcast %551 : f32 to vector<8x8xf32>
    %553 = arith.mulf %552, %207 : vector<8x8xf32>
    %554 = arith.addf %550, %553 : vector<8x8xf32>
    %c135 = arith.constant 135 : index
    %555 = memref.load %arg2[%c135] : memref<656xf32, #tpu.memory_space<smem>>
    %556 = vector.broadcast %555 : f32 to vector<8x8xf32>
    %557 = arith.mulf %556, %235 : vector<8x8xf32>
    %558 = arith.addf %554, %557 : vector<8x8xf32>
    %c136 = arith.constant 136 : index
    %559 = memref.load %arg2[%c136] : memref<656xf32, #tpu.memory_space<smem>>
    %560 = vector.broadcast %559 : f32 to vector<8x8xf32>
    %561 = arith.mulf %560, %263 : vector<8x8xf32>
    %562 = arith.addf %558, %561 : vector<8x8xf32>
    %c137 = arith.constant 137 : index
    %563 = memref.load %arg2[%c137] : memref<656xf32, #tpu.memory_space<smem>>
    %564 = vector.broadcast %563 : f32 to vector<8x8xf32>
    %565 = arith.mulf %564, %291 : vector<8x8xf32>
    %566 = arith.addf %562, %565 : vector<8x8xf32>
    %c138 = arith.constant 138 : index
    %567 = memref.load %arg2[%c138] : memref<656xf32, #tpu.memory_space<smem>>
    %568 = vector.broadcast %567 : f32 to vector<8x8xf32>
    %569 = arith.mulf %568, %319 : vector<8x8xf32>
    %570 = arith.addf %566, %569 : vector<8x8xf32>
    %c139 = arith.constant 139 : index
    %571 = memref.load %arg2[%c139] : memref<656xf32, #tpu.memory_space<smem>>
    %572 = vector.broadcast %571 : f32 to vector<8x8xf32>
    %573 = arith.mulf %572, %347 : vector<8x8xf32>
    %574 = arith.addf %570, %573 : vector<8x8xf32>
    %c140 = arith.constant 140 : index
    %575 = memref.load %arg2[%c140] : memref<656xf32, #tpu.memory_space<smem>>
    %576 = vector.broadcast %575 : f32 to vector<8x8xf32>
    %577 = arith.mulf %576, %375 : vector<8x8xf32>
    %578 = arith.addf %574, %577 : vector<8x8xf32>
    %c141 = arith.constant 141 : index
    %579 = memref.load %arg2[%c141] : memref<656xf32, #tpu.memory_space<smem>>
    %580 = vector.broadcast %579 : f32 to vector<8x8xf32>
    %581 = arith.mulf %580, %403 : vector<8x8xf32>
    %582 = arith.addf %578, %581 : vector<8x8xf32>
    %c142 = arith.constant 142 : index
    %583 = memref.load %arg2[%c142] : memref<656xf32, #tpu.memory_space<smem>>
    %584 = vector.broadcast %583 : f32 to vector<8x8xf32>
    %585 = arith.mulf %584, %431 : vector<8x8xf32>
    %586 = arith.addf %582, %585 : vector<8x8xf32>
    %c143 = arith.constant 143 : index
    %587 = memref.load %arg2[%c143] : memref<656xf32, #tpu.memory_space<smem>>
    %588 = vector.broadcast %587 : f32 to vector<8x8xf32>
    %589 = arith.mulf %588, %459 : vector<8x8xf32>
    %590 = arith.addf %586, %589 : vector<8x8xf32>
    %c625 = arith.constant 625 : index
    %591 = memref.load %arg2[%c625] : memref<656xf32, #tpu.memory_space<smem>>
    %592 = vector.broadcast %591 : f32 to vector<8x8xf32>
    %593 = arith.addf %590, %592 : vector<8x8xf32>
    %cst_40 = arith.constant 0.000000e+00 : f32
    %594 = vector.broadcast %cst_40 : f32 to vector<8x8xf32>
    %595 = arith.maximumf %593, %594 : vector<8x8xf32>
    %c144 = arith.constant 144 : index
    %596 = memref.load %arg2[%c144] : memref<656xf32, #tpu.memory_space<smem>>
    %597 = vector.broadcast %596 : f32 to vector<8x8xf32>
    %598 = arith.mulf %597, %39 : vector<8x8xf32>
    %c145 = arith.constant 145 : index
    %599 = memref.load %arg2[%c145] : memref<656xf32, #tpu.memory_space<smem>>
    %600 = vector.broadcast %599 : f32 to vector<8x8xf32>
    %601 = arith.mulf %600, %67 : vector<8x8xf32>
    %602 = arith.addf %598, %601 : vector<8x8xf32>
    %c146 = arith.constant 146 : index
    %603 = memref.load %arg2[%c146] : memref<656xf32, #tpu.memory_space<smem>>
    %604 = vector.broadcast %603 : f32 to vector<8x8xf32>
    %605 = arith.mulf %604, %95 : vector<8x8xf32>
    %606 = arith.addf %602, %605 : vector<8x8xf32>
    %c147 = arith.constant 147 : index
    %607 = memref.load %arg2[%c147] : memref<656xf32, #tpu.memory_space<smem>>
    %608 = vector.broadcast %607 : f32 to vector<8x8xf32>
    %609 = arith.mulf %608, %123 : vector<8x8xf32>
    %610 = arith.addf %606, %609 : vector<8x8xf32>
    %c148 = arith.constant 148 : index
    %611 = memref.load %arg2[%c148] : memref<656xf32, #tpu.memory_space<smem>>
    %612 = vector.broadcast %611 : f32 to vector<8x8xf32>
    %613 = arith.mulf %612, %151 : vector<8x8xf32>
    %614 = arith.addf %610, %613 : vector<8x8xf32>
    %c149 = arith.constant 149 : index
    %615 = memref.load %arg2[%c149] : memref<656xf32, #tpu.memory_space<smem>>
    %616 = vector.broadcast %615 : f32 to vector<8x8xf32>
    %617 = arith.mulf %616, %179 : vector<8x8xf32>
    %618 = arith.addf %614, %617 : vector<8x8xf32>
    %c150 = arith.constant 150 : index
    %619 = memref.load %arg2[%c150] : memref<656xf32, #tpu.memory_space<smem>>
    %620 = vector.broadcast %619 : f32 to vector<8x8xf32>
    %621 = arith.mulf %620, %207 : vector<8x8xf32>
    %622 = arith.addf %618, %621 : vector<8x8xf32>
    %c151 = arith.constant 151 : index
    %623 = memref.load %arg2[%c151] : memref<656xf32, #tpu.memory_space<smem>>
    %624 = vector.broadcast %623 : f32 to vector<8x8xf32>
    %625 = arith.mulf %624, %235 : vector<8x8xf32>
    %626 = arith.addf %622, %625 : vector<8x8xf32>
    %c152 = arith.constant 152 : index
    %627 = memref.load %arg2[%c152] : memref<656xf32, #tpu.memory_space<smem>>
    %628 = vector.broadcast %627 : f32 to vector<8x8xf32>
    %629 = arith.mulf %628, %263 : vector<8x8xf32>
    %630 = arith.addf %626, %629 : vector<8x8xf32>
    %c153 = arith.constant 153 : index
    %631 = memref.load %arg2[%c153] : memref<656xf32, #tpu.memory_space<smem>>
    %632 = vector.broadcast %631 : f32 to vector<8x8xf32>
    %633 = arith.mulf %632, %291 : vector<8x8xf32>
    %634 = arith.addf %630, %633 : vector<8x8xf32>
    %c154 = arith.constant 154 : index
    %635 = memref.load %arg2[%c154] : memref<656xf32, #tpu.memory_space<smem>>
    %636 = vector.broadcast %635 : f32 to vector<8x8xf32>
    %637 = arith.mulf %636, %319 : vector<8x8xf32>
    %638 = arith.addf %634, %637 : vector<8x8xf32>
    %c155 = arith.constant 155 : index
    %639 = memref.load %arg2[%c155] : memref<656xf32, #tpu.memory_space<smem>>
    %640 = vector.broadcast %639 : f32 to vector<8x8xf32>
    %641 = arith.mulf %640, %347 : vector<8x8xf32>
    %642 = arith.addf %638, %641 : vector<8x8xf32>
    %c156 = arith.constant 156 : index
    %643 = memref.load %arg2[%c156] : memref<656xf32, #tpu.memory_space<smem>>
    %644 = vector.broadcast %643 : f32 to vector<8x8xf32>
    %645 = arith.mulf %644, %375 : vector<8x8xf32>
    %646 = arith.addf %642, %645 : vector<8x8xf32>
    %c157 = arith.constant 157 : index
    %647 = memref.load %arg2[%c157] : memref<656xf32, #tpu.memory_space<smem>>
    %648 = vector.broadcast %647 : f32 to vector<8x8xf32>
    %649 = arith.mulf %648, %403 : vector<8x8xf32>
    %650 = arith.addf %646, %649 : vector<8x8xf32>
    %c158 = arith.constant 158 : index
    %651 = memref.load %arg2[%c158] : memref<656xf32, #tpu.memory_space<smem>>
    %652 = vector.broadcast %651 : f32 to vector<8x8xf32>
    %653 = arith.mulf %652, %431 : vector<8x8xf32>
    %654 = arith.addf %650, %653 : vector<8x8xf32>
    %c159 = arith.constant 159 : index
    %655 = memref.load %arg2[%c159] : memref<656xf32, #tpu.memory_space<smem>>
    %656 = vector.broadcast %655 : f32 to vector<8x8xf32>
    %657 = arith.mulf %656, %459 : vector<8x8xf32>
    %658 = arith.addf %654, %657 : vector<8x8xf32>
    %c626 = arith.constant 626 : index
    %659 = memref.load %arg2[%c626] : memref<656xf32, #tpu.memory_space<smem>>
    %660 = vector.broadcast %659 : f32 to vector<8x8xf32>
    %661 = arith.addf %658, %660 : vector<8x8xf32>
    %cst_41 = arith.constant 0.000000e+00 : f32
    %662 = vector.broadcast %cst_41 : f32 to vector<8x8xf32>
    %663 = arith.maximumf %661, %662 : vector<8x8xf32>
    %c160 = arith.constant 160 : index
    %664 = memref.load %arg2[%c160] : memref<656xf32, #tpu.memory_space<smem>>
    %665 = vector.broadcast %664 : f32 to vector<8x8xf32>
    %666 = arith.mulf %665, %39 : vector<8x8xf32>
    %c161 = arith.constant 161 : index
    %667 = memref.load %arg2[%c161] : memref<656xf32, #tpu.memory_space<smem>>
    %668 = vector.broadcast %667 : f32 to vector<8x8xf32>
    %669 = arith.mulf %668, %67 : vector<8x8xf32>
    %670 = arith.addf %666, %669 : vector<8x8xf32>
    %c162 = arith.constant 162 : index
    %671 = memref.load %arg2[%c162] : memref<656xf32, #tpu.memory_space<smem>>
    %672 = vector.broadcast %671 : f32 to vector<8x8xf32>
    %673 = arith.mulf %672, %95 : vector<8x8xf32>
    %674 = arith.addf %670, %673 : vector<8x8xf32>
    %c163 = arith.constant 163 : index
    %675 = memref.load %arg2[%c163] : memref<656xf32, #tpu.memory_space<smem>>
    %676 = vector.broadcast %675 : f32 to vector<8x8xf32>
    %677 = arith.mulf %676, %123 : vector<8x8xf32>
    %678 = arith.addf %674, %677 : vector<8x8xf32>
    %c164 = arith.constant 164 : index
    %679 = memref.load %arg2[%c164] : memref<656xf32, #tpu.memory_space<smem>>
    %680 = vector.broadcast %679 : f32 to vector<8x8xf32>
    %681 = arith.mulf %680, %151 : vector<8x8xf32>
    %682 = arith.addf %678, %681 : vector<8x8xf32>
    %c165 = arith.constant 165 : index
    %683 = memref.load %arg2[%c165] : memref<656xf32, #tpu.memory_space<smem>>
    %684 = vector.broadcast %683 : f32 to vector<8x8xf32>
    %685 = arith.mulf %684, %179 : vector<8x8xf32>
    %686 = arith.addf %682, %685 : vector<8x8xf32>
    %c166 = arith.constant 166 : index
    %687 = memref.load %arg2[%c166] : memref<656xf32, #tpu.memory_space<smem>>
    %688 = vector.broadcast %687 : f32 to vector<8x8xf32>
    %689 = arith.mulf %688, %207 : vector<8x8xf32>
    %690 = arith.addf %686, %689 : vector<8x8xf32>
    %c167 = arith.constant 167 : index
    %691 = memref.load %arg2[%c167] : memref<656xf32, #tpu.memory_space<smem>>
    %692 = vector.broadcast %691 : f32 to vector<8x8xf32>
    %693 = arith.mulf %692, %235 : vector<8x8xf32>
    %694 = arith.addf %690, %693 : vector<8x8xf32>
    %c168 = arith.constant 168 : index
    %695 = memref.load %arg2[%c168] : memref<656xf32, #tpu.memory_space<smem>>
    %696 = vector.broadcast %695 : f32 to vector<8x8xf32>
    %697 = arith.mulf %696, %263 : vector<8x8xf32>
    %698 = arith.addf %694, %697 : vector<8x8xf32>
    %c169 = arith.constant 169 : index
    %699 = memref.load %arg2[%c169] : memref<656xf32, #tpu.memory_space<smem>>
    %700 = vector.broadcast %699 : f32 to vector<8x8xf32>
    %701 = arith.mulf %700, %291 : vector<8x8xf32>
    %702 = arith.addf %698, %701 : vector<8x8xf32>
    %c170 = arith.constant 170 : index
    %703 = memref.load %arg2[%c170] : memref<656xf32, #tpu.memory_space<smem>>
    %704 = vector.broadcast %703 : f32 to vector<8x8xf32>
    %705 = arith.mulf %704, %319 : vector<8x8xf32>
    %706 = arith.addf %702, %705 : vector<8x8xf32>
    %c171 = arith.constant 171 : index
    %707 = memref.load %arg2[%c171] : memref<656xf32, #tpu.memory_space<smem>>
    %708 = vector.broadcast %707 : f32 to vector<8x8xf32>
    %709 = arith.mulf %708, %347 : vector<8x8xf32>
    %710 = arith.addf %706, %709 : vector<8x8xf32>
    %c172 = arith.constant 172 : index
    %711 = memref.load %arg2[%c172] : memref<656xf32, #tpu.memory_space<smem>>
    %712 = vector.broadcast %711 : f32 to vector<8x8xf32>
    %713 = arith.mulf %712, %375 : vector<8x8xf32>
    %714 = arith.addf %710, %713 : vector<8x8xf32>
    %c173 = arith.constant 173 : index
    %715 = memref.load %arg2[%c173] : memref<656xf32, #tpu.memory_space<smem>>
    %716 = vector.broadcast %715 : f32 to vector<8x8xf32>
    %717 = arith.mulf %716, %403 : vector<8x8xf32>
    %718 = arith.addf %714, %717 : vector<8x8xf32>
    %c174 = arith.constant 174 : index
    %719 = memref.load %arg2[%c174] : memref<656xf32, #tpu.memory_space<smem>>
    %720 = vector.broadcast %719 : f32 to vector<8x8xf32>
    %721 = arith.mulf %720, %431 : vector<8x8xf32>
    %722 = arith.addf %718, %721 : vector<8x8xf32>
    %c175 = arith.constant 175 : index
    %723 = memref.load %arg2[%c175] : memref<656xf32, #tpu.memory_space<smem>>
    %724 = vector.broadcast %723 : f32 to vector<8x8xf32>
    %725 = arith.mulf %724, %459 : vector<8x8xf32>
    %726 = arith.addf %722, %725 : vector<8x8xf32>
    %c627 = arith.constant 627 : index
    %727 = memref.load %arg2[%c627] : memref<656xf32, #tpu.memory_space<smem>>
    %728 = vector.broadcast %727 : f32 to vector<8x8xf32>
    %729 = arith.addf %726, %728 : vector<8x8xf32>
    %cst_42 = arith.constant 0.000000e+00 : f32
    %730 = vector.broadcast %cst_42 : f32 to vector<8x8xf32>
    %731 = arith.maximumf %729, %730 : vector<8x8xf32>
    %c176 = arith.constant 176 : index
    %732 = memref.load %arg2[%c176] : memref<656xf32, #tpu.memory_space<smem>>
    %733 = vector.broadcast %732 : f32 to vector<8x8xf32>
    %734 = arith.mulf %733, %39 : vector<8x8xf32>
    %c177 = arith.constant 177 : index
    %735 = memref.load %arg2[%c177] : memref<656xf32, #tpu.memory_space<smem>>
    %736 = vector.broadcast %735 : f32 to vector<8x8xf32>
    %737 = arith.mulf %736, %67 : vector<8x8xf32>
    %738 = arith.addf %734, %737 : vector<8x8xf32>
    %c178 = arith.constant 178 : index
    %739 = memref.load %arg2[%c178] : memref<656xf32, #tpu.memory_space<smem>>
    %740 = vector.broadcast %739 : f32 to vector<8x8xf32>
    %741 = arith.mulf %740, %95 : vector<8x8xf32>
    %742 = arith.addf %738, %741 : vector<8x8xf32>
    %c179 = arith.constant 179 : index
    %743 = memref.load %arg2[%c179] : memref<656xf32, #tpu.memory_space<smem>>
    %744 = vector.broadcast %743 : f32 to vector<8x8xf32>
    %745 = arith.mulf %744, %123 : vector<8x8xf32>
    %746 = arith.addf %742, %745 : vector<8x8xf32>
    %c180 = arith.constant 180 : index
    %747 = memref.load %arg2[%c180] : memref<656xf32, #tpu.memory_space<smem>>
    %748 = vector.broadcast %747 : f32 to vector<8x8xf32>
    %749 = arith.mulf %748, %151 : vector<8x8xf32>
    %750 = arith.addf %746, %749 : vector<8x8xf32>
    %c181 = arith.constant 181 : index
    %751 = memref.load %arg2[%c181] : memref<656xf32, #tpu.memory_space<smem>>
    %752 = vector.broadcast %751 : f32 to vector<8x8xf32>
    %753 = arith.mulf %752, %179 : vector<8x8xf32>
    %754 = arith.addf %750, %753 : vector<8x8xf32>
    %c182 = arith.constant 182 : index
    %755 = memref.load %arg2[%c182] : memref<656xf32, #tpu.memory_space<smem>>
    %756 = vector.broadcast %755 : f32 to vector<8x8xf32>
    %757 = arith.mulf %756, %207 : vector<8x8xf32>
    %758 = arith.addf %754, %757 : vector<8x8xf32>
    %c183 = arith.constant 183 : index
    %759 = memref.load %arg2[%c183] : memref<656xf32, #tpu.memory_space<smem>>
    %760 = vector.broadcast %759 : f32 to vector<8x8xf32>
    %761 = arith.mulf %760, %235 : vector<8x8xf32>
    %762 = arith.addf %758, %761 : vector<8x8xf32>
    %c184 = arith.constant 184 : index
    %763 = memref.load %arg2[%c184] : memref<656xf32, #tpu.memory_space<smem>>
    %764 = vector.broadcast %763 : f32 to vector<8x8xf32>
    %765 = arith.mulf %764, %263 : vector<8x8xf32>
    %766 = arith.addf %762, %765 : vector<8x8xf32>
    %c185 = arith.constant 185 : index
    %767 = memref.load %arg2[%c185] : memref<656xf32, #tpu.memory_space<smem>>
    %768 = vector.broadcast %767 : f32 to vector<8x8xf32>
    %769 = arith.mulf %768, %291 : vector<8x8xf32>
    %770 = arith.addf %766, %769 : vector<8x8xf32>
    %c186 = arith.constant 186 : index
    %771 = memref.load %arg2[%c186] : memref<656xf32, #tpu.memory_space<smem>>
    %772 = vector.broadcast %771 : f32 to vector<8x8xf32>
    %773 = arith.mulf %772, %319 : vector<8x8xf32>
    %774 = arith.addf %770, %773 : vector<8x8xf32>
    %c187 = arith.constant 187 : index
    %775 = memref.load %arg2[%c187] : memref<656xf32, #tpu.memory_space<smem>>
    %776 = vector.broadcast %775 : f32 to vector<8x8xf32>
    %777 = arith.mulf %776, %347 : vector<8x8xf32>
    %778 = arith.addf %774, %777 : vector<8x8xf32>
    %c188 = arith.constant 188 : index
    %779 = memref.load %arg2[%c188] : memref<656xf32, #tpu.memory_space<smem>>
    %780 = vector.broadcast %779 : f32 to vector<8x8xf32>
    %781 = arith.mulf %780, %375 : vector<8x8xf32>
    %782 = arith.addf %778, %781 : vector<8x8xf32>
    %c189 = arith.constant 189 : index
    %783 = memref.load %arg2[%c189] : memref<656xf32, #tpu.memory_space<smem>>
    %784 = vector.broadcast %783 : f32 to vector<8x8xf32>
    %785 = arith.mulf %784, %403 : vector<8x8xf32>
    %786 = arith.addf %782, %785 : vector<8x8xf32>
    %c190 = arith.constant 190 : index
    %787 = memref.load %arg2[%c190] : memref<656xf32, #tpu.memory_space<smem>>
    %788 = vector.broadcast %787 : f32 to vector<8x8xf32>
    %789 = arith.mulf %788, %431 : vector<8x8xf32>
    %790 = arith.addf %786, %789 : vector<8x8xf32>
    %c191 = arith.constant 191 : index
    %791 = memref.load %arg2[%c191] : memref<656xf32, #tpu.memory_space<smem>>
    %792 = vector.broadcast %791 : f32 to vector<8x8xf32>
    %793 = arith.mulf %792, %459 : vector<8x8xf32>
    %794 = arith.addf %790, %793 : vector<8x8xf32>
    %c628 = arith.constant 628 : index
    %795 = memref.load %arg2[%c628] : memref<656xf32, #tpu.memory_space<smem>>
    %796 = vector.broadcast %795 : f32 to vector<8x8xf32>
    %797 = arith.addf %794, %796 : vector<8x8xf32>
    %cst_43 = arith.constant 0.000000e+00 : f32
    %798 = vector.broadcast %cst_43 : f32 to vector<8x8xf32>
    %799 = arith.maximumf %797, %798 : vector<8x8xf32>
    %c192 = arith.constant 192 : index
    %800 = memref.load %arg2[%c192] : memref<656xf32, #tpu.memory_space<smem>>
    %801 = vector.broadcast %800 : f32 to vector<8x8xf32>
    %802 = arith.mulf %801, %39 : vector<8x8xf32>
    %c193 = arith.constant 193 : index
    %803 = memref.load %arg2[%c193] : memref<656xf32, #tpu.memory_space<smem>>
    %804 = vector.broadcast %803 : f32 to vector<8x8xf32>
    %805 = arith.mulf %804, %67 : vector<8x8xf32>
    %806 = arith.addf %802, %805 : vector<8x8xf32>
    %c194 = arith.constant 194 : index
    %807 = memref.load %arg2[%c194] : memref<656xf32, #tpu.memory_space<smem>>
    %808 = vector.broadcast %807 : f32 to vector<8x8xf32>
    %809 = arith.mulf %808, %95 : vector<8x8xf32>
    %810 = arith.addf %806, %809 : vector<8x8xf32>
    %c195 = arith.constant 195 : index
    %811 = memref.load %arg2[%c195] : memref<656xf32, #tpu.memory_space<smem>>
    %812 = vector.broadcast %811 : f32 to vector<8x8xf32>
    %813 = arith.mulf %812, %123 : vector<8x8xf32>
    %814 = arith.addf %810, %813 : vector<8x8xf32>
    %c196 = arith.constant 196 : index
    %815 = memref.load %arg2[%c196] : memref<656xf32, #tpu.memory_space<smem>>
    %816 = vector.broadcast %815 : f32 to vector<8x8xf32>
    %817 = arith.mulf %816, %151 : vector<8x8xf32>
    %818 = arith.addf %814, %817 : vector<8x8xf32>
    %c197 = arith.constant 197 : index
    %819 = memref.load %arg2[%c197] : memref<656xf32, #tpu.memory_space<smem>>
    %820 = vector.broadcast %819 : f32 to vector<8x8xf32>
    %821 = arith.mulf %820, %179 : vector<8x8xf32>
    %822 = arith.addf %818, %821 : vector<8x8xf32>
    %c198 = arith.constant 198 : index
    %823 = memref.load %arg2[%c198] : memref<656xf32, #tpu.memory_space<smem>>
    %824 = vector.broadcast %823 : f32 to vector<8x8xf32>
    %825 = arith.mulf %824, %207 : vector<8x8xf32>
    %826 = arith.addf %822, %825 : vector<8x8xf32>
    %c199 = arith.constant 199 : index
    %827 = memref.load %arg2[%c199] : memref<656xf32, #tpu.memory_space<smem>>
    %828 = vector.broadcast %827 : f32 to vector<8x8xf32>
    %829 = arith.mulf %828, %235 : vector<8x8xf32>
    %830 = arith.addf %826, %829 : vector<8x8xf32>
    %c200 = arith.constant 200 : index
    %831 = memref.load %arg2[%c200] : memref<656xf32, #tpu.memory_space<smem>>
    %832 = vector.broadcast %831 : f32 to vector<8x8xf32>
    %833 = arith.mulf %832, %263 : vector<8x8xf32>
    %834 = arith.addf %830, %833 : vector<8x8xf32>
    %c201 = arith.constant 201 : index
    %835 = memref.load %arg2[%c201] : memref<656xf32, #tpu.memory_space<smem>>
    %836 = vector.broadcast %835 : f32 to vector<8x8xf32>
    %837 = arith.mulf %836, %291 : vector<8x8xf32>
    %838 = arith.addf %834, %837 : vector<8x8xf32>
    %c202 = arith.constant 202 : index
    %839 = memref.load %arg2[%c202] : memref<656xf32, #tpu.memory_space<smem>>
    %840 = vector.broadcast %839 : f32 to vector<8x8xf32>
    %841 = arith.mulf %840, %319 : vector<8x8xf32>
    %842 = arith.addf %838, %841 : vector<8x8xf32>
    %c203 = arith.constant 203 : index
    %843 = memref.load %arg2[%c203] : memref<656xf32, #tpu.memory_space<smem>>
    %844 = vector.broadcast %843 : f32 to vector<8x8xf32>
    %845 = arith.mulf %844, %347 : vector<8x8xf32>
    %846 = arith.addf %842, %845 : vector<8x8xf32>
    %c204 = arith.constant 204 : index
    %847 = memref.load %arg2[%c204] : memref<656xf32, #tpu.memory_space<smem>>
    %848 = vector.broadcast %847 : f32 to vector<8x8xf32>
    %849 = arith.mulf %848, %375 : vector<8x8xf32>
    %850 = arith.addf %846, %849 : vector<8x8xf32>
    %c205 = arith.constant 205 : index
    %851 = memref.load %arg2[%c205] : memref<656xf32, #tpu.memory_space<smem>>
    %852 = vector.broadcast %851 : f32 to vector<8x8xf32>
    %853 = arith.mulf %852, %403 : vector<8x8xf32>
    %854 = arith.addf %850, %853 : vector<8x8xf32>
    %c206 = arith.constant 206 : index
    %855 = memref.load %arg2[%c206] : memref<656xf32, #tpu.memory_space<smem>>
    %856 = vector.broadcast %855 : f32 to vector<8x8xf32>
    %857 = arith.mulf %856, %431 : vector<8x8xf32>
    %858 = arith.addf %854, %857 : vector<8x8xf32>
    %c207 = arith.constant 207 : index
    %859 = memref.load %arg2[%c207] : memref<656xf32, #tpu.memory_space<smem>>
    %860 = vector.broadcast %859 : f32 to vector<8x8xf32>
    %861 = arith.mulf %860, %459 : vector<8x8xf32>
    %862 = arith.addf %858, %861 : vector<8x8xf32>
    %c629 = arith.constant 629 : index
    %863 = memref.load %arg2[%c629] : memref<656xf32, #tpu.memory_space<smem>>
    %864 = vector.broadcast %863 : f32 to vector<8x8xf32>
    %865 = arith.addf %862, %864 : vector<8x8xf32>
    %cst_44 = arith.constant 0.000000e+00 : f32
    %866 = vector.broadcast %cst_44 : f32 to vector<8x8xf32>
    %867 = arith.maximumf %865, %866 : vector<8x8xf32>
    %c208 = arith.constant 208 : index
    %868 = memref.load %arg2[%c208] : memref<656xf32, #tpu.memory_space<smem>>
    %869 = vector.broadcast %868 : f32 to vector<8x8xf32>
    %870 = arith.mulf %869, %39 : vector<8x8xf32>
    %c209 = arith.constant 209 : index
    %871 = memref.load %arg2[%c209] : memref<656xf32, #tpu.memory_space<smem>>
    %872 = vector.broadcast %871 : f32 to vector<8x8xf32>
    %873 = arith.mulf %872, %67 : vector<8x8xf32>
    %874 = arith.addf %870, %873 : vector<8x8xf32>
    %c210 = arith.constant 210 : index
    %875 = memref.load %arg2[%c210] : memref<656xf32, #tpu.memory_space<smem>>
    %876 = vector.broadcast %875 : f32 to vector<8x8xf32>
    %877 = arith.mulf %876, %95 : vector<8x8xf32>
    %878 = arith.addf %874, %877 : vector<8x8xf32>
    %c211 = arith.constant 211 : index
    %879 = memref.load %arg2[%c211] : memref<656xf32, #tpu.memory_space<smem>>
    %880 = vector.broadcast %879 : f32 to vector<8x8xf32>
    %881 = arith.mulf %880, %123 : vector<8x8xf32>
    %882 = arith.addf %878, %881 : vector<8x8xf32>
    %c212 = arith.constant 212 : index
    %883 = memref.load %arg2[%c212] : memref<656xf32, #tpu.memory_space<smem>>
    %884 = vector.broadcast %883 : f32 to vector<8x8xf32>
    %885 = arith.mulf %884, %151 : vector<8x8xf32>
    %886 = arith.addf %882, %885 : vector<8x8xf32>
    %c213 = arith.constant 213 : index
    %887 = memref.load %arg2[%c213] : memref<656xf32, #tpu.memory_space<smem>>
    %888 = vector.broadcast %887 : f32 to vector<8x8xf32>
    %889 = arith.mulf %888, %179 : vector<8x8xf32>
    %890 = arith.addf %886, %889 : vector<8x8xf32>
    %c214 = arith.constant 214 : index
    %891 = memref.load %arg2[%c214] : memref<656xf32, #tpu.memory_space<smem>>
    %892 = vector.broadcast %891 : f32 to vector<8x8xf32>
    %893 = arith.mulf %892, %207 : vector<8x8xf32>
    %894 = arith.addf %890, %893 : vector<8x8xf32>
    %c215 = arith.constant 215 : index
    %895 = memref.load %arg2[%c215] : memref<656xf32, #tpu.memory_space<smem>>
    %896 = vector.broadcast %895 : f32 to vector<8x8xf32>
    %897 = arith.mulf %896, %235 : vector<8x8xf32>
    %898 = arith.addf %894, %897 : vector<8x8xf32>
    %c216 = arith.constant 216 : index
    %899 = memref.load %arg2[%c216] : memref<656xf32, #tpu.memory_space<smem>>
    %900 = vector.broadcast %899 : f32 to vector<8x8xf32>
    %901 = arith.mulf %900, %263 : vector<8x8xf32>
    %902 = arith.addf %898, %901 : vector<8x8xf32>
    %c217 = arith.constant 217 : index
    %903 = memref.load %arg2[%c217] : memref<656xf32, #tpu.memory_space<smem>>
    %904 = vector.broadcast %903 : f32 to vector<8x8xf32>
    %905 = arith.mulf %904, %291 : vector<8x8xf32>
    %906 = arith.addf %902, %905 : vector<8x8xf32>
    %c218 = arith.constant 218 : index
    %907 = memref.load %arg2[%c218] : memref<656xf32, #tpu.memory_space<smem>>
    %908 = vector.broadcast %907 : f32 to vector<8x8xf32>
    %909 = arith.mulf %908, %319 : vector<8x8xf32>
    %910 = arith.addf %906, %909 : vector<8x8xf32>
    %c219 = arith.constant 219 : index
    %911 = memref.load %arg2[%c219] : memref<656xf32, #tpu.memory_space<smem>>
    %912 = vector.broadcast %911 : f32 to vector<8x8xf32>
    %913 = arith.mulf %912, %347 : vector<8x8xf32>
    %914 = arith.addf %910, %913 : vector<8x8xf32>
    %c220 = arith.constant 220 : index
    %915 = memref.load %arg2[%c220] : memref<656xf32, #tpu.memory_space<smem>>
    %916 = vector.broadcast %915 : f32 to vector<8x8xf32>
    %917 = arith.mulf %916, %375 : vector<8x8xf32>
    %918 = arith.addf %914, %917 : vector<8x8xf32>
    %c221 = arith.constant 221 : index
    %919 = memref.load %arg2[%c221] : memref<656xf32, #tpu.memory_space<smem>>
    %920 = vector.broadcast %919 : f32 to vector<8x8xf32>
    %921 = arith.mulf %920, %403 : vector<8x8xf32>
    %922 = arith.addf %918, %921 : vector<8x8xf32>
    %c222 = arith.constant 222 : index
    %923 = memref.load %arg2[%c222] : memref<656xf32, #tpu.memory_space<smem>>
    %924 = vector.broadcast %923 : f32 to vector<8x8xf32>
    %925 = arith.mulf %924, %431 : vector<8x8xf32>
    %926 = arith.addf %922, %925 : vector<8x8xf32>
    %c223 = arith.constant 223 : index
    %927 = memref.load %arg2[%c223] : memref<656xf32, #tpu.memory_space<smem>>
    %928 = vector.broadcast %927 : f32 to vector<8x8xf32>
    %929 = arith.mulf %928, %459 : vector<8x8xf32>
    %930 = arith.addf %926, %929 : vector<8x8xf32>
    %c630 = arith.constant 630 : index
    %931 = memref.load %arg2[%c630] : memref<656xf32, #tpu.memory_space<smem>>
    %932 = vector.broadcast %931 : f32 to vector<8x8xf32>
    %933 = arith.addf %930, %932 : vector<8x8xf32>
    %cst_45 = arith.constant 0.000000e+00 : f32
    %934 = vector.broadcast %cst_45 : f32 to vector<8x8xf32>
    %935 = arith.maximumf %933, %934 : vector<8x8xf32>
    %c224 = arith.constant 224 : index
    %936 = memref.load %arg2[%c224] : memref<656xf32, #tpu.memory_space<smem>>
    %937 = vector.broadcast %936 : f32 to vector<8x8xf32>
    %938 = arith.mulf %937, %39 : vector<8x8xf32>
    %c225 = arith.constant 225 : index
    %939 = memref.load %arg2[%c225] : memref<656xf32, #tpu.memory_space<smem>>
    %940 = vector.broadcast %939 : f32 to vector<8x8xf32>
    %941 = arith.mulf %940, %67 : vector<8x8xf32>
    %942 = arith.addf %938, %941 : vector<8x8xf32>
    %c226 = arith.constant 226 : index
    %943 = memref.load %arg2[%c226] : memref<656xf32, #tpu.memory_space<smem>>
    %944 = vector.broadcast %943 : f32 to vector<8x8xf32>
    %945 = arith.mulf %944, %95 : vector<8x8xf32>
    %946 = arith.addf %942, %945 : vector<8x8xf32>
    %c227 = arith.constant 227 : index
    %947 = memref.load %arg2[%c227] : memref<656xf32, #tpu.memory_space<smem>>
    %948 = vector.broadcast %947 : f32 to vector<8x8xf32>
    %949 = arith.mulf %948, %123 : vector<8x8xf32>
    %950 = arith.addf %946, %949 : vector<8x8xf32>
    %c228 = arith.constant 228 : index
    %951 = memref.load %arg2[%c228] : memref<656xf32, #tpu.memory_space<smem>>
    %952 = vector.broadcast %951 : f32 to vector<8x8xf32>
    %953 = arith.mulf %952, %151 : vector<8x8xf32>
    %954 = arith.addf %950, %953 : vector<8x8xf32>
    %c229 = arith.constant 229 : index
    %955 = memref.load %arg2[%c229] : memref<656xf32, #tpu.memory_space<smem>>
    %956 = vector.broadcast %955 : f32 to vector<8x8xf32>
    %957 = arith.mulf %956, %179 : vector<8x8xf32>
    %958 = arith.addf %954, %957 : vector<8x8xf32>
    %c230 = arith.constant 230 : index
    %959 = memref.load %arg2[%c230] : memref<656xf32, #tpu.memory_space<smem>>
    %960 = vector.broadcast %959 : f32 to vector<8x8xf32>
    %961 = arith.mulf %960, %207 : vector<8x8xf32>
    %962 = arith.addf %958, %961 : vector<8x8xf32>
    %c231 = arith.constant 231 : index
    %963 = memref.load %arg2[%c231] : memref<656xf32, #tpu.memory_space<smem>>
    %964 = vector.broadcast %963 : f32 to vector<8x8xf32>
    %965 = arith.mulf %964, %235 : vector<8x8xf32>
    %966 = arith.addf %962, %965 : vector<8x8xf32>
    %c232 = arith.constant 232 : index
    %967 = memref.load %arg2[%c232] : memref<656xf32, #tpu.memory_space<smem>>
    %968 = vector.broadcast %967 : f32 to vector<8x8xf32>
    %969 = arith.mulf %968, %263 : vector<8x8xf32>
    %970 = arith.addf %966, %969 : vector<8x8xf32>
    %c233 = arith.constant 233 : index
    %971 = memref.load %arg2[%c233] : memref<656xf32, #tpu.memory_space<smem>>
    %972 = vector.broadcast %971 : f32 to vector<8x8xf32>
    %973 = arith.mulf %972, %291 : vector<8x8xf32>
    %974 = arith.addf %970, %973 : vector<8x8xf32>
    %c234 = arith.constant 234 : index
    %975 = memref.load %arg2[%c234] : memref<656xf32, #tpu.memory_space<smem>>
    %976 = vector.broadcast %975 : f32 to vector<8x8xf32>
    %977 = arith.mulf %976, %319 : vector<8x8xf32>
    %978 = arith.addf %974, %977 : vector<8x8xf32>
    %c235 = arith.constant 235 : index
    %979 = memref.load %arg2[%c235] : memref<656xf32, #tpu.memory_space<smem>>
    %980 = vector.broadcast %979 : f32 to vector<8x8xf32>
    %981 = arith.mulf %980, %347 : vector<8x8xf32>
    %982 = arith.addf %978, %981 : vector<8x8xf32>
    %c236 = arith.constant 236 : index
    %983 = memref.load %arg2[%c236] : memref<656xf32, #tpu.memory_space<smem>>
    %984 = vector.broadcast %983 : f32 to vector<8x8xf32>
    %985 = arith.mulf %984, %375 : vector<8x8xf32>
    %986 = arith.addf %982, %985 : vector<8x8xf32>
    %c237 = arith.constant 237 : index
    %987 = memref.load %arg2[%c237] : memref<656xf32, #tpu.memory_space<smem>>
    %988 = vector.broadcast %987 : f32 to vector<8x8xf32>
    %989 = arith.mulf %988, %403 : vector<8x8xf32>
    %990 = arith.addf %986, %989 : vector<8x8xf32>
    %c238 = arith.constant 238 : index
    %991 = memref.load %arg2[%c238] : memref<656xf32, #tpu.memory_space<smem>>
    %992 = vector.broadcast %991 : f32 to vector<8x8xf32>
    %993 = arith.mulf %992, %431 : vector<8x8xf32>
    %994 = arith.addf %990, %993 : vector<8x8xf32>
    %c239 = arith.constant 239 : index
    %995 = memref.load %arg2[%c239] : memref<656xf32, #tpu.memory_space<smem>>
    %996 = vector.broadcast %995 : f32 to vector<8x8xf32>
    %997 = arith.mulf %996, %459 : vector<8x8xf32>
    %998 = arith.addf %994, %997 : vector<8x8xf32>
    %c631 = arith.constant 631 : index
    %999 = memref.load %arg2[%c631] : memref<656xf32, #tpu.memory_space<smem>>
    %1000 = vector.broadcast %999 : f32 to vector<8x8xf32>
    %1001 = arith.addf %998, %1000 : vector<8x8xf32>
    %cst_46 = arith.constant 0.000000e+00 : f32
    %1002 = vector.broadcast %cst_46 : f32 to vector<8x8xf32>
    %1003 = arith.maximumf %1001, %1002 : vector<8x8xf32>
    %c240 = arith.constant 240 : index
    %1004 = memref.load %arg2[%c240] : memref<656xf32, #tpu.memory_space<smem>>
    %1005 = vector.broadcast %1004 : f32 to vector<8x8xf32>
    %1006 = arith.mulf %1005, %39 : vector<8x8xf32>
    %c241 = arith.constant 241 : index
    %1007 = memref.load %arg2[%c241] : memref<656xf32, #tpu.memory_space<smem>>
    %1008 = vector.broadcast %1007 : f32 to vector<8x8xf32>
    %1009 = arith.mulf %1008, %67 : vector<8x8xf32>
    %1010 = arith.addf %1006, %1009 : vector<8x8xf32>
    %c242 = arith.constant 242 : index
    %1011 = memref.load %arg2[%c242] : memref<656xf32, #tpu.memory_space<smem>>
    %1012 = vector.broadcast %1011 : f32 to vector<8x8xf32>
    %1013 = arith.mulf %1012, %95 : vector<8x8xf32>
    %1014 = arith.addf %1010, %1013 : vector<8x8xf32>
    %c243 = arith.constant 243 : index
    %1015 = memref.load %arg2[%c243] : memref<656xf32, #tpu.memory_space<smem>>
    %1016 = vector.broadcast %1015 : f32 to vector<8x8xf32>
    %1017 = arith.mulf %1016, %123 : vector<8x8xf32>
    %1018 = arith.addf %1014, %1017 : vector<8x8xf32>
    %c244 = arith.constant 244 : index
    %1019 = memref.load %arg2[%c244] : memref<656xf32, #tpu.memory_space<smem>>
    %1020 = vector.broadcast %1019 : f32 to vector<8x8xf32>
    %1021 = arith.mulf %1020, %151 : vector<8x8xf32>
    %1022 = arith.addf %1018, %1021 : vector<8x8xf32>
    %c245 = arith.constant 245 : index
    %1023 = memref.load %arg2[%c245] : memref<656xf32, #tpu.memory_space<smem>>
    %1024 = vector.broadcast %1023 : f32 to vector<8x8xf32>
    %1025 = arith.mulf %1024, %179 : vector<8x8xf32>
    %1026 = arith.addf %1022, %1025 : vector<8x8xf32>
    %c246 = arith.constant 246 : index
    %1027 = memref.load %arg2[%c246] : memref<656xf32, #tpu.memory_space<smem>>
    %1028 = vector.broadcast %1027 : f32 to vector<8x8xf32>
    %1029 = arith.mulf %1028, %207 : vector<8x8xf32>
    %1030 = arith.addf %1026, %1029 : vector<8x8xf32>
    %c247 = arith.constant 247 : index
    %1031 = memref.load %arg2[%c247] : memref<656xf32, #tpu.memory_space<smem>>
    %1032 = vector.broadcast %1031 : f32 to vector<8x8xf32>
    %1033 = arith.mulf %1032, %235 : vector<8x8xf32>
    %1034 = arith.addf %1030, %1033 : vector<8x8xf32>
    %c248 = arith.constant 248 : index
    %1035 = memref.load %arg2[%c248] : memref<656xf32, #tpu.memory_space<smem>>
    %1036 = vector.broadcast %1035 : f32 to vector<8x8xf32>
    %1037 = arith.mulf %1036, %263 : vector<8x8xf32>
    %1038 = arith.addf %1034, %1037 : vector<8x8xf32>
    %c249 = arith.constant 249 : index
    %1039 = memref.load %arg2[%c249] : memref<656xf32, #tpu.memory_space<smem>>
    %1040 = vector.broadcast %1039 : f32 to vector<8x8xf32>
    %1041 = arith.mulf %1040, %291 : vector<8x8xf32>
    %1042 = arith.addf %1038, %1041 : vector<8x8xf32>
    %c250 = arith.constant 250 : index
    %1043 = memref.load %arg2[%c250] : memref<656xf32, #tpu.memory_space<smem>>
    %1044 = vector.broadcast %1043 : f32 to vector<8x8xf32>
    %1045 = arith.mulf %1044, %319 : vector<8x8xf32>
    %1046 = arith.addf %1042, %1045 : vector<8x8xf32>
    %c251 = arith.constant 251 : index
    %1047 = memref.load %arg2[%c251] : memref<656xf32, #tpu.memory_space<smem>>
    %1048 = vector.broadcast %1047 : f32 to vector<8x8xf32>
    %1049 = arith.mulf %1048, %347 : vector<8x8xf32>
    %1050 = arith.addf %1046, %1049 : vector<8x8xf32>
    %c252 = arith.constant 252 : index
    %1051 = memref.load %arg2[%c252] : memref<656xf32, #tpu.memory_space<smem>>
    %1052 = vector.broadcast %1051 : f32 to vector<8x8xf32>
    %1053 = arith.mulf %1052, %375 : vector<8x8xf32>
    %1054 = arith.addf %1050, %1053 : vector<8x8xf32>
    %c253 = arith.constant 253 : index
    %1055 = memref.load %arg2[%c253] : memref<656xf32, #tpu.memory_space<smem>>
    %1056 = vector.broadcast %1055 : f32 to vector<8x8xf32>
    %1057 = arith.mulf %1056, %403 : vector<8x8xf32>
    %1058 = arith.addf %1054, %1057 : vector<8x8xf32>
    %c254 = arith.constant 254 : index
    %1059 = memref.load %arg2[%c254] : memref<656xf32, #tpu.memory_space<smem>>
    %1060 = vector.broadcast %1059 : f32 to vector<8x8xf32>
    %1061 = arith.mulf %1060, %431 : vector<8x8xf32>
    %1062 = arith.addf %1058, %1061 : vector<8x8xf32>
    %c255 = arith.constant 255 : index
    %1063 = memref.load %arg2[%c255] : memref<656xf32, #tpu.memory_space<smem>>
    %1064 = vector.broadcast %1063 : f32 to vector<8x8xf32>
    %1065 = arith.mulf %1064, %459 : vector<8x8xf32>
    %1066 = arith.addf %1062, %1065 : vector<8x8xf32>
    %c632 = arith.constant 632 : index
    %1067 = memref.load %arg2[%c632] : memref<656xf32, #tpu.memory_space<smem>>
    %1068 = vector.broadcast %1067 : f32 to vector<8x8xf32>
    %1069 = arith.addf %1066, %1068 : vector<8x8xf32>
    %cst_47 = arith.constant 0.000000e+00 : f32
    %1070 = vector.broadcast %cst_47 : f32 to vector<8x8xf32>
    %1071 = arith.maximumf %1069, %1070 : vector<8x8xf32>
    %c256 = arith.constant 256 : index
    %1072 = memref.load %arg2[%c256] : memref<656xf32, #tpu.memory_space<smem>>
    %1073 = vector.broadcast %1072 : f32 to vector<8x8xf32>
    %1074 = arith.mulf %1073, %39 : vector<8x8xf32>
    %c257 = arith.constant 257 : index
    %1075 = memref.load %arg2[%c257] : memref<656xf32, #tpu.memory_space<smem>>
    %1076 = vector.broadcast %1075 : f32 to vector<8x8xf32>
    %1077 = arith.mulf %1076, %67 : vector<8x8xf32>
    %1078 = arith.addf %1074, %1077 : vector<8x8xf32>
    %c258 = arith.constant 258 : index
    %1079 = memref.load %arg2[%c258] : memref<656xf32, #tpu.memory_space<smem>>
    %1080 = vector.broadcast %1079 : f32 to vector<8x8xf32>
    %1081 = arith.mulf %1080, %95 : vector<8x8xf32>
    %1082 = arith.addf %1078, %1081 : vector<8x8xf32>
    %c259 = arith.constant 259 : index
    %1083 = memref.load %arg2[%c259] : memref<656xf32, #tpu.memory_space<smem>>
    %1084 = vector.broadcast %1083 : f32 to vector<8x8xf32>
    %1085 = arith.mulf %1084, %123 : vector<8x8xf32>
    %1086 = arith.addf %1082, %1085 : vector<8x8xf32>
    %c260 = arith.constant 260 : index
    %1087 = memref.load %arg2[%c260] : memref<656xf32, #tpu.memory_space<smem>>
    %1088 = vector.broadcast %1087 : f32 to vector<8x8xf32>
    %1089 = arith.mulf %1088, %151 : vector<8x8xf32>
    %1090 = arith.addf %1086, %1089 : vector<8x8xf32>
    %c261 = arith.constant 261 : index
    %1091 = memref.load %arg2[%c261] : memref<656xf32, #tpu.memory_space<smem>>
    %1092 = vector.broadcast %1091 : f32 to vector<8x8xf32>
    %1093 = arith.mulf %1092, %179 : vector<8x8xf32>
    %1094 = arith.addf %1090, %1093 : vector<8x8xf32>
    %c262 = arith.constant 262 : index
    %1095 = memref.load %arg2[%c262] : memref<656xf32, #tpu.memory_space<smem>>
    %1096 = vector.broadcast %1095 : f32 to vector<8x8xf32>
    %1097 = arith.mulf %1096, %207 : vector<8x8xf32>
    %1098 = arith.addf %1094, %1097 : vector<8x8xf32>
    %c263 = arith.constant 263 : index
    %1099 = memref.load %arg2[%c263] : memref<656xf32, #tpu.memory_space<smem>>
    %1100 = vector.broadcast %1099 : f32 to vector<8x8xf32>
    %1101 = arith.mulf %1100, %235 : vector<8x8xf32>
    %1102 = arith.addf %1098, %1101 : vector<8x8xf32>
    %c264 = arith.constant 264 : index
    %1103 = memref.load %arg2[%c264] : memref<656xf32, #tpu.memory_space<smem>>
    %1104 = vector.broadcast %1103 : f32 to vector<8x8xf32>
    %1105 = arith.mulf %1104, %263 : vector<8x8xf32>
    %1106 = arith.addf %1102, %1105 : vector<8x8xf32>
    %c265 = arith.constant 265 : index
    %1107 = memref.load %arg2[%c265] : memref<656xf32, #tpu.memory_space<smem>>
    %1108 = vector.broadcast %1107 : f32 to vector<8x8xf32>
    %1109 = arith.mulf %1108, %291 : vector<8x8xf32>
    %1110 = arith.addf %1106, %1109 : vector<8x8xf32>
    %c266 = arith.constant 266 : index
    %1111 = memref.load %arg2[%c266] : memref<656xf32, #tpu.memory_space<smem>>
    %1112 = vector.broadcast %1111 : f32 to vector<8x8xf32>
    %1113 = arith.mulf %1112, %319 : vector<8x8xf32>
    %1114 = arith.addf %1110, %1113 : vector<8x8xf32>
    %c267 = arith.constant 267 : index
    %1115 = memref.load %arg2[%c267] : memref<656xf32, #tpu.memory_space<smem>>
    %1116 = vector.broadcast %1115 : f32 to vector<8x8xf32>
    %1117 = arith.mulf %1116, %347 : vector<8x8xf32>
    %1118 = arith.addf %1114, %1117 : vector<8x8xf32>
    %c268 = arith.constant 268 : index
    %1119 = memref.load %arg2[%c268] : memref<656xf32, #tpu.memory_space<smem>>
    %1120 = vector.broadcast %1119 : f32 to vector<8x8xf32>
    %1121 = arith.mulf %1120, %375 : vector<8x8xf32>
    %1122 = arith.addf %1118, %1121 : vector<8x8xf32>
    %c269 = arith.constant 269 : index
    %1123 = memref.load %arg2[%c269] : memref<656xf32, #tpu.memory_space<smem>>
    %1124 = vector.broadcast %1123 : f32 to vector<8x8xf32>
    %1125 = arith.mulf %1124, %403 : vector<8x8xf32>
    %1126 = arith.addf %1122, %1125 : vector<8x8xf32>
    %c270 = arith.constant 270 : index
    %1127 = memref.load %arg2[%c270] : memref<656xf32, #tpu.memory_space<smem>>
    %1128 = vector.broadcast %1127 : f32 to vector<8x8xf32>
    %1129 = arith.mulf %1128, %431 : vector<8x8xf32>
    %1130 = arith.addf %1126, %1129 : vector<8x8xf32>
    %c271 = arith.constant 271 : index
    %1131 = memref.load %arg2[%c271] : memref<656xf32, #tpu.memory_space<smem>>
    %1132 = vector.broadcast %1131 : f32 to vector<8x8xf32>
    %1133 = arith.mulf %1132, %459 : vector<8x8xf32>
    %1134 = arith.addf %1130, %1133 : vector<8x8xf32>
    %c633 = arith.constant 633 : index
    %1135 = memref.load %arg2[%c633] : memref<656xf32, #tpu.memory_space<smem>>
    %1136 = vector.broadcast %1135 : f32 to vector<8x8xf32>
    %1137 = arith.addf %1134, %1136 : vector<8x8xf32>
    %cst_48 = arith.constant 0.000000e+00 : f32
    %1138 = vector.broadcast %cst_48 : f32 to vector<8x8xf32>
    %1139 = arith.maximumf %1137, %1138 : vector<8x8xf32>
    %c272 = arith.constant 272 : index
    %1140 = memref.load %arg2[%c272] : memref<656xf32, #tpu.memory_space<smem>>
    %1141 = vector.broadcast %1140 : f32 to vector<8x8xf32>
    %1142 = arith.mulf %1141, %39 : vector<8x8xf32>
    %c273 = arith.constant 273 : index
    %1143 = memref.load %arg2[%c273] : memref<656xf32, #tpu.memory_space<smem>>
    %1144 = vector.broadcast %1143 : f32 to vector<8x8xf32>
    %1145 = arith.mulf %1144, %67 : vector<8x8xf32>
    %1146 = arith.addf %1142, %1145 : vector<8x8xf32>
    %c274 = arith.constant 274 : index
    %1147 = memref.load %arg2[%c274] : memref<656xf32, #tpu.memory_space<smem>>
    %1148 = vector.broadcast %1147 : f32 to vector<8x8xf32>
    %1149 = arith.mulf %1148, %95 : vector<8x8xf32>
    %1150 = arith.addf %1146, %1149 : vector<8x8xf32>
    %c275 = arith.constant 275 : index
    %1151 = memref.load %arg2[%c275] : memref<656xf32, #tpu.memory_space<smem>>
    %1152 = vector.broadcast %1151 : f32 to vector<8x8xf32>
    %1153 = arith.mulf %1152, %123 : vector<8x8xf32>
    %1154 = arith.addf %1150, %1153 : vector<8x8xf32>
    %c276 = arith.constant 276 : index
    %1155 = memref.load %arg2[%c276] : memref<656xf32, #tpu.memory_space<smem>>
    %1156 = vector.broadcast %1155 : f32 to vector<8x8xf32>
    %1157 = arith.mulf %1156, %151 : vector<8x8xf32>
    %1158 = arith.addf %1154, %1157 : vector<8x8xf32>
    %c277 = arith.constant 277 : index
    %1159 = memref.load %arg2[%c277] : memref<656xf32, #tpu.memory_space<smem>>
    %1160 = vector.broadcast %1159 : f32 to vector<8x8xf32>
    %1161 = arith.mulf %1160, %179 : vector<8x8xf32>
    %1162 = arith.addf %1158, %1161 : vector<8x8xf32>
    %c278 = arith.constant 278 : index
    %1163 = memref.load %arg2[%c278] : memref<656xf32, #tpu.memory_space<smem>>
    %1164 = vector.broadcast %1163 : f32 to vector<8x8xf32>
    %1165 = arith.mulf %1164, %207 : vector<8x8xf32>
    %1166 = arith.addf %1162, %1165 : vector<8x8xf32>
    %c279 = arith.constant 279 : index
    %1167 = memref.load %arg2[%c279] : memref<656xf32, #tpu.memory_space<smem>>
    %1168 = vector.broadcast %1167 : f32 to vector<8x8xf32>
    %1169 = arith.mulf %1168, %235 : vector<8x8xf32>
    %1170 = arith.addf %1166, %1169 : vector<8x8xf32>
    %c280 = arith.constant 280 : index
    %1171 = memref.load %arg2[%c280] : memref<656xf32, #tpu.memory_space<smem>>
    %1172 = vector.broadcast %1171 : f32 to vector<8x8xf32>
    %1173 = arith.mulf %1172, %263 : vector<8x8xf32>
    %1174 = arith.addf %1170, %1173 : vector<8x8xf32>
    %c281 = arith.constant 281 : index
    %1175 = memref.load %arg2[%c281] : memref<656xf32, #tpu.memory_space<smem>>
    %1176 = vector.broadcast %1175 : f32 to vector<8x8xf32>
    %1177 = arith.mulf %1176, %291 : vector<8x8xf32>
    %1178 = arith.addf %1174, %1177 : vector<8x8xf32>
    %c282 = arith.constant 282 : index
    %1179 = memref.load %arg2[%c282] : memref<656xf32, #tpu.memory_space<smem>>
    %1180 = vector.broadcast %1179 : f32 to vector<8x8xf32>
    %1181 = arith.mulf %1180, %319 : vector<8x8xf32>
    %1182 = arith.addf %1178, %1181 : vector<8x8xf32>
    %c283 = arith.constant 283 : index
    %1183 = memref.load %arg2[%c283] : memref<656xf32, #tpu.memory_space<smem>>
    %1184 = vector.broadcast %1183 : f32 to vector<8x8xf32>
    %1185 = arith.mulf %1184, %347 : vector<8x8xf32>
    %1186 = arith.addf %1182, %1185 : vector<8x8xf32>
    %c284 = arith.constant 284 : index
    %1187 = memref.load %arg2[%c284] : memref<656xf32, #tpu.memory_space<smem>>
    %1188 = vector.broadcast %1187 : f32 to vector<8x8xf32>
    %1189 = arith.mulf %1188, %375 : vector<8x8xf32>
    %1190 = arith.addf %1186, %1189 : vector<8x8xf32>
    %c285 = arith.constant 285 : index
    %1191 = memref.load %arg2[%c285] : memref<656xf32, #tpu.memory_space<smem>>
    %1192 = vector.broadcast %1191 : f32 to vector<8x8xf32>
    %1193 = arith.mulf %1192, %403 : vector<8x8xf32>
    %1194 = arith.addf %1190, %1193 : vector<8x8xf32>
    %c286 = arith.constant 286 : index
    %1195 = memref.load %arg2[%c286] : memref<656xf32, #tpu.memory_space<smem>>
    %1196 = vector.broadcast %1195 : f32 to vector<8x8xf32>
    %1197 = arith.mulf %1196, %431 : vector<8x8xf32>
    %1198 = arith.addf %1194, %1197 : vector<8x8xf32>
    %c287 = arith.constant 287 : index
    %1199 = memref.load %arg2[%c287] : memref<656xf32, #tpu.memory_space<smem>>
    %1200 = vector.broadcast %1199 : f32 to vector<8x8xf32>
    %1201 = arith.mulf %1200, %459 : vector<8x8xf32>
    %1202 = arith.addf %1198, %1201 : vector<8x8xf32>
    %c634 = arith.constant 634 : index
    %1203 = memref.load %arg2[%c634] : memref<656xf32, #tpu.memory_space<smem>>
    %1204 = vector.broadcast %1203 : f32 to vector<8x8xf32>
    %1205 = arith.addf %1202, %1204 : vector<8x8xf32>
    %cst_49 = arith.constant 0.000000e+00 : f32
    %1206 = vector.broadcast %cst_49 : f32 to vector<8x8xf32>
    %1207 = arith.maximumf %1205, %1206 : vector<8x8xf32>
    %c288 = arith.constant 288 : index
    %1208 = memref.load %arg2[%c288] : memref<656xf32, #tpu.memory_space<smem>>
    %1209 = vector.broadcast %1208 : f32 to vector<8x8xf32>
    %1210 = arith.mulf %1209, %39 : vector<8x8xf32>
    %c289 = arith.constant 289 : index
    %1211 = memref.load %arg2[%c289] : memref<656xf32, #tpu.memory_space<smem>>
    %1212 = vector.broadcast %1211 : f32 to vector<8x8xf32>
    %1213 = arith.mulf %1212, %67 : vector<8x8xf32>
    %1214 = arith.addf %1210, %1213 : vector<8x8xf32>
    %c290 = arith.constant 290 : index
    %1215 = memref.load %arg2[%c290] : memref<656xf32, #tpu.memory_space<smem>>
    %1216 = vector.broadcast %1215 : f32 to vector<8x8xf32>
    %1217 = arith.mulf %1216, %95 : vector<8x8xf32>
    %1218 = arith.addf %1214, %1217 : vector<8x8xf32>
    %c291 = arith.constant 291 : index
    %1219 = memref.load %arg2[%c291] : memref<656xf32, #tpu.memory_space<smem>>
    %1220 = vector.broadcast %1219 : f32 to vector<8x8xf32>
    %1221 = arith.mulf %1220, %123 : vector<8x8xf32>
    %1222 = arith.addf %1218, %1221 : vector<8x8xf32>
    %c292 = arith.constant 292 : index
    %1223 = memref.load %arg2[%c292] : memref<656xf32, #tpu.memory_space<smem>>
    %1224 = vector.broadcast %1223 : f32 to vector<8x8xf32>
    %1225 = arith.mulf %1224, %151 : vector<8x8xf32>
    %1226 = arith.addf %1222, %1225 : vector<8x8xf32>
    %c293 = arith.constant 293 : index
    %1227 = memref.load %arg2[%c293] : memref<656xf32, #tpu.memory_space<smem>>
    %1228 = vector.broadcast %1227 : f32 to vector<8x8xf32>
    %1229 = arith.mulf %1228, %179 : vector<8x8xf32>
    %1230 = arith.addf %1226, %1229 : vector<8x8xf32>
    %c294 = arith.constant 294 : index
    %1231 = memref.load %arg2[%c294] : memref<656xf32, #tpu.memory_space<smem>>
    %1232 = vector.broadcast %1231 : f32 to vector<8x8xf32>
    %1233 = arith.mulf %1232, %207 : vector<8x8xf32>
    %1234 = arith.addf %1230, %1233 : vector<8x8xf32>
    %c295 = arith.constant 295 : index
    %1235 = memref.load %arg2[%c295] : memref<656xf32, #tpu.memory_space<smem>>
    %1236 = vector.broadcast %1235 : f32 to vector<8x8xf32>
    %1237 = arith.mulf %1236, %235 : vector<8x8xf32>
    %1238 = arith.addf %1234, %1237 : vector<8x8xf32>
    %c296 = arith.constant 296 : index
    %1239 = memref.load %arg2[%c296] : memref<656xf32, #tpu.memory_space<smem>>
    %1240 = vector.broadcast %1239 : f32 to vector<8x8xf32>
    %1241 = arith.mulf %1240, %263 : vector<8x8xf32>
    %1242 = arith.addf %1238, %1241 : vector<8x8xf32>
    %c297 = arith.constant 297 : index
    %1243 = memref.load %arg2[%c297] : memref<656xf32, #tpu.memory_space<smem>>
    %1244 = vector.broadcast %1243 : f32 to vector<8x8xf32>
    %1245 = arith.mulf %1244, %291 : vector<8x8xf32>
    %1246 = arith.addf %1242, %1245 : vector<8x8xf32>
    %c298 = arith.constant 298 : index
    %1247 = memref.load %arg2[%c298] : memref<656xf32, #tpu.memory_space<smem>>
    %1248 = vector.broadcast %1247 : f32 to vector<8x8xf32>
    %1249 = arith.mulf %1248, %319 : vector<8x8xf32>
    %1250 = arith.addf %1246, %1249 : vector<8x8xf32>
    %c299 = arith.constant 299 : index
    %1251 = memref.load %arg2[%c299] : memref<656xf32, #tpu.memory_space<smem>>
    %1252 = vector.broadcast %1251 : f32 to vector<8x8xf32>
    %1253 = arith.mulf %1252, %347 : vector<8x8xf32>
    %1254 = arith.addf %1250, %1253 : vector<8x8xf32>
    %c300 = arith.constant 300 : index
    %1255 = memref.load %arg2[%c300] : memref<656xf32, #tpu.memory_space<smem>>
    %1256 = vector.broadcast %1255 : f32 to vector<8x8xf32>
    %1257 = arith.mulf %1256, %375 : vector<8x8xf32>
    %1258 = arith.addf %1254, %1257 : vector<8x8xf32>
    %c301 = arith.constant 301 : index
    %1259 = memref.load %arg2[%c301] : memref<656xf32, #tpu.memory_space<smem>>
    %1260 = vector.broadcast %1259 : f32 to vector<8x8xf32>
    %1261 = arith.mulf %1260, %403 : vector<8x8xf32>
    %1262 = arith.addf %1258, %1261 : vector<8x8xf32>
    %c302 = arith.constant 302 : index
    %1263 = memref.load %arg2[%c302] : memref<656xf32, #tpu.memory_space<smem>>
    %1264 = vector.broadcast %1263 : f32 to vector<8x8xf32>
    %1265 = arith.mulf %1264, %431 : vector<8x8xf32>
    %1266 = arith.addf %1262, %1265 : vector<8x8xf32>
    %c303 = arith.constant 303 : index
    %1267 = memref.load %arg2[%c303] : memref<656xf32, #tpu.memory_space<smem>>
    %1268 = vector.broadcast %1267 : f32 to vector<8x8xf32>
    %1269 = arith.mulf %1268, %459 : vector<8x8xf32>
    %1270 = arith.addf %1266, %1269 : vector<8x8xf32>
    %c635 = arith.constant 635 : index
    %1271 = memref.load %arg2[%c635] : memref<656xf32, #tpu.memory_space<smem>>
    %1272 = vector.broadcast %1271 : f32 to vector<8x8xf32>
    %1273 = arith.addf %1270, %1272 : vector<8x8xf32>
    %cst_50 = arith.constant 0.000000e+00 : f32
    %1274 = vector.broadcast %cst_50 : f32 to vector<8x8xf32>
    %1275 = arith.maximumf %1273, %1274 : vector<8x8xf32>
    %c304 = arith.constant 304 : index
    %1276 = memref.load %arg2[%c304] : memref<656xf32, #tpu.memory_space<smem>>
    %1277 = vector.broadcast %1276 : f32 to vector<8x8xf32>
    %1278 = arith.mulf %1277, %39 : vector<8x8xf32>
    %c305 = arith.constant 305 : index
    %1279 = memref.load %arg2[%c305] : memref<656xf32, #tpu.memory_space<smem>>
    %1280 = vector.broadcast %1279 : f32 to vector<8x8xf32>
    %1281 = arith.mulf %1280, %67 : vector<8x8xf32>
    %1282 = arith.addf %1278, %1281 : vector<8x8xf32>
    %c306 = arith.constant 306 : index
    %1283 = memref.load %arg2[%c306] : memref<656xf32, #tpu.memory_space<smem>>
    %1284 = vector.broadcast %1283 : f32 to vector<8x8xf32>
    %1285 = arith.mulf %1284, %95 : vector<8x8xf32>
    %1286 = arith.addf %1282, %1285 : vector<8x8xf32>
    %c307 = arith.constant 307 : index
    %1287 = memref.load %arg2[%c307] : memref<656xf32, #tpu.memory_space<smem>>
    %1288 = vector.broadcast %1287 : f32 to vector<8x8xf32>
    %1289 = arith.mulf %1288, %123 : vector<8x8xf32>
    %1290 = arith.addf %1286, %1289 : vector<8x8xf32>
    %c308 = arith.constant 308 : index
    %1291 = memref.load %arg2[%c308] : memref<656xf32, #tpu.memory_space<smem>>
    %1292 = vector.broadcast %1291 : f32 to vector<8x8xf32>
    %1293 = arith.mulf %1292, %151 : vector<8x8xf32>
    %1294 = arith.addf %1290, %1293 : vector<8x8xf32>
    %c309 = arith.constant 309 : index
    %1295 = memref.load %arg2[%c309] : memref<656xf32, #tpu.memory_space<smem>>
    %1296 = vector.broadcast %1295 : f32 to vector<8x8xf32>
    %1297 = arith.mulf %1296, %179 : vector<8x8xf32>
    %1298 = arith.addf %1294, %1297 : vector<8x8xf32>
    %c310 = arith.constant 310 : index
    %1299 = memref.load %arg2[%c310] : memref<656xf32, #tpu.memory_space<smem>>
    %1300 = vector.broadcast %1299 : f32 to vector<8x8xf32>
    %1301 = arith.mulf %1300, %207 : vector<8x8xf32>
    %1302 = arith.addf %1298, %1301 : vector<8x8xf32>
    %c311 = arith.constant 311 : index
    %1303 = memref.load %arg2[%c311] : memref<656xf32, #tpu.memory_space<smem>>
    %1304 = vector.broadcast %1303 : f32 to vector<8x8xf32>
    %1305 = arith.mulf %1304, %235 : vector<8x8xf32>
    %1306 = arith.addf %1302, %1305 : vector<8x8xf32>
    %c312 = arith.constant 312 : index
    %1307 = memref.load %arg2[%c312] : memref<656xf32, #tpu.memory_space<smem>>
    %1308 = vector.broadcast %1307 : f32 to vector<8x8xf32>
    %1309 = arith.mulf %1308, %263 : vector<8x8xf32>
    %1310 = arith.addf %1306, %1309 : vector<8x8xf32>
    %c313 = arith.constant 313 : index
    %1311 = memref.load %arg2[%c313] : memref<656xf32, #tpu.memory_space<smem>>
    %1312 = vector.broadcast %1311 : f32 to vector<8x8xf32>
    %1313 = arith.mulf %1312, %291 : vector<8x8xf32>
    %1314 = arith.addf %1310, %1313 : vector<8x8xf32>
    %c314 = arith.constant 314 : index
    %1315 = memref.load %arg2[%c314] : memref<656xf32, #tpu.memory_space<smem>>
    %1316 = vector.broadcast %1315 : f32 to vector<8x8xf32>
    %1317 = arith.mulf %1316, %319 : vector<8x8xf32>
    %1318 = arith.addf %1314, %1317 : vector<8x8xf32>
    %c315 = arith.constant 315 : index
    %1319 = memref.load %arg2[%c315] : memref<656xf32, #tpu.memory_space<smem>>
    %1320 = vector.broadcast %1319 : f32 to vector<8x8xf32>
    %1321 = arith.mulf %1320, %347 : vector<8x8xf32>
    %1322 = arith.addf %1318, %1321 : vector<8x8xf32>
    %c316 = arith.constant 316 : index
    %1323 = memref.load %arg2[%c316] : memref<656xf32, #tpu.memory_space<smem>>
    %1324 = vector.broadcast %1323 : f32 to vector<8x8xf32>
    %1325 = arith.mulf %1324, %375 : vector<8x8xf32>
    %1326 = arith.addf %1322, %1325 : vector<8x8xf32>
    %c317 = arith.constant 317 : index
    %1327 = memref.load %arg2[%c317] : memref<656xf32, #tpu.memory_space<smem>>
    %1328 = vector.broadcast %1327 : f32 to vector<8x8xf32>
    %1329 = arith.mulf %1328, %403 : vector<8x8xf32>
    %1330 = arith.addf %1326, %1329 : vector<8x8xf32>
    %c318 = arith.constant 318 : index
    %1331 = memref.load %arg2[%c318] : memref<656xf32, #tpu.memory_space<smem>>
    %1332 = vector.broadcast %1331 : f32 to vector<8x8xf32>
    %1333 = arith.mulf %1332, %431 : vector<8x8xf32>
    %1334 = arith.addf %1330, %1333 : vector<8x8xf32>
    %c319 = arith.constant 319 : index
    %1335 = memref.load %arg2[%c319] : memref<656xf32, #tpu.memory_space<smem>>
    %1336 = vector.broadcast %1335 : f32 to vector<8x8xf32>
    %1337 = arith.mulf %1336, %459 : vector<8x8xf32>
    %1338 = arith.addf %1334, %1337 : vector<8x8xf32>
    %c636 = arith.constant 636 : index
    %1339 = memref.load %arg2[%c636] : memref<656xf32, #tpu.memory_space<smem>>
    %1340 = vector.broadcast %1339 : f32 to vector<8x8xf32>
    %1341 = arith.addf %1338, %1340 : vector<8x8xf32>
    %cst_51 = arith.constant 0.000000e+00 : f32
    %1342 = vector.broadcast %cst_51 : f32 to vector<8x8xf32>
    %1343 = arith.maximumf %1341, %1342 : vector<8x8xf32>
    %c320 = arith.constant 320 : index
    %1344 = memref.load %arg2[%c320] : memref<656xf32, #tpu.memory_space<smem>>
    %1345 = vector.broadcast %1344 : f32 to vector<8x8xf32>
    %1346 = arith.mulf %1345, %39 : vector<8x8xf32>
    %c321 = arith.constant 321 : index
    %1347 = memref.load %arg2[%c321] : memref<656xf32, #tpu.memory_space<smem>>
    %1348 = vector.broadcast %1347 : f32 to vector<8x8xf32>
    %1349 = arith.mulf %1348, %67 : vector<8x8xf32>
    %1350 = arith.addf %1346, %1349 : vector<8x8xf32>
    %c322 = arith.constant 322 : index
    %1351 = memref.load %arg2[%c322] : memref<656xf32, #tpu.memory_space<smem>>
    %1352 = vector.broadcast %1351 : f32 to vector<8x8xf32>
    %1353 = arith.mulf %1352, %95 : vector<8x8xf32>
    %1354 = arith.addf %1350, %1353 : vector<8x8xf32>
    %c323 = arith.constant 323 : index
    %1355 = memref.load %arg2[%c323] : memref<656xf32, #tpu.memory_space<smem>>
    %1356 = vector.broadcast %1355 : f32 to vector<8x8xf32>
    %1357 = arith.mulf %1356, %123 : vector<8x8xf32>
    %1358 = arith.addf %1354, %1357 : vector<8x8xf32>
    %c324 = arith.constant 324 : index
    %1359 = memref.load %arg2[%c324] : memref<656xf32, #tpu.memory_space<smem>>
    %1360 = vector.broadcast %1359 : f32 to vector<8x8xf32>
    %1361 = arith.mulf %1360, %151 : vector<8x8xf32>
    %1362 = arith.addf %1358, %1361 : vector<8x8xf32>
    %c325 = arith.constant 325 : index
    %1363 = memref.load %arg2[%c325] : memref<656xf32, #tpu.memory_space<smem>>
    %1364 = vector.broadcast %1363 : f32 to vector<8x8xf32>
    %1365 = arith.mulf %1364, %179 : vector<8x8xf32>
    %1366 = arith.addf %1362, %1365 : vector<8x8xf32>
    %c326 = arith.constant 326 : index
    %1367 = memref.load %arg2[%c326] : memref<656xf32, #tpu.memory_space<smem>>
    %1368 = vector.broadcast %1367 : f32 to vector<8x8xf32>
    %1369 = arith.mulf %1368, %207 : vector<8x8xf32>
    %1370 = arith.addf %1366, %1369 : vector<8x8xf32>
    %c327 = arith.constant 327 : index
    %1371 = memref.load %arg2[%c327] : memref<656xf32, #tpu.memory_space<smem>>
    %1372 = vector.broadcast %1371 : f32 to vector<8x8xf32>
    %1373 = arith.mulf %1372, %235 : vector<8x8xf32>
    %1374 = arith.addf %1370, %1373 : vector<8x8xf32>
    %c328 = arith.constant 328 : index
    %1375 = memref.load %arg2[%c328] : memref<656xf32, #tpu.memory_space<smem>>
    %1376 = vector.broadcast %1375 : f32 to vector<8x8xf32>
    %1377 = arith.mulf %1376, %263 : vector<8x8xf32>
    %1378 = arith.addf %1374, %1377 : vector<8x8xf32>
    %c329 = arith.constant 329 : index
    %1379 = memref.load %arg2[%c329] : memref<656xf32, #tpu.memory_space<smem>>
    %1380 = vector.broadcast %1379 : f32 to vector<8x8xf32>
    %1381 = arith.mulf %1380, %291 : vector<8x8xf32>
    %1382 = arith.addf %1378, %1381 : vector<8x8xf32>
    %c330 = arith.constant 330 : index
    %1383 = memref.load %arg2[%c330] : memref<656xf32, #tpu.memory_space<smem>>
    %1384 = vector.broadcast %1383 : f32 to vector<8x8xf32>
    %1385 = arith.mulf %1384, %319 : vector<8x8xf32>
    %1386 = arith.addf %1382, %1385 : vector<8x8xf32>
    %c331 = arith.constant 331 : index
    %1387 = memref.load %arg2[%c331] : memref<656xf32, #tpu.memory_space<smem>>
    %1388 = vector.broadcast %1387 : f32 to vector<8x8xf32>
    %1389 = arith.mulf %1388, %347 : vector<8x8xf32>
    %1390 = arith.addf %1386, %1389 : vector<8x8xf32>
    %c332 = arith.constant 332 : index
    %1391 = memref.load %arg2[%c332] : memref<656xf32, #tpu.memory_space<smem>>
    %1392 = vector.broadcast %1391 : f32 to vector<8x8xf32>
    %1393 = arith.mulf %1392, %375 : vector<8x8xf32>
    %1394 = arith.addf %1390, %1393 : vector<8x8xf32>
    %c333 = arith.constant 333 : index
    %1395 = memref.load %arg2[%c333] : memref<656xf32, #tpu.memory_space<smem>>
    %1396 = vector.broadcast %1395 : f32 to vector<8x8xf32>
    %1397 = arith.mulf %1396, %403 : vector<8x8xf32>
    %1398 = arith.addf %1394, %1397 : vector<8x8xf32>
    %c334 = arith.constant 334 : index
    %1399 = memref.load %arg2[%c334] : memref<656xf32, #tpu.memory_space<smem>>
    %1400 = vector.broadcast %1399 : f32 to vector<8x8xf32>
    %1401 = arith.mulf %1400, %431 : vector<8x8xf32>
    %1402 = arith.addf %1398, %1401 : vector<8x8xf32>
    %c335 = arith.constant 335 : index
    %1403 = memref.load %arg2[%c335] : memref<656xf32, #tpu.memory_space<smem>>
    %1404 = vector.broadcast %1403 : f32 to vector<8x8xf32>
    %1405 = arith.mulf %1404, %459 : vector<8x8xf32>
    %1406 = arith.addf %1402, %1405 : vector<8x8xf32>
    %c637 = arith.constant 637 : index
    %1407 = memref.load %arg2[%c637] : memref<656xf32, #tpu.memory_space<smem>>
    %1408 = vector.broadcast %1407 : f32 to vector<8x8xf32>
    %1409 = arith.addf %1406, %1408 : vector<8x8xf32>
    %cst_52 = arith.constant 0.000000e+00 : f32
    %1410 = vector.broadcast %cst_52 : f32 to vector<8x8xf32>
    %1411 = arith.maximumf %1409, %1410 : vector<8x8xf32>
    %c336 = arith.constant 336 : index
    %1412 = memref.load %arg2[%c336] : memref<656xf32, #tpu.memory_space<smem>>
    %1413 = vector.broadcast %1412 : f32 to vector<8x8xf32>
    %1414 = arith.mulf %1413, %39 : vector<8x8xf32>
    %c337 = arith.constant 337 : index
    %1415 = memref.load %arg2[%c337] : memref<656xf32, #tpu.memory_space<smem>>
    %1416 = vector.broadcast %1415 : f32 to vector<8x8xf32>
    %1417 = arith.mulf %1416, %67 : vector<8x8xf32>
    %1418 = arith.addf %1414, %1417 : vector<8x8xf32>
    %c338 = arith.constant 338 : index
    %1419 = memref.load %arg2[%c338] : memref<656xf32, #tpu.memory_space<smem>>
    %1420 = vector.broadcast %1419 : f32 to vector<8x8xf32>
    %1421 = arith.mulf %1420, %95 : vector<8x8xf32>
    %1422 = arith.addf %1418, %1421 : vector<8x8xf32>
    %c339 = arith.constant 339 : index
    %1423 = memref.load %arg2[%c339] : memref<656xf32, #tpu.memory_space<smem>>
    %1424 = vector.broadcast %1423 : f32 to vector<8x8xf32>
    %1425 = arith.mulf %1424, %123 : vector<8x8xf32>
    %1426 = arith.addf %1422, %1425 : vector<8x8xf32>
    %c340 = arith.constant 340 : index
    %1427 = memref.load %arg2[%c340] : memref<656xf32, #tpu.memory_space<smem>>
    %1428 = vector.broadcast %1427 : f32 to vector<8x8xf32>
    %1429 = arith.mulf %1428, %151 : vector<8x8xf32>
    %1430 = arith.addf %1426, %1429 : vector<8x8xf32>
    %c341 = arith.constant 341 : index
    %1431 = memref.load %arg2[%c341] : memref<656xf32, #tpu.memory_space<smem>>
    %1432 = vector.broadcast %1431 : f32 to vector<8x8xf32>
    %1433 = arith.mulf %1432, %179 : vector<8x8xf32>
    %1434 = arith.addf %1430, %1433 : vector<8x8xf32>
    %c342 = arith.constant 342 : index
    %1435 = memref.load %arg2[%c342] : memref<656xf32, #tpu.memory_space<smem>>
    %1436 = vector.broadcast %1435 : f32 to vector<8x8xf32>
    %1437 = arith.mulf %1436, %207 : vector<8x8xf32>
    %1438 = arith.addf %1434, %1437 : vector<8x8xf32>
    %c343 = arith.constant 343 : index
    %1439 = memref.load %arg2[%c343] : memref<656xf32, #tpu.memory_space<smem>>
    %1440 = vector.broadcast %1439 : f32 to vector<8x8xf32>
    %1441 = arith.mulf %1440, %235 : vector<8x8xf32>
    %1442 = arith.addf %1438, %1441 : vector<8x8xf32>
    %c344 = arith.constant 344 : index
    %1443 = memref.load %arg2[%c344] : memref<656xf32, #tpu.memory_space<smem>>
    %1444 = vector.broadcast %1443 : f32 to vector<8x8xf32>
    %1445 = arith.mulf %1444, %263 : vector<8x8xf32>
    %1446 = arith.addf %1442, %1445 : vector<8x8xf32>
    %c345 = arith.constant 345 : index
    %1447 = memref.load %arg2[%c345] : memref<656xf32, #tpu.memory_space<smem>>
    %1448 = vector.broadcast %1447 : f32 to vector<8x8xf32>
    %1449 = arith.mulf %1448, %291 : vector<8x8xf32>
    %1450 = arith.addf %1446, %1449 : vector<8x8xf32>
    %c346 = arith.constant 346 : index
    %1451 = memref.load %arg2[%c346] : memref<656xf32, #tpu.memory_space<smem>>
    %1452 = vector.broadcast %1451 : f32 to vector<8x8xf32>
    %1453 = arith.mulf %1452, %319 : vector<8x8xf32>
    %1454 = arith.addf %1450, %1453 : vector<8x8xf32>
    %c347 = arith.constant 347 : index
    %1455 = memref.load %arg2[%c347] : memref<656xf32, #tpu.memory_space<smem>>
    %1456 = vector.broadcast %1455 : f32 to vector<8x8xf32>
    %1457 = arith.mulf %1456, %347 : vector<8x8xf32>
    %1458 = arith.addf %1454, %1457 : vector<8x8xf32>
    %c348 = arith.constant 348 : index
    %1459 = memref.load %arg2[%c348] : memref<656xf32, #tpu.memory_space<smem>>
    %1460 = vector.broadcast %1459 : f32 to vector<8x8xf32>
    %1461 = arith.mulf %1460, %375 : vector<8x8xf32>
    %1462 = arith.addf %1458, %1461 : vector<8x8xf32>
    %c349 = arith.constant 349 : index
    %1463 = memref.load %arg2[%c349] : memref<656xf32, #tpu.memory_space<smem>>
    %1464 = vector.broadcast %1463 : f32 to vector<8x8xf32>
    %1465 = arith.mulf %1464, %403 : vector<8x8xf32>
    %1466 = arith.addf %1462, %1465 : vector<8x8xf32>
    %c350 = arith.constant 350 : index
    %1467 = memref.load %arg2[%c350] : memref<656xf32, #tpu.memory_space<smem>>
    %1468 = vector.broadcast %1467 : f32 to vector<8x8xf32>
    %1469 = arith.mulf %1468, %431 : vector<8x8xf32>
    %1470 = arith.addf %1466, %1469 : vector<8x8xf32>
    %c351 = arith.constant 351 : index
    %1471 = memref.load %arg2[%c351] : memref<656xf32, #tpu.memory_space<smem>>
    %1472 = vector.broadcast %1471 : f32 to vector<8x8xf32>
    %1473 = arith.mulf %1472, %459 : vector<8x8xf32>
    %1474 = arith.addf %1470, %1473 : vector<8x8xf32>
    %c638 = arith.constant 638 : index
    %1475 = memref.load %arg2[%c638] : memref<656xf32, #tpu.memory_space<smem>>
    %1476 = vector.broadcast %1475 : f32 to vector<8x8xf32>
    %1477 = arith.addf %1474, %1476 : vector<8x8xf32>
    %cst_53 = arith.constant 0.000000e+00 : f32
    %1478 = vector.broadcast %cst_53 : f32 to vector<8x8xf32>
    %1479 = arith.maximumf %1477, %1478 : vector<8x8xf32>
    %c352 = arith.constant 352 : index
    %1480 = memref.load %arg2[%c352] : memref<656xf32, #tpu.memory_space<smem>>
    %1481 = vector.broadcast %1480 : f32 to vector<8x8xf32>
    %1482 = arith.mulf %1481, %39 : vector<8x8xf32>
    %c353 = arith.constant 353 : index
    %1483 = memref.load %arg2[%c353] : memref<656xf32, #tpu.memory_space<smem>>
    %1484 = vector.broadcast %1483 : f32 to vector<8x8xf32>
    %1485 = arith.mulf %1484, %67 : vector<8x8xf32>
    %1486 = arith.addf %1482, %1485 : vector<8x8xf32>
    %c354 = arith.constant 354 : index
    %1487 = memref.load %arg2[%c354] : memref<656xf32, #tpu.memory_space<smem>>
    %1488 = vector.broadcast %1487 : f32 to vector<8x8xf32>
    %1489 = arith.mulf %1488, %95 : vector<8x8xf32>
    %1490 = arith.addf %1486, %1489 : vector<8x8xf32>
    %c355 = arith.constant 355 : index
    %1491 = memref.load %arg2[%c355] : memref<656xf32, #tpu.memory_space<smem>>
    %1492 = vector.broadcast %1491 : f32 to vector<8x8xf32>
    %1493 = arith.mulf %1492, %123 : vector<8x8xf32>
    %1494 = arith.addf %1490, %1493 : vector<8x8xf32>
    %c356 = arith.constant 356 : index
    %1495 = memref.load %arg2[%c356] : memref<656xf32, #tpu.memory_space<smem>>
    %1496 = vector.broadcast %1495 : f32 to vector<8x8xf32>
    %1497 = arith.mulf %1496, %151 : vector<8x8xf32>
    %1498 = arith.addf %1494, %1497 : vector<8x8xf32>
    %c357 = arith.constant 357 : index
    %1499 = memref.load %arg2[%c357] : memref<656xf32, #tpu.memory_space<smem>>
    %1500 = vector.broadcast %1499 : f32 to vector<8x8xf32>
    %1501 = arith.mulf %1500, %179 : vector<8x8xf32>
    %1502 = arith.addf %1498, %1501 : vector<8x8xf32>
    %c358 = arith.constant 358 : index
    %1503 = memref.load %arg2[%c358] : memref<656xf32, #tpu.memory_space<smem>>
    %1504 = vector.broadcast %1503 : f32 to vector<8x8xf32>
    %1505 = arith.mulf %1504, %207 : vector<8x8xf32>
    %1506 = arith.addf %1502, %1505 : vector<8x8xf32>
    %c359 = arith.constant 359 : index
    %1507 = memref.load %arg2[%c359] : memref<656xf32, #tpu.memory_space<smem>>
    %1508 = vector.broadcast %1507 : f32 to vector<8x8xf32>
    %1509 = arith.mulf %1508, %235 : vector<8x8xf32>
    %1510 = arith.addf %1506, %1509 : vector<8x8xf32>
    %c360 = arith.constant 360 : index
    %1511 = memref.load %arg2[%c360] : memref<656xf32, #tpu.memory_space<smem>>
    %1512 = vector.broadcast %1511 : f32 to vector<8x8xf32>
    %1513 = arith.mulf %1512, %263 : vector<8x8xf32>
    %1514 = arith.addf %1510, %1513 : vector<8x8xf32>
    %c361 = arith.constant 361 : index
    %1515 = memref.load %arg2[%c361] : memref<656xf32, #tpu.memory_space<smem>>
    %1516 = vector.broadcast %1515 : f32 to vector<8x8xf32>
    %1517 = arith.mulf %1516, %291 : vector<8x8xf32>
    %1518 = arith.addf %1514, %1517 : vector<8x8xf32>
    %c362 = arith.constant 362 : index
    %1519 = memref.load %arg2[%c362] : memref<656xf32, #tpu.memory_space<smem>>
    %1520 = vector.broadcast %1519 : f32 to vector<8x8xf32>
    %1521 = arith.mulf %1520, %319 : vector<8x8xf32>
    %1522 = arith.addf %1518, %1521 : vector<8x8xf32>
    %c363 = arith.constant 363 : index
    %1523 = memref.load %arg2[%c363] : memref<656xf32, #tpu.memory_space<smem>>
    %1524 = vector.broadcast %1523 : f32 to vector<8x8xf32>
    %1525 = arith.mulf %1524, %347 : vector<8x8xf32>
    %1526 = arith.addf %1522, %1525 : vector<8x8xf32>
    %c364 = arith.constant 364 : index
    %1527 = memref.load %arg2[%c364] : memref<656xf32, #tpu.memory_space<smem>>
    %1528 = vector.broadcast %1527 : f32 to vector<8x8xf32>
    %1529 = arith.mulf %1528, %375 : vector<8x8xf32>
    %1530 = arith.addf %1526, %1529 : vector<8x8xf32>
    %c365 = arith.constant 365 : index
    %1531 = memref.load %arg2[%c365] : memref<656xf32, #tpu.memory_space<smem>>
    %1532 = vector.broadcast %1531 : f32 to vector<8x8xf32>
    %1533 = arith.mulf %1532, %403 : vector<8x8xf32>
    %1534 = arith.addf %1530, %1533 : vector<8x8xf32>
    %c366 = arith.constant 366 : index
    %1535 = memref.load %arg2[%c366] : memref<656xf32, #tpu.memory_space<smem>>
    %1536 = vector.broadcast %1535 : f32 to vector<8x8xf32>
    %1537 = arith.mulf %1536, %431 : vector<8x8xf32>
    %1538 = arith.addf %1534, %1537 : vector<8x8xf32>
    %c367 = arith.constant 367 : index
    %1539 = memref.load %arg2[%c367] : memref<656xf32, #tpu.memory_space<smem>>
    %1540 = vector.broadcast %1539 : f32 to vector<8x8xf32>
    %1541 = arith.mulf %1540, %459 : vector<8x8xf32>
    %1542 = arith.addf %1538, %1541 : vector<8x8xf32>
    %c639 = arith.constant 639 : index
    %1543 = memref.load %arg2[%c639] : memref<656xf32, #tpu.memory_space<smem>>
    %1544 = vector.broadcast %1543 : f32 to vector<8x8xf32>
    %1545 = arith.addf %1542, %1544 : vector<8x8xf32>
    %cst_54 = arith.constant 0.000000e+00 : f32
    %1546 = vector.broadcast %cst_54 : f32 to vector<8x8xf32>
    %1547 = arith.maximumf %1545, %1546 : vector<8x8xf32>
    %c368 = arith.constant 368 : index
    %1548 = memref.load %arg2[%c368] : memref<656xf32, #tpu.memory_space<smem>>
    %1549 = vector.broadcast %1548 : f32 to vector<8x8xf32>
    %1550 = arith.mulf %1549, %39 : vector<8x8xf32>
    %c369 = arith.constant 369 : index
    %1551 = memref.load %arg2[%c369] : memref<656xf32, #tpu.memory_space<smem>>
    %1552 = vector.broadcast %1551 : f32 to vector<8x8xf32>
    %1553 = arith.mulf %1552, %67 : vector<8x8xf32>
    %1554 = arith.addf %1550, %1553 : vector<8x8xf32>
    %c370 = arith.constant 370 : index
    %1555 = memref.load %arg2[%c370] : memref<656xf32, #tpu.memory_space<smem>>
    %1556 = vector.broadcast %1555 : f32 to vector<8x8xf32>
    %1557 = arith.mulf %1556, %95 : vector<8x8xf32>
    %1558 = arith.addf %1554, %1557 : vector<8x8xf32>
    %c371 = arith.constant 371 : index
    %1559 = memref.load %arg2[%c371] : memref<656xf32, #tpu.memory_space<smem>>
    %1560 = vector.broadcast %1559 : f32 to vector<8x8xf32>
    %1561 = arith.mulf %1560, %123 : vector<8x8xf32>
    %1562 = arith.addf %1558, %1561 : vector<8x8xf32>
    %c372 = arith.constant 372 : index
    %1563 = memref.load %arg2[%c372] : memref<656xf32, #tpu.memory_space<smem>>
    %1564 = vector.broadcast %1563 : f32 to vector<8x8xf32>
    %1565 = arith.mulf %1564, %151 : vector<8x8xf32>
    %1566 = arith.addf %1562, %1565 : vector<8x8xf32>
    %c373 = arith.constant 373 : index
    %1567 = memref.load %arg2[%c373] : memref<656xf32, #tpu.memory_space<smem>>
    %1568 = vector.broadcast %1567 : f32 to vector<8x8xf32>
    %1569 = arith.mulf %1568, %179 : vector<8x8xf32>
    %1570 = arith.addf %1566, %1569 : vector<8x8xf32>
    %c374 = arith.constant 374 : index
    %1571 = memref.load %arg2[%c374] : memref<656xf32, #tpu.memory_space<smem>>
    %1572 = vector.broadcast %1571 : f32 to vector<8x8xf32>
    %1573 = arith.mulf %1572, %207 : vector<8x8xf32>
    %1574 = arith.addf %1570, %1573 : vector<8x8xf32>
    %c375 = arith.constant 375 : index
    %1575 = memref.load %arg2[%c375] : memref<656xf32, #tpu.memory_space<smem>>
    %1576 = vector.broadcast %1575 : f32 to vector<8x8xf32>
    %1577 = arith.mulf %1576, %235 : vector<8x8xf32>
    %1578 = arith.addf %1574, %1577 : vector<8x8xf32>
    %c376 = arith.constant 376 : index
    %1579 = memref.load %arg2[%c376] : memref<656xf32, #tpu.memory_space<smem>>
    %1580 = vector.broadcast %1579 : f32 to vector<8x8xf32>
    %1581 = arith.mulf %1580, %263 : vector<8x8xf32>
    %1582 = arith.addf %1578, %1581 : vector<8x8xf32>
    %c377 = arith.constant 377 : index
    %1583 = memref.load %arg2[%c377] : memref<656xf32, #tpu.memory_space<smem>>
    %1584 = vector.broadcast %1583 : f32 to vector<8x8xf32>
    %1585 = arith.mulf %1584, %291 : vector<8x8xf32>
    %1586 = arith.addf %1582, %1585 : vector<8x8xf32>
    %c378 = arith.constant 378 : index
    %1587 = memref.load %arg2[%c378] : memref<656xf32, #tpu.memory_space<smem>>
    %1588 = vector.broadcast %1587 : f32 to vector<8x8xf32>
    %1589 = arith.mulf %1588, %319 : vector<8x8xf32>
    %1590 = arith.addf %1586, %1589 : vector<8x8xf32>
    %c379 = arith.constant 379 : index
    %1591 = memref.load %arg2[%c379] : memref<656xf32, #tpu.memory_space<smem>>
    %1592 = vector.broadcast %1591 : f32 to vector<8x8xf32>
    %1593 = arith.mulf %1592, %347 : vector<8x8xf32>
    %1594 = arith.addf %1590, %1593 : vector<8x8xf32>
    %c380 = arith.constant 380 : index
    %1595 = memref.load %arg2[%c380] : memref<656xf32, #tpu.memory_space<smem>>
    %1596 = vector.broadcast %1595 : f32 to vector<8x8xf32>
    %1597 = arith.mulf %1596, %375 : vector<8x8xf32>
    %1598 = arith.addf %1594, %1597 : vector<8x8xf32>
    %c381 = arith.constant 381 : index
    %1599 = memref.load %arg2[%c381] : memref<656xf32, #tpu.memory_space<smem>>
    %1600 = vector.broadcast %1599 : f32 to vector<8x8xf32>
    %1601 = arith.mulf %1600, %403 : vector<8x8xf32>
    %1602 = arith.addf %1598, %1601 : vector<8x8xf32>
    %c382 = arith.constant 382 : index
    %1603 = memref.load %arg2[%c382] : memref<656xf32, #tpu.memory_space<smem>>
    %1604 = vector.broadcast %1603 : f32 to vector<8x8xf32>
    %1605 = arith.mulf %1604, %431 : vector<8x8xf32>
    %1606 = arith.addf %1602, %1605 : vector<8x8xf32>
    %c383 = arith.constant 383 : index
    %1607 = memref.load %arg2[%c383] : memref<656xf32, #tpu.memory_space<smem>>
    %1608 = vector.broadcast %1607 : f32 to vector<8x8xf32>
    %1609 = arith.mulf %1608, %459 : vector<8x8xf32>
    %1610 = arith.addf %1606, %1609 : vector<8x8xf32>
    %c640 = arith.constant 640 : index
    %1611 = memref.load %arg2[%c640] : memref<656xf32, #tpu.memory_space<smem>>
    %1612 = vector.broadcast %1611 : f32 to vector<8x8xf32>
    %1613 = arith.addf %1610, %1612 : vector<8x8xf32>
    %cst_55 = arith.constant 0.000000e+00 : f32
    %1614 = vector.broadcast %cst_55 : f32 to vector<8x8xf32>
    %1615 = arith.maximumf %1613, %1614 : vector<8x8xf32>
    %c384 = arith.constant 384 : index
    %1616 = memref.load %arg2[%c384] : memref<656xf32, #tpu.memory_space<smem>>
    %1617 = vector.broadcast %1616 : f32 to vector<8x8xf32>
    %1618 = arith.mulf %1617, %39 : vector<8x8xf32>
    %c385 = arith.constant 385 : index
    %1619 = memref.load %arg2[%c385] : memref<656xf32, #tpu.memory_space<smem>>
    %1620 = vector.broadcast %1619 : f32 to vector<8x8xf32>
    %1621 = arith.mulf %1620, %67 : vector<8x8xf32>
    %1622 = arith.addf %1618, %1621 : vector<8x8xf32>
    %c386 = arith.constant 386 : index
    %1623 = memref.load %arg2[%c386] : memref<656xf32, #tpu.memory_space<smem>>
    %1624 = vector.broadcast %1623 : f32 to vector<8x8xf32>
    %1625 = arith.mulf %1624, %95 : vector<8x8xf32>
    %1626 = arith.addf %1622, %1625 : vector<8x8xf32>
    %c387 = arith.constant 387 : index
    %1627 = memref.load %arg2[%c387] : memref<656xf32, #tpu.memory_space<smem>>
    %1628 = vector.broadcast %1627 : f32 to vector<8x8xf32>
    %1629 = arith.mulf %1628, %123 : vector<8x8xf32>
    %1630 = arith.addf %1626, %1629 : vector<8x8xf32>
    %c388 = arith.constant 388 : index
    %1631 = memref.load %arg2[%c388] : memref<656xf32, #tpu.memory_space<smem>>
    %1632 = vector.broadcast %1631 : f32 to vector<8x8xf32>
    %1633 = arith.mulf %1632, %151 : vector<8x8xf32>
    %1634 = arith.addf %1630, %1633 : vector<8x8xf32>
    %c389 = arith.constant 389 : index
    %1635 = memref.load %arg2[%c389] : memref<656xf32, #tpu.memory_space<smem>>
    %1636 = vector.broadcast %1635 : f32 to vector<8x8xf32>
    %1637 = arith.mulf %1636, %179 : vector<8x8xf32>
    %1638 = arith.addf %1634, %1637 : vector<8x8xf32>
    %c390 = arith.constant 390 : index
    %1639 = memref.load %arg2[%c390] : memref<656xf32, #tpu.memory_space<smem>>
    %1640 = vector.broadcast %1639 : f32 to vector<8x8xf32>
    %1641 = arith.mulf %1640, %207 : vector<8x8xf32>
    %1642 = arith.addf %1638, %1641 : vector<8x8xf32>
    %c391 = arith.constant 391 : index
    %1643 = memref.load %arg2[%c391] : memref<656xf32, #tpu.memory_space<smem>>
    %1644 = vector.broadcast %1643 : f32 to vector<8x8xf32>
    %1645 = arith.mulf %1644, %235 : vector<8x8xf32>
    %1646 = arith.addf %1642, %1645 : vector<8x8xf32>
    %c392 = arith.constant 392 : index
    %1647 = memref.load %arg2[%c392] : memref<656xf32, #tpu.memory_space<smem>>
    %1648 = vector.broadcast %1647 : f32 to vector<8x8xf32>
    %1649 = arith.mulf %1648, %263 : vector<8x8xf32>
    %1650 = arith.addf %1646, %1649 : vector<8x8xf32>
    %c393 = arith.constant 393 : index
    %1651 = memref.load %arg2[%c393] : memref<656xf32, #tpu.memory_space<smem>>
    %1652 = vector.broadcast %1651 : f32 to vector<8x8xf32>
    %1653 = arith.mulf %1652, %291 : vector<8x8xf32>
    %1654 = arith.addf %1650, %1653 : vector<8x8xf32>
    %c394 = arith.constant 394 : index
    %1655 = memref.load %arg2[%c394] : memref<656xf32, #tpu.memory_space<smem>>
    %1656 = vector.broadcast %1655 : f32 to vector<8x8xf32>
    %1657 = arith.mulf %1656, %319 : vector<8x8xf32>
    %1658 = arith.addf %1654, %1657 : vector<8x8xf32>
    %c395 = arith.constant 395 : index
    %1659 = memref.load %arg2[%c395] : memref<656xf32, #tpu.memory_space<smem>>
    %1660 = vector.broadcast %1659 : f32 to vector<8x8xf32>
    %1661 = arith.mulf %1660, %347 : vector<8x8xf32>
    %1662 = arith.addf %1658, %1661 : vector<8x8xf32>
    %c396 = arith.constant 396 : index
    %1663 = memref.load %arg2[%c396] : memref<656xf32, #tpu.memory_space<smem>>
    %1664 = vector.broadcast %1663 : f32 to vector<8x8xf32>
    %1665 = arith.mulf %1664, %375 : vector<8x8xf32>
    %1666 = arith.addf %1662, %1665 : vector<8x8xf32>
    %c397 = arith.constant 397 : index
    %1667 = memref.load %arg2[%c397] : memref<656xf32, #tpu.memory_space<smem>>
    %1668 = vector.broadcast %1667 : f32 to vector<8x8xf32>
    %1669 = arith.mulf %1668, %403 : vector<8x8xf32>
    %1670 = arith.addf %1666, %1669 : vector<8x8xf32>
    %c398 = arith.constant 398 : index
    %1671 = memref.load %arg2[%c398] : memref<656xf32, #tpu.memory_space<smem>>
    %1672 = vector.broadcast %1671 : f32 to vector<8x8xf32>
    %1673 = arith.mulf %1672, %431 : vector<8x8xf32>
    %1674 = arith.addf %1670, %1673 : vector<8x8xf32>
    %c399 = arith.constant 399 : index
    %1675 = memref.load %arg2[%c399] : memref<656xf32, #tpu.memory_space<smem>>
    %1676 = vector.broadcast %1675 : f32 to vector<8x8xf32>
    %1677 = arith.mulf %1676, %459 : vector<8x8xf32>
    %1678 = arith.addf %1674, %1677 : vector<8x8xf32>
    %c641 = arith.constant 641 : index
    %1679 = memref.load %arg2[%c641] : memref<656xf32, #tpu.memory_space<smem>>
    %1680 = vector.broadcast %1679 : f32 to vector<8x8xf32>
    %1681 = arith.addf %1678, %1680 : vector<8x8xf32>
    %cst_56 = arith.constant 0.000000e+00 : f32
    %1682 = vector.broadcast %cst_56 : f32 to vector<8x8xf32>
    %1683 = arith.maximumf %1681, %1682 : vector<8x8xf32>
    %c400 = arith.constant 400 : index
    %1684 = memref.load %arg2[%c400] : memref<656xf32, #tpu.memory_space<smem>>
    %1685 = vector.broadcast %1684 : f32 to vector<8x8xf32>
    %1686 = arith.mulf %1685, %39 : vector<8x8xf32>
    %c401 = arith.constant 401 : index
    %1687 = memref.load %arg2[%c401] : memref<656xf32, #tpu.memory_space<smem>>
    %1688 = vector.broadcast %1687 : f32 to vector<8x8xf32>
    %1689 = arith.mulf %1688, %67 : vector<8x8xf32>
    %1690 = arith.addf %1686, %1689 : vector<8x8xf32>
    %c402 = arith.constant 402 : index
    %1691 = memref.load %arg2[%c402] : memref<656xf32, #tpu.memory_space<smem>>
    %1692 = vector.broadcast %1691 : f32 to vector<8x8xf32>
    %1693 = arith.mulf %1692, %95 : vector<8x8xf32>
    %1694 = arith.addf %1690, %1693 : vector<8x8xf32>
    %c403 = arith.constant 403 : index
    %1695 = memref.load %arg2[%c403] : memref<656xf32, #tpu.memory_space<smem>>
    %1696 = vector.broadcast %1695 : f32 to vector<8x8xf32>
    %1697 = arith.mulf %1696, %123 : vector<8x8xf32>
    %1698 = arith.addf %1694, %1697 : vector<8x8xf32>
    %c404 = arith.constant 404 : index
    %1699 = memref.load %arg2[%c404] : memref<656xf32, #tpu.memory_space<smem>>
    %1700 = vector.broadcast %1699 : f32 to vector<8x8xf32>
    %1701 = arith.mulf %1700, %151 : vector<8x8xf32>
    %1702 = arith.addf %1698, %1701 : vector<8x8xf32>
    %c405 = arith.constant 405 : index
    %1703 = memref.load %arg2[%c405] : memref<656xf32, #tpu.memory_space<smem>>
    %1704 = vector.broadcast %1703 : f32 to vector<8x8xf32>
    %1705 = arith.mulf %1704, %179 : vector<8x8xf32>
    %1706 = arith.addf %1702, %1705 : vector<8x8xf32>
    %c406 = arith.constant 406 : index
    %1707 = memref.load %arg2[%c406] : memref<656xf32, #tpu.memory_space<smem>>
    %1708 = vector.broadcast %1707 : f32 to vector<8x8xf32>
    %1709 = arith.mulf %1708, %207 : vector<8x8xf32>
    %1710 = arith.addf %1706, %1709 : vector<8x8xf32>
    %c407 = arith.constant 407 : index
    %1711 = memref.load %arg2[%c407] : memref<656xf32, #tpu.memory_space<smem>>
    %1712 = vector.broadcast %1711 : f32 to vector<8x8xf32>
    %1713 = arith.mulf %1712, %235 : vector<8x8xf32>
    %1714 = arith.addf %1710, %1713 : vector<8x8xf32>
    %c408 = arith.constant 408 : index
    %1715 = memref.load %arg2[%c408] : memref<656xf32, #tpu.memory_space<smem>>
    %1716 = vector.broadcast %1715 : f32 to vector<8x8xf32>
    %1717 = arith.mulf %1716, %263 : vector<8x8xf32>
    %1718 = arith.addf %1714, %1717 : vector<8x8xf32>
    %c409 = arith.constant 409 : index
    %1719 = memref.load %arg2[%c409] : memref<656xf32, #tpu.memory_space<smem>>
    %1720 = vector.broadcast %1719 : f32 to vector<8x8xf32>
    %1721 = arith.mulf %1720, %291 : vector<8x8xf32>
    %1722 = arith.addf %1718, %1721 : vector<8x8xf32>
    %c410 = arith.constant 410 : index
    %1723 = memref.load %arg2[%c410] : memref<656xf32, #tpu.memory_space<smem>>
    %1724 = vector.broadcast %1723 : f32 to vector<8x8xf32>
    %1725 = arith.mulf %1724, %319 : vector<8x8xf32>
    %1726 = arith.addf %1722, %1725 : vector<8x8xf32>
    %c411 = arith.constant 411 : index
    %1727 = memref.load %arg2[%c411] : memref<656xf32, #tpu.memory_space<smem>>
    %1728 = vector.broadcast %1727 : f32 to vector<8x8xf32>
    %1729 = arith.mulf %1728, %347 : vector<8x8xf32>
    %1730 = arith.addf %1726, %1729 : vector<8x8xf32>
    %c412 = arith.constant 412 : index
    %1731 = memref.load %arg2[%c412] : memref<656xf32, #tpu.memory_space<smem>>
    %1732 = vector.broadcast %1731 : f32 to vector<8x8xf32>
    %1733 = arith.mulf %1732, %375 : vector<8x8xf32>
    %1734 = arith.addf %1730, %1733 : vector<8x8xf32>
    %c413 = arith.constant 413 : index
    %1735 = memref.load %arg2[%c413] : memref<656xf32, #tpu.memory_space<smem>>
    %1736 = vector.broadcast %1735 : f32 to vector<8x8xf32>
    %1737 = arith.mulf %1736, %403 : vector<8x8xf32>
    %1738 = arith.addf %1734, %1737 : vector<8x8xf32>
    %c414 = arith.constant 414 : index
    %1739 = memref.load %arg2[%c414] : memref<656xf32, #tpu.memory_space<smem>>
    %1740 = vector.broadcast %1739 : f32 to vector<8x8xf32>
    %1741 = arith.mulf %1740, %431 : vector<8x8xf32>
    %1742 = arith.addf %1738, %1741 : vector<8x8xf32>
    %c415 = arith.constant 415 : index
    %1743 = memref.load %arg2[%c415] : memref<656xf32, #tpu.memory_space<smem>>
    %1744 = vector.broadcast %1743 : f32 to vector<8x8xf32>
    %1745 = arith.mulf %1744, %459 : vector<8x8xf32>
    %1746 = arith.addf %1742, %1745 : vector<8x8xf32>
    %c642 = arith.constant 642 : index
    %1747 = memref.load %arg2[%c642] : memref<656xf32, #tpu.memory_space<smem>>
    %1748 = vector.broadcast %1747 : f32 to vector<8x8xf32>
    %1749 = arith.addf %1746, %1748 : vector<8x8xf32>
    %cst_57 = arith.constant 0.000000e+00 : f32
    %1750 = vector.broadcast %cst_57 : f32 to vector<8x8xf32>
    %1751 = arith.maximumf %1749, %1750 : vector<8x8xf32>
    %c416 = arith.constant 416 : index
    %1752 = memref.load %arg2[%c416] : memref<656xf32, #tpu.memory_space<smem>>
    %1753 = vector.broadcast %1752 : f32 to vector<8x8xf32>
    %1754 = arith.mulf %1753, %39 : vector<8x8xf32>
    %c417 = arith.constant 417 : index
    %1755 = memref.load %arg2[%c417] : memref<656xf32, #tpu.memory_space<smem>>
    %1756 = vector.broadcast %1755 : f32 to vector<8x8xf32>
    %1757 = arith.mulf %1756, %67 : vector<8x8xf32>
    %1758 = arith.addf %1754, %1757 : vector<8x8xf32>
    %c418 = arith.constant 418 : index
    %1759 = memref.load %arg2[%c418] : memref<656xf32, #tpu.memory_space<smem>>
    %1760 = vector.broadcast %1759 : f32 to vector<8x8xf32>
    %1761 = arith.mulf %1760, %95 : vector<8x8xf32>
    %1762 = arith.addf %1758, %1761 : vector<8x8xf32>
    %c419 = arith.constant 419 : index
    %1763 = memref.load %arg2[%c419] : memref<656xf32, #tpu.memory_space<smem>>
    %1764 = vector.broadcast %1763 : f32 to vector<8x8xf32>
    %1765 = arith.mulf %1764, %123 : vector<8x8xf32>
    %1766 = arith.addf %1762, %1765 : vector<8x8xf32>
    %c420 = arith.constant 420 : index
    %1767 = memref.load %arg2[%c420] : memref<656xf32, #tpu.memory_space<smem>>
    %1768 = vector.broadcast %1767 : f32 to vector<8x8xf32>
    %1769 = arith.mulf %1768, %151 : vector<8x8xf32>
    %1770 = arith.addf %1766, %1769 : vector<8x8xf32>
    %c421 = arith.constant 421 : index
    %1771 = memref.load %arg2[%c421] : memref<656xf32, #tpu.memory_space<smem>>
    %1772 = vector.broadcast %1771 : f32 to vector<8x8xf32>
    %1773 = arith.mulf %1772, %179 : vector<8x8xf32>
    %1774 = arith.addf %1770, %1773 : vector<8x8xf32>
    %c422 = arith.constant 422 : index
    %1775 = memref.load %arg2[%c422] : memref<656xf32, #tpu.memory_space<smem>>
    %1776 = vector.broadcast %1775 : f32 to vector<8x8xf32>
    %1777 = arith.mulf %1776, %207 : vector<8x8xf32>
    %1778 = arith.addf %1774, %1777 : vector<8x8xf32>
    %c423 = arith.constant 423 : index
    %1779 = memref.load %arg2[%c423] : memref<656xf32, #tpu.memory_space<smem>>
    %1780 = vector.broadcast %1779 : f32 to vector<8x8xf32>
    %1781 = arith.mulf %1780, %235 : vector<8x8xf32>
    %1782 = arith.addf %1778, %1781 : vector<8x8xf32>
    %c424 = arith.constant 424 : index
    %1783 = memref.load %arg2[%c424] : memref<656xf32, #tpu.memory_space<smem>>
    %1784 = vector.broadcast %1783 : f32 to vector<8x8xf32>
    %1785 = arith.mulf %1784, %263 : vector<8x8xf32>
    %1786 = arith.addf %1782, %1785 : vector<8x8xf32>
    %c425 = arith.constant 425 : index
    %1787 = memref.load %arg2[%c425] : memref<656xf32, #tpu.memory_space<smem>>
    %1788 = vector.broadcast %1787 : f32 to vector<8x8xf32>
    %1789 = arith.mulf %1788, %291 : vector<8x8xf32>
    %1790 = arith.addf %1786, %1789 : vector<8x8xf32>
    %c426 = arith.constant 426 : index
    %1791 = memref.load %arg2[%c426] : memref<656xf32, #tpu.memory_space<smem>>
    %1792 = vector.broadcast %1791 : f32 to vector<8x8xf32>
    %1793 = arith.mulf %1792, %319 : vector<8x8xf32>
    %1794 = arith.addf %1790, %1793 : vector<8x8xf32>
    %c427 = arith.constant 427 : index
    %1795 = memref.load %arg2[%c427] : memref<656xf32, #tpu.memory_space<smem>>
    %1796 = vector.broadcast %1795 : f32 to vector<8x8xf32>
    %1797 = arith.mulf %1796, %347 : vector<8x8xf32>
    %1798 = arith.addf %1794, %1797 : vector<8x8xf32>
    %c428 = arith.constant 428 : index
    %1799 = memref.load %arg2[%c428] : memref<656xf32, #tpu.memory_space<smem>>
    %1800 = vector.broadcast %1799 : f32 to vector<8x8xf32>
    %1801 = arith.mulf %1800, %375 : vector<8x8xf32>
    %1802 = arith.addf %1798, %1801 : vector<8x8xf32>
    %c429 = arith.constant 429 : index
    %1803 = memref.load %arg2[%c429] : memref<656xf32, #tpu.memory_space<smem>>
    %1804 = vector.broadcast %1803 : f32 to vector<8x8xf32>
    %1805 = arith.mulf %1804, %403 : vector<8x8xf32>
    %1806 = arith.addf %1802, %1805 : vector<8x8xf32>
    %c430 = arith.constant 430 : index
    %1807 = memref.load %arg2[%c430] : memref<656xf32, #tpu.memory_space<smem>>
    %1808 = vector.broadcast %1807 : f32 to vector<8x8xf32>
    %1809 = arith.mulf %1808, %431 : vector<8x8xf32>
    %1810 = arith.addf %1806, %1809 : vector<8x8xf32>
    %c431 = arith.constant 431 : index
    %1811 = memref.load %arg2[%c431] : memref<656xf32, #tpu.memory_space<smem>>
    %1812 = vector.broadcast %1811 : f32 to vector<8x8xf32>
    %1813 = arith.mulf %1812, %459 : vector<8x8xf32>
    %1814 = arith.addf %1810, %1813 : vector<8x8xf32>
    %c643 = arith.constant 643 : index
    %1815 = memref.load %arg2[%c643] : memref<656xf32, #tpu.memory_space<smem>>
    %1816 = vector.broadcast %1815 : f32 to vector<8x8xf32>
    %1817 = arith.addf %1814, %1816 : vector<8x8xf32>
    %cst_58 = arith.constant 0.000000e+00 : f32
    %1818 = vector.broadcast %cst_58 : f32 to vector<8x8xf32>
    %1819 = arith.maximumf %1817, %1818 : vector<8x8xf32>
    %c432 = arith.constant 432 : index
    %1820 = memref.load %arg2[%c432] : memref<656xf32, #tpu.memory_space<smem>>
    %1821 = vector.broadcast %1820 : f32 to vector<8x8xf32>
    %1822 = arith.mulf %1821, %39 : vector<8x8xf32>
    %c433 = arith.constant 433 : index
    %1823 = memref.load %arg2[%c433] : memref<656xf32, #tpu.memory_space<smem>>
    %1824 = vector.broadcast %1823 : f32 to vector<8x8xf32>
    %1825 = arith.mulf %1824, %67 : vector<8x8xf32>
    %1826 = arith.addf %1822, %1825 : vector<8x8xf32>
    %c434 = arith.constant 434 : index
    %1827 = memref.load %arg2[%c434] : memref<656xf32, #tpu.memory_space<smem>>
    %1828 = vector.broadcast %1827 : f32 to vector<8x8xf32>
    %1829 = arith.mulf %1828, %95 : vector<8x8xf32>
    %1830 = arith.addf %1826, %1829 : vector<8x8xf32>
    %c435 = arith.constant 435 : index
    %1831 = memref.load %arg2[%c435] : memref<656xf32, #tpu.memory_space<smem>>
    %1832 = vector.broadcast %1831 : f32 to vector<8x8xf32>
    %1833 = arith.mulf %1832, %123 : vector<8x8xf32>
    %1834 = arith.addf %1830, %1833 : vector<8x8xf32>
    %c436 = arith.constant 436 : index
    %1835 = memref.load %arg2[%c436] : memref<656xf32, #tpu.memory_space<smem>>
    %1836 = vector.broadcast %1835 : f32 to vector<8x8xf32>
    %1837 = arith.mulf %1836, %151 : vector<8x8xf32>
    %1838 = arith.addf %1834, %1837 : vector<8x8xf32>
    %c437 = arith.constant 437 : index
    %1839 = memref.load %arg2[%c437] : memref<656xf32, #tpu.memory_space<smem>>
    %1840 = vector.broadcast %1839 : f32 to vector<8x8xf32>
    %1841 = arith.mulf %1840, %179 : vector<8x8xf32>
    %1842 = arith.addf %1838, %1841 : vector<8x8xf32>
    %c438 = arith.constant 438 : index
    %1843 = memref.load %arg2[%c438] : memref<656xf32, #tpu.memory_space<smem>>
    %1844 = vector.broadcast %1843 : f32 to vector<8x8xf32>
    %1845 = arith.mulf %1844, %207 : vector<8x8xf32>
    %1846 = arith.addf %1842, %1845 : vector<8x8xf32>
    %c439 = arith.constant 439 : index
    %1847 = memref.load %arg2[%c439] : memref<656xf32, #tpu.memory_space<smem>>
    %1848 = vector.broadcast %1847 : f32 to vector<8x8xf32>
    %1849 = arith.mulf %1848, %235 : vector<8x8xf32>
    %1850 = arith.addf %1846, %1849 : vector<8x8xf32>
    %c440 = arith.constant 440 : index
    %1851 = memref.load %arg2[%c440] : memref<656xf32, #tpu.memory_space<smem>>
    %1852 = vector.broadcast %1851 : f32 to vector<8x8xf32>
    %1853 = arith.mulf %1852, %263 : vector<8x8xf32>
    %1854 = arith.addf %1850, %1853 : vector<8x8xf32>
    %c441 = arith.constant 441 : index
    %1855 = memref.load %arg2[%c441] : memref<656xf32, #tpu.memory_space<smem>>
    %1856 = vector.broadcast %1855 : f32 to vector<8x8xf32>
    %1857 = arith.mulf %1856, %291 : vector<8x8xf32>
    %1858 = arith.addf %1854, %1857 : vector<8x8xf32>
    %c442 = arith.constant 442 : index
    %1859 = memref.load %arg2[%c442] : memref<656xf32, #tpu.memory_space<smem>>
    %1860 = vector.broadcast %1859 : f32 to vector<8x8xf32>
    %1861 = arith.mulf %1860, %319 : vector<8x8xf32>
    %1862 = arith.addf %1858, %1861 : vector<8x8xf32>
    %c443 = arith.constant 443 : index
    %1863 = memref.load %arg2[%c443] : memref<656xf32, #tpu.memory_space<smem>>
    %1864 = vector.broadcast %1863 : f32 to vector<8x8xf32>
    %1865 = arith.mulf %1864, %347 : vector<8x8xf32>
    %1866 = arith.addf %1862, %1865 : vector<8x8xf32>
    %c444 = arith.constant 444 : index
    %1867 = memref.load %arg2[%c444] : memref<656xf32, #tpu.memory_space<smem>>
    %1868 = vector.broadcast %1867 : f32 to vector<8x8xf32>
    %1869 = arith.mulf %1868, %375 : vector<8x8xf32>
    %1870 = arith.addf %1866, %1869 : vector<8x8xf32>
    %c445 = arith.constant 445 : index
    %1871 = memref.load %arg2[%c445] : memref<656xf32, #tpu.memory_space<smem>>
    %1872 = vector.broadcast %1871 : f32 to vector<8x8xf32>
    %1873 = arith.mulf %1872, %403 : vector<8x8xf32>
    %1874 = arith.addf %1870, %1873 : vector<8x8xf32>
    %c446 = arith.constant 446 : index
    %1875 = memref.load %arg2[%c446] : memref<656xf32, #tpu.memory_space<smem>>
    %1876 = vector.broadcast %1875 : f32 to vector<8x8xf32>
    %1877 = arith.mulf %1876, %431 : vector<8x8xf32>
    %1878 = arith.addf %1874, %1877 : vector<8x8xf32>
    %c447 = arith.constant 447 : index
    %1879 = memref.load %arg2[%c447] : memref<656xf32, #tpu.memory_space<smem>>
    %1880 = vector.broadcast %1879 : f32 to vector<8x8xf32>
    %1881 = arith.mulf %1880, %459 : vector<8x8xf32>
    %1882 = arith.addf %1878, %1881 : vector<8x8xf32>
    %c644 = arith.constant 644 : index
    %1883 = memref.load %arg2[%c644] : memref<656xf32, #tpu.memory_space<smem>>
    %1884 = vector.broadcast %1883 : f32 to vector<8x8xf32>
    %1885 = arith.addf %1882, %1884 : vector<8x8xf32>
    %cst_59 = arith.constant 0.000000e+00 : f32
    %1886 = vector.broadcast %cst_59 : f32 to vector<8x8xf32>
    %1887 = arith.maximumf %1885, %1886 : vector<8x8xf32>
    %c448 = arith.constant 448 : index
    %1888 = memref.load %arg2[%c448] : memref<656xf32, #tpu.memory_space<smem>>
    %1889 = vector.broadcast %1888 : f32 to vector<8x8xf32>
    %1890 = arith.mulf %1889, %39 : vector<8x8xf32>
    %c449 = arith.constant 449 : index
    %1891 = memref.load %arg2[%c449] : memref<656xf32, #tpu.memory_space<smem>>
    %1892 = vector.broadcast %1891 : f32 to vector<8x8xf32>
    %1893 = arith.mulf %1892, %67 : vector<8x8xf32>
    %1894 = arith.addf %1890, %1893 : vector<8x8xf32>
    %c450 = arith.constant 450 : index
    %1895 = memref.load %arg2[%c450] : memref<656xf32, #tpu.memory_space<smem>>
    %1896 = vector.broadcast %1895 : f32 to vector<8x8xf32>
    %1897 = arith.mulf %1896, %95 : vector<8x8xf32>
    %1898 = arith.addf %1894, %1897 : vector<8x8xf32>
    %c451 = arith.constant 451 : index
    %1899 = memref.load %arg2[%c451] : memref<656xf32, #tpu.memory_space<smem>>
    %1900 = vector.broadcast %1899 : f32 to vector<8x8xf32>
    %1901 = arith.mulf %1900, %123 : vector<8x8xf32>
    %1902 = arith.addf %1898, %1901 : vector<8x8xf32>
    %c452 = arith.constant 452 : index
    %1903 = memref.load %arg2[%c452] : memref<656xf32, #tpu.memory_space<smem>>
    %1904 = vector.broadcast %1903 : f32 to vector<8x8xf32>
    %1905 = arith.mulf %1904, %151 : vector<8x8xf32>
    %1906 = arith.addf %1902, %1905 : vector<8x8xf32>
    %c453 = arith.constant 453 : index
    %1907 = memref.load %arg2[%c453] : memref<656xf32, #tpu.memory_space<smem>>
    %1908 = vector.broadcast %1907 : f32 to vector<8x8xf32>
    %1909 = arith.mulf %1908, %179 : vector<8x8xf32>
    %1910 = arith.addf %1906, %1909 : vector<8x8xf32>
    %c454 = arith.constant 454 : index
    %1911 = memref.load %arg2[%c454] : memref<656xf32, #tpu.memory_space<smem>>
    %1912 = vector.broadcast %1911 : f32 to vector<8x8xf32>
    %1913 = arith.mulf %1912, %207 : vector<8x8xf32>
    %1914 = arith.addf %1910, %1913 : vector<8x8xf32>
    %c455 = arith.constant 455 : index
    %1915 = memref.load %arg2[%c455] : memref<656xf32, #tpu.memory_space<smem>>
    %1916 = vector.broadcast %1915 : f32 to vector<8x8xf32>
    %1917 = arith.mulf %1916, %235 : vector<8x8xf32>
    %1918 = arith.addf %1914, %1917 : vector<8x8xf32>
    %c456 = arith.constant 456 : index
    %1919 = memref.load %arg2[%c456] : memref<656xf32, #tpu.memory_space<smem>>
    %1920 = vector.broadcast %1919 : f32 to vector<8x8xf32>
    %1921 = arith.mulf %1920, %263 : vector<8x8xf32>
    %1922 = arith.addf %1918, %1921 : vector<8x8xf32>
    %c457 = arith.constant 457 : index
    %1923 = memref.load %arg2[%c457] : memref<656xf32, #tpu.memory_space<smem>>
    %1924 = vector.broadcast %1923 : f32 to vector<8x8xf32>
    %1925 = arith.mulf %1924, %291 : vector<8x8xf32>
    %1926 = arith.addf %1922, %1925 : vector<8x8xf32>
    %c458 = arith.constant 458 : index
    %1927 = memref.load %arg2[%c458] : memref<656xf32, #tpu.memory_space<smem>>
    %1928 = vector.broadcast %1927 : f32 to vector<8x8xf32>
    %1929 = arith.mulf %1928, %319 : vector<8x8xf32>
    %1930 = arith.addf %1926, %1929 : vector<8x8xf32>
    %c459 = arith.constant 459 : index
    %1931 = memref.load %arg2[%c459] : memref<656xf32, #tpu.memory_space<smem>>
    %1932 = vector.broadcast %1931 : f32 to vector<8x8xf32>
    %1933 = arith.mulf %1932, %347 : vector<8x8xf32>
    %1934 = arith.addf %1930, %1933 : vector<8x8xf32>
    %c460 = arith.constant 460 : index
    %1935 = memref.load %arg2[%c460] : memref<656xf32, #tpu.memory_space<smem>>
    %1936 = vector.broadcast %1935 : f32 to vector<8x8xf32>
    %1937 = arith.mulf %1936, %375 : vector<8x8xf32>
    %1938 = arith.addf %1934, %1937 : vector<8x8xf32>
    %c461 = arith.constant 461 : index
    %1939 = memref.load %arg2[%c461] : memref<656xf32, #tpu.memory_space<smem>>
    %1940 = vector.broadcast %1939 : f32 to vector<8x8xf32>
    %1941 = arith.mulf %1940, %403 : vector<8x8xf32>
    %1942 = arith.addf %1938, %1941 : vector<8x8xf32>
    %c462 = arith.constant 462 : index
    %1943 = memref.load %arg2[%c462] : memref<656xf32, #tpu.memory_space<smem>>
    %1944 = vector.broadcast %1943 : f32 to vector<8x8xf32>
    %1945 = arith.mulf %1944, %431 : vector<8x8xf32>
    %1946 = arith.addf %1942, %1945 : vector<8x8xf32>
    %c463 = arith.constant 463 : index
    %1947 = memref.load %arg2[%c463] : memref<656xf32, #tpu.memory_space<smem>>
    %1948 = vector.broadcast %1947 : f32 to vector<8x8xf32>
    %1949 = arith.mulf %1948, %459 : vector<8x8xf32>
    %1950 = arith.addf %1946, %1949 : vector<8x8xf32>
    %c645 = arith.constant 645 : index
    %1951 = memref.load %arg2[%c645] : memref<656xf32, #tpu.memory_space<smem>>
    %1952 = vector.broadcast %1951 : f32 to vector<8x8xf32>
    %1953 = arith.addf %1950, %1952 : vector<8x8xf32>
    %cst_60 = arith.constant 0.000000e+00 : f32
    %1954 = vector.broadcast %cst_60 : f32 to vector<8x8xf32>
    %1955 = arith.maximumf %1953, %1954 : vector<8x8xf32>
    %c464 = arith.constant 464 : index
    %1956 = memref.load %arg2[%c464] : memref<656xf32, #tpu.memory_space<smem>>
    %1957 = vector.broadcast %1956 : f32 to vector<8x8xf32>
    %1958 = arith.mulf %1957, %39 : vector<8x8xf32>
    %c465 = arith.constant 465 : index
    %1959 = memref.load %arg2[%c465] : memref<656xf32, #tpu.memory_space<smem>>
    %1960 = vector.broadcast %1959 : f32 to vector<8x8xf32>
    %1961 = arith.mulf %1960, %67 : vector<8x8xf32>
    %1962 = arith.addf %1958, %1961 : vector<8x8xf32>
    %c466 = arith.constant 466 : index
    %1963 = memref.load %arg2[%c466] : memref<656xf32, #tpu.memory_space<smem>>
    %1964 = vector.broadcast %1963 : f32 to vector<8x8xf32>
    %1965 = arith.mulf %1964, %95 : vector<8x8xf32>
    %1966 = arith.addf %1962, %1965 : vector<8x8xf32>
    %c467 = arith.constant 467 : index
    %1967 = memref.load %arg2[%c467] : memref<656xf32, #tpu.memory_space<smem>>
    %1968 = vector.broadcast %1967 : f32 to vector<8x8xf32>
    %1969 = arith.mulf %1968, %123 : vector<8x8xf32>
    %1970 = arith.addf %1966, %1969 : vector<8x8xf32>
    %c468 = arith.constant 468 : index
    %1971 = memref.load %arg2[%c468] : memref<656xf32, #tpu.memory_space<smem>>
    %1972 = vector.broadcast %1971 : f32 to vector<8x8xf32>
    %1973 = arith.mulf %1972, %151 : vector<8x8xf32>
    %1974 = arith.addf %1970, %1973 : vector<8x8xf32>
    %c469 = arith.constant 469 : index
    %1975 = memref.load %arg2[%c469] : memref<656xf32, #tpu.memory_space<smem>>
    %1976 = vector.broadcast %1975 : f32 to vector<8x8xf32>
    %1977 = arith.mulf %1976, %179 : vector<8x8xf32>
    %1978 = arith.addf %1974, %1977 : vector<8x8xf32>
    %c470 = arith.constant 470 : index
    %1979 = memref.load %arg2[%c470] : memref<656xf32, #tpu.memory_space<smem>>
    %1980 = vector.broadcast %1979 : f32 to vector<8x8xf32>
    %1981 = arith.mulf %1980, %207 : vector<8x8xf32>
    %1982 = arith.addf %1978, %1981 : vector<8x8xf32>
    %c471 = arith.constant 471 : index
    %1983 = memref.load %arg2[%c471] : memref<656xf32, #tpu.memory_space<smem>>
    %1984 = vector.broadcast %1983 : f32 to vector<8x8xf32>
    %1985 = arith.mulf %1984, %235 : vector<8x8xf32>
    %1986 = arith.addf %1982, %1985 : vector<8x8xf32>
    %c472 = arith.constant 472 : index
    %1987 = memref.load %arg2[%c472] : memref<656xf32, #tpu.memory_space<smem>>
    %1988 = vector.broadcast %1987 : f32 to vector<8x8xf32>
    %1989 = arith.mulf %1988, %263 : vector<8x8xf32>
    %1990 = arith.addf %1986, %1989 : vector<8x8xf32>
    %c473 = arith.constant 473 : index
    %1991 = memref.load %arg2[%c473] : memref<656xf32, #tpu.memory_space<smem>>
    %1992 = vector.broadcast %1991 : f32 to vector<8x8xf32>
    %1993 = arith.mulf %1992, %291 : vector<8x8xf32>
    %1994 = arith.addf %1990, %1993 : vector<8x8xf32>
    %c474 = arith.constant 474 : index
    %1995 = memref.load %arg2[%c474] : memref<656xf32, #tpu.memory_space<smem>>
    %1996 = vector.broadcast %1995 : f32 to vector<8x8xf32>
    %1997 = arith.mulf %1996, %319 : vector<8x8xf32>
    %1998 = arith.addf %1994, %1997 : vector<8x8xf32>
    %c475 = arith.constant 475 : index
    %1999 = memref.load %arg2[%c475] : memref<656xf32, #tpu.memory_space<smem>>
    %2000 = vector.broadcast %1999 : f32 to vector<8x8xf32>
    %2001 = arith.mulf %2000, %347 : vector<8x8xf32>
    %2002 = arith.addf %1998, %2001 : vector<8x8xf32>
    %c476 = arith.constant 476 : index
    %2003 = memref.load %arg2[%c476] : memref<656xf32, #tpu.memory_space<smem>>
    %2004 = vector.broadcast %2003 : f32 to vector<8x8xf32>
    %2005 = arith.mulf %2004, %375 : vector<8x8xf32>
    %2006 = arith.addf %2002, %2005 : vector<8x8xf32>
    %c477 = arith.constant 477 : index
    %2007 = memref.load %arg2[%c477] : memref<656xf32, #tpu.memory_space<smem>>
    %2008 = vector.broadcast %2007 : f32 to vector<8x8xf32>
    %2009 = arith.mulf %2008, %403 : vector<8x8xf32>
    %2010 = arith.addf %2006, %2009 : vector<8x8xf32>
    %c478 = arith.constant 478 : index
    %2011 = memref.load %arg2[%c478] : memref<656xf32, #tpu.memory_space<smem>>
    %2012 = vector.broadcast %2011 : f32 to vector<8x8xf32>
    %2013 = arith.mulf %2012, %431 : vector<8x8xf32>
    %2014 = arith.addf %2010, %2013 : vector<8x8xf32>
    %c479 = arith.constant 479 : index
    %2015 = memref.load %arg2[%c479] : memref<656xf32, #tpu.memory_space<smem>>
    %2016 = vector.broadcast %2015 : f32 to vector<8x8xf32>
    %2017 = arith.mulf %2016, %459 : vector<8x8xf32>
    %2018 = arith.addf %2014, %2017 : vector<8x8xf32>
    %c646 = arith.constant 646 : index
    %2019 = memref.load %arg2[%c646] : memref<656xf32, #tpu.memory_space<smem>>
    %2020 = vector.broadcast %2019 : f32 to vector<8x8xf32>
    %2021 = arith.addf %2018, %2020 : vector<8x8xf32>
    %cst_61 = arith.constant 0.000000e+00 : f32
    %2022 = vector.broadcast %cst_61 : f32 to vector<8x8xf32>
    %2023 = arith.maximumf %2021, %2022 : vector<8x8xf32>
    %c480 = arith.constant 480 : index
    %2024 = memref.load %arg2[%c480] : memref<656xf32, #tpu.memory_space<smem>>
    %2025 = vector.broadcast %2024 : f32 to vector<8x8xf32>
    %2026 = arith.mulf %2025, %39 : vector<8x8xf32>
    %c481 = arith.constant 481 : index
    %2027 = memref.load %arg2[%c481] : memref<656xf32, #tpu.memory_space<smem>>
    %2028 = vector.broadcast %2027 : f32 to vector<8x8xf32>
    %2029 = arith.mulf %2028, %67 : vector<8x8xf32>
    %2030 = arith.addf %2026, %2029 : vector<8x8xf32>
    %c482 = arith.constant 482 : index
    %2031 = memref.load %arg2[%c482] : memref<656xf32, #tpu.memory_space<smem>>
    %2032 = vector.broadcast %2031 : f32 to vector<8x8xf32>
    %2033 = arith.mulf %2032, %95 : vector<8x8xf32>
    %2034 = arith.addf %2030, %2033 : vector<8x8xf32>
    %c483 = arith.constant 483 : index
    %2035 = memref.load %arg2[%c483] : memref<656xf32, #tpu.memory_space<smem>>
    %2036 = vector.broadcast %2035 : f32 to vector<8x8xf32>
    %2037 = arith.mulf %2036, %123 : vector<8x8xf32>
    %2038 = arith.addf %2034, %2037 : vector<8x8xf32>
    %c484 = arith.constant 484 : index
    %2039 = memref.load %arg2[%c484] : memref<656xf32, #tpu.memory_space<smem>>
    %2040 = vector.broadcast %2039 : f32 to vector<8x8xf32>
    %2041 = arith.mulf %2040, %151 : vector<8x8xf32>
    %2042 = arith.addf %2038, %2041 : vector<8x8xf32>
    %c485 = arith.constant 485 : index
    %2043 = memref.load %arg2[%c485] : memref<656xf32, #tpu.memory_space<smem>>
    %2044 = vector.broadcast %2043 : f32 to vector<8x8xf32>
    %2045 = arith.mulf %2044, %179 : vector<8x8xf32>
    %2046 = arith.addf %2042, %2045 : vector<8x8xf32>
    %c486 = arith.constant 486 : index
    %2047 = memref.load %arg2[%c486] : memref<656xf32, #tpu.memory_space<smem>>
    %2048 = vector.broadcast %2047 : f32 to vector<8x8xf32>
    %2049 = arith.mulf %2048, %207 : vector<8x8xf32>
    %2050 = arith.addf %2046, %2049 : vector<8x8xf32>
    %c487 = arith.constant 487 : index
    %2051 = memref.load %arg2[%c487] : memref<656xf32, #tpu.memory_space<smem>>
    %2052 = vector.broadcast %2051 : f32 to vector<8x8xf32>
    %2053 = arith.mulf %2052, %235 : vector<8x8xf32>
    %2054 = arith.addf %2050, %2053 : vector<8x8xf32>
    %c488 = arith.constant 488 : index
    %2055 = memref.load %arg2[%c488] : memref<656xf32, #tpu.memory_space<smem>>
    %2056 = vector.broadcast %2055 : f32 to vector<8x8xf32>
    %2057 = arith.mulf %2056, %263 : vector<8x8xf32>
    %2058 = arith.addf %2054, %2057 : vector<8x8xf32>
    %c489 = arith.constant 489 : index
    %2059 = memref.load %arg2[%c489] : memref<656xf32, #tpu.memory_space<smem>>
    %2060 = vector.broadcast %2059 : f32 to vector<8x8xf32>
    %2061 = arith.mulf %2060, %291 : vector<8x8xf32>
    %2062 = arith.addf %2058, %2061 : vector<8x8xf32>
    %c490 = arith.constant 490 : index
    %2063 = memref.load %arg2[%c490] : memref<656xf32, #tpu.memory_space<smem>>
    %2064 = vector.broadcast %2063 : f32 to vector<8x8xf32>
    %2065 = arith.mulf %2064, %319 : vector<8x8xf32>
    %2066 = arith.addf %2062, %2065 : vector<8x8xf32>
    %c491 = arith.constant 491 : index
    %2067 = memref.load %arg2[%c491] : memref<656xf32, #tpu.memory_space<smem>>
    %2068 = vector.broadcast %2067 : f32 to vector<8x8xf32>
    %2069 = arith.mulf %2068, %347 : vector<8x8xf32>
    %2070 = arith.addf %2066, %2069 : vector<8x8xf32>
    %c492 = arith.constant 492 : index
    %2071 = memref.load %arg2[%c492] : memref<656xf32, #tpu.memory_space<smem>>
    %2072 = vector.broadcast %2071 : f32 to vector<8x8xf32>
    %2073 = arith.mulf %2072, %375 : vector<8x8xf32>
    %2074 = arith.addf %2070, %2073 : vector<8x8xf32>
    %c493 = arith.constant 493 : index
    %2075 = memref.load %arg2[%c493] : memref<656xf32, #tpu.memory_space<smem>>
    %2076 = vector.broadcast %2075 : f32 to vector<8x8xf32>
    %2077 = arith.mulf %2076, %403 : vector<8x8xf32>
    %2078 = arith.addf %2074, %2077 : vector<8x8xf32>
    %c494 = arith.constant 494 : index
    %2079 = memref.load %arg2[%c494] : memref<656xf32, #tpu.memory_space<smem>>
    %2080 = vector.broadcast %2079 : f32 to vector<8x8xf32>
    %2081 = arith.mulf %2080, %431 : vector<8x8xf32>
    %2082 = arith.addf %2078, %2081 : vector<8x8xf32>
    %c495 = arith.constant 495 : index
    %2083 = memref.load %arg2[%c495] : memref<656xf32, #tpu.memory_space<smem>>
    %2084 = vector.broadcast %2083 : f32 to vector<8x8xf32>
    %2085 = arith.mulf %2084, %459 : vector<8x8xf32>
    %2086 = arith.addf %2082, %2085 : vector<8x8xf32>
    %c647 = arith.constant 647 : index
    %2087 = memref.load %arg2[%c647] : memref<656xf32, #tpu.memory_space<smem>>
    %2088 = vector.broadcast %2087 : f32 to vector<8x8xf32>
    %2089 = arith.addf %2086, %2088 : vector<8x8xf32>
    %cst_62 = arith.constant 0.000000e+00 : f32
    %2090 = vector.broadcast %cst_62 : f32 to vector<8x8xf32>
    %2091 = arith.maximumf %2089, %2090 : vector<8x8xf32>
    %c496 = arith.constant 496 : index
    %2092 = memref.load %arg2[%c496] : memref<656xf32, #tpu.memory_space<smem>>
    %2093 = vector.broadcast %2092 : f32 to vector<8x8xf32>
    %2094 = arith.mulf %2093, %39 : vector<8x8xf32>
    %c497 = arith.constant 497 : index
    %2095 = memref.load %arg2[%c497] : memref<656xf32, #tpu.memory_space<smem>>
    %2096 = vector.broadcast %2095 : f32 to vector<8x8xf32>
    %2097 = arith.mulf %2096, %67 : vector<8x8xf32>
    %2098 = arith.addf %2094, %2097 : vector<8x8xf32>
    %c498 = arith.constant 498 : index
    %2099 = memref.load %arg2[%c498] : memref<656xf32, #tpu.memory_space<smem>>
    %2100 = vector.broadcast %2099 : f32 to vector<8x8xf32>
    %2101 = arith.mulf %2100, %95 : vector<8x8xf32>
    %2102 = arith.addf %2098, %2101 : vector<8x8xf32>
    %c499 = arith.constant 499 : index
    %2103 = memref.load %arg2[%c499] : memref<656xf32, #tpu.memory_space<smem>>
    %2104 = vector.broadcast %2103 : f32 to vector<8x8xf32>
    %2105 = arith.mulf %2104, %123 : vector<8x8xf32>
    %2106 = arith.addf %2102, %2105 : vector<8x8xf32>
    %c500 = arith.constant 500 : index
    %2107 = memref.load %arg2[%c500] : memref<656xf32, #tpu.memory_space<smem>>
    %2108 = vector.broadcast %2107 : f32 to vector<8x8xf32>
    %2109 = arith.mulf %2108, %151 : vector<8x8xf32>
    %2110 = arith.addf %2106, %2109 : vector<8x8xf32>
    %c501 = arith.constant 501 : index
    %2111 = memref.load %arg2[%c501] : memref<656xf32, #tpu.memory_space<smem>>
    %2112 = vector.broadcast %2111 : f32 to vector<8x8xf32>
    %2113 = arith.mulf %2112, %179 : vector<8x8xf32>
    %2114 = arith.addf %2110, %2113 : vector<8x8xf32>
    %c502 = arith.constant 502 : index
    %2115 = memref.load %arg2[%c502] : memref<656xf32, #tpu.memory_space<smem>>
    %2116 = vector.broadcast %2115 : f32 to vector<8x8xf32>
    %2117 = arith.mulf %2116, %207 : vector<8x8xf32>
    %2118 = arith.addf %2114, %2117 : vector<8x8xf32>
    %c503 = arith.constant 503 : index
    %2119 = memref.load %arg2[%c503] : memref<656xf32, #tpu.memory_space<smem>>
    %2120 = vector.broadcast %2119 : f32 to vector<8x8xf32>
    %2121 = arith.mulf %2120, %235 : vector<8x8xf32>
    %2122 = arith.addf %2118, %2121 : vector<8x8xf32>
    %c504 = arith.constant 504 : index
    %2123 = memref.load %arg2[%c504] : memref<656xf32, #tpu.memory_space<smem>>
    %2124 = vector.broadcast %2123 : f32 to vector<8x8xf32>
    %2125 = arith.mulf %2124, %263 : vector<8x8xf32>
    %2126 = arith.addf %2122, %2125 : vector<8x8xf32>
    %c505 = arith.constant 505 : index
    %2127 = memref.load %arg2[%c505] : memref<656xf32, #tpu.memory_space<smem>>
    %2128 = vector.broadcast %2127 : f32 to vector<8x8xf32>
    %2129 = arith.mulf %2128, %291 : vector<8x8xf32>
    %2130 = arith.addf %2126, %2129 : vector<8x8xf32>
    %c506 = arith.constant 506 : index
    %2131 = memref.load %arg2[%c506] : memref<656xf32, #tpu.memory_space<smem>>
    %2132 = vector.broadcast %2131 : f32 to vector<8x8xf32>
    %2133 = arith.mulf %2132, %319 : vector<8x8xf32>
    %2134 = arith.addf %2130, %2133 : vector<8x8xf32>
    %c507 = arith.constant 507 : index
    %2135 = memref.load %arg2[%c507] : memref<656xf32, #tpu.memory_space<smem>>
    %2136 = vector.broadcast %2135 : f32 to vector<8x8xf32>
    %2137 = arith.mulf %2136, %347 : vector<8x8xf32>
    %2138 = arith.addf %2134, %2137 : vector<8x8xf32>
    %c508 = arith.constant 508 : index
    %2139 = memref.load %arg2[%c508] : memref<656xf32, #tpu.memory_space<smem>>
    %2140 = vector.broadcast %2139 : f32 to vector<8x8xf32>
    %2141 = arith.mulf %2140, %375 : vector<8x8xf32>
    %2142 = arith.addf %2138, %2141 : vector<8x8xf32>
    %c509 = arith.constant 509 : index
    %2143 = memref.load %arg2[%c509] : memref<656xf32, #tpu.memory_space<smem>>
    %2144 = vector.broadcast %2143 : f32 to vector<8x8xf32>
    %2145 = arith.mulf %2144, %403 : vector<8x8xf32>
    %2146 = arith.addf %2142, %2145 : vector<8x8xf32>
    %c510 = arith.constant 510 : index
    %2147 = memref.load %arg2[%c510] : memref<656xf32, #tpu.memory_space<smem>>
    %2148 = vector.broadcast %2147 : f32 to vector<8x8xf32>
    %2149 = arith.mulf %2148, %431 : vector<8x8xf32>
    %2150 = arith.addf %2146, %2149 : vector<8x8xf32>
    %c511 = arith.constant 511 : index
    %2151 = memref.load %arg2[%c511] : memref<656xf32, #tpu.memory_space<smem>>
    %2152 = vector.broadcast %2151 : f32 to vector<8x8xf32>
    %2153 = arith.mulf %2152, %459 : vector<8x8xf32>
    %2154 = arith.addf %2150, %2153 : vector<8x8xf32>
    %c648 = arith.constant 648 : index
    %2155 = memref.load %arg2[%c648] : memref<656xf32, #tpu.memory_space<smem>>
    %2156 = vector.broadcast %2155 : f32 to vector<8x8xf32>
    %2157 = arith.addf %2154, %2156 : vector<8x8xf32>
    %cst_63 = arith.constant 0.000000e+00 : f32
    %2158 = vector.broadcast %cst_63 : f32 to vector<8x8xf32>
    %2159 = arith.maximumf %2157, %2158 : vector<8x8xf32>
    %c512 = arith.constant 512 : index
    %2160 = memref.load %arg2[%c512] : memref<656xf32, #tpu.memory_space<smem>>
    %2161 = vector.broadcast %2160 : f32 to vector<8x8xf32>
    %2162 = arith.mulf %2161, %39 : vector<8x8xf32>
    %c513 = arith.constant 513 : index
    %2163 = memref.load %arg2[%c513] : memref<656xf32, #tpu.memory_space<smem>>
    %2164 = vector.broadcast %2163 : f32 to vector<8x8xf32>
    %2165 = arith.mulf %2164, %67 : vector<8x8xf32>
    %2166 = arith.addf %2162, %2165 : vector<8x8xf32>
    %c514 = arith.constant 514 : index
    %2167 = memref.load %arg2[%c514] : memref<656xf32, #tpu.memory_space<smem>>
    %2168 = vector.broadcast %2167 : f32 to vector<8x8xf32>
    %2169 = arith.mulf %2168, %95 : vector<8x8xf32>
    %2170 = arith.addf %2166, %2169 : vector<8x8xf32>
    %c515 = arith.constant 515 : index
    %2171 = memref.load %arg2[%c515] : memref<656xf32, #tpu.memory_space<smem>>
    %2172 = vector.broadcast %2171 : f32 to vector<8x8xf32>
    %2173 = arith.mulf %2172, %123 : vector<8x8xf32>
    %2174 = arith.addf %2170, %2173 : vector<8x8xf32>
    %c516 = arith.constant 516 : index
    %2175 = memref.load %arg2[%c516] : memref<656xf32, #tpu.memory_space<smem>>
    %2176 = vector.broadcast %2175 : f32 to vector<8x8xf32>
    %2177 = arith.mulf %2176, %151 : vector<8x8xf32>
    %2178 = arith.addf %2174, %2177 : vector<8x8xf32>
    %c517 = arith.constant 517 : index
    %2179 = memref.load %arg2[%c517] : memref<656xf32, #tpu.memory_space<smem>>
    %2180 = vector.broadcast %2179 : f32 to vector<8x8xf32>
    %2181 = arith.mulf %2180, %179 : vector<8x8xf32>
    %2182 = arith.addf %2178, %2181 : vector<8x8xf32>
    %c518 = arith.constant 518 : index
    %2183 = memref.load %arg2[%c518] : memref<656xf32, #tpu.memory_space<smem>>
    %2184 = vector.broadcast %2183 : f32 to vector<8x8xf32>
    %2185 = arith.mulf %2184, %207 : vector<8x8xf32>
    %2186 = arith.addf %2182, %2185 : vector<8x8xf32>
    %c519 = arith.constant 519 : index
    %2187 = memref.load %arg2[%c519] : memref<656xf32, #tpu.memory_space<smem>>
    %2188 = vector.broadcast %2187 : f32 to vector<8x8xf32>
    %2189 = arith.mulf %2188, %235 : vector<8x8xf32>
    %2190 = arith.addf %2186, %2189 : vector<8x8xf32>
    %c520 = arith.constant 520 : index
    %2191 = memref.load %arg2[%c520] : memref<656xf32, #tpu.memory_space<smem>>
    %2192 = vector.broadcast %2191 : f32 to vector<8x8xf32>
    %2193 = arith.mulf %2192, %263 : vector<8x8xf32>
    %2194 = arith.addf %2190, %2193 : vector<8x8xf32>
    %c521 = arith.constant 521 : index
    %2195 = memref.load %arg2[%c521] : memref<656xf32, #tpu.memory_space<smem>>
    %2196 = vector.broadcast %2195 : f32 to vector<8x8xf32>
    %2197 = arith.mulf %2196, %291 : vector<8x8xf32>
    %2198 = arith.addf %2194, %2197 : vector<8x8xf32>
    %c522 = arith.constant 522 : index
    %2199 = memref.load %arg2[%c522] : memref<656xf32, #tpu.memory_space<smem>>
    %2200 = vector.broadcast %2199 : f32 to vector<8x8xf32>
    %2201 = arith.mulf %2200, %319 : vector<8x8xf32>
    %2202 = arith.addf %2198, %2201 : vector<8x8xf32>
    %c523 = arith.constant 523 : index
    %2203 = memref.load %arg2[%c523] : memref<656xf32, #tpu.memory_space<smem>>
    %2204 = vector.broadcast %2203 : f32 to vector<8x8xf32>
    %2205 = arith.mulf %2204, %347 : vector<8x8xf32>
    %2206 = arith.addf %2202, %2205 : vector<8x8xf32>
    %c524 = arith.constant 524 : index
    %2207 = memref.load %arg2[%c524] : memref<656xf32, #tpu.memory_space<smem>>
    %2208 = vector.broadcast %2207 : f32 to vector<8x8xf32>
    %2209 = arith.mulf %2208, %375 : vector<8x8xf32>
    %2210 = arith.addf %2206, %2209 : vector<8x8xf32>
    %c525 = arith.constant 525 : index
    %2211 = memref.load %arg2[%c525] : memref<656xf32, #tpu.memory_space<smem>>
    %2212 = vector.broadcast %2211 : f32 to vector<8x8xf32>
    %2213 = arith.mulf %2212, %403 : vector<8x8xf32>
    %2214 = arith.addf %2210, %2213 : vector<8x8xf32>
    %c526 = arith.constant 526 : index
    %2215 = memref.load %arg2[%c526] : memref<656xf32, #tpu.memory_space<smem>>
    %2216 = vector.broadcast %2215 : f32 to vector<8x8xf32>
    %2217 = arith.mulf %2216, %431 : vector<8x8xf32>
    %2218 = arith.addf %2214, %2217 : vector<8x8xf32>
    %c527 = arith.constant 527 : index
    %2219 = memref.load %arg2[%c527] : memref<656xf32, #tpu.memory_space<smem>>
    %2220 = vector.broadcast %2219 : f32 to vector<8x8xf32>
    %2221 = arith.mulf %2220, %459 : vector<8x8xf32>
    %2222 = arith.addf %2218, %2221 : vector<8x8xf32>
    %c649 = arith.constant 649 : index
    %2223 = memref.load %arg2[%c649] : memref<656xf32, #tpu.memory_space<smem>>
    %2224 = vector.broadcast %2223 : f32 to vector<8x8xf32>
    %2225 = arith.addf %2222, %2224 : vector<8x8xf32>
    %cst_64 = arith.constant 0.000000e+00 : f32
    %2226 = vector.broadcast %cst_64 : f32 to vector<8x8xf32>
    %2227 = arith.maximumf %2225, %2226 : vector<8x8xf32>
    %c528 = arith.constant 528 : index
    %2228 = memref.load %arg2[%c528] : memref<656xf32, #tpu.memory_space<smem>>
    %2229 = vector.broadcast %2228 : f32 to vector<8x8xf32>
    %2230 = arith.mulf %2229, %39 : vector<8x8xf32>
    %c529 = arith.constant 529 : index
    %2231 = memref.load %arg2[%c529] : memref<656xf32, #tpu.memory_space<smem>>
    %2232 = vector.broadcast %2231 : f32 to vector<8x8xf32>
    %2233 = arith.mulf %2232, %67 : vector<8x8xf32>
    %2234 = arith.addf %2230, %2233 : vector<8x8xf32>
    %c530 = arith.constant 530 : index
    %2235 = memref.load %arg2[%c530] : memref<656xf32, #tpu.memory_space<smem>>
    %2236 = vector.broadcast %2235 : f32 to vector<8x8xf32>
    %2237 = arith.mulf %2236, %95 : vector<8x8xf32>
    %2238 = arith.addf %2234, %2237 : vector<8x8xf32>
    %c531 = arith.constant 531 : index
    %2239 = memref.load %arg2[%c531] : memref<656xf32, #tpu.memory_space<smem>>
    %2240 = vector.broadcast %2239 : f32 to vector<8x8xf32>
    %2241 = arith.mulf %2240, %123 : vector<8x8xf32>
    %2242 = arith.addf %2238, %2241 : vector<8x8xf32>
    %c532 = arith.constant 532 : index
    %2243 = memref.load %arg2[%c532] : memref<656xf32, #tpu.memory_space<smem>>
    %2244 = vector.broadcast %2243 : f32 to vector<8x8xf32>
    %2245 = arith.mulf %2244, %151 : vector<8x8xf32>
    %2246 = arith.addf %2242, %2245 : vector<8x8xf32>
    %c533 = arith.constant 533 : index
    %2247 = memref.load %arg2[%c533] : memref<656xf32, #tpu.memory_space<smem>>
    %2248 = vector.broadcast %2247 : f32 to vector<8x8xf32>
    %2249 = arith.mulf %2248, %179 : vector<8x8xf32>
    %2250 = arith.addf %2246, %2249 : vector<8x8xf32>
    %c534 = arith.constant 534 : index
    %2251 = memref.load %arg2[%c534] : memref<656xf32, #tpu.memory_space<smem>>
    %2252 = vector.broadcast %2251 : f32 to vector<8x8xf32>
    %2253 = arith.mulf %2252, %207 : vector<8x8xf32>
    %2254 = arith.addf %2250, %2253 : vector<8x8xf32>
    %c535 = arith.constant 535 : index
    %2255 = memref.load %arg2[%c535] : memref<656xf32, #tpu.memory_space<smem>>
    %2256 = vector.broadcast %2255 : f32 to vector<8x8xf32>
    %2257 = arith.mulf %2256, %235 : vector<8x8xf32>
    %2258 = arith.addf %2254, %2257 : vector<8x8xf32>
    %c536 = arith.constant 536 : index
    %2259 = memref.load %arg2[%c536] : memref<656xf32, #tpu.memory_space<smem>>
    %2260 = vector.broadcast %2259 : f32 to vector<8x8xf32>
    %2261 = arith.mulf %2260, %263 : vector<8x8xf32>
    %2262 = arith.addf %2258, %2261 : vector<8x8xf32>
    %c537 = arith.constant 537 : index
    %2263 = memref.load %arg2[%c537] : memref<656xf32, #tpu.memory_space<smem>>
    %2264 = vector.broadcast %2263 : f32 to vector<8x8xf32>
    %2265 = arith.mulf %2264, %291 : vector<8x8xf32>
    %2266 = arith.addf %2262, %2265 : vector<8x8xf32>
    %c538 = arith.constant 538 : index
    %2267 = memref.load %arg2[%c538] : memref<656xf32, #tpu.memory_space<smem>>
    %2268 = vector.broadcast %2267 : f32 to vector<8x8xf32>
    %2269 = arith.mulf %2268, %319 : vector<8x8xf32>
    %2270 = arith.addf %2266, %2269 : vector<8x8xf32>
    %c539 = arith.constant 539 : index
    %2271 = memref.load %arg2[%c539] : memref<656xf32, #tpu.memory_space<smem>>
    %2272 = vector.broadcast %2271 : f32 to vector<8x8xf32>
    %2273 = arith.mulf %2272, %347 : vector<8x8xf32>
    %2274 = arith.addf %2270, %2273 : vector<8x8xf32>
    %c540 = arith.constant 540 : index
    %2275 = memref.load %arg2[%c540] : memref<656xf32, #tpu.memory_space<smem>>
    %2276 = vector.broadcast %2275 : f32 to vector<8x8xf32>
    %2277 = arith.mulf %2276, %375 : vector<8x8xf32>
    %2278 = arith.addf %2274, %2277 : vector<8x8xf32>
    %c541 = arith.constant 541 : index
    %2279 = memref.load %arg2[%c541] : memref<656xf32, #tpu.memory_space<smem>>
    %2280 = vector.broadcast %2279 : f32 to vector<8x8xf32>
    %2281 = arith.mulf %2280, %403 : vector<8x8xf32>
    %2282 = arith.addf %2278, %2281 : vector<8x8xf32>
    %c542 = arith.constant 542 : index
    %2283 = memref.load %arg2[%c542] : memref<656xf32, #tpu.memory_space<smem>>
    %2284 = vector.broadcast %2283 : f32 to vector<8x8xf32>
    %2285 = arith.mulf %2284, %431 : vector<8x8xf32>
    %2286 = arith.addf %2282, %2285 : vector<8x8xf32>
    %c543 = arith.constant 543 : index
    %2287 = memref.load %arg2[%c543] : memref<656xf32, #tpu.memory_space<smem>>
    %2288 = vector.broadcast %2287 : f32 to vector<8x8xf32>
    %2289 = arith.mulf %2288, %459 : vector<8x8xf32>
    %2290 = arith.addf %2286, %2289 : vector<8x8xf32>
    %c650 = arith.constant 650 : index
    %2291 = memref.load %arg2[%c650] : memref<656xf32, #tpu.memory_space<smem>>
    %2292 = vector.broadcast %2291 : f32 to vector<8x8xf32>
    %2293 = arith.addf %2290, %2292 : vector<8x8xf32>
    %cst_65 = arith.constant 0.000000e+00 : f32
    %2294 = vector.broadcast %cst_65 : f32 to vector<8x8xf32>
    %2295 = arith.maximumf %2293, %2294 : vector<8x8xf32>
    %c544 = arith.constant 544 : index
    %2296 = memref.load %arg2[%c544] : memref<656xf32, #tpu.memory_space<smem>>
    %2297 = vector.broadcast %2296 : f32 to vector<8x8xf32>
    %2298 = arith.mulf %2297, %39 : vector<8x8xf32>
    %c545 = arith.constant 545 : index
    %2299 = memref.load %arg2[%c545] : memref<656xf32, #tpu.memory_space<smem>>
    %2300 = vector.broadcast %2299 : f32 to vector<8x8xf32>
    %2301 = arith.mulf %2300, %67 : vector<8x8xf32>
    %2302 = arith.addf %2298, %2301 : vector<8x8xf32>
    %c546 = arith.constant 546 : index
    %2303 = memref.load %arg2[%c546] : memref<656xf32, #tpu.memory_space<smem>>
    %2304 = vector.broadcast %2303 : f32 to vector<8x8xf32>
    %2305 = arith.mulf %2304, %95 : vector<8x8xf32>
    %2306 = arith.addf %2302, %2305 : vector<8x8xf32>
    %c547 = arith.constant 547 : index
    %2307 = memref.load %arg2[%c547] : memref<656xf32, #tpu.memory_space<smem>>
    %2308 = vector.broadcast %2307 : f32 to vector<8x8xf32>
    %2309 = arith.mulf %2308, %123 : vector<8x8xf32>
    %2310 = arith.addf %2306, %2309 : vector<8x8xf32>
    %c548 = arith.constant 548 : index
    %2311 = memref.load %arg2[%c548] : memref<656xf32, #tpu.memory_space<smem>>
    %2312 = vector.broadcast %2311 : f32 to vector<8x8xf32>
    %2313 = arith.mulf %2312, %151 : vector<8x8xf32>
    %2314 = arith.addf %2310, %2313 : vector<8x8xf32>
    %c549 = arith.constant 549 : index
    %2315 = memref.load %arg2[%c549] : memref<656xf32, #tpu.memory_space<smem>>
    %2316 = vector.broadcast %2315 : f32 to vector<8x8xf32>
    %2317 = arith.mulf %2316, %179 : vector<8x8xf32>
    %2318 = arith.addf %2314, %2317 : vector<8x8xf32>
    %c550 = arith.constant 550 : index
    %2319 = memref.load %arg2[%c550] : memref<656xf32, #tpu.memory_space<smem>>
    %2320 = vector.broadcast %2319 : f32 to vector<8x8xf32>
    %2321 = arith.mulf %2320, %207 : vector<8x8xf32>
    %2322 = arith.addf %2318, %2321 : vector<8x8xf32>
    %c551 = arith.constant 551 : index
    %2323 = memref.load %arg2[%c551] : memref<656xf32, #tpu.memory_space<smem>>
    %2324 = vector.broadcast %2323 : f32 to vector<8x8xf32>
    %2325 = arith.mulf %2324, %235 : vector<8x8xf32>
    %2326 = arith.addf %2322, %2325 : vector<8x8xf32>
    %c552 = arith.constant 552 : index
    %2327 = memref.load %arg2[%c552] : memref<656xf32, #tpu.memory_space<smem>>
    %2328 = vector.broadcast %2327 : f32 to vector<8x8xf32>
    %2329 = arith.mulf %2328, %263 : vector<8x8xf32>
    %2330 = arith.addf %2326, %2329 : vector<8x8xf32>
    %c553 = arith.constant 553 : index
    %2331 = memref.load %arg2[%c553] : memref<656xf32, #tpu.memory_space<smem>>
    %2332 = vector.broadcast %2331 : f32 to vector<8x8xf32>
    %2333 = arith.mulf %2332, %291 : vector<8x8xf32>
    %2334 = arith.addf %2330, %2333 : vector<8x8xf32>
    %c554 = arith.constant 554 : index
    %2335 = memref.load %arg2[%c554] : memref<656xf32, #tpu.memory_space<smem>>
    %2336 = vector.broadcast %2335 : f32 to vector<8x8xf32>
    %2337 = arith.mulf %2336, %319 : vector<8x8xf32>
    %2338 = arith.addf %2334, %2337 : vector<8x8xf32>
    %c555 = arith.constant 555 : index
    %2339 = memref.load %arg2[%c555] : memref<656xf32, #tpu.memory_space<smem>>
    %2340 = vector.broadcast %2339 : f32 to vector<8x8xf32>
    %2341 = arith.mulf %2340, %347 : vector<8x8xf32>
    %2342 = arith.addf %2338, %2341 : vector<8x8xf32>
    %c556 = arith.constant 556 : index
    %2343 = memref.load %arg2[%c556] : memref<656xf32, #tpu.memory_space<smem>>
    %2344 = vector.broadcast %2343 : f32 to vector<8x8xf32>
    %2345 = arith.mulf %2344, %375 : vector<8x8xf32>
    %2346 = arith.addf %2342, %2345 : vector<8x8xf32>
    %c557 = arith.constant 557 : index
    %2347 = memref.load %arg2[%c557] : memref<656xf32, #tpu.memory_space<smem>>
    %2348 = vector.broadcast %2347 : f32 to vector<8x8xf32>
    %2349 = arith.mulf %2348, %403 : vector<8x8xf32>
    %2350 = arith.addf %2346, %2349 : vector<8x8xf32>
    %c558 = arith.constant 558 : index
    %2351 = memref.load %arg2[%c558] : memref<656xf32, #tpu.memory_space<smem>>
    %2352 = vector.broadcast %2351 : f32 to vector<8x8xf32>
    %2353 = arith.mulf %2352, %431 : vector<8x8xf32>
    %2354 = arith.addf %2350, %2353 : vector<8x8xf32>
    %c559 = arith.constant 559 : index
    %2355 = memref.load %arg2[%c559] : memref<656xf32, #tpu.memory_space<smem>>
    %2356 = vector.broadcast %2355 : f32 to vector<8x8xf32>
    %2357 = arith.mulf %2356, %459 : vector<8x8xf32>
    %2358 = arith.addf %2354, %2357 : vector<8x8xf32>
    %c651 = arith.constant 651 : index
    %2359 = memref.load %arg2[%c651] : memref<656xf32, #tpu.memory_space<smem>>
    %2360 = vector.broadcast %2359 : f32 to vector<8x8xf32>
    %2361 = arith.addf %2358, %2360 : vector<8x8xf32>
    %cst_66 = arith.constant 0.000000e+00 : f32
    %2362 = vector.broadcast %cst_66 : f32 to vector<8x8xf32>
    %2363 = arith.maximumf %2361, %2362 : vector<8x8xf32>
    %c560 = arith.constant 560 : index
    %2364 = memref.load %arg2[%c560] : memref<656xf32, #tpu.memory_space<smem>>
    %2365 = vector.broadcast %2364 : f32 to vector<8x8xf32>
    %2366 = arith.mulf %2365, %39 : vector<8x8xf32>
    %c561 = arith.constant 561 : index
    %2367 = memref.load %arg2[%c561] : memref<656xf32, #tpu.memory_space<smem>>
    %2368 = vector.broadcast %2367 : f32 to vector<8x8xf32>
    %2369 = arith.mulf %2368, %67 : vector<8x8xf32>
    %2370 = arith.addf %2366, %2369 : vector<8x8xf32>
    %c562 = arith.constant 562 : index
    %2371 = memref.load %arg2[%c562] : memref<656xf32, #tpu.memory_space<smem>>
    %2372 = vector.broadcast %2371 : f32 to vector<8x8xf32>
    %2373 = arith.mulf %2372, %95 : vector<8x8xf32>
    %2374 = arith.addf %2370, %2373 : vector<8x8xf32>
    %c563 = arith.constant 563 : index
    %2375 = memref.load %arg2[%c563] : memref<656xf32, #tpu.memory_space<smem>>
    %2376 = vector.broadcast %2375 : f32 to vector<8x8xf32>
    %2377 = arith.mulf %2376, %123 : vector<8x8xf32>
    %2378 = arith.addf %2374, %2377 : vector<8x8xf32>
    %c564 = arith.constant 564 : index
    %2379 = memref.load %arg2[%c564] : memref<656xf32, #tpu.memory_space<smem>>
    %2380 = vector.broadcast %2379 : f32 to vector<8x8xf32>
    %2381 = arith.mulf %2380, %151 : vector<8x8xf32>
    %2382 = arith.addf %2378, %2381 : vector<8x8xf32>
    %c565 = arith.constant 565 : index
    %2383 = memref.load %arg2[%c565] : memref<656xf32, #tpu.memory_space<smem>>
    %2384 = vector.broadcast %2383 : f32 to vector<8x8xf32>
    %2385 = arith.mulf %2384, %179 : vector<8x8xf32>
    %2386 = arith.addf %2382, %2385 : vector<8x8xf32>
    %c566 = arith.constant 566 : index
    %2387 = memref.load %arg2[%c566] : memref<656xf32, #tpu.memory_space<smem>>
    %2388 = vector.broadcast %2387 : f32 to vector<8x8xf32>
    %2389 = arith.mulf %2388, %207 : vector<8x8xf32>
    %2390 = arith.addf %2386, %2389 : vector<8x8xf32>
    %c567 = arith.constant 567 : index
    %2391 = memref.load %arg2[%c567] : memref<656xf32, #tpu.memory_space<smem>>
    %2392 = vector.broadcast %2391 : f32 to vector<8x8xf32>
    %2393 = arith.mulf %2392, %235 : vector<8x8xf32>
    %2394 = arith.addf %2390, %2393 : vector<8x8xf32>
    %c568 = arith.constant 568 : index
    %2395 = memref.load %arg2[%c568] : memref<656xf32, #tpu.memory_space<smem>>
    %2396 = vector.broadcast %2395 : f32 to vector<8x8xf32>
    %2397 = arith.mulf %2396, %263 : vector<8x8xf32>
    %2398 = arith.addf %2394, %2397 : vector<8x8xf32>
    %c569 = arith.constant 569 : index
    %2399 = memref.load %arg2[%c569] : memref<656xf32, #tpu.memory_space<smem>>
    %2400 = vector.broadcast %2399 : f32 to vector<8x8xf32>
    %2401 = arith.mulf %2400, %291 : vector<8x8xf32>
    %2402 = arith.addf %2398, %2401 : vector<8x8xf32>
    %c570 = arith.constant 570 : index
    %2403 = memref.load %arg2[%c570] : memref<656xf32, #tpu.memory_space<smem>>
    %2404 = vector.broadcast %2403 : f32 to vector<8x8xf32>
    %2405 = arith.mulf %2404, %319 : vector<8x8xf32>
    %2406 = arith.addf %2402, %2405 : vector<8x8xf32>
    %c571 = arith.constant 571 : index
    %2407 = memref.load %arg2[%c571] : memref<656xf32, #tpu.memory_space<smem>>
    %2408 = vector.broadcast %2407 : f32 to vector<8x8xf32>
    %2409 = arith.mulf %2408, %347 : vector<8x8xf32>
    %2410 = arith.addf %2406, %2409 : vector<8x8xf32>
    %c572 = arith.constant 572 : index
    %2411 = memref.load %arg2[%c572] : memref<656xf32, #tpu.memory_space<smem>>
    %2412 = vector.broadcast %2411 : f32 to vector<8x8xf32>
    %2413 = arith.mulf %2412, %375 : vector<8x8xf32>
    %2414 = arith.addf %2410, %2413 : vector<8x8xf32>
    %c573 = arith.constant 573 : index
    %2415 = memref.load %arg2[%c573] : memref<656xf32, #tpu.memory_space<smem>>
    %2416 = vector.broadcast %2415 : f32 to vector<8x8xf32>
    %2417 = arith.mulf %2416, %403 : vector<8x8xf32>
    %2418 = arith.addf %2414, %2417 : vector<8x8xf32>
    %c574 = arith.constant 574 : index
    %2419 = memref.load %arg2[%c574] : memref<656xf32, #tpu.memory_space<smem>>
    %2420 = vector.broadcast %2419 : f32 to vector<8x8xf32>
    %2421 = arith.mulf %2420, %431 : vector<8x8xf32>
    %2422 = arith.addf %2418, %2421 : vector<8x8xf32>
    %c575 = arith.constant 575 : index
    %2423 = memref.load %arg2[%c575] : memref<656xf32, #tpu.memory_space<smem>>
    %2424 = vector.broadcast %2423 : f32 to vector<8x8xf32>
    %2425 = arith.mulf %2424, %459 : vector<8x8xf32>
    %2426 = arith.addf %2422, %2425 : vector<8x8xf32>
    %c652 = arith.constant 652 : index
    %2427 = memref.load %arg2[%c652] : memref<656xf32, #tpu.memory_space<smem>>
    %2428 = vector.broadcast %2427 : f32 to vector<8x8xf32>
    %2429 = arith.addf %2426, %2428 : vector<8x8xf32>
    %cst_67 = arith.constant 0.000000e+00 : f32
    %2430 = vector.broadcast %cst_67 : f32 to vector<8x8xf32>
    %2431 = arith.maximumf %2429, %2430 : vector<8x8xf32>
    %c576 = arith.constant 576 : index
    %2432 = memref.load %arg2[%c576] : memref<656xf32, #tpu.memory_space<smem>>
    %2433 = vector.broadcast %2432 : f32 to vector<8x8xf32>
    %2434 = arith.mulf %2433, %39 : vector<8x8xf32>
    %c577 = arith.constant 577 : index
    %2435 = memref.load %arg2[%c577] : memref<656xf32, #tpu.memory_space<smem>>
    %2436 = vector.broadcast %2435 : f32 to vector<8x8xf32>
    %2437 = arith.mulf %2436, %67 : vector<8x8xf32>
    %2438 = arith.addf %2434, %2437 : vector<8x8xf32>
    %c578 = arith.constant 578 : index
    %2439 = memref.load %arg2[%c578] : memref<656xf32, #tpu.memory_space<smem>>
    %2440 = vector.broadcast %2439 : f32 to vector<8x8xf32>
    %2441 = arith.mulf %2440, %95 : vector<8x8xf32>
    %2442 = arith.addf %2438, %2441 : vector<8x8xf32>
    %c579 = arith.constant 579 : index
    %2443 = memref.load %arg2[%c579] : memref<656xf32, #tpu.memory_space<smem>>
    %2444 = vector.broadcast %2443 : f32 to vector<8x8xf32>
    %2445 = arith.mulf %2444, %123 : vector<8x8xf32>
    %2446 = arith.addf %2442, %2445 : vector<8x8xf32>
    %c580 = arith.constant 580 : index
    %2447 = memref.load %arg2[%c580] : memref<656xf32, #tpu.memory_space<smem>>
    %2448 = vector.broadcast %2447 : f32 to vector<8x8xf32>
    %2449 = arith.mulf %2448, %151 : vector<8x8xf32>
    %2450 = arith.addf %2446, %2449 : vector<8x8xf32>
    %c581 = arith.constant 581 : index
    %2451 = memref.load %arg2[%c581] : memref<656xf32, #tpu.memory_space<smem>>
    %2452 = vector.broadcast %2451 : f32 to vector<8x8xf32>
    %2453 = arith.mulf %2452, %179 : vector<8x8xf32>
    %2454 = arith.addf %2450, %2453 : vector<8x8xf32>
    %c582 = arith.constant 582 : index
    %2455 = memref.load %arg2[%c582] : memref<656xf32, #tpu.memory_space<smem>>
    %2456 = vector.broadcast %2455 : f32 to vector<8x8xf32>
    %2457 = arith.mulf %2456, %207 : vector<8x8xf32>
    %2458 = arith.addf %2454, %2457 : vector<8x8xf32>
    %c583 = arith.constant 583 : index
    %2459 = memref.load %arg2[%c583] : memref<656xf32, #tpu.memory_space<smem>>
    %2460 = vector.broadcast %2459 : f32 to vector<8x8xf32>
    %2461 = arith.mulf %2460, %235 : vector<8x8xf32>
    %2462 = arith.addf %2458, %2461 : vector<8x8xf32>
    %c584 = arith.constant 584 : index
    %2463 = memref.load %arg2[%c584] : memref<656xf32, #tpu.memory_space<smem>>
    %2464 = vector.broadcast %2463 : f32 to vector<8x8xf32>
    %2465 = arith.mulf %2464, %263 : vector<8x8xf32>
    %2466 = arith.addf %2462, %2465 : vector<8x8xf32>
    %c585 = arith.constant 585 : index
    %2467 = memref.load %arg2[%c585] : memref<656xf32, #tpu.memory_space<smem>>
    %2468 = vector.broadcast %2467 : f32 to vector<8x8xf32>
    %2469 = arith.mulf %2468, %291 : vector<8x8xf32>
    %2470 = arith.addf %2466, %2469 : vector<8x8xf32>
    %c586 = arith.constant 586 : index
    %2471 = memref.load %arg2[%c586] : memref<656xf32, #tpu.memory_space<smem>>
    %2472 = vector.broadcast %2471 : f32 to vector<8x8xf32>
    %2473 = arith.mulf %2472, %319 : vector<8x8xf32>
    %2474 = arith.addf %2470, %2473 : vector<8x8xf32>
    %c587 = arith.constant 587 : index
    %2475 = memref.load %arg2[%c587] : memref<656xf32, #tpu.memory_space<smem>>
    %2476 = vector.broadcast %2475 : f32 to vector<8x8xf32>
    %2477 = arith.mulf %2476, %347 : vector<8x8xf32>
    %2478 = arith.addf %2474, %2477 : vector<8x8xf32>
    %c588 = arith.constant 588 : index
    %2479 = memref.load %arg2[%c588] : memref<656xf32, #tpu.memory_space<smem>>
    %2480 = vector.broadcast %2479 : f32 to vector<8x8xf32>
    %2481 = arith.mulf %2480, %375 : vector<8x8xf32>
    %2482 = arith.addf %2478, %2481 : vector<8x8xf32>
    %c589 = arith.constant 589 : index
    %2483 = memref.load %arg2[%c589] : memref<656xf32, #tpu.memory_space<smem>>
    %2484 = vector.broadcast %2483 : f32 to vector<8x8xf32>
    %2485 = arith.mulf %2484, %403 : vector<8x8xf32>
    %2486 = arith.addf %2482, %2485 : vector<8x8xf32>
    %c590 = arith.constant 590 : index
    %2487 = memref.load %arg2[%c590] : memref<656xf32, #tpu.memory_space<smem>>
    %2488 = vector.broadcast %2487 : f32 to vector<8x8xf32>
    %2489 = arith.mulf %2488, %431 : vector<8x8xf32>
    %2490 = arith.addf %2486, %2489 : vector<8x8xf32>
    %c591 = arith.constant 591 : index
    %2491 = memref.load %arg2[%c591] : memref<656xf32, #tpu.memory_space<smem>>
    %2492 = vector.broadcast %2491 : f32 to vector<8x8xf32>
    %2493 = arith.mulf %2492, %459 : vector<8x8xf32>
    %2494 = arith.addf %2490, %2493 : vector<8x8xf32>
    %c653 = arith.constant 653 : index
    %2495 = memref.load %arg2[%c653] : memref<656xf32, #tpu.memory_space<smem>>
    %2496 = vector.broadcast %2495 : f32 to vector<8x8xf32>
    %2497 = arith.addf %2494, %2496 : vector<8x8xf32>
    %cst_68 = arith.constant 0.000000e+00 : f32
    %2498 = vector.broadcast %cst_68 : f32 to vector<8x8xf32>
    %2499 = arith.maximumf %2497, %2498 : vector<8x8xf32>
    %c592 = arith.constant 592 : index
    %2500 = memref.load %arg2[%c592] : memref<656xf32, #tpu.memory_space<smem>>
    %2501 = vector.broadcast %2500 : f32 to vector<8x8xf32>
    %2502 = arith.mulf %2501, %39 : vector<8x8xf32>
    %c593 = arith.constant 593 : index
    %2503 = memref.load %arg2[%c593] : memref<656xf32, #tpu.memory_space<smem>>
    %2504 = vector.broadcast %2503 : f32 to vector<8x8xf32>
    %2505 = arith.mulf %2504, %67 : vector<8x8xf32>
    %2506 = arith.addf %2502, %2505 : vector<8x8xf32>
    %c594 = arith.constant 594 : index
    %2507 = memref.load %arg2[%c594] : memref<656xf32, #tpu.memory_space<smem>>
    %2508 = vector.broadcast %2507 : f32 to vector<8x8xf32>
    %2509 = arith.mulf %2508, %95 : vector<8x8xf32>
    %2510 = arith.addf %2506, %2509 : vector<8x8xf32>
    %c595 = arith.constant 595 : index
    %2511 = memref.load %arg2[%c595] : memref<656xf32, #tpu.memory_space<smem>>
    %2512 = vector.broadcast %2511 : f32 to vector<8x8xf32>
    %2513 = arith.mulf %2512, %123 : vector<8x8xf32>
    %2514 = arith.addf %2510, %2513 : vector<8x8xf32>
    %c596 = arith.constant 596 : index
    %2515 = memref.load %arg2[%c596] : memref<656xf32, #tpu.memory_space<smem>>
    %2516 = vector.broadcast %2515 : f32 to vector<8x8xf32>
    %2517 = arith.mulf %2516, %151 : vector<8x8xf32>
    %2518 = arith.addf %2514, %2517 : vector<8x8xf32>
    %c597 = arith.constant 597 : index
    %2519 = memref.load %arg2[%c597] : memref<656xf32, #tpu.memory_space<smem>>
    %2520 = vector.broadcast %2519 : f32 to vector<8x8xf32>
    %2521 = arith.mulf %2520, %179 : vector<8x8xf32>
    %2522 = arith.addf %2518, %2521 : vector<8x8xf32>
    %c598 = arith.constant 598 : index
    %2523 = memref.load %arg2[%c598] : memref<656xf32, #tpu.memory_space<smem>>
    %2524 = vector.broadcast %2523 : f32 to vector<8x8xf32>
    %2525 = arith.mulf %2524, %207 : vector<8x8xf32>
    %2526 = arith.addf %2522, %2525 : vector<8x8xf32>
    %c599 = arith.constant 599 : index
    %2527 = memref.load %arg2[%c599] : memref<656xf32, #tpu.memory_space<smem>>
    %2528 = vector.broadcast %2527 : f32 to vector<8x8xf32>
    %2529 = arith.mulf %2528, %235 : vector<8x8xf32>
    %2530 = arith.addf %2526, %2529 : vector<8x8xf32>
    %c600 = arith.constant 600 : index
    %2531 = memref.load %arg2[%c600] : memref<656xf32, #tpu.memory_space<smem>>
    %2532 = vector.broadcast %2531 : f32 to vector<8x8xf32>
    %2533 = arith.mulf %2532, %263 : vector<8x8xf32>
    %2534 = arith.addf %2530, %2533 : vector<8x8xf32>
    %c601 = arith.constant 601 : index
    %2535 = memref.load %arg2[%c601] : memref<656xf32, #tpu.memory_space<smem>>
    %2536 = vector.broadcast %2535 : f32 to vector<8x8xf32>
    %2537 = arith.mulf %2536, %291 : vector<8x8xf32>
    %2538 = arith.addf %2534, %2537 : vector<8x8xf32>
    %c602 = arith.constant 602 : index
    %2539 = memref.load %arg2[%c602] : memref<656xf32, #tpu.memory_space<smem>>
    %2540 = vector.broadcast %2539 : f32 to vector<8x8xf32>
    %2541 = arith.mulf %2540, %319 : vector<8x8xf32>
    %2542 = arith.addf %2538, %2541 : vector<8x8xf32>
    %c603 = arith.constant 603 : index
    %2543 = memref.load %arg2[%c603] : memref<656xf32, #tpu.memory_space<smem>>
    %2544 = vector.broadcast %2543 : f32 to vector<8x8xf32>
    %2545 = arith.mulf %2544, %347 : vector<8x8xf32>
    %2546 = arith.addf %2542, %2545 : vector<8x8xf32>
    %c604 = arith.constant 604 : index
    %2547 = memref.load %arg2[%c604] : memref<656xf32, #tpu.memory_space<smem>>
    %2548 = vector.broadcast %2547 : f32 to vector<8x8xf32>
    %2549 = arith.mulf %2548, %375 : vector<8x8xf32>
    %2550 = arith.addf %2546, %2549 : vector<8x8xf32>
    %c605 = arith.constant 605 : index
    %2551 = memref.load %arg2[%c605] : memref<656xf32, #tpu.memory_space<smem>>
    %2552 = vector.broadcast %2551 : f32 to vector<8x8xf32>
    %2553 = arith.mulf %2552, %403 : vector<8x8xf32>
    %2554 = arith.addf %2550, %2553 : vector<8x8xf32>
    %c606 = arith.constant 606 : index
    %2555 = memref.load %arg2[%c606] : memref<656xf32, #tpu.memory_space<smem>>
    %2556 = vector.broadcast %2555 : f32 to vector<8x8xf32>
    %2557 = arith.mulf %2556, %431 : vector<8x8xf32>
    %2558 = arith.addf %2554, %2557 : vector<8x8xf32>
    %c607 = arith.constant 607 : index
    %2559 = memref.load %arg2[%c607] : memref<656xf32, #tpu.memory_space<smem>>
    %2560 = vector.broadcast %2559 : f32 to vector<8x8xf32>
    %2561 = arith.mulf %2560, %459 : vector<8x8xf32>
    %2562 = arith.addf %2558, %2561 : vector<8x8xf32>
    %c654 = arith.constant 654 : index
    %2563 = memref.load %arg2[%c654] : memref<656xf32, #tpu.memory_space<smem>>
    %2564 = vector.broadcast %2563 : f32 to vector<8x8xf32>
    %2565 = arith.addf %2562, %2564 : vector<8x8xf32>
    %cst_69 = arith.constant 0.000000e+00 : f32
    %2566 = vector.broadcast %cst_69 : f32 to vector<8x8xf32>
    %2567 = arith.maximumf %2565, %2566 : vector<8x8xf32>
    %c608 = arith.constant 608 : index
    %2568 = memref.load %arg2[%c608] : memref<656xf32, #tpu.memory_space<smem>>
    %2569 = vector.broadcast %2568 : f32 to vector<8x8xf32>
    %2570 = arith.mulf %2569, %39 : vector<8x8xf32>
    %c609 = arith.constant 609 : index
    %2571 = memref.load %arg2[%c609] : memref<656xf32, #tpu.memory_space<smem>>
    %2572 = vector.broadcast %2571 : f32 to vector<8x8xf32>
    %2573 = arith.mulf %2572, %67 : vector<8x8xf32>
    %2574 = arith.addf %2570, %2573 : vector<8x8xf32>
    %c610 = arith.constant 610 : index
    %2575 = memref.load %arg2[%c610] : memref<656xf32, #tpu.memory_space<smem>>
    %2576 = vector.broadcast %2575 : f32 to vector<8x8xf32>
    %2577 = arith.mulf %2576, %95 : vector<8x8xf32>
    %2578 = arith.addf %2574, %2577 : vector<8x8xf32>
    %c611 = arith.constant 611 : index
    %2579 = memref.load %arg2[%c611] : memref<656xf32, #tpu.memory_space<smem>>
    %2580 = vector.broadcast %2579 : f32 to vector<8x8xf32>
    %2581 = arith.mulf %2580, %123 : vector<8x8xf32>
    %2582 = arith.addf %2578, %2581 : vector<8x8xf32>
    %c612 = arith.constant 612 : index
    %2583 = memref.load %arg2[%c612] : memref<656xf32, #tpu.memory_space<smem>>
    %2584 = vector.broadcast %2583 : f32 to vector<8x8xf32>
    %2585 = arith.mulf %2584, %151 : vector<8x8xf32>
    %2586 = arith.addf %2582, %2585 : vector<8x8xf32>
    %c613 = arith.constant 613 : index
    %2587 = memref.load %arg2[%c613] : memref<656xf32, #tpu.memory_space<smem>>
    %2588 = vector.broadcast %2587 : f32 to vector<8x8xf32>
    %2589 = arith.mulf %2588, %179 : vector<8x8xf32>
    %2590 = arith.addf %2586, %2589 : vector<8x8xf32>
    %c614 = arith.constant 614 : index
    %2591 = memref.load %arg2[%c614] : memref<656xf32, #tpu.memory_space<smem>>
    %2592 = vector.broadcast %2591 : f32 to vector<8x8xf32>
    %2593 = arith.mulf %2592, %207 : vector<8x8xf32>
    %2594 = arith.addf %2590, %2593 : vector<8x8xf32>
    %c615 = arith.constant 615 : index
    %2595 = memref.load %arg2[%c615] : memref<656xf32, #tpu.memory_space<smem>>
    %2596 = vector.broadcast %2595 : f32 to vector<8x8xf32>
    %2597 = arith.mulf %2596, %235 : vector<8x8xf32>
    %2598 = arith.addf %2594, %2597 : vector<8x8xf32>
    %c616 = arith.constant 616 : index
    %2599 = memref.load %arg2[%c616] : memref<656xf32, #tpu.memory_space<smem>>
    %2600 = vector.broadcast %2599 : f32 to vector<8x8xf32>
    %2601 = arith.mulf %2600, %263 : vector<8x8xf32>
    %2602 = arith.addf %2598, %2601 : vector<8x8xf32>
    %c617 = arith.constant 617 : index
    %2603 = memref.load %arg2[%c617] : memref<656xf32, #tpu.memory_space<smem>>
    %2604 = vector.broadcast %2603 : f32 to vector<8x8xf32>
    %2605 = arith.mulf %2604, %291 : vector<8x8xf32>
    %2606 = arith.addf %2602, %2605 : vector<8x8xf32>
    %c618 = arith.constant 618 : index
    %2607 = memref.load %arg2[%c618] : memref<656xf32, #tpu.memory_space<smem>>
    %2608 = vector.broadcast %2607 : f32 to vector<8x8xf32>
    %2609 = arith.mulf %2608, %319 : vector<8x8xf32>
    %2610 = arith.addf %2606, %2609 : vector<8x8xf32>
    %c619 = arith.constant 619 : index
    %2611 = memref.load %arg2[%c619] : memref<656xf32, #tpu.memory_space<smem>>
    %2612 = vector.broadcast %2611 : f32 to vector<8x8xf32>
    %2613 = arith.mulf %2612, %347 : vector<8x8xf32>
    %2614 = arith.addf %2610, %2613 : vector<8x8xf32>
    %c620 = arith.constant 620 : index
    %2615 = memref.load %arg2[%c620] : memref<656xf32, #tpu.memory_space<smem>>
    %2616 = vector.broadcast %2615 : f32 to vector<8x8xf32>
    %2617 = arith.mulf %2616, %375 : vector<8x8xf32>
    %2618 = arith.addf %2614, %2617 : vector<8x8xf32>
    %c621 = arith.constant 621 : index
    %2619 = memref.load %arg2[%c621] : memref<656xf32, #tpu.memory_space<smem>>
    %2620 = vector.broadcast %2619 : f32 to vector<8x8xf32>
    %2621 = arith.mulf %2620, %403 : vector<8x8xf32>
    %2622 = arith.addf %2618, %2621 : vector<8x8xf32>
    %c622 = arith.constant 622 : index
    %2623 = memref.load %arg2[%c622] : memref<656xf32, #tpu.memory_space<smem>>
    %2624 = vector.broadcast %2623 : f32 to vector<8x8xf32>
    %2625 = arith.mulf %2624, %431 : vector<8x8xf32>
    %2626 = arith.addf %2622, %2625 : vector<8x8xf32>
    %c623 = arith.constant 623 : index
    %2627 = memref.load %arg2[%c623] : memref<656xf32, #tpu.memory_space<smem>>
    %2628 = vector.broadcast %2627 : f32 to vector<8x8xf32>
    %2629 = arith.mulf %2628, %459 : vector<8x8xf32>
    %2630 = arith.addf %2626, %2629 : vector<8x8xf32>
    %c655 = arith.constant 655 : index
    %2631 = memref.load %arg2[%c655] : memref<656xf32, #tpu.memory_space<smem>>
    %2632 = vector.broadcast %2631 : f32 to vector<8x8xf32>
    %2633 = arith.addf %2630, %2632 : vector<8x8xf32>
    %cst_70 = arith.constant 0.000000e+00 : f32
    %2634 = vector.broadcast %cst_70 : f32 to vector<8x8xf32>
    %2635 = arith.maximumf %2633, %2634 : vector<8x8xf32>
    %cst_71 = arith.constant dense<0xFF800000> : vector<8xf32>
    %2636 = vector.multi_reduction <maximumf>, %527, %cst_71 [0] : vector<8x8xf32> to vector<8xf32>
    %2637 = vector.shape_cast %2636 : vector<8xf32> to vector<1x8xf32>
    %cst_72 = arith.constant dense<0xFF800000> : vector<8xf32>
    %2638 = vector.multi_reduction <maximumf>, %595, %cst_72 [0] : vector<8x8xf32> to vector<8xf32>
    %2639 = vector.shape_cast %2638 : vector<8xf32> to vector<1x8xf32>
    %cst_73 = arith.constant dense<0xFF800000> : vector<8xf32>
    %2640 = vector.multi_reduction <maximumf>, %663, %cst_73 [0] : vector<8x8xf32> to vector<8xf32>
    %2641 = vector.shape_cast %2640 : vector<8xf32> to vector<1x8xf32>
    %cst_74 = arith.constant dense<0xFF800000> : vector<8xf32>
    %2642 = vector.multi_reduction <maximumf>, %731, %cst_74 [0] : vector<8x8xf32> to vector<8xf32>
    %2643 = vector.shape_cast %2642 : vector<8xf32> to vector<1x8xf32>
    %cst_75 = arith.constant dense<0xFF800000> : vector<8xf32>
    %2644 = vector.multi_reduction <maximumf>, %799, %cst_75 [0] : vector<8x8xf32> to vector<8xf32>
    %2645 = vector.shape_cast %2644 : vector<8xf32> to vector<1x8xf32>
    %cst_76 = arith.constant dense<0xFF800000> : vector<8xf32>
    %2646 = vector.multi_reduction <maximumf>, %867, %cst_76 [0] : vector<8x8xf32> to vector<8xf32>
    %2647 = vector.shape_cast %2646 : vector<8xf32> to vector<1x8xf32>
    %cst_77 = arith.constant dense<0xFF800000> : vector<8xf32>
    %2648 = vector.multi_reduction <maximumf>, %935, %cst_77 [0] : vector<8x8xf32> to vector<8xf32>
    %2649 = vector.shape_cast %2648 : vector<8xf32> to vector<1x8xf32>
    %cst_78 = arith.constant dense<0xFF800000> : vector<8xf32>
    %2650 = vector.multi_reduction <maximumf>, %1003, %cst_78 [0] : vector<8x8xf32> to vector<8xf32>
    %2651 = vector.shape_cast %2650 : vector<8xf32> to vector<1x8xf32>
    %cst_79 = arith.constant dense<0xFF800000> : vector<8xf32>
    %2652 = vector.multi_reduction <maximumf>, %1071, %cst_79 [0] : vector<8x8xf32> to vector<8xf32>
    %2653 = vector.shape_cast %2652 : vector<8xf32> to vector<1x8xf32>
    %cst_80 = arith.constant dense<0xFF800000> : vector<8xf32>
    %2654 = vector.multi_reduction <maximumf>, %1139, %cst_80 [0] : vector<8x8xf32> to vector<8xf32>
    %2655 = vector.shape_cast %2654 : vector<8xf32> to vector<1x8xf32>
    %cst_81 = arith.constant dense<0xFF800000> : vector<8xf32>
    %2656 = vector.multi_reduction <maximumf>, %1207, %cst_81 [0] : vector<8x8xf32> to vector<8xf32>
    %2657 = vector.shape_cast %2656 : vector<8xf32> to vector<1x8xf32>
    %cst_82 = arith.constant dense<0xFF800000> : vector<8xf32>
    %2658 = vector.multi_reduction <maximumf>, %1275, %cst_82 [0] : vector<8x8xf32> to vector<8xf32>
    %2659 = vector.shape_cast %2658 : vector<8xf32> to vector<1x8xf32>
    %cst_83 = arith.constant dense<0xFF800000> : vector<8xf32>
    %2660 = vector.multi_reduction <maximumf>, %1343, %cst_83 [0] : vector<8x8xf32> to vector<8xf32>
    %2661 = vector.shape_cast %2660 : vector<8xf32> to vector<1x8xf32>
    %cst_84 = arith.constant dense<0xFF800000> : vector<8xf32>
    %2662 = vector.multi_reduction <maximumf>, %1411, %cst_84 [0] : vector<8x8xf32> to vector<8xf32>
    %2663 = vector.shape_cast %2662 : vector<8xf32> to vector<1x8xf32>
    %cst_85 = arith.constant dense<0xFF800000> : vector<8xf32>
    %2664 = vector.multi_reduction <maximumf>, %1479, %cst_85 [0] : vector<8x8xf32> to vector<8xf32>
    %2665 = vector.shape_cast %2664 : vector<8xf32> to vector<1x8xf32>
    %cst_86 = arith.constant dense<0xFF800000> : vector<8xf32>
    %2666 = vector.multi_reduction <maximumf>, %1547, %cst_86 [0] : vector<8x8xf32> to vector<8xf32>
    %2667 = vector.shape_cast %2666 : vector<8xf32> to vector<1x8xf32>
    %cst_87 = arith.constant dense<0xFF800000> : vector<8xf32>
    %2668 = vector.multi_reduction <maximumf>, %1615, %cst_87 [0] : vector<8x8xf32> to vector<8xf32>
    %2669 = vector.shape_cast %2668 : vector<8xf32> to vector<1x8xf32>
    %cst_88 = arith.constant dense<0xFF800000> : vector<8xf32>
    %2670 = vector.multi_reduction <maximumf>, %1683, %cst_88 [0] : vector<8x8xf32> to vector<8xf32>
    %2671 = vector.shape_cast %2670 : vector<8xf32> to vector<1x8xf32>
    %cst_89 = arith.constant dense<0xFF800000> : vector<8xf32>
    %2672 = vector.multi_reduction <maximumf>, %1751, %cst_89 [0] : vector<8x8xf32> to vector<8xf32>
    %2673 = vector.shape_cast %2672 : vector<8xf32> to vector<1x8xf32>
    %cst_90 = arith.constant dense<0xFF800000> : vector<8xf32>
    %2674 = vector.multi_reduction <maximumf>, %1819, %cst_90 [0] : vector<8x8xf32> to vector<8xf32>
    %2675 = vector.shape_cast %2674 : vector<8xf32> to vector<1x8xf32>
    %cst_91 = arith.constant dense<0xFF800000> : vector<8xf32>
    %2676 = vector.multi_reduction <maximumf>, %1887, %cst_91 [0] : vector<8x8xf32> to vector<8xf32>
    %2677 = vector.shape_cast %2676 : vector<8xf32> to vector<1x8xf32>
    %cst_92 = arith.constant dense<0xFF800000> : vector<8xf32>
    %2678 = vector.multi_reduction <maximumf>, %1955, %cst_92 [0] : vector<8x8xf32> to vector<8xf32>
    %2679 = vector.shape_cast %2678 : vector<8xf32> to vector<1x8xf32>
    %cst_93 = arith.constant dense<0xFF800000> : vector<8xf32>
    %2680 = vector.multi_reduction <maximumf>, %2023, %cst_93 [0] : vector<8x8xf32> to vector<8xf32>
    %2681 = vector.shape_cast %2680 : vector<8xf32> to vector<1x8xf32>
    %cst_94 = arith.constant dense<0xFF800000> : vector<8xf32>
    %2682 = vector.multi_reduction <maximumf>, %2091, %cst_94 [0] : vector<8x8xf32> to vector<8xf32>
    %2683 = vector.shape_cast %2682 : vector<8xf32> to vector<1x8xf32>
    %cst_95 = arith.constant dense<0xFF800000> : vector<8xf32>
    %2684 = vector.multi_reduction <maximumf>, %2159, %cst_95 [0] : vector<8x8xf32> to vector<8xf32>
    %2685 = vector.shape_cast %2684 : vector<8xf32> to vector<1x8xf32>
    %cst_96 = arith.constant dense<0xFF800000> : vector<8xf32>
    %2686 = vector.multi_reduction <maximumf>, %2227, %cst_96 [0] : vector<8x8xf32> to vector<8xf32>
    %2687 = vector.shape_cast %2686 : vector<8xf32> to vector<1x8xf32>
    %cst_97 = arith.constant dense<0xFF800000> : vector<8xf32>
    %2688 = vector.multi_reduction <maximumf>, %2295, %cst_97 [0] : vector<8x8xf32> to vector<8xf32>
    %2689 = vector.shape_cast %2688 : vector<8xf32> to vector<1x8xf32>
    %cst_98 = arith.constant dense<0xFF800000> : vector<8xf32>
    %2690 = vector.multi_reduction <maximumf>, %2363, %cst_98 [0] : vector<8x8xf32> to vector<8xf32>
    %2691 = vector.shape_cast %2690 : vector<8xf32> to vector<1x8xf32>
    %cst_99 = arith.constant dense<0xFF800000> : vector<8xf32>
    %2692 = vector.multi_reduction <maximumf>, %2431, %cst_99 [0] : vector<8x8xf32> to vector<8xf32>
    %2693 = vector.shape_cast %2692 : vector<8xf32> to vector<1x8xf32>
    %cst_100 = arith.constant dense<0xFF800000> : vector<8xf32>
    %2694 = vector.multi_reduction <maximumf>, %2499, %cst_100 [0] : vector<8x8xf32> to vector<8xf32>
    %2695 = vector.shape_cast %2694 : vector<8xf32> to vector<1x8xf32>
    %cst_101 = arith.constant dense<0xFF800000> : vector<8xf32>
    %2696 = vector.multi_reduction <maximumf>, %2567, %cst_101 [0] : vector<8x8xf32> to vector<8xf32>
    %2697 = vector.shape_cast %2696 : vector<8xf32> to vector<1x8xf32>
    %cst_102 = arith.constant dense<0xFF800000> : vector<8xf32>
    %2698 = vector.multi_reduction <maximumf>, %2635, %cst_102 [0] : vector<8x8xf32> to vector<8xf32>
    %2699 = vector.shape_cast %2698 : vector<8xf32> to vector<1x8xf32>
    %2700 = tpu.concatenate %2637, %2639, %2641, %2643, %2645, %2647, %2649, %2651, %2653, %2655, %2657, %2659, %2661, %2663, %2665, %2667 in 0 : vector<1x8xf32>, vector<1x8xf32>, vector<1x8xf32>, vector<1x8xf32>, vector<1x8xf32>, vector<1x8xf32>, vector<1x8xf32>, vector<1x8xf32>, vector<1x8xf32>, vector<1x8xf32>, vector<1x8xf32>, vector<1x8xf32>, vector<1x8xf32>, vector<1x8xf32>, vector<1x8xf32>, vector<1x8xf32> -> vector<16x8xf32>
    %2701 = tpu.concatenate %2669, %2671, %2673, %2675, %2677, %2679, %2681, %2683, %2685, %2687, %2689, %2691, %2693, %2695, %2697, %2699 in 0 : vector<1x8xf32>, vector<1x8xf32>, vector<1x8xf32>, vector<1x8xf32>, vector<1x8xf32>, vector<1x8xf32>, vector<1x8xf32>, vector<1x8xf32>, vector<1x8xf32>, vector<1x8xf32>, vector<1x8xf32>, vector<1x8xf32>, vector<1x8xf32>, vector<1x8xf32>, vector<1x8xf32>, vector<1x8xf32> -> vector<16x8xf32>
    %2702 = tpu.concatenate %2700, %2701 in 0 : vector<16x8xf32>, vector<16x8xf32> -> vector<32x8xf32>
    %c0_103 = arith.constant 0 : index
    %c0_104 = arith.constant 0 : index
    %c0_105 = arith.constant 0 : index
    %2703 = vector.load %arg4[%c0_103, %c0_104, %c0_105] : memref<1x32x8xf32, #tpu.memory_space<vmem>>, vector<1x32x8xf32>
    %2704 = vector.shape_cast %2703 : vector<1x32x8xf32> to vector<32x8xf32>
    %2705 = vector.shape_cast %2702 : vector<32x8xf32> to vector<1x32x8xf32>
    tpu.vector_store %arg4[%c0_103, %c0_104, %c0_105], %2705 {strides = array<i32>} : memref<1x32x8xf32, #tpu.memory_space<vmem>>, vector<1x32x8xf32>,
    return
  }
  func.func @transform_0(%arg0: i32, %arg1: i32) -> i32 {
    %c0_i32 = arith.constant 0 : i32
    %c0_i32_0 = arith.constant 0 : i32
    return %c0_i32 : i32
  }
  func.func @transform_1(%arg0: i32, %arg1: i32) -> (i32, i32, i32, i32) {
    %c0_i32 = arith.constant 0 : i32
    %c0_i32_0 = arith.constant 0 : i32
    %c0_i32_1 = arith.constant 0 : i32
    return %arg0, %c0_i32, %c0_i32_0, %arg1 : i32, i32, i32, i32
  }
  func.func @transform_2(%arg0: i32, %arg1: i32) -> (i32, i32, i32) {
    %c0_i32 = arith.constant 0 : i32
    %c0_i32_0 = arith.constant 0 : i32
    return %arg0, %c0_i32, %arg1 : i32, i32, i32
  }
}

</mosaic_0001>

<bundles_post_ra>
// kernel: tpu_custom_call.1
= control target key start
LH: loop header
LB: loop body
LE: loop exit
PB: predicated region body
PF: predicated region fallthrough
CT: control target
= control target key end

     0   :  { %s7141_s0 = inlined_call_operand.hbm [shape: f32[656], index: 0, kind: input, shape index: {}]   ;;  %s7142_s1 = inlined_call_operand.hbm [shape: f32[2,6,8,8], index: 1, kind: input, shape index: {}]   ;;  %s7143_s2 = inlined_call_operand.vmem [shape: f32[2,32,8], index: 2, kind: output, shape index: {}]  }
   0x1   :  { %7168 = sst [smem:[#allocation171_spill]] %s7141_s0 }
   0x2   :  { %7169 = sst [smem:[#allocation172_spill]] %s7142_s1 }
   0x3   :  { %7170 = sst [smem:[#allocation173_spill]] %s7143_s2 }
   0x4   :  { %7 = vsyncpa [#allocation4], 0 }
   0x5   :  { %8 = vsyncpa [#allocation3], 0 }
   0x6   :  { %10 = vsyncpa [#allocation3 + $0x1], 0  ;;  %s4020_s9 = smov 0   ;;  %s4022_s10 = smov 0  }
   0x7   :  { %s4024_s11 = smov 0   ;;  %s4026_s12 = smov 0  }
   0x8   :  { %s4028_s13 = smov 0   ;;  %s4030_s14 = smov 0  }
   0x9 LB: > { %7171 = sst [smem:[#allocation8_spill]] %s3984_s10  ;;  %s3157_s15 = sadd.s32 4294967295, %s4000_s14   ;;  %s4000_s14 = sphi %s4030_s14, %s16_s14   ;;  %s3996_s13 = sphi %s4028_s13, %s8007_s13   ;;  %s3992_s12 = sphi %s4026_s12, %s8006_s12   ;;  %s3988_s11 = sphi %s4024_s11, %s8005_s11   ;;  %s3984_s10 = sphi %s4022_s10, %s8004_s10   ;;  %s3980_s9 = sphi %s4020_s9, %s8003_s9  }
   0xa   : > { %7172 = sst [smem:[#allocation9_spill]] %s3988_s11  ;;  %s58_s16 = sadd.s32 1, %s3988_s11 }
   0xb   : > { %7173 = sst [smem:[#allocation10_spill]] %s3992_s12  ;;  %p65_p0 = scmp.ne.s32.totalorder %s3988_s11, %s3984_s10 }
   0xc   : > { %7174 = sst [smem:[#allocation11_spill]] %s3996_s13  ;;  %p66_p1 = scmp.eq.s32.totalorder %s4000_s14, 0 }
   0xd   : > { %7175 = sst [smem:[#allocation12_spill]] %s4000_s14  ;;  %p71_p2 = scmp.ne.s32.totalorder %s3984_s10, %s3980_s9 }
   0xe   : > { %p4054_p3 = scmp.eq.s32.totalorder %s3157_s15, 0  ;;  %p67_p4 = por %p66_p1, %p65_p0 }
   0xf   : > { %p3159_p5 = scmp.ge.s32.totalorder %s4000_s14, 1  ;;  %p110_p7 = scmp.lt.s32.totalorder %s4000_s14, 3 }
  0x10   : > { %p4061_p6 = por %p4054_p3, %p71_p2  ;;  %s7178_s0 = sld [smem:[#allocation171_spill]] }
  0x11   : > { %p4069_p8 = pnand %p3159_p5, %p110_p7  ;;  %p3848_p10 = scmp.lt.s32.totalorder %s4000_s14, 2 }
  0x12   : > { %s133_s23 = sand.u32 1, %s3988_s11   ;;  %s4002_s25 = smov [#allocation2]  }
  0x13   : > { %p3839_p9 = pneg %p4069_p8  ;;  %p4079_p12 = pnand %p3848_p10, %p67_p4 }
  0x14   : > { %s28_s26 = sadd.s32 1, %s3996_s13  ;;  %s3830_s27 = smul.u32 48, %s133_s23 }
  0x15   : > { %p3840_p11 = pnand %p3839_p9, %p4054_p3  ;;  %p30_p13 = scmp.ge.s32.totalorder %s28_s26, 2 }
  0x16   : > { %s122_s21 = sshll.u32 %s7178_s0, 4  ;;  %s3831_s28 = smul.u32 48, %s3996_s13  ;;  %s123_s21 = int_to_ptr.hbm [resolvable:$true] %s122_s21 }
  0x17   : > { %3842 = dma.hbm_to_smem (!%p3840_p11), %s123_s21, 96, %s4002_s25, [#allocation4]  }
  0x18   : > { %s8009_s26 = smov (%p30_p13, %s28_s26), 0  ;;  %s7182_s1 = sld [smem:[#allocation172_spill]] }
  0x19   : > { %7181 = sst [smem:[#allocation13_spill]] %s8009_s26  ;;  %s137_s4 = scalar_lea.vmem [#allocation5], %s3830_s27 }
  0x1a   : > { %s146_s5 = sshll.u32 %s137_s4, 4  ;;  %s53_s6 = ssub.s32 %s3996_s13, %s8009_s26  ;;  %s147_s5 = int_to_ptr.vmem [resolvable:$true] %s146_s5 }
  0x1b   : > { %p56_p0 = scmp.eq.s32.totalorder %s53_s6, 0  ;;  %s134_s9 = scalar_lea.sflag [#allocation3], %s133_s23 }
  0x1c   : > { %s4003_s15 = smov 128   ;;  %s4004_s19 = smov 8  }
  0x1d   : > { %s4095_s8 = scalar_select %p56_p0, %s3988_s11, %s58_s16  }
  0x1e   : > { %s143_s3 = scalar_lea.hbm %s7182_s1, %s3831_s28  ;;  %158 = sbr.rel (%p4069_p8) target bundleno = 1553 (0x611), region = 28 }
  0x1f   : > { %s144_s7 = sshll.u32 %s143_s3, 4  ;;  %7183 = sst [smem:[#allocation14_spill]] %s4095_s8  ;;  %s145_s7 = int_to_ptr.hbm [resolvable:$true] %s144_s7 }
  0x20   : > { %3846 = dma.hbm_to_vmem [thread:$0]  (!%p4079_p12), %s145_s7, 768, %s147_s5, %s134_s9, %s4003_s15, %s4003_s15, %s4004_s19  }
  0x23   : > { %3971 = dma.done.wait (%p4054_p3), [#allocation4], 96  }
  0x24   : > { %3973 = vsyncadd (%p4054_p3), [#allocation4], 4294967200  ;;  %s165_s20 = sand.u32 1, %s3984_s10  }
  0x25   : > { %s3832_s21 = smul.u32 48, %s165_s20  ;;  %s166_s16 = scalar_lea.sflag [#allocation3], %s165_s20 }
  0x27   : > { %s4106_s25 = scalar_lea.vmem [#allocation5], %s3832_s21 }
  0x28   : > { %3975 = dma.done.wait (%p4061_p6), %s166_s16, 768  }
  0x29   : > { %3977 = vsyncadd (%p4061_p6), %s166_s16, 4294966528 }
  0x2a   : > { %175 = sfence }
  0x2b   : > { %s4112_s22 = sld [smem:[#allocation2]]  ;;  %v4445_v0 = vld [vmem:[%s4106_s25] sm:$0xff]  ;;  %v4448_v1 = vld [vmem:[%s4106_s25 + $0x8] sm:$0xff]  ;;  %v4463_v6 = vld [vmem:[%s4106_s25 + $0x10] sm:$0xff]  ;;  %vm2790_vm0 = vcmask 64512   ;;  %vm3015_vm1 = vcmask 1040384  }
  0x2c   : > { %s4114_s23 = sld [smem:[#allocation2 + $0x1]]  ;;  %v4476_v10 = vld [vmem:[%s4106_s25 + $0x18] sm:$0xff]  ;;  %v4491_v16 = vld [vmem:[%s4106_s25 + $0x20] sm:$0xff]  ;;  %v4507_v23 = vld [vmem:[%s4106_s25 + $0x28] sm:$0xff]  ;;  %vm3017_vm2 = vcmask 1041408   ;;  %vm3019_vm3 = vcmask 1042432  }
  0x2d   : > { %s4116_s24 = sld [smem:[#allocation2 + $0x2]]  ;;  %vm3021_vm4 = vcmask 1043456   ;;  %vm3023_vm5 = vcmask 1044480   ;;  %vm3025_vm6 = vcmask 1045504   ;;  %vm3027_vm7 = vcmask 1046528  }
  0x2e   : > { %s4118_s17 = sld [smem:[#allocation2 + $0x3]] }
  0x2f   : > { %s4120_s27 = sld [smem:[#allocation2 + $0x4]] }
  0x30   : > { %s4122_s28 = sld [smem:[#allocation2 + $0x5]] }
  0x31   : > { %s4124_s29 = sld [smem:[#allocation2 + $0x60]]  ;;  %v215_v2 = vstv %s4112_s22 }
  0x32   : > { %s4126_s30 = sld [smem:[#allocation2 + $0x6]]  ;;  %v218_v3 = vstv %s4114_s23  ;;  %v216_v4 = vmul.f32 %v215_v2, %v4445_v0 }
  0x33   : > { %s4128_s3 = sld [smem:[#allocation2 + $0x7]]  ;;  %v219_v5 = vmul.f32 %v4448_v1, %v218_v3  ;;  %v222_v7 = vstv %s4116_s24 }
  0x34   : > { %s4130_s18 = sld [smem:[#allocation2 + $0x8]]  ;;  %v223_v9 = vmul.f32 %v4463_v6, %v222_v7  ;;  %v226_v11 = vstv %s4118_s17 }
  0x35   : > { %s4132_s4 = sld [smem:[#allocation2 + $0x9]]  ;;  %v220_v8 = vadd.f32 %v219_v5, %v216_v4  ;;  %v227_v13 = vmul.f32 %v4476_v10, %v226_v11  ;;  %v230_v17 = vstv %s4120_s27 }
  0x36   : > { %s4134_s5 = sld [smem:[#allocation2 + $0xa]]  ;;  %v231_v21 = vmul.f32 %v4491_v16, %v230_v17  ;;  %v234_v24 = vstv %s4122_s28 }
  0x37   : > { %7184 = sst [smem:[#allocation15_spill]] %s4124_s29  ;;  %v224_v12 = vadd.f32 %v223_v9, %v220_v8  ;;  %v235_v32 = vmul.f32 %v4507_v23, %v234_v24 }
  0x38   : > { %s4136_s6 = sld [smem:[#allocation2 + $0xb]]  ;;  %v242_v14 = vstv %s4126_s30 }
  0x39   : > { %s4138_s7 = sld [smem:[#allocation2 + $0x61]]  ;;  %v245_v15 = vstv %s4128_s3  ;;  %v243_v18 = vmul.f32 %v242_v14, %v4445_v0  ;;  %v228_v20 = vadd.f32 %v227_v13, %v224_v12 }
  0x3a   : > { %s4140_s9 = sld [smem:[#allocation2 + $0xc]]  ;;  %v246_v19 = vmul.f32 %v4448_v1, %v245_v15  ;;  %v249_v22 = vstv %s4130_s18 }
  0x3b   : > { %s4142_s15 = sld [smem:[#allocation2 + $0xd]]  ;;  %v250_v28 = vmul.f32 %v4463_v6, %v249_v22  ;;  %v232_v31 = vadd.f32 %v231_v21, %v228_v20  ;;  %v253_v33 = vstv %s4132_s4 }
  0x3c   : > { %s4144_s19 = sld [smem:[#allocation2 + $0xe]]  ;;  %v247_v27 = vadd.f32 %v246_v19, %v243_v18  ;;  %v257_v36 = vstv %s4134_s5  ;;  %v254_v41 = vmul.f32 %v4476_v10, %v253_v33 }
  0x3d   : > { %s4146_s20 = sld [smem:[#allocation2 + $0xf]]  ;;  %v236_v43 = vadd.f32 %v235_v32, %v232_v31  ;;  %v258_v47 = vmul.f32 %v4491_v16, %v257_v36 }
  0x3e   : > { %7185 = sst [smem:[#allocation16_spill]] %s4136_s6  ;;  %v251_v40 = vadd.f32 %v250_v28, %v247_v27 }
  0x3f   : > { %7186 = sst [smem:[#allocation17_spill]] %s4138_s7 }
  0x40   : > { %s4148_s21 = sld [smem:[#allocation2 + $0x10]]  ;;  %v269_v25 = vstv %s4140_s9  ;;  %v255_v54 = vadd.f32 %v254_v41, %v251_v40 }
  0x41   : > { %s4150_s16 = sld [smem:[#allocation2 + $0x11]]  ;;  %v272_v26 = vstv %s4142_s15  ;;  %v270_v34 = vmul.f32 %v269_v25, %v4445_v0 }
  0x42   : > { %s4152_s0 = sld [smem:[#allocation2 + $0x62]]  ;;  %v273_v35 = vmul.f32 %v4448_v1, %v272_v26  ;;  %v276_v37 = vstv %s4144_s19  ;;  %v259_v7 = vadd.f32 %v258_v47, %v255_v54 }
  0x43   : > { %7187 = sst [smem:[#allocation18_spill]] %s4146_s20  ;;  %v277_v49 = vmul.f32 %v4463_v6, %v276_v37 }
  0x44   : > { %s4154_s1 = sld [smem:[#allocation2 + $0x12]]  ;;  %v274_v48 = vadd.f32 %v273_v35, %v270_v34 }
  0x45   : > { %s4156_s26 = sld [smem:[#allocation2 + $0x13]] }
  0x46   : > { %7188 = sst [smem:[#allocation19_spill]] %s4148_s21  ;;  %v278_v61 = vadd.f32 %v277_v49, %v274_v48 }
  0x47   : > { %7189 = sst [smem:[#allocation20_spill]] %s4150_s16 }
  0x48   : > { %7190 = sst [smem:[#allocation21_spill]] %s4152_s0 }
  0x49   : > { %s4158_s13 = sld [smem:[#allocation2 + $0x14]] }
  0x4a   : > { %s4160_s8 = sld [smem:[#allocation2 + $0x15]]  ;;  %v296_v29 = vstv %s4154_s1 }
  0x4b   : > { %s4162_s11 = sld [smem:[#allocation2 + $0x16]]  ;;  %v299_v30 = vstv %s4156_s26  ;;  %v297_v38 = vmul.f32 %v296_v29, %v4445_v0 }
  0x4c   : > { %s4164_s10 = sld [smem:[#allocation2 + $0x17]]  ;;  %v300_v39 = vmul.f32 %v4448_v1, %v299_v30 }
  0x4d   : > { %s4166_s14 = sld [smem:[#allocation2 + $0x63]] }
  0x4e   : > { %s4168_s2 = sld [smem:[#allocation2 + $0x18]]  ;;  %v301_v52 = vadd.f32 %v300_v39, %v297_v38 }
  0x4f   : > { %s4170_s12 = sld [smem:[#allocation2 + $0x19]]  ;;  %v303_v42 = vstv %s4158_s13 }
  0x50   : > { %7191 = sst [smem:[#allocation22_spill]] %s4160_s8  ;;  %v304_v53 = vmul.f32 %v4463_v6, %v303_v42 }
  0x51   : > { %7192 = sst [smem:[#allocation23_spill]] %s4162_s11 }
  0x52   : > { %7193 = sst [smem:[#allocation24_spill]] %s4164_s10  ;;  %v305_v2 = vadd.f32 %v304_v53, %v301_v52 }
  0x53   : > { %7194 = sst [smem:[#allocation25_spill]] %s4166_s14 }
  0x54   : > { %s4172_s16 = sld [smem:[#allocation2 + $0x1a]]  ;;  %v323_v44 = vstv %s4168_s2 }
  0x55   : > { %s4174_s0 = sld [smem:[#allocation2 + $0x1b]]  ;;  %v326_v45 = vstv %s4170_s12  ;;  %v324_v56 = vmul.f32 %v323_v44, %v4445_v0 }
  0x56   : > { %s4176_s7 = sld [smem:[#allocation2 + $0x1c]]  ;;  %v327_v57 = vmul.f32 %v4448_v1, %v326_v45 }
  0x57   : > { %s4178_s21 = sld [smem:[#allocation2 + $0x1d]] }
  0x58   : > { %s4180_s20 = sld [smem:[#allocation2 + $0x64]]  ;;  %v328_v9 = vadd.f32 %v327_v57, %v324_v56 }
  0x59   : > { %s4182_s8 = sld [smem:[#allocation2 + $0x1e]] }
  0x5a   : > { %7195 = sst [smem:[#allocation26_spill]] %s4172_s16 }
  0x5b   : > { %7196 = sst [smem:[#allocation27_spill]] %s4174_s0 }
  0x5c   : > { %7197 = sst [smem:[#allocation28_spill]] %s4176_s7 }
  0x5d   : > { %7198 = sst [smem:[#allocation29_spill]] %s4178_s21 }
  0x5e   : > { %7199 = sst [smem:[#allocation30_spill]] %s4180_s20 }
  0x5f   : > { %7200 = sst [smem:[#allocation31_spill]] %s4182_s8 }
  0x60   : > { %s4184_s11 = sld [smem:[#allocation2 + $0x1f]] }
  0x61   : > { %s4186_s10 = sld [smem:[#allocation2 + $0x20]] }
  0x62   : > { %s4188_s14 = sld [smem:[#allocation2 + $0x21]] }
  0x63   : > { %s4190_s6 = sld [smem:[#allocation2 + $0x22]] }
  0x64   : > { %s4192_s29 = sld [smem:[#allocation2 + $0x23]] }
  0x65   : > { %s4194_s16 = sld [smem:[#allocation2 + $0x65]] }
  0x66   : > { %7201 = sst [smem:[#allocation32_spill]] %s4184_s11 }
  0x67   : > { %7202 = sst [smem:[#allocation33_spill]] %s4186_s10 }
  0x68   : > { %7203 = sst [smem:[#allocation34_spill]] %s4188_s14 }
  0x69   : > { %7204 = sst [smem:[#allocation35_spill]] %s4190_s6 }
  0x6a   : > { %7205 = sst [smem:[#allocation36_spill]] %s4192_s29 }
  0x6b   : > { %7206 = sst [smem:[#allocation37_spill]] %s4194_s16 }
  0x6c   : > { %s4196_s0 = sld [smem:[#allocation2 + $0x24]] }
  0x6d   : > { %s4198_s7 = sld [smem:[#allocation2 + $0x25]] }
  0x6e   : > { %s4200_s21 = sld [smem:[#allocation2 + $0x26]] }
  0x6f   : > { %s4202_s20 = sld [smem:[#allocation2 + $0x27]] }
  0x70   : > { %s4204_s8 = sld [smem:[#allocation2 + $0x28]] }
  0x71   : > { %s4206_s11 = sld [smem:[#allocation2 + $0x29]] }
  0x72   : > { %7207 = sst [smem:[#allocation38_spill]] %s4196_s0 }
  0x73   : > { %7208 = sst [smem:[#allocation39_spill]] %s4198_s7 }
  0x74   : > { %7209 = sst [smem:[#allocation40_spill]] %s4200_s21 }
  0x75   : > { %7210 = sst [smem:[#allocation41_spill]] %s4202_s20 }
  0x76   : > { %7211 = sst [smem:[#allocation42_spill]] %s4204_s8 }
  0x77   : > { %7212 = sst [smem:[#allocation43_spill]] %s4206_s11 }
  0x78   : > { %s4208_s10 = sld [smem:[#allocation2 + $0x66]] }
  0x79   : > { %s4210_s14 = sld [smem:[#allocation2 + $0x2a]] }
  0x7a   : > { %s4212_s6 = sld [smem:[#allocation2 + $0x2b]] }
  0x7b   : > { %s4214_s29 = sld [smem:[#allocation2 + $0x2c]] }
  0x7c   : > { %s4216_s16 = sld [smem:[#allocation2 + $0x2d]] }
  0x7d   : > { %s4218_s0 = sld [smem:[#allocation2 + $0x2e]] }
  0x7e   : > { %7213 = sst [smem:[#allocation44_spill]] %s4208_s10 }
  0x7f   : > { %7214 = sst [smem:[#allocation45_spill]] %s4210_s14 }
  0x80   : > { %7215 = sst [smem:[#allocation46_spill]] %s4212_s6 }
  0x81   : > { %7216 = sst [smem:[#allocation47_spill]] %s4214_s29 }
  0x82   : > { %7217 = sst [smem:[#allocation48_spill]] %s4216_s16 }
  0x83   : > { %7218 = sst [smem:[#allocation49_spill]] %s4218_s0 }
  0x84   : > { %s4220_s7 = sld [smem:[#allocation2 + $0x2f]] }
  0x85   : > { %s4222_s21 = sld [smem:[#allocation2 + $0x67]] }
  0x86   : > { %s4224_s20 = sld [smem:[#allocation2 + $0x30]] }
  0x87   : > { %s4226_s8 = sld [smem:[#allocation2 + $0x31]] }
  0x88   : > { %s4228_s11 = sld [smem:[#allocation2 + $0x32]] }
  0x89   : > { %s4230_s10 = sld [smem:[#allocation2 + $0x33]] }
  0x8a   : > { %7219 = sst [smem:[#allocation50_spill]] %s4220_s7 }
  0x8b   : > { %7220 = sst [smem:[#allocation51_spill]] %s4222_s21 }
  0x8c   : > { %7221 = sst [smem:[#allocation52_spill]] %s4224_s20 }
  0x8d   : > { %7222 = sst [smem:[#allocation53_spill]] %s4226_s8 }
  0x8e   : > { %7223 = sst [smem:[#allocation54_spill]] %s4228_s11 }
  0x8f   : > { %7224 = sst [smem:[#allocation55_spill]] %s4230_s10 }
  0x90   : > { %s4232_s14 = sld [smem:[#allocation2 + $0x34]] }
  0x91   : > { %s4234_s6 = sld [smem:[#allocation2 + $0x35]] }
  0x92   : > { %s4236_s29 = sld [smem:[#allocation2 + $0x68]] }
  0x93   : > { %s4238_s16 = sld [smem:[#allocation2 + $0x36]] }
  0x94   : > { %s4240_s0 = sld [smem:[#allocation2 + $0x37]] }
  0x95   : > { %s4242_s7 = sld [smem:[#allocation2 + $0x38]] }
  0x96   : > { %7225 = sst [smem:[#allocation56_spill]] %s4232_s14 }
  0x97   : > { %7226 = sst [smem:[#allocation57_spill]] %s4234_s6 }
  0x98   : > { %7227 = sst [smem:[#allocation58_spill]] %s4236_s29 }
  0x99   : > { %7228 = sst [smem:[#allocation59_spill]] %s4238_s16 }
  0x9a   : > { %7229 = sst [smem:[#allocation60_spill]] %s4240_s0 }
  0x9b   : > { %7230 = sst [smem:[#allocation61_spill]] %s4242_s7 }
  0x9c   : > { %s4244_s21 = sld [smem:[#allocation2 + $0x39]] }
  0x9d   : > { %s4246_s20 = sld [smem:[#allocation2 + $0x3a]] }
  0x9e   : > { %s4248_s8 = sld [smem:[#allocation2 + $0x3b]] }
  0x9f   : > { %s4250_s11 = sld [smem:[#allocation2 + $0x69]] }
  0xa0   : > { %s4252_s10 = sld [smem:[#allocation2 + $0x3c]] }
  0xa1   : > { %s4254_s14 = sld [smem:[#allocation2 + $0x3d]] }
  0xa2   : > { %7231 = sst [smem:[#allocation62_spill]] %s4244_s21 }
  0xa3   : > { %7232 = sst [smem:[#allocation63_spill]] %s4246_s20 }
  0xa4   : > { %7233 = sst [smem:[#allocation64_spill]] %s4248_s8 }
  0xa5   : > { %7234 = sst [smem:[#allocation65_spill]] %s4250_s11 }
  0xa6   : > { %7235 = sst [smem:[#allocation66_spill]] %s4252_s10 }
  0xa7   : > { %7236 = sst [smem:[#allocation67_spill]] %s4254_s14 }
  0xa8   : > { %s4256_s6 = sld [smem:[#allocation2 + $0x3e]] }
  0xa9   : > { %s4258_s29 = sld [smem:[#allocation2 + $0x3f]] }
  0xaa   : > { %s4260_s16 = sld [smem:[#allocation2 + $0x40]] }
  0xab   : > { %s4262_s0 = sld [smem:[#allocation2 + $0x41]] }
  0xac   : > { %s4264_s7 = sld [smem:[#allocation2 + $0x6a]] }
  0xad   : > { %s4266_s21 = sld [smem:[#allocation2 + $0x42]] }
  0xae   : > { %7237 = sst [smem:[#allocation68_spill]] %s4256_s6 }
  0xaf   : > { %7238 = sst [smem:[#allocation69_spill]] %s4258_s29 }
  0xb0   : > { %7239 = sst [smem:[#allocation70_spill]] %s4260_s16 }
  0xb1   : > { %7240 = sst [smem:[#allocation71_spill]] %s4262_s0 }
  0xb2   : > { %7241 = sst [smem:[#allocation72_spill]] %s4264_s7 }
  0xb3   : > { %7242 = sst [smem:[#allocation73_spill]] %s4266_s21 }
  0xb4   : > { %s4268_s20 = sld [smem:[#allocation2 + $0x43]] }
  0xb5   : > { %s4270_s8 = sld [smem:[#allocation2 + $0x44]] }
  0xb6   : > { %s4272_s11 = sld [smem:[#allocation2 + $0x45]] }
  0xb7   : > { %s4274_s10 = sld [smem:[#allocation2 + $0x46]] }
  0xb8   : > { %s4276_s14 = sld [smem:[#allocation2 + $0x47]] }
  0xb9   : > { %s4278_s6 = sld [smem:[#allocation2 + $0x6b]] }
  0xba   : > { %7243 = sst [smem:[#allocation74_spill]] %s4268_s20 }
  0xbb   : > { %7244 = sst [smem:[#allocation75_spill]] %s4270_s8 }
  0xbc   : > { %7245 = sst [smem:[#allocation76_spill]] %s4272_s11 }
  0xbd   : > { %7246 = sst [smem:[#allocation77_spill]] %s4274_s10 }
  0xbe   : > { %7247 = sst [smem:[#allocation78_spill]] %s4276_s14 }
  0xbf   : > { %7248 = sst [smem:[#allocation79_spill]] %s4278_s6 }
  0xc0   : > { %s4280_s29 = sld [smem:[#allocation2 + $0x48]] }
  0xc1   : > { %s4282_s16 = sld [smem:[#allocation2 + $0x49]] }
  0xc2   : > { %s4284_s0 = sld [smem:[#allocation2 + $0x4a]] }
  0xc3   : > { %s4286_s7 = sld [smem:[#allocation2 + $0x4b]] }
  0xc4   : > { %s4288_s21 = sld [smem:[#allocation2 + $0x4c]] }
  0xc5   : > { %s4290_s20 = sld [smem:[#allocation2 + $0x4d]] }
  0xc6   : > { %7249 = sst [smem:[#allocation80_spill]] %s4280_s29 }
  0xc7   : > { %7250 = sst [smem:[#allocation81_spill]] %s4282_s16 }
  0xc8   : > { %7251 = sst [smem:[#allocation82_spill]] %s4284_s0 }
  0xc9   : > { %7252 = sst [smem:[#allocation83_spill]] %s4286_s7 }
  0xca   : > { %7253 = sst [smem:[#allocation84_spill]] %s4288_s21 }
  0xcb   : > { %7254 = sst [smem:[#allocation85_spill]] %s4290_s20 }
  0xcc   : > { %s4292_s8 = sld [smem:[#allocation2 + $0x6c]] }
  0xcd   : > { %s4294_s11 = sld [smem:[#allocation2 + $0x4e]] }
  0xce   : > { %s4296_s10 = sld [smem:[#allocation2 + $0x4f]] }
  0xcf   : > { %s4298_s14 = sld [smem:[#allocation2 + $0x50]] }
  0xd0   : > { %s4300_s6 = sld [smem:[#allocation2 + $0x51]] }
  0xd1   : > { %s4302_s29 = sld [smem:[#allocation2 + $0x52]] }
  0xd2   : > { %7255 = sst [smem:[#allocation86_spill]] %s4292_s8 }
  0xd3   : > { %7256 = sst [smem:[#allocation87_spill]] %s4294_s11 }
  0xd4   : > { %7257 = sst [smem:[#allocation88_spill]] %s4296_s10 }
  0xd5   : > { %7258 = sst [smem:[#allocation89_spill]] %s4298_s14 }
  0xd6   : > { %7259 = sst [smem:[#allocation90_spill]] %s4300_s6 }
  0xd7   : > { %7260 = sst [smem:[#allocation91_spill]] %s4302_s29 }
  0xd8   : > { %s4304_s16 = sld [smem:[#allocation2 + $0x53]] }
  0xd9   : > { %s4306_s0 = sld [smem:[#allocation2 + $0x6d]] }
  0xda   : > { %s4308_s7 = sld [smem:[#allocation2 + $0x54]] }
  0xdb   : > { %s4310_s21 = sld [smem:[#allocation2 + $0x55]] }
  0xdc   : > { %s4312_s20 = sld [smem:[#allocation2 + $0x56]] }
  0xdd   : > { %s4314_s8 = sld [smem:[#allocation2 + $0x57]] }
  0xde   : > { %7261 = sst [smem:[#allocation92_spill]] %s4304_s16 }
  0xdf   : > { %7262 = sst [smem:[#allocation93_spill]] %s4306_s0 }
  0xe0   : > { %7263 = sst [smem:[#allocation94_spill]] %s4308_s7 }
  0xe1   : > { %7264 = sst [smem:[#allocation95_spill]] %s4310_s21 }
  0xe2   : > { %7265 = sst [smem:[#allocation96_spill]] %s4312_s20 }
  0xe3   : > { %7266 = sst [smem:[#allocation97_spill]] %s4314_s8 }
  0xe4   : > { %s4316_s11 = sld [smem:[#allocation2 + $0x58]] }
  0xe5   : > { %s4318_s10 = sld [smem:[#allocation2 + $0x59]] }
  0xe6   : > { %s4320_s14 = sld [smem:[#allocation2 + $0x6e]] }
  0xe7   : > { %s4322_s6 = sld [smem:[#allocation2 + $0x5a]] }
  0xe8   : > { %s4324_s29 = sld [smem:[#allocation2 + $0x5b]] }
  0xe9   : > { %s4326_s16 = sld [smem:[#allocation2 + $0x5c]] }
  0xea   : > { %7267 = sst [smem:[#allocation98_spill]] %s4316_s11 }
  0xeb   : > { %7268 = sst [smem:[#allocation99_spill]] %s4318_s10 }
  0xec   : > { %7269 = sst [smem:[#allocation100_spill]] %s4320_s14 }
  0xed   : > { %7270 = sst [smem:[#allocation101_spill]] %s4322_s6 }
  0xee   : > { %7271 = sst [smem:[#allocation102_spill]] %s4324_s29 }
  0xef   : > { %7272 = sst [smem:[#allocation103_spill]] %s4326_s16 }
  0xf0   : > { %s4328_s0 = sld [smem:[#allocation2 + $0x5d]] }
  0xf1   : > { %s4330_s7 = sld [smem:[#allocation2 + $0x5e]] }
  0xf2   : > { %s4332_s21 = sld [smem:[#allocation2 + $0x5f]] }
  0xf3   : > { %s4334_s20 = sld [smem:[#allocation2 + $0x6f]] }
  0xf4   : > { %s4336_s8 = sld [smem:[#allocation2 + $0x70]] }
  0xf5   : > { %s4338_s11 = sld [smem:[#allocation2 + $0x71]] }
  0xf6   : > { %7273 = sst [smem:[#allocation104_spill]] %s4328_s0 }
  0xf7   : > { %7274 = sst [smem:[#allocation105_spill]] %s4330_s7 }
  0xf8   : > { %7275 = sst [smem:[#allocation106_spill]] %s4332_s21 }
  0xf9   : > { %7276 = sst [smem:[#allocation107_spill]] %s4334_s20 }
  0xfa   : > { %7277 = sst [smem:[#allocation108_spill]] %s4336_s8 }
  0xfb   : > { %7278 = sst [smem:[#allocation109_spill]] %s4338_s11 }
  0xfc   : > { %s4340_s10 = sld [smem:[#allocation2 + $0x72]] }
  0xfd   : > { %s4342_s14 = sld [smem:[#allocation2 + $0x73]] }
  0xfe   : > { %s4344_s6 = sld [smem:[#allocation2 + $0x74]] }
  0xff   : > { %s4346_s29 = sld [smem:[#allocation2 + $0x75]] }
 0x100   : > { %s4348_s16 = sld [smem:[#allocation2 + $0x76]] }
 0x101   : > { %s4350_s0 = sld [smem:[#allocation2 + $0x77]] }
 0x102   : > { %7279 = sst [smem:[#allocation110_spill]] %s4340_s10 }
 0x103   : > { %7280 = sst [smem:[#allocation111_spill]] %s4342_s14 }
 0x104   : > { %7281 = sst [smem:[#allocation112_spill]] %s4344_s6 }
 0x105   : > { %7282 = sst [smem:[#allocation113_spill]] %s4346_s29 }
 0x106   : > { %7283 = sst [smem:[#allocation114_spill]] %s4348_s16 }
 0x107   : > { %7284 = sst [smem:[#allocation115_spill]] %s4350_s0 }
 0x108   : > { %s4352_s7 = sld [smem:[#allocation2 + $0x78]] }
 0x109   : > { %s4354_s21 = sld [smem:[#allocation2 + $0x79]] }
 0x10a   : > { %s4356_s20 = sld [smem:[#allocation2 + $0x7a]] }
 0x10b   : > { %s4358_s8 = sld [smem:[#allocation2 + $0x7b]] }
 0x10c   : > { %s4360_s11 = sld [smem:[#allocation2 + $0x7c]] }
 0x10d   : > { %s4362_s10 = sld [smem:[#allocation2 + $0x7d]] }
 0x10e   : > { %7285 = sst [smem:[#allocation116_spill]] %s4352_s7 }
 0x10f   : > { %7286 = sst [smem:[#allocation117_spill]] %s4354_s21 }
 0x110   : > { %7287 = sst [smem:[#allocation118_spill]] %s4356_s20 }
 0x111   : > { %7288 = sst [smem:[#allocation119_spill]] %s4358_s8 }
 0x112   : > { %7289 = sst [smem:[#allocation120_spill]] %s4360_s11 }
 0x113   : > { %7290 = sst [smem:[#allocation121_spill]] %s4362_s10 }
 0x114   : > { %s4364_s14 = sld [smem:[#allocation2 + $0x7e]] }
 0x115   : > { %s4366_s6 = sld [smem:[#allocation2 + $0x7f]] }
 0x116   : > { %s4368_s29 = sld [smem:[#allocation2 + $0x270]] }
 0x117   : > { %s4370_s16 = sld [smem:[#allocation2 + $0x80]] }
 0x118   : > { %s4372_s0 = sld [smem:[#allocation2 + $0x81]] }
 0x119   : > { %s4374_s7 = sld [smem:[#allocation2 + $0x82]] }
 0x11a   : > { %7291 = sst [smem:[#allocation122_spill]] %s4364_s14 }
 0x11b   : > { %7292 = sst [smem:[#allocation123_spill]] %s4366_s6 }
 0x11c   : > { %7293 = sst [smem:[#allocation124_spill]] %s4368_s29 }
 0x11d   : > { %7294 = sst [smem:[#allocation125_spill]] %s4370_s16 }
 0x11e   : > { %7295 = sst [smem:[#allocation126_spill]] %s4372_s0 }
 0x11f   : > { %7296 = sst [smem:[#allocation127_spill]] %s4374_s7 }
 0x120   : > { %s4376_s21 = sld [smem:[#allocation2 + $0x83]] }
 0x121   : > { %s4378_s20 = sld [smem:[#allocation2 + $0x84]] }
 0x122   : > { %s4380_s8 = sld [smem:[#allocation2 + $0x85]] }
 0x123   : > { %s4382_s11 = sld [smem:[#allocation2 + $0x86]] }
 0x124   : > { %s4384_s10 = sld [smem:[#allocation2 + $0x87]] }
 0x125   : > { %s4386_s14 = sld [smem:[#allocation2 + $0x88]] }
 0x126   : > { %7297 = sst [smem:[#allocation128_spill]] %s4376_s21 }
 0x127   : > { %7298 = sst [smem:[#allocation129_spill]] %s4378_s20 }
 0x128   : > { %7299 = sst [smem:[#allocation130_spill]] %s4380_s8 }
 0x129   : > { %7300 = sst [smem:[#allocation131_spill]] %s4382_s11 }
 0x12a   : > { %7301 = sst [smem:[#allocation132_spill]] %s4384_s10 }
 0x12b   : > { %7302 = sst [smem:[#allocation133_spill]] %s4386_s14 }
 0x12c   : > { %s4388_s6 = sld [smem:[#allocation2 + $0x89]] }
 0x12d   : > { %s4390_s29 = sld [smem:[#allocation2 + $0x8a]] }
 0x12e   : > { %s4392_s16 = sld [smem:[#allocation2 + $0x8b]] }
 0x12f   : > { %s4394_s0 = sld [smem:[#allocation2 + $0x8c]] }
 0x130   : > { %s4396_s7 = sld [smem:[#allocation2 + $0x8d]] }
 0x131   : > { %s4398_s21 = sld [smem:[#allocation2 + $0x8e]] }
 0x132   : > { %7303 = sst [smem:[#allocation134_spill]] %s4388_s6 }
 0x133   : > { %7304 = sst [smem:[#allocation135_spill]] %s4390_s29 }
 0x134   : > { %7305 = sst [smem:[#allocation136_spill]] %s4392_s16 }
 0x135   : > { %7306 = sst [smem:[#allocation137_spill]] %s4394_s0 }
 0x136   : > { %7307 = sst [smem:[#allocation138_spill]] %s4396_s7 }
 0x137   : > { %7308 = sst [smem:[#allocation139_spill]] %s4398_s21 }
 0x138   : > { %s4400_s20 = sld [smem:[#allocation2 + $0x8f]] }
 0x139   : > { %s4402_s8 = sld [smem:[#allocation2 + $0x271]] }
 0x13a   : > { %s4404_s11 = sld [smem:[#allocation2 + $0x90]] }
 0x13b   : > { %s4406_s10 = sld [smem:[#allocation2 + $0x91]] }
 0x13c   : > { %s4408_s14 = sld [smem:[#allocation2 + $0x92]] }
 0x13d   : > { %s4410_s6 = sld [smem:[#allocation2 + $0x93]] }
 0x13e   : > { %7309 = sst [smem:[#allocation140_spill]] %s4400_s20 }
 0x13f   : > { %7310 = sst [smem:[#allocation141_spill]] %s4402_s8 }
 0x140   : > { %s4412_s29 = sld [smem:[#allocation2 + $0x94]] }
 0x141   : > { %7311 = sst [smem:[#allocation142_spill]] %s4406_s10 }
 0x142   : > { %7312 = sst [smem:[#allocation143_spill]] %s4408_s14 }
 0x143   : > { %7313 = sst [smem:[#allocation144_spill]] %s4410_s6 }
 0x144   : > { %s4414_s0 = sld [smem:[#allocation2 + $0x95]] }
 0x145   : > { %s4416_s7 = sld [smem:[#allocation2 + $0x96]] }
 0x146   : > { %7314 = sst [smem:[#allocation145_spill]] %s4412_s29 }
 0x147   : > { %s4418_s20 = sld [smem:[#allocation2 + $0x97]] }
 0x148   : > { %s4420_s8 = sld [smem:[#allocation2 + $0x98]] }
 0x149   : > { %s4422_s21 = sld [smem:[#allocation2 + $0x99]] }
 0x14a   : > { %7315 = sst [smem:[#allocation146_spill]] %s4414_s0 }
 0x14b   : > { %7316 = sst [smem:[#allocation147_spill]] %s4416_s7 }
 0x14c   : > { %s4424_s16 = sld [smem:[#allocation2 + $0x9a]] }
 0x14d   : > { %7317 = sst [smem:[#allocation148_spill]] %s4418_s20 }
 0x14e   : > { %7318 = sst [smem:[#allocation149_spill]] %s4420_s8 }
 0x14f   : > { %7319 = sst [smem:[#allocation150_spill]] %s4422_s21 }
 0x150   : > { %s4426_s14 = sld [smem:[#allocation2 + $0x9b]] }
 0x151   : > { %s4428_s6 = sld [smem:[#allocation2 + $0x9c]] }
 0x152   : > { %7320 = sst [smem:[#allocation151_spill]] %s4424_s16 }
 0x153   : > { %s4430_s29 = sld [smem:[#allocation2 + $0x9d]] }
 0x154   : > { %s4432_s0 = sld [smem:[#allocation2 + $0x9e]] }
 0x155   : > { %s4434_s7 = sld [smem:[#allocation2 + $0x9f]] }
 0x156   : > { %7321 = sst [smem:[#allocation152_spill]] %s4426_s14 }
 0x157   : > { %7322 = sst [smem:[#allocation153_spill]] %s4428_s6 }
 0x158   : > { %s4436_s20 = sld [smem:[#allocation2 + $0x272]] }
 0x159   : > { %7323 = sst [smem:[#allocation154_spill]] %s4430_s29 }
 0x15a   : > { %7324 = sst [smem:[#allocation155_spill]] %s4432_s0 }
 0x15b   : > { %7325 = sst [smem:[#allocation156_spill]] %s4434_s7 }
 0x15c   : > { %s4438_s10 = sld [smem:[#allocation2 + $0xa0]] }
 0x15d   : > { %s4440_s8 = sld [smem:[#allocation2 + $0xa1]] }
 0x15e   : > { %7326 = sst [smem:[#allocation157_spill]] %s4436_s20 }
 0x15f   : > { %s4442_s21 = sld [smem:[#allocation2 + $0xa2]] }
 0x160   : > { %s4452_s0 = sld [smem:[#allocation2 + $0xa3]] }
 0x161   : > { %s4454_s7 = sld [smem:[#allocation2 + $0xa4]] }
 0x162   : > { %s4456_s29 = sld [smem:[#allocation2 + $0xa5]] }
 0x163   : > { %s4460_s20 = sld [smem:[#allocation2 + $0xa6]] }
 0x164   : > { %s4466_s22 = sld [smem:[#allocation2 + $0xa7]] }
 0x165   : > { %s4468_s23 = sld [smem:[#allocation2 + $0xa8]] }
 0x166   : > { %s4470_s6 = sld [smem:[#allocation2 + $0xa9]] }
 0x167   : > { %s4473_s14 = sld [smem:[#allocation2 + $0xaa]] }
 0x168   : > { %s4479_s16 = sld [smem:[#allocation2 + $0xab]] }
 0x169   : > { %7327 = sst [smem:[#allocation158_spill]] %s4460_s20 }
 0x16a   : > { %s4481_s20 = sld [smem:[#allocation2 + $0xac]] }
 0x16b   : > { %s4483_s24 = sld [smem:[#allocation2 + $0xad]] }
 0x16c   : > { %7328 = sst [smem:[#allocation159_spill]] %s4470_s6 }
 0x16d   : > { %7329 = sst [smem:[#allocation160_spill]] %s4473_s14 }
 0x16e   : > { %7330 = sst [smem:[#allocation161_spill]] %s4479_s16 }
 0x16f   : > { %s4488_s6 = sld [smem:[#allocation2 + $0xae]] }
 0x170   : > { %7331 = sst [smem:[#allocation162_spill]] %s4481_s20 }
 0x171   : > { %7332 = sst [smem:[#allocation163_spill]] %s4483_s24 }
 0x172   : > { %s4494_s17 = sld [smem:[#allocation2 + $0xaf]] }
 0x173   : > { %s4496_s20 = sld [smem:[#allocation2 + $0x273]] }
 0x174   : > { %s4500_s24 = sld [smem:[#allocation2 + $0xb0]] }
 0x175   : > { %7333 = sst [smem:[#allocation164_spill]] %s4488_s6 }
 0x176   : > { %s4504_s30 = sld [smem:[#allocation2 + $0xb1]] }
 0x177   : > { %s4510_s27 = sld [smem:[#allocation2 + $0xb2]] }
 0x178   : > { %7334 = sst [smem:[#allocation165_spill]] %s4494_s17 }
 0x179   : > { %7335 = sst [smem:[#allocation166_spill]] %s4496_s20 }
 0x17a   : > { %s4514_s3 = sld [smem:[#allocation2 + $0xb3]] }
 0x17b   : > { %s4519_s18 = sld [smem:[#allocation2 + $0xb4]] }
 0x17c   : > { %s4523_s25 = sld [smem:[#allocation2 + $0xb5]] }
 0x17d   : > { %s7336_s28 = sld [smem:[#allocation15_spill]] }
 0x17e   : > { %s4527_s9 = sld [smem:[#allocation2 + $0xb6]] }
 0x17f   : > { %s7337_s1 = sld [smem:[#allocation16_spill]] }
 0x180   : > { %s7338_s26 = sld [smem:[#allocation18_spill]] }
 0x181   : > { %s4533_s15 = sld [smem:[#allocation2 + $0xb7]] }
 0x182   : > { %s4537_s4 = sld [smem:[#allocation2 + $0xb8]] }
 0x183   : > { %s7341_s20 = sld [smem:[#allocation22_spill]]  ;;  %v238_v46 = vstv %s7336_s28 }
 0x184   : > { %s4541_s5 = sld [smem:[#allocation2 + $0xb9]]  ;;  %v239_v58 = vadd.f32 %v238_v46, %v236_v43 }
 0x185   : > { %s7343_s19 = sld [smem:[#allocation26_spill]]  ;;  %v261_v50 = vstv %s7337_s1 }
 0x186   : > { %s4546_s17 = sld [smem:[#allocation2 + $0xba]]  ;;  %v280_v51 = vstv %s7338_s26  ;;  %v262_v60 = vmul.f32 %v4507_v23, %v261_v50  ;;  %v4595_v30 = vmax.f32 %v239_v58, 0.0 }
 0x187   : > { %7339 = sst [smem:[#allocation15_spill]] %s4533_s15  ;;  %v281_v62 = vmul.f32 %v4476_v10, %v280_v51 }
 0x188   : > { %7340 = sst [smem:[#allocation16_spill]] %s4537_s4  ;;  %v263_v26 = vadd.f32 %v262_v60, %v259_v7 }
 0x189   : > { %s7345_s6 = sld [smem:[#allocation19_spill]]  ;;  %v307_v55 = vstv %s7341_s20  ;;  %v282_v21 = vadd.f32 %v281_v62, %v278_v61 }
 0x18a   : > { %7342 = sst [smem:[#allocation18_spill]] %s4541_s5  ;;  %v308_v3 = vmul.f32 %v4476_v10, %v307_v55 }
 0x18b   : > { %s4551_s13 = sld [smem:[#allocation2 + $0xbb]]  ;;  %v330_v59 = vstv %s7343_s19 }
 0x18c   : > { %7344 = sst [smem:[#allocation22_spill]] %s4546_s17  ;;  %v331_v11 = vmul.f32 %v4463_v6, %v330_v59  ;;  %v309_v22 = vadd.f32 %v308_v3, %v305_v2 }
 0x18d   : > { %s7347_s2 = sld [smem:[#allocation31_spill]] }
 0x18e   : > { %s7348_s12 = sld [smem:[#allocation32_spill]]  ;;  %v332_v28 = vadd.f32 %v331_v11, %v328_v9 }
 0x18f   : > { %s7349_s28 = sld [smem:[#allocation23_spill]]  ;;  %v284_v63 = vstv %s7345_s6 }
 0x190   : > { %s4556_s5 = sld [smem:[#allocation2 + $0xbc]]  ;;  %v285_v13 = vmul.f32 %v4491_v16, %v284_v63 }
 0x191   : > { %7346 = sst [smem:[#allocation26_spill]] %s4551_s13 }
 0x192   : > { %s4559_s1 = sld [smem:[#allocation2 + $0xbd]]  ;;  %v286_v38 = vadd.f32 %v285_v13, %v282_v21 }
 0x193   : > { %s7352_s26 = sld [smem:[#allocation17_spill]]  ;;  %v350_v4 = vstv %s7347_s2 }
 0x194   : > { %s7353_s13 = sld [smem:[#allocation20_spill]]  ;;  %v353_v5 = vstv %s7348_s12  ;;  %v351_v17 = vmul.f32 %v350_v4, %v4445_v0 }
 0x195   : > { %s7354_s17 = sld [smem:[#allocation27_spill]]  ;;  %v311_v8 = vstv %s7349_s28  ;;  %v354_v18 = vmul.f32 %v4448_v1, %v353_v5 }
 0x196   : > { %7350 = sst [smem:[#allocation19_spill]] %s4556_s5  ;;  %v312_v24 = vmul.f32 %v4491_v16, %v311_v8 }
 0x197   : > { %s4564_s20 = sld [smem:[#allocation2 + $0xbe]]  ;;  %v355_v35 = vadd.f32 %v354_v18, %v351_v17 }
 0x198   : > { %7351 = sst [smem:[#allocation31_spill]] %s4559_s1  ;;  %v313_v39 = vadd.f32 %v312_v24, %v309_v22 }
 0x199   : > { %s7356_s4 = sld [smem:[#allocation38_spill]]  ;;  %v265_v12 = vstv %s7352_s26 }
 0x19a   : > { %s7357_s5 = sld [smem:[#allocation39_spill]]  ;;  %v288_v14 = vstv %s7353_s13  ;;  %v266_v42 = vadd.f32 %v265_v12, %v263_v26 }
 0x19b   : > { %s4569_s19 = sld [smem:[#allocation2 + $0xbf]]  ;;  %v334_v15 = vstv %s7354_s17  ;;  %v289_v34 = vmul.f32 %v4507_v23, %v288_v14 }
 0x19c   : > { %s7359_s1 = sld [smem:[#allocation33_spill]]  ;;  %v335_v29 = vmul.f32 %v4476_v10, %v334_v15  ;;  %v4634_v62 = vmax.f32 %v266_v42, 0.0 }
 0x19d   : > { %7355 = sst [smem:[#allocation32_spill]] %s4564_s20  ;;  %v290_v54 = vadd.f32 %v289_v34, %v286_v38 }
 0x19e   : > { %s4573_s16 = sld [smem:[#allocation2 + $0x274]]  ;;  %v336_v43 = vadd.f32 %v335_v29, %v332_v28 }
 0x19f   : > { %s7361_s6 = sld [smem:[#allocation24_spill]]  ;;  %v377_v19 = vstv %s7356_s4 }
 0x1a0   : > { %s4579_s20 = sld [smem:[#allocation2 + $0xc0]]  ;;  %v380_v20 = vstv %s7357_s5  ;;  %v378_v32 = vmul.f32 %v377_v19, %v4445_v0 }
 0x1a1   : > { %7358 = sst [smem:[#allocation23_spill]] %s4569_s19  ;;  %v381_v33 = vmul.f32 %v4448_v1, %v380_v20 }
 0x1a2   : > { %s7362_s2 = sld [smem:[#allocation28_spill]]  ;;  %v357_v25 = vstv %s7359_s1 }
 0x1a3   : > { %s4585_s12 = sld [smem:[#allocation2 + $0xc1]]  ;;  %v358_v36 = vmul.f32 %v4463_v6, %v357_v25  ;;  %v382_v46 = vadd.f32 %v381_v33, %v378_v32 }
 0x1a4   : > { %7360 = sst [smem:[#allocation17_spill]] %s4573_s16 }
 0x1a5   : > { %s7364_s28 = sld [smem:[#allocation40_spill]]  ;;  %v315_v27 = vstv %s7361_s6  ;;  %v359_v51 = vadd.f32 %v358_v36, %v355_v35 }
 0x1a6   : > { %s4589_s26 = sld [smem:[#allocation2 + $0xc2]]  ;;  %v316_v40 = vmul.f32 %v4507_v23, %v315_v27 }
 0x1a7   : > { %s7366_s17 = sld [smem:[#allocation34_spill]] }
 0x1a8   : > { %s4593_s13 = sld [smem:[#allocation2 + $0xc3]]  ;;  %v338_v31 = vstv %s7362_s2  ;;  %v317_v55 = vadd.f32 %v316_v40, %v313_v39 }
 0x1a9   : > { %7363 = sst [smem:[#allocation20_spill]] %s4585_s12  ;;  %v339_v44 = vmul.f32 %v4491_v16, %v338_v31 }
 0x1aa   : > { %s7368_s4 = sld [smem:[#allocation29_spill]] }
 0x1ab   : > { %s4600_s5 = sld [smem:[#allocation2 + $0xc4]]  ;;  %v384_v37 = vstv %s7364_s28  ;;  %v340_v58 = vadd.f32 %v339_v44, %v336_v43 }
 0x1ac   : > { %7365 = sst [smem:[#allocation27_spill]] %s4589_s26  ;;  %v385_v47 = vmul.f32 %v4463_v6, %v384_v37 }
 0x1ad   : > { %s7370_s1 = sld [smem:[#allocation45_spill]]  ;;  %v361_v41 = vstv %s7366_s17 }
 0x1ae   : > { %7367 = sst [smem:[#allocation38_spill]] %s4593_s13  ;;  %v362_v52 = vmul.f32 %v4476_v10, %v361_v41  ;;  %v386_v63 = vadd.f32 %v385_v47, %v382_v46 }
 0x1af   : > { %s7371_s6 = sld [smem:[#allocation46_spill]] }
 0x1b0   : > { %s4605_s16 = sld [smem:[#allocation2 + $0xc5]]  ;;  %v342_v45 = vstv %s7368_s4  ;;  %v363_v4 = vadd.f32 %v362_v52, %v359_v51 }
 0x1b1   : > { %7369 = sst [smem:[#allocation39_spill]] %s4600_s5  ;;  %v343_v59 = vmul.f32 %v4507_v23, %v342_v45 }
 0x1b2   : > { %s7373_s19 = sld [smem:[#allocation21_spill]] }
 0x1b3   : > { %s7374_s2 = sld [smem:[#allocation41_spill]]  ;;  %v404_v48 = vstv %s7370_s1  ;;  %v344_v14 = vadd.f32 %v343_v59, %v340_v58 }
 0x1b4   : > { %s4609_s13 = sld [smem:[#allocation2 + $0xc6]]  ;;  %v405_v60 = vmul.f32 %v404_v48, %v4445_v0 }
 0x1b5   : > { %s7376_s5 = sld [smem:[#allocation25_spill]]  ;;  %v407_v49 = vstv %s7371_s6 }
 0x1b6   : > { %7372 = sst [smem:[#allocation33_spill]] %s4605_s16  ;;  %v408_v61 = vmul.f32 %v4448_v1, %v407_v49 }
 0x1b7   : > { %s7377_s26 = sld [smem:[#allocation35_spill]] }
 0x1b8   : > { %s4613_s15 = sld [smem:[#allocation2 + $0xc7]]  ;;  %v292_v50 = vstv %s7373_s19  ;;  %v409_v17 = vadd.f32 %v408_v61, %v405_v60 }
 0x1b9   : > { %s4618_s28 = sld [smem:[#allocation2 + $0xc8]]  ;;  %v388_v53 = vstv %s7374_s2  ;;  %v293_v9 = vadd.f32 %v292_v50, %v290_v54 }
 0x1ba   : > { %7375 = sst [smem:[#allocation24_spill]] %s4609_s13  ;;  %v389_v2 = vmul.f32 %v4476_v10, %v388_v53 }
 0x1bb   : > { %s7380_s17 = sld [smem:[#allocation47_spill]]  ;;  %v319_v56 = vstv %s7376_s5  ;;  %v4663_v28 = vmax.f32 %v293_v9, 0.0 }
 0x1bc   : > { %s4623_s13 = sld [smem:[#allocation2 + $0xc9]]  ;;  %v320_v11 = vadd.f32 %v319_v56, %v317_v55  ;;  %v390_v20 = vadd.f32 %v389_v2, %v386_v63 }
 0x1bd   : > { %s7382_s4 = sld [smem:[#allocation36_spill]]  ;;  %v365_v57 = vstv %s7377_s26 }
 0x1be   : > { %7378 = sst [smem:[#allocation28_spill]] %s4613_s15  ;;  %v366_v5 = vmul.f32 %v4491_v16, %v365_v57  ;;  %v4665_v29 = vmax.f32 %v320_v11, 0.0 }
 0x1bf   : > { %7379 = sst [smem:[#allocation40_spill]] %s4618_s28 }
 0x1c0   : > { %s7383_s15 = sld [smem:[#allocation42_spill]]  ;;  %v367_v24 = vadd.f32 %v366_v5, %v363_v4 }
 0x1c1   : > { %s4627_s16 = sld [smem:[#allocation2 + $0xca]]  ;;  %v411_v3 = vstv %s7380_s17 }
 0x1c2   : > { %7381 = sst [smem:[#allocation34_spill]] %s4623_s13  ;;  %v412_v18 = vmul.f32 %v4463_v6, %v411_v3 }
 0x1c3   : > { %s7385_s19 = sld [smem:[#allocation52_spill]]  ;;  %v369_v7 = vstv %s7382_s4 }
 0x1c4   : > { %s7386_s1 = sld [smem:[#allocation53_spill]]  ;;  %v370_v19 = vmul.f32 %v4507_v23, %v369_v7  ;;  %v413_v33 = vadd.f32 %v412_v18, %v409_v17 }
 0x1c5   : > { %s4632_s6 = sld [smem:[#allocation2 + $0xcb]] }
 0x1c6   : > { %s7388_s2 = sld [smem:[#allocation30_spill]]  ;;  %v392_v8 = vstv %s7383_s15  ;;  %v4682_v41 = vadd.f32 %v370_v19, %v367_v24 }
 0x1c7   : > { %7384 = sst [smem:[#allocation29_spill]] %s4627_s16  ;;  %v393_v21 = vmul.f32 %v4491_v16, %v392_v8 }
 0x1c8   : > { %s4638_s26 = sld [smem:[#allocation2 + $0xcc]] }
 0x1c9   : > { %s7390_s5 = sld [smem:[#allocation48_spill]]  ;;  %v431_v12 = vstv %s7385_s19  ;;  %v394_v38 = vadd.f32 %v393_v21, %v390_v20 }
 0x1ca   : > { %s4643_s16 = sld [smem:[#allocation2 + $0xcd]]  ;;  %v434_v13 = vstv %s7386_s1  ;;  %v432_v26 = vmul.f32 %v431_v12, %v4445_v0 }
 0x1cb   : > { %7387 = sst [smem:[#allocation45_spill]] %s4632_s6  ;;  %v435_v27 = vmul.f32 %v4448_v1, %v434_v13 }
 0x1cc   : > { %s7392_s13 = sld [smem:[#allocation43_spill]]  ;;  %v346_v15 = vstv %s7388_s2 }
 0x1cd   : > { %s4647_s6 = sld [smem:[#allocation2 + $0xce]]  ;;  %v4676_v37 = vadd.f32 %v346_v15, %v344_v14  ;;  %v436_v42 = vadd.f32 %v435_v27, %v432_v26 }
 0x1ce   : > { %7389 = sst [smem:[#allocation46_spill]] %s4638_s26 }
 0x1cf   : > { %s7394_s17 = sld [smem:[#allocation37_spill]]  ;;  %v415_v22 = vstv %s7390_s5 }
 0x1d0   : > { %7391 = sst [smem:[#allocation21_spill]] %s4643_s16  ;;  %v416_v34 = vmul.f32 %v4476_v10, %v415_v22 }
 0x1d1   : > { %s7395_s26 = sld [smem:[#allocation54_spill]] }
 0x1d2   : > { %s4651_s28 = sld [smem:[#allocation2 + $0xcf]]  ;;  %v396_v25 = vstv %s7392_s13  ;;  %v417_v49 = vadd.f32 %v416_v34, %v413_v33 }
 0x1d3   : > { %7393 = sst [smem:[#allocation41_spill]] %s4647_s6  ;;  %v397_v39 = vmul.f32 %v4507_v23, %v396_v25 }
 0x1d4   : > { %s7397_s15 = sld [smem:[#allocation59_spill]] }
 0x1d5   : > { %s7398_s4 = sld [smem:[#allocation60_spill]]  ;;  %v373_v31 = vstv %s7394_s17  ;;  %v4699_v53 = vadd.f32 %v397_v39, %v394_v38 }
 0x1d6   : > { %s4656_s19 = sld [smem:[#allocation2 + $0x275]] }
 0x1d7   : > { %s7400_s1 = sld [smem:[#allocation49_spill]]  ;;  %v438_v32 = vstv %s7395_s26 }
 0x1d8   : > { %7396 = sst [smem:[#allocation25_spill]] %s4651_s28  ;;  %v439_v43 = vmul.f32 %v4463_v6, %v438_v32 }
 0x1d9   : > { %s4661_s2 = sld [smem:[#allocation2 + $0xd0]] }
 0x1da   : > { %s7402_s28 = sld [smem:[#allocation55_spill]]  ;;  %v458_v35 = vstv %s7397_s15  ;;  %v440_v57 = vadd.f32 %v439_v43, %v436_v42 }
 0x1db   : > { %s4669_s6 = sld [smem:[#allocation2 + $0xd1]]  ;;  %v461_v36 = vstv %s7398_s4  ;;  %v459_v46 = vmul.f32 %v458_v35, %v4445_v0 }
 0x1dc   : > { %7399 = sst [smem:[#allocation35_spill]] %s4656_s19  ;;  %v462_v47 = vmul.f32 %v4448_v1, %v461_v36 }
 0x1dd   : > { %s7404_s5 = sld [smem:[#allocation44_spill]]  ;;  %v419_v40 = vstv %s7400_s1 }
 0x1de   : > { %s7405_s13 = sld [smem:[#allocation61_spill]]  ;;  %v420_v50 = vmul.f32 %v4491_v16, %v419_v40  ;;  %v463_v61 = vadd.f32 %v462_v47, %v459_v46 }
 0x1df   : > { %7401 = sst [smem:[#allocation47_spill]] %s4661_s2 }
 0x1e0   : > { %s4674_s19 = sld [smem:[#allocation2 + $0xd2]]  ;;  %v442_v44 = vstv %s7402_s28  ;;  %v421_v4 = vadd.f32 %v420_v50, %v417_v49 }
 0x1e1   : > { %7403 = sst [smem:[#allocation36_spill]] %s4669_s6  ;;  %v443_v55 = vmul.f32 %v4476_v10, %v442_v44 }
 0x1e2   : > { %s7407_s16 = sld [smem:[#allocation66_spill]] }
 0x1e3   : > { %s7408_s2 = sld [smem:[#allocation67_spill]]  ;;  %v400_v45 = vstv %s7404_s5  ;;  %v444_v14 = vadd.f32 %v443_v55, %v440_v57 }
 0x1e4   : > { %s4680_s26 = sld [smem:[#allocation2 + $0xd3]]  ;;  %v465_v48 = vstv %s7405_s13 }
 0x1e5   : > { %s7410_s6 = sld [smem:[#allocation50_spill]]  ;;  %v466_v58 = vmul.f32 %v4463_v6, %v465_v48 }
 0x1e6   : > { %7406 = sst [smem:[#allocation42_spill]] %s4674_s19 }
 0x1e7   : > { %s7411_s15 = sld [smem:[#allocation56_spill]]  ;;  %v467_v19 = vadd.f32 %v466_v58, %v463_v61 }
 0x1e8   : > { %s4686_s4 = sld [smem:[#allocation2 + $0xd4]]  ;;  %v485_v51 = vstv %s7407_s16 }
 0x1e9   : > { %s7413_s19 = sld [smem:[#allocation73_spill]]  ;;  %v488_v52 = vstv %s7408_s2  ;;  %v486_v2 = vmul.f32 %v485_v51, %v4445_v0 }
 0x1ea   : > { %7409 = sst [smem:[#allocation52_spill]] %s4680_s26  ;;  %v489_v3 = vmul.f32 %v4448_v1, %v488_v52 }
 0x1eb   : > { %s7414_s14 = sld [smem:[#allocation74_spill]]  ;;  %v423_v54 = vstv %s7410_s6 }
 0x1ec   : > { %s4692_s1 = sld [smem:[#allocation2 + $0xd5]]  ;;  %v424_v5 = vmul.f32 %v4507_v23, %v423_v54  ;;  %v490_v21 = vadd.f32 %v489_v3, %v486_v2 }
 0x1ed   : > { %s7416_s26 = sld [smem:[#allocation62_spill]]  ;;  %v446_v56 = vstv %s7411_s15 }
 0x1ee   : > { %7412 = sst [smem:[#allocation53_spill]] %s4686_s4  ;;  %v447_v7 = vmul.f32 %v4491_v16, %v446_v56  ;;  %v425_v32 = vadd.f32 %v424_v5, %v421_v4 }
 0x1ef   : > { %s4697_s12 = sld [smem:[#allocation2 + $0xd6]]  ;;  %v512_v59 = vstv %s7413_s19 }
 0x1f0   : > { %s7418_s28 = sld [smem:[#allocation68_spill]]  ;;  %v513_v9 = vmul.f32 %v512_v59, %v4445_v0  ;;  %v448_v36 = vadd.f32 %v447_v7, %v444_v14  ;;  %v374_v14 = vadd.f32 %v373_v31, %v4682_v41 }
 0x1f1   : > { %s4704_s4 = sld [smem:[#allocation2 + $0xd7]]  ;;  %v515_v60 = vstv %s7414_s14 }
 0x1f2   : > { %7415 = sst [smem:[#allocation30_spill]] %s4692_s1  ;;  %v516_v11 = vmul.f32 %v4448_v1, %v515_v60 }
 0x1f3   : > { %s7420_s13 = sld [smem:[#allocation80_spill]]  ;;  %v469_v63 = vstv %s7416_s26 }
 0x1f4   : > { %s7421_s1 = sld [smem:[#allocation81_spill]]  ;;  %v470_v17 = vmul.f32 %v4476_v10, %v469_v63  ;;  %v517_v33 = vadd.f32 %v516_v11, %v513_v9 }
 0x1f5   : > { %7417 = sst [smem:[#allocation48_spill]] %s4697_s12 }
 0x1f6   : > { %s4709_s16 = sld [smem:[#allocation2 + $0xd8]]  ;;  %v492_v8 = vstv %s7418_s28  ;;  %v471_v42 = vadd.f32 %v470_v17, %v467_v19 }
 0x1f7   : > { %7419 = sst [smem:[#allocation43_spill]] %s4704_s4  ;;  %v493_v22 = vmul.f32 %v4463_v6, %v492_v8 }
 0x1f8   : > { %s7423_s2 = sld [smem:[#allocation57_spill]] }
 0x1f9   : > { %s7424_s6 = sld [smem:[#allocation75_spill]]  ;;  %v539_v12 = vstv %s7420_s13  ;;  %v494_v44 = vadd.f32 %v493_v22, %v490_v21 }
 0x1fa   : > { %s4714_s15 = sld [smem:[#allocation2 + $0xd9]]  ;;  %v542_v13 = vstv %s7421_s1  ;;  %v540_v26 = vmul.f32 %v539_v12, %v4445_v0 }
 0x1fb   : > { %s7426_s4 = sld [smem:[#allocation63_spill]]  ;;  %v543_v27 = vmul.f32 %v4448_v1, %v542_v13  ;;  %v4785_v13 = vmax.f32 %v4676_v37, 0.0 }
 0x1fc   : > { %7422 = sst [smem:[#allocation37_spill]] %s4709_s16 }
 0x1fd   : > { %s4719_s14 = sld [smem:[#allocation2 + $0xda]]  ;;  %v544_v49 = vadd.f32 %v543_v27, %v540_v26  ;;  %v4807_v26 = vmax.f32 %v374_v14, 0.0 }
 0x1fe   : > { %s7428_s19 = sld [smem:[#allocation51_spill]]  ;;  %v450_v15 = vstv %s7423_s2 }
 0x1ff   : > { %s7429_s26 = sld [smem:[#allocation69_spill]]  ;;  %v519_v18 = vstv %s7424_s6  ;;  %v451_v38 = vmul.f32 %v4507_v23, %v450_v15  ;;  %v401_v15 = vadd.f32 %v400_v45, %v4699_v53 }
 0x200   : > { %7425 = sst [smem:[#allocation54_spill]] %s4714_s15  ;;  %v520_v34 = vmul.f32 %v4463_v6, %v519_v18 }
 0x201   : > { %s4725_s16 = sld [smem:[#allocation2 + $0xdb]]  ;;  %v473_v20 = vstv %s7426_s4  ;;  %v452_v56 = vadd.f32 %v451_v38, %v448_v36  ;;  %v4809_v27 = vmax.f32 %v401_v15, 0.0 }
 0x202   : > { %s7431_s15 = sld [smem:[#allocation82_spill]]  ;;  %v474_v39 = vmul.f32 %v4491_v16, %v473_v20  ;;  %v521_v51 = vadd.f32 %v520_v34, %v517_v33 }
 0x203   : > { %7427 = sst [smem:[#allocation59_spill]] %s4719_s14 }
 0x204   : > { %s4730_s12 = sld [smem:[#allocation2 + $0xdc]]  ;;  %v427_v24 = vstv %s7428_s19  ;;  %v475_v60 = vadd.f32 %v474_v39, %v471_v42 }
 0x205   : > { %s7433_s28 = sld [smem:[#allocation76_spill]]  ;;  %v496_v25 = vstv %s7429_s26  ;;  %v428_v18 = vadd.f32 %v427_v24, %v425_v32 }
 0x206   : > { %s4734_s14 = sld [smem:[#allocation2 + $0xdd]]  ;;  %v497_v46 = vmul.f32 %v4476_v10, %v496_v25 }
 0x207   : > { %7430 = sst [smem:[#allocation60_spill]] %s4725_s16  ;;  %v4815_v34 = vmax.f32 %v428_v18, 0.0 }
 0x208   : > { %s7435_s1 = sld [smem:[#allocation64_spill]]  ;;  %v546_v35 = vstv %s7431_s15  ;;  %v498_v61 = vadd.f32 %v497_v46, %v494_v44 }
 0x209   : > { %s4740_s13 = sld [smem:[#allocation2 + $0xde]]  ;;  %v547_v50 = vmul.f32 %v4463_v6, %v546_v35 }
 0x20a   : > { %7432 = sst [smem:[#allocation49_spill]] %s4730_s12 }
 0x20b   : > { %s7437_s2 = sld [smem:[#allocation58_spill]]  ;;  %v523_v40 = vstv %s7433_s28  ;;  %v548_v5 = vadd.f32 %v547_v50, %v544_v49 }
 0x20c   : > { %7434 = sst [smem:[#allocation55_spill]] %s4734_s14  ;;  %v524_v52 = vmul.f32 %v4476_v10, %v523_v40 }
 0x20d   : > { %s7438_s6 = sld [smem:[#allocation70_spill]] }
 0x20e   : > { %s4744_s4 = sld [smem:[#allocation2 + $0xdf]]  ;;  %v477_v43 = vstv %s7435_s1  ;;  %v525_v8 = vadd.f32 %v524_v52, %v521_v51 }
 0x20f   : > { %7436 = sst [smem:[#allocation44_spill]] %s4740_s13  ;;  %v478_v57 = vmul.f32 %v4507_v23, %v477_v43 }
 0x210   : > { %s7440_s19 = sld [smem:[#allocation77_spill]] }
 0x211   : > { %s7441_s26 = sld [smem:[#allocation83_spill]]  ;;  %v454_v47 = vstv %s7437_s2  ;;  %v479_v37 = vadd.f32 %v478_v57, %v475_v60 }
 0x212   : > { %s4749_s14 = sld [smem:[#allocation2 + $0x276]]  ;;  %v455_v19 = vadd.f32 %v454_v47, %v452_v56 }
 0x213   : > { %s7443_s13 = sld [smem:[#allocation87_spill]]  ;;  %v500_v48 = vstv %s7438_s6 }
 0x214   : > { %7439 = sst [smem:[#allocation61_spill]] %s4744_s4  ;;  %v501_v63 = vmul.f32 %v4491_v16, %v500_v48  ;;  %v4821_v39 = vmax.f32 %v455_v19, 0.0 }
 0x215   : > { %s7444_s12 = sld [smem:[#allocation88_spill]] }
 0x216   : > { %s4753_s15 = sld [smem:[#allocation2 + $0xe0]]  ;;  %v527_v54 = vstv %s7440_s19  ;;  %v502_v20 = vadd.f32 %v501_v63, %v498_v61 }
 0x217   : > { %s7446_s4 = sld [smem:[#allocation71_spill]]  ;;  %v550_v55 = vstv %s7441_s26  ;;  %v528_v3 = vmul.f32 %v4491_v16, %v527_v54 }
 0x218   : > { %7442 = sst [smem:[#allocation66_spill]] %s4749_s14  ;;  %v551_v7 = vmul.f32 %v4476_v10, %v550_v55 }
 0x219   : > { %s4758_s16 = sld [smem:[#allocation2 + $0xe1]]  ;;  %v566_v58 = vstv %s7443_s13  ;;  %v529_v45 = vadd.f32 %v528_v3, %v525_v8 }
 0x21a   : > { %s7448_s28 = sld [smem:[#allocation78_spill]]  ;;  %v567_v11 = vmul.f32 %v566_v58, %v4445_v0  ;;  %v552_v31 = vadd.f32 %v551_v7, %v548_v5 }
 0x21b   : > { %s4763_s1 = sld [smem:[#allocation2 + $0xe2]]  ;;  %v569_v59 = vstv %s7444_s12 }
 0x21c   : > { %7445 = sst [smem:[#allocation67_spill]] %s4753_s15  ;;  %v570_v12 = vmul.f32 %v4448_v1, %v569_v59 }
 0x21d   : > { %s7450_s14 = sld [smem:[#allocation84_spill]]  ;;  %v504_v2 = vstv %s7446_s4 }
 0x21e   : > { %s4768_s2 = sld [smem:[#allocation2 + $0xe3]]  ;;  %v505_v21 = vmul.f32 %v4507_v23, %v504_v2  ;;  %v571_v24 = vadd.f32 %v570_v12, %v567_v11 }
 0x21f   : > { %7447 = sst [smem:[#allocation50_spill]] %s4758_s16 }
 0x220   : > { %s7452_s6 = sld [smem:[#allocation89_spill]]  ;;  %v531_v4 = vstv %s7448_s28  ;;  %v506_v35 = vadd.f32 %v505_v21, %v502_v20 }
 0x221   : > { %7449 = sst [smem:[#allocation56_spill]] %s4763_s1  ;;  %v532_v22 = vmul.f32 %v4507_v23, %v531_v4 }
 0x222   : > { %s4772_s19 = sld [smem:[#allocation2 + $0xe4]] }
 0x223   : > { %s4777_s13 = sld [smem:[#allocation2 + $0xe5]]  ;;  %v554_v9 = vstv %s7450_s14  ;;  %v533_v46 = vadd.f32 %v532_v22, %v529_v45 }
 0x224   : > { %7451 = sst [smem:[#allocation73_spill]] %s4768_s2  ;;  %v555_v41 = vmul.f32 %v4491_v16, %v554_v9 }
 0x225   : > { %s4782_s12 = sld [smem:[#allocation2 + $0xe6]] }
 0x226   : > { %s7456_s4 = sld [smem:[#allocation85_spill]]  ;;  %v573_v17 = vstv %s7452_s6  ;;  %v556_v42 = vadd.f32 %v555_v41, %v552_v31 }
 0x227   : > { %s4794_s26 = sld [smem:[#allocation2 + $0xe7]]  ;;  %v574_v25 = vmul.f32 %v4463_v6, %v573_v17 }
 0x228   : > { %7453 = sst [smem:[#allocation74_spill]] %s4772_s19 }
 0x229   : > { %7454 = sst [smem:[#allocation62_spill]] %s4777_s13  ;;  %v575_v47 = vadd.f32 %v574_v25, %v571_v24 }
 0x22a   : > { %s7458_s14 = sld [smem:[#allocation65_spill]] }
 0x22b   : > { %7455 = sst [smem:[#allocation68_spill]] %s4782_s12 }
 0x22c   : > { %s7459_s28 = sld [smem:[#allocation90_spill]]  ;;  %v558_v53 = vstv %s7456_s4 }
 0x22d   : > { %7457 = sst [smem:[#allocation80_spill]] %s4794_s26  ;;  %v559_v43 = vmul.f32 %v4507_v23, %v558_v53 }
 0x22e   : > { %s4797_s12 = sld [smem:[#allocation2 + $0xe8]] }
 0x22f   : > { %s7461_s17 = sld [smem:[#allocation108_spill]]  ;;  %v560_v58 = vadd.f32 %v559_v43, %v556_v42 }
 0x230   : > { %s7462_s5 = sld [smem:[#allocation109_spill]]  ;;  %v481_v32 = vstv %s7458_s14 }
 0x231   : > { %s4801_s6 = sld [smem:[#allocation2 + $0xe9]]  ;;  %v482_v44 = vadd.f32 %v481_v32, %v479_v37 }
 0x232   : > { %s7464_s26 = sld [smem:[#allocation72_spill]]  ;;  %v577_v33 = vstv %s7459_s28 }
 0x233   : > { %s4805_s13 = sld [smem:[#allocation2 + $0xea]]  ;;  %v578_v48 = vmul.f32 %v4476_v10, %v577_v33  ;;  %v4861_v17 = vmax.f32 %v482_v44, 0.0 }
 0x234   : > { %7460 = sst [smem:[#allocation81_spill]] %s4797_s12 }
 0x235   : > { %s4813_s12 = sld [smem:[#allocation2 + $0xeb]]  ;;  %v647_v36 = vstv %s7461_s17  ;;  %v579_v2 = vadd.f32 %v578_v48, %v575_v47 }
 0x236   : > { %s7467_s19 = sld [smem:[#allocation79_spill]]  ;;  %v650_v38 = vstv %s7462_s5  ;;  %v648_v51 = vmul.f32 %v647_v36, %v4595_v30 }
 0x237   : > { %7463 = sst [smem:[#allocation57_spill]] %s4801_s6  ;;  %v651_v52 = vmul.f32 %v650_v38, %v4634_v62 }
 0x238   : > { %s7468_s6 = sld [smem:[#allocation91_spill]]  ;;  %v508_v40 = vstv %s7464_s26 }
 0x239   : > { %7465 = sst [smem:[#allocation75_spill]] %s4805_s13  ;;  %v509_v54 = vadd.f32 %v508_v40, %v506_v35  ;;  %v652_v8 = vadd.f32 %v651_v52, %v648_v51 }
 0x23a   : > { %s4819_s4 = sld [smem:[#allocation2 + $0xec]] }
 0x23b   : > { %7466 = sst [smem:[#allocation63_spill]] %s4813_s12  ;;  %v4863_v18 = vmax.f32 %v509_v54, 0.0 }
 0x23c   : > { %s7470_s13 = sld [smem:[#allocation94_spill]]  ;;  %v535_v49 = vstv %s7467_s19 }
 0x23d   : > { %s7471_s2 = sld [smem:[#allocation95_spill]]  ;;  %v536_v63 = vadd.f32 %v535_v49, %v533_v46 }
 0x23e   : > { %s7472_s14 = sld [smem:[#allocation110_spill]]  ;;  %v581_v50 = vstv %s7468_s6 }
 0x23f   : > { %s4825_s28 = sld [smem:[#allocation2 + $0xed]]  ;;  %v582_v3 = vmul.f32 %v4491_v16, %v581_v50  ;;  %v4868_v21 = vmax.f32 %v536_v63, 0.0  ;;  %v781_v50 = vstv %s4404_s11 }
 0x240   : > { %7469 = sst [smem:[#allocation51_spill]] %s4819_s4 }
 0x241   : > { %s7474_s12 = sld [smem:[#allocation86_spill]]  ;;  %v583_v37 = vadd.f32 %v582_v3, %v579_v2  ;;  %v782_v2 = vmul.f32 %v781_v50, %v4595_v30 }
 0x242   : > { %s7475_s1 = sld [smem:[#allocation125_spill]]  ;;  %v593_v55 = vstv %s7470_s13 }
 0x243   : > { %s7476_s17 = sld [smem:[#allocation126_spill]]  ;;  %v596_v56 = vstv %s7471_s2  ;;  %v594_v5 = vmul.f32 %v593_v55, %v4445_v0 }
 0x244   : > { %s4828_s5 = sld [smem:[#allocation2 + $0xee]]  ;;  %v654_v57 = vstv %s7472_s14  ;;  %v597_v7 = vmul.f32 %v4448_v1, %v596_v56 }
 0x245   : > { %7473 = sst [smem:[#allocation69_spill]] %s4825_s28  ;;  %v655_v9 = vmul.f32 %v654_v57, %v4663_v28 }
 0x246   : > { %s7478_s26 = sld [smem:[#allocation92_spill]]  ;;  %v598_v25 = vadd.f32 %v597_v7, %v594_v5 }
 0x247   : > { %s4834_s4 = sld [smem:[#allocation2 + $0xef]]  ;;  %v562_v59 = vstv %s7474_s12  ;;  %v656_v53 = vadd.f32 %v655_v9, %v652_v8 }
 0x248   : > { %s4839_s28 = sld [smem:[#allocation2 + $0x277]]  ;;  %v714_v60 = vstv %s7475_s1  ;;  %v563_v19 = vadd.f32 %v562_v59, %v560_v58 }
 0x249   : > { %s7481_s16 = sld [smem:[#allocation96_spill]]  ;;  %v717_v61 = vstv %s7476_s17  ;;  %v715_v14 = vmul.f32 %v714_v60, %v4595_v30 }
 0x24a   : > { %7477 = sst [smem:[#allocation82_spill]] %s4828_s5  ;;  %v718_v15 = vmul.f32 %v717_v61, %v4634_v62  ;;  %v4883_v36 = vmax.f32 %v563_v19, 0.0 }
 0x24b   : > { %s7482_s15 = sld [smem:[#allocation111_spill]] }
 0x24c   : > { %s4844_s19 = sld [smem:[#allocation2 + $0xf0]]  ;;  %v585_v4 = vstv %s7478_s26  ;;  %v719_v33 = vadd.f32 %v718_v15, %v715_v14 }
 0x24d   : > { %7479 = sst [smem:[#allocation76_spill]] %s4834_s4  ;;  %v586_v22 = vmul.f32 %v4507_v23, %v585_v4 }
 0x24e   : > { %7480 = sst [smem:[#allocation64_spill]] %s4839_s28 }
 0x24f   : > { %s7483_s6 = sld [smem:[#allocation127_spill]]  ;;  %v600_v11 = vstv %s7481_s16  ;;  %v587_v43 = vadd.f32 %v586_v22, %v583_v37 }
 0x250   : > { %s4848_s4 = sld [smem:[#allocation2 + $0xf1]]  ;;  %v601_v45 = vmul.f32 %v4463_v6, %v600_v11 }
 0x251   : > { %s7484_s2 = sld [smem:[#allocation97_spill]]  ;;  %v658_v12 = vstv %s7482_s15 }
 0x252   : > { %s4853_s1 = sld [smem:[#allocation2 + $0xf2]]  ;;  %v659_v24 = vmul.f32 %v658_v12, %v4665_v29  ;;  %v602_v52 = vadd.f32 %v601_v45, %v598_v25 }
 0x253   : > { %s7486_s13 = sld [smem:[#allocation93_spill]] }
 0x254   : > { %s4859_s12 = sld [smem:[#allocation2 + $0xf3]]  ;;  %v660_v48 = vadd.f32 %v659_v24, %v656_v53 }
 0x255   : > { %s7488_s14 = sld [smem:[#allocation112_spill]]  ;;  %v721_v20 = vstv %s7483_s6 }
 0x256   : > { %s4866_s17 = sld [smem:[#allocation2 + $0xf4]]  ;;  %v722_v35 = vmul.f32 %v721_v20, %v4663_v28 }
 0x257   : > { %s7490_s16 = sld [smem:[#allocation98_spill]]  ;;  %v604_v31 = vstv %s7484_s2 }
 0x258   : > { %7485 = sst [smem:[#allocation58_spill]] %s4853_s1  ;;  %v605_v38 = vmul.f32 %v4476_v10, %v604_v31  ;;  %v723_v55 = vadd.f32 %v722_v35, %v719_v33 }
 0x259   : > { %s7491_s15 = sld [smem:[#allocation128_spill]]  ;;  %v589_v41 = vstv %s7486_s13 }
 0x25a   : > { %7487 = sst [smem:[#allocation70_spill]] %s4859_s12  ;;  %v590_v61 = vadd.f32 %v589_v41, %v587_v43  ;;  %v606_v7 = vadd.f32 %v605_v38, %v602_v52 }
 0x25b   : > { %s4872_s26 = sld [smem:[#allocation2 + $0xf5]]  ;;  %v662_v32 = vstv %s7488_s14 }
 0x25c   : > { %7489 = sst [smem:[#allocation77_spill]] %s4866_s17  ;;  %v663_v49 = vmul.f32 %v662_v32, %v4785_v13  ;;  %v4929_v20 = vmax.f32 %v590_v61, 0.0 }
 0x25d   : > { %s7493_s28 = sld [smem:[#allocation99_spill]]  ;;  %v608_v40 = vstv %s7490_s16 }
 0x25e   : > { %s7494_s5 = sld [smem:[#allocation101_spill]]  ;;  %v609_v57 = vmul.f32 %v4491_v16, %v608_v40  ;;  %v664_v5 = vadd.f32 %v663_v49, %v660_v48  ;;  %v848_v40 = vstv %s4438_s10 }
 0x25f   : > { %s7495_s6 = sld [smem:[#allocation102_spill]]  ;;  %v725_v42 = vstv %s7491_s15 }
 0x260   : > { %s4877_s17 = sld [smem:[#allocation2 + $0xf6]]  ;;  %v726_v56 = vmul.f32 %v725_v42, %v4665_v29  ;;  %v610_v24 = vadd.f32 %v609_v57, %v606_v7  ;;  %v851_v42 = vstv %s4440_s8 }
 0x261   : > { %7492 = sst [smem:[#allocation83_spill]] %s4872_s26 }
 0x262   : > { %s7497_s12 = sld [smem:[#allocation142_spill]]  ;;  %v727_v9 = vadd.f32 %v726_v56, %v723_v55  ;;  %v852_v55 = vmul.f32 %v851_v42, %v4634_v62 }
 0x263   : > { %s4881_s2 = sld [smem:[#allocation2 + $0xf7]]  ;;  %v612_v44 = vstv %s7493_s28 }
 0x264   : > { %s7499_s13 = sld [smem:[#allocation113_spill]]  ;;  %v620_v46 = vstv %s7494_s5  ;;  %v613_v4 = vmul.f32 %v4507_v23, %v612_v44 }
 0x265   : > { %s4888_s26 = sld [smem:[#allocation2 + $0xf8]]  ;;  %v623_v47 = vstv %s7495_s6  ;;  %v621_v58 = vmul.f32 %v620_v46, %v4445_v0 }
 0x266   : > { %7496 = sst [smem:[#allocation87_spill]] %s4877_s17  ;;  %v624_v59 = vmul.f32 %v4448_v1, %v623_v47  ;;  %v614_v56 = vadd.f32 %v613_v4, %v610_v24 }
 0x267   : > { %s7500_s14 = sld [smem:[#allocation129_spill]] }
 0x268   : > { %s4893_s17 = sld [smem:[#allocation2 + $0xf9]]  ;;  %v784_v51 = vstv %s7497_s12  ;;  %v625_v14 = vadd.f32 %v624_v59, %v621_v58  ;;  %v855_v59 = vstv %s4442_s21 }
 0x269   : > { %7498 = sst [smem:[#allocation88_spill]] %s4881_s2  ;;  %v785_v3 = vmul.f32 %v784_v51, %v4634_v62 }
 0x26a   : > { %s7502_s1 = sld [smem:[#allocation103_spill]]  ;;  %v666_v54 = vstv %s7499_s13 }
 0x26b   : > { %s4898_s2 = sld [smem:[#allocation2 + $0xfa]]  ;;  %v667_v0 = vmul.f32 %v666_v54, %v4807_v26  ;;  %v786_v22 = vadd.f32 %v785_v3, %v782_v2  ;;  %v849_v54 = vmul.f32 %v848_v40, %v4595_v30 }
 0x26c   : > { %s7504_s16 = sld [smem:[#allocation143_spill]] }
 0x26d   : > { %s4902_s28 = sld [smem:[#allocation2 + $0xfb]]  ;;  %v729_v60 = vstv %s7500_s14  ;;  %v668_v41 = vadd.f32 %v667_v0, %v664_v5  ;;  %v853_v7 = vadd.f32 %v852_v55, %v849_v54  ;;  %v867_v55 = vstv %s4456_s29 }
 0x26e   : > { %7501 = sst [smem:[#allocation71_spill]] %s4893_s17  ;;  %v730_v11 = vmul.f32 %v729_v60, %v4785_v13 }
 0x26f   : > { %s7506_s5 = sld [smem:[#allocation114_spill]] }
 0x270   : > { %s4908_s11 = sld [smem:[#allocation2 + $0xfc]]  ;;  %v627_v63 = vstv %s7502_s1  ;;  %v731_v25 = vadd.f32 %v730_v11, %v727_v9 }
 0x271   : > { %7503 = sst [smem:[#allocation78_spill]] %s4898_s2  ;;  %v628_v15 = vmul.f32 %v4463_v6, %v627_v63 }
 0x272   : > { %s7508_s12 = sld [smem:[#allocation100_spill]]  ;;  %v788_v1 = vstv %s7504_s16 }
 0x273   : > { %7505 = sst [smem:[#allocation84_spill]] %s4902_s28  ;;  %v789_v31 = vmul.f32 %v788_v1, %v4663_v28  ;;  %v629_v35 = vadd.f32 %v628_v15, %v625_v14  ;;  %v859_v15 = vstv %s4452_s0 }
 0x274   : > { %s7509_s15 = sld [smem:[#allocation130_spill]] }
 0x275   : > { %s4913_s6 = sld [smem:[#allocation2 + $0xfd]]  ;;  %v670_v8 = vstv %s7506_s5  ;;  %v790_v46 = vadd.f32 %v789_v31, %v786_v22 }
 0x276   : > { %7507 = sst [smem:[#allocation89_spill]] %s4908_s11  ;;  %v671_v45 = vmul.f32 %v670_v8, %v4809_v27  ;;  %v856_v8 = vmul.f32 %v855_v59, %v4663_v28 }
 0x277   : > { %s7511_s13 = sld [smem:[#allocation104_spill]] }
 0x278   : > { %s4918_s14 = sld [smem:[#allocation2 + $0xfe]]  ;;  %v616_v12 = vstv %s7508_s12  ;;  %v672_v48 = vadd.f32 %v671_v45, %v668_v41  ;;  %v857_v24 = vadd.f32 %v856_v8, %v853_v7 }
 0x279   : > { %s7513_s11 = sld [smem:[#allocation115_spill]]  ;;  %v617_v9 = vadd.f32 %v616_v12, %v614_v56 }
 0x27a   : > { %s7514_s1 = sld [smem:[#allocation144_spill]]  ;;  %v733_v19 = vstv %s7509_s15 }
 0x27b   : > { %7510 = sst [smem:[#allocation85_spill]] %s4913_s6  ;;  %v734_v32 = vmul.f32 %v733_v19, %v4807_v26 }
 0x27c   : > { %s4922_s28 = sld [smem:[#allocation2 + $0xff]] }
 0x27d   : > { %s7516_s6 = sld [smem:[#allocation131_spill]]  ;;  %v631_v37 = vstv %s7511_s13 }
 0x27e   : > { %7512 = sst [smem:[#allocation65_spill]] %s4918_s14  ;;  %v632_v38 = vmul.f32 %v4476_v10, %v631_v37  ;;  %v735_v10 = vadd.f32 %v734_v32, %v731_v25  ;;  %v860_v25 = vmul.f32 %v859_v15, %v4665_v29  ;;  %v5000_v32 = vmax.f32 %v617_v9, 0.0 }
 0x27f   : > { %s4927_s2 = sld [smem:[#allocation2 + $0x278]]  ;;  %v674_v53 = vstv %s7513_s11 }
 0x280   : > { %s4933_s16 = sld [smem:[#allocation2 + $0x100]]  ;;  %v792_v6 = vstv %s7514_s1  ;;  %v675_v44 = vmul.f32 %v674_v53, %v4815_v34  ;;  %v633_v57 = vadd.f32 %v632_v38, %v629_v35  ;;  %v863_v38 = vstv %s4454_s7 }
 0x281   : > { %s7518_s5 = sld [smem:[#allocation105_spill]]  ;;  %v793_v47 = vmul.f32 %v792_v6, %v4665_v29 }
 0x282   : > { %7515 = sst [smem:[#allocation90_spill]] %s4922_s28  ;;  %v676_v3 = vadd.f32 %v675_v44, %v672_v48  ;;  %v918_v44 = vstv %s4504_s30 }
 0x283   : > { %s4938_s12 = sld [smem:[#allocation2 + $0x101]]  ;;  %v737_v33 = vstv %s7516_s6  ;;  %v794_v63 = vadd.f32 %v793_v47, %v790_v46 }
 0x284   : > { %s7519_s15 = sld [smem:[#allocation116_spill]]  ;;  %v738_v50 = vmul.f32 %v737_v33, %v4809_v27 }
 0x285   : > { %7517 = sst [smem:[#allocation108_spill]] %s4927_s2 }
 0x286   : > { %s7520_s13 = sld [smem:[#allocation145_spill]] }
 0x287   : > { %s4942_s2 = sld [smem:[#allocation2 + $0x102]]  ;;  %v635_v43 = vstv %s7518_s5 }
 0x288   : > { %s7521_s28 = sld [smem:[#allocation132_spill]]  ;;  %v636_v58 = vmul.f32 %v4491_v16, %v635_v43  ;;  %v739_v16 = vadd.f32 %v738_v50, %v735_v10  ;;  %v915_v43 = vstv %s4500_s24  ;;  %v861_v10 = vadd.f32 %v860_v25, %v857_v24 }
 0x289   : > { %s4947_s14 = sld [smem:[#allocation2 + $0x103]]  ;;  %v916_v56 = vmul.f32 %v915_v43, %v4595_v30  ;;  %v875_v25 = vstv %s4466_s22  ;;  %v930_v43 = vstv %s4519_s18 }
 0x28a   : > { %s4952_s11 = sld [smem:[#allocation2 + $0x104]]  ;;  %v678_v49 = vstv %s7519_s15  ;;  %v637_v11 = vadd.f32 %v636_v58, %v633_v57  ;;  %v919_v57 = vmul.f32 %v918_v44, %v4634_v62 }
 0x28b   : > { %s7522_s6 = sld [smem:[#allocation106_spill]]  ;;  %v679_v61 = vmul.f32 %v678_v49, %v4821_v39 }
 0x28c   : > { %v796_v51 = vstv %s7520_s13  ;;  %s4957_s1 = sld [smem:[#allocation2 + $0x105]]  ;;  %v920_v9 = vadd.f32 %v919_v57, %v916_v56 }
 0x28d   : > { %s7524_s10 = sld [smem:[#allocation117_spill]]  ;;  %v797_v2 = vmul.f32 %v796_v51, %v4785_v13  ;;  %v680_v41 = vadd.f32 %v679_v61, %v676_v3  ;;  %v922_v61 = vstv %s4510_s27 }
 0x28e   : > { %v741_v52 = vstv %s7521_s28  ;;  %s7525_s8 = sld [smem:[#allocation146_spill]] }
 0x28f   : > { %s4962_s5 = sld [smem:[#allocation2 + $0x106]]  ;;  %v742_v5 = vmul.f32 %v741_v52, %v4815_v34  ;;  %v798_v22 = vadd.f32 %v797_v2, %v794_v63  ;;  %v864_v52 = vmul.f32 %v863_v38, %v4785_v13 }
 0x290   : > { %s7527_s17 = sld [smem:[#allocation133_spill]] }
 0x291   : > { %s4966_s15 = sld [smem:[#allocation2 + $0x107]]  ;;  %v639_v60 = vstv %s7522_s6 }
 0x292   : > { %7523 = sst [smem:[#allocation109_spill]] %s4957_s1  ;;  %v640_v14 = vmul.f32 %v4507_v23, %v639_v60  ;;  %v743_v23 = vadd.f32 %v742_v5, %v739_v16  ;;  %v865_v16 = vadd.f32 %v864_v52, %v861_v10  ;;  %v876_v10 = vmul.f32 %v875_v25, %v4815_v34 }
 0x293   : > { %s4971_s28 = sld [smem:[#allocation2 + $0x108]]  ;;  %v682_v4 = vstv %s7524_s10  ;;  %v879_v52 = vstv %s4468_s23 }
 0x294   : > { %s7529_s13 = sld [smem:[#allocation107_spill]]  ;;  %v800_v0 = vstv %s7525_s8  ;;  %v683_v45 = vmul.f32 %v682_v4, %v4861_v17  ;;  %v641_v33 = vadd.f32 %v640_v14, %v637_v11  ;;  %v923_v11 = vmul.f32 %v922_v61, %v4663_v28 }
 0x295   : > { %7526 = sst [smem:[#allocation72_spill]] %s4962_s5  ;;  %v801_v31 = vmul.f32 %v800_v0, %v4807_v26 }
 0x296   : > { %s7530_s5 = sld [smem:[#allocation118_spill]]  ;;  %v745_v1 = vstv %s7527_s17  ;;  %v684_v46 = vadd.f32 %v683_v45, %v680_v41 }
 0x297   : > { %7528 = sst [smem:[#allocation79_spill]] %s4966_s15  ;;  %v746_v12 = vmul.f32 %v745_v1, %v4821_v39  ;;  %v802_v40 = vadd.f32 %v801_v31, %v798_v22  ;;  %v868_v1 = vmul.f32 %v867_v55, %v4807_v26  ;;  %v931_v55 = vmul.f32 %v930_v43, %v4785_v13 }
 0x298   : > { %s4976_s1 = sld [smem:[#allocation2 + $0x109]] }
 0x299   : > { %s7532_s21 = sld [smem:[#allocation147_spill]]  ;;  %v747_v50 = vadd.f32 %v746_v12, %v743_v23  ;;  %v869_v23 = vadd.f32 %v868_v1, %v865_v16 }
 0x29a   : > { %s4980_s6 = sld [smem:[#allocation2 + $0x10a]]  ;;  %v643_v19 = vstv %s7529_s13 }
 0x29b   : > { %s7534_s15 = sld [smem:[#allocation134_spill]]  ;;  %v644_v54 = vadd.f32 %v643_v19, %v641_v33  ;;  %v924_v33 = vadd.f32 %v923_v11, %v920_v9  ;;  %v938_v9 = vstv %s4527_s9 }
 0x29c   : > { %s4984_s10 = sld [smem:[#allocation2 + $0x10b]]  ;;  %v686_v37 = vstv %s7530_s5 }
 0x29d   : > { %s4989_s17 = sld [smem:[#allocation2 + $0x10c]]  ;;  %v687_v35 = vmul.f32 %v686_v37, %v4863_v18  ;;  %v5039_v7 = vmax.f32 %v644_v54, 0.0  ;;  %v926_v37 = vstv %s4514_s3 }
 0x29e   : > { %7531 = sst [smem:[#allocation91_spill]] %s4976_s1 }
 0x29f   : > { %v804_v53 = vstv %s7532_s21  ;;  %s4994_s8 = sld [smem:[#allocation2 + $0x10d]]  ;;  %v688_v63 = vadd.f32 %v687_v35, %v684_v46  ;;  %v927_v35 = vmul.f32 %v926_v37, %v4665_v29 }
 0x2a0   : > { %7533 = sst [smem:[#allocation94_spill]] %s4980_s6  ;;  %v805_v42 = vmul.f32 %v804_v53, %v4809_v27 }
 0x2a1   : > { %s7538_s0 = sld [smem:[#allocation119_spill]]  ;;  %v749_v6 = vstv %s7534_s15  ;;  %v928_v54 = vadd.f32 %v927_v35, %v924_v33 }
 0x2a2   : > { %7535 = sst [smem:[#allocation95_spill]] %s4984_s10  ;;  %v750_v48 = vmul.f32 %v749_v6, %v4861_v17  ;;  %v806_v59 = vadd.f32 %v805_v42, %v802_v40 }
 0x2a3   : > { %7536 = sst [smem:[#allocation110_spill]] %s4989_s17  ;;  %v932_v1 = vadd.f32 %v931_v55, %v928_v54 }
 0x2a4   : > { %s7539_s5 = sld [smem:[#allocation148_spill]]  ;;  %v751_v5 = vadd.f32 %v750_v48, %v747_v50 }
 0x2a5   : > { %7537 = sst [smem:[#allocation86_spill]] %s4994_s8 }
 0x2a6   : > { %s4998_s13 = sld [smem:[#allocation2 + $0x10e]] }
 0x2a7   : > { %s7541_s17 = sld [smem:[#allocation135_spill]]  ;;  %v690_v47 = vstv %s7538_s0 }
 0x2a8   : > { %s5004_s10 = sld [smem:[#allocation2 + $0x10f]]  ;;  %v691_v58 = vmul.f32 %v690_v47, %v4868_v21 }
 0x2a9   : > { %s5009_s15 = sld [smem:[#allocation2 + $0x279]] }
 0x2aa   : > { %v808_v49 = vstv %s7539_s5  ;;  %s5014_s21 = sld [smem:[#allocation2 + $0x110]]  ;;  %v692_v22 = vadd.f32 %v691_v58, %v688_v63 }
 0x2ab   : > { %s7544_s7 = sld [smem:[#allocation120_spill]]  ;;  %v809_v60 = vmul.f32 %v808_v49, %v4815_v34 }
 0x2ac   : > { %7540 = sst [smem:[#allocation125_spill]] %s4998_s13 }
 0x2ad   : > { %v753_v51 = vstv %s7541_s17  ;;  %s5018_s13 = sld [smem:[#allocation2 + $0x111]]  ;;  %v810_v15 = vadd.f32 %v809_v60, %v806_v59  ;;  %v934_v59 = vstv %s4523_s25 }
 0x2ae   : > { %7542 = sst [smem:[#allocation126_spill]] %s5004_s10  ;;  %v754_v3 = vmul.f32 %v753_v51, %v4863_v18 }
 0x2af   : > { %7543 = sst [smem:[#allocation92_spill]] %s5009_s15 }
 0x2b0   : > { %s7545_s10 = sld [smem:[#allocation149_spill]]  ;;  %v755_v12 = vadd.f32 %v754_v3, %v751_v5 }
 0x2b1   : > { %s7546_s24 = sld [smem:[#allocation136_spill]]  ;;  %v694_v2 = vstv %s7544_s7 }
 0x2b2   : > { %s5023_s30 = sld [smem:[#allocation2 + $0x112]]  ;;  %v695_v31 = vmul.f32 %v694_v2, %v4883_v36 }
 0x2b3   : > { %s7547_s0 = sld [smem:[#allocation158_spill]] }
 0x2b4   : > { %s5028_s17 = sld [smem:[#allocation2 + $0x113]]  ;;  %v696_v44 = vadd.f32 %v695_v31, %v692_v22 }
 0x2b5   : > { %s7548_s5 = sld [smem:[#allocation121_spill]] }
 0x2b6   : > { %v812_v4 = vstv %s7545_s10  ;;  %s5033_s29 = sld [smem:[#allocation2 + $0x114]] }
 0x2b7   : > { %v757_v0 = vstv %s7546_s24  ;;  %s7549_s15 = sld [smem:[#allocation150_spill]]  ;;  %v813_v19 = vmul.f32 %v812_v4, %v4821_v39 }
 0x2b8   : > { %s5037_s8 = sld [smem:[#allocation2 + $0x115]]  ;;  %v758_v41 = vmul.f32 %v757_v0, %v4868_v21  ;;  %v880_v0 = vmul.f32 %v879_v52, %v4821_v39 }
 0x2b9   : > { %s7550_s27 = sld [smem:[#allocation137_spill]]  ;;  %v871_v8 = vstv %s7547_s0  ;;  %v814_v40 = vadd.f32 %v813_v19, %v810_v15  ;;  %v982_v15 = vstv %s4579_s20 }
 0x2ba   : > { %s5043_s7 = sld [smem:[#allocation2 + $0x116]]  ;;  %v872_v6 = vmul.f32 %v871_v8, %v4809_v27  ;;  %v759_v49 = vadd.f32 %v758_v41, %v755_v12  ;;  %v935_v8 = vmul.f32 %v934_v59, %v4807_v26  ;;  %v983_v25 = vmul.f32 %v982_v15, %v4595_v30 }
 0x2bb   : > { %v698_v14 = vstv %s7548_s5  ;;  %s5048_s10 = sld [smem:[#allocation2 + $0x117]] }
 0x2bc   : > { %s7552_s24 = sld [smem:[#allocation122_spill]]  ;;  %v699_v24 = vmul.f32 %v698_v14, %v4929_v20  ;;  %v873_v51 = vadd.f32 %v872_v6, %v869_v23  ;;  %v939_v23 = vmul.f32 %v938_v9, %v4809_v27  ;;  %v936_v6 = vadd.f32 %v935_v8, %v932_v1 }
 0x2bd   : > { %v816_v45 = vstv %s7549_s15  ;;  %s5053_s0 = sld [smem:[#allocation2 + $0x118]] }
 0x2be   : > { %s7554_s6 = sld [smem:[#allocation123_spill]]  ;;  %v817_v42 = vmul.f32 %v816_v45, %v4861_v17  ;;  %v700_v60 = vadd.f32 %v699_v24, %v696_v44  ;;  %v877_v5 = vadd.f32 %v876_v10, %v873_v51  ;;  %v940_v10 = vadd.f32 %v939_v23, %v936_v6 }
 0x2bf   : > { %v761_v53 = vstv %s7550_s27  ;;  %s7555_s5 = sld [smem:[#allocation151_spill]] }
 0x2c0   : > { %s5057_s3 = sld [smem:[#allocation2 + $0x119]]  ;;  %v762_v47 = vmul.f32 %v761_v53, %v4883_v36  ;;  %v818_v57 = vadd.f32 %v817_v42, %v814_v40  ;;  %v881_v45 = vadd.f32 %v880_v0, %v877_v5 }
 0x2c1   : > { %7551 = sst [smem:[#allocation96_spill]] %s5048_s10 }
 0x2c2   : > { %s7557_s10 = sld [smem:[#allocation138_spill]]  ;;  %v702_v38 = vstv %s7552_s24  ;;  %v763_v3 = vadd.f32 %v762_v47, %v759_v49 }
 0x2c3   : > { %7553 = sst [smem:[#allocation111_spill]] %s5053_s0  ;;  %v703_v56 = vmul.f32 %v702_v38, %v5000_v32 }
 0x2c4   : > { %s5062_s1 = sld [smem:[#allocation2 + $0x11a]]  ;;  %v706_v46 = vstv %s7554_s6 }
 0x2c5   : > { %s5067_s15 = sld [smem:[#allocation2 + $0x11b]]  ;;  %v820_v48 = vstv %s7555_s5  ;;  %v707_v61 = vmul.f32 %v706_v46, %v5039_v7  ;;  %v704_v37 = vadd.f32 %v703_v56, %v700_v60 }
 0x2c6   : > { %7556 = sst [smem:[#allocation127_spill]] %s5057_s3  ;;  %v821_v58 = vmul.f32 %v820_v48, %v4863_v18 }
 0x2c7   : > { %s5072_s22 = sld [smem:[#allocation2 + $0x11c]]  ;;  %v708_v43 = vadd.f32 %v707_v61, %v704_v37 }
 0x2c8   : > { %v765_v50 = vstv %s7557_s10  ;;  %s7561_s27 = sld [smem:[#allocation152_spill]]  ;;  %v822_v11 = vadd.f32 %v821_v58, %v818_v57 }
 0x2c9   : > { %s5076_s24 = sld [smem:[#allocation2 + $0x11d]]  ;;  %v766_v63 = vmul.f32 %v765_v50, %v4929_v20 }
 0x2ca   : > { %7558 = sst [smem:[#allocation97_spill]] %s5062_s1 }
 0x2cb   : > { %7559 = sst [smem:[#allocation93_spill]] %s5067_s15  ;;  %v767_v35 = vadd.f32 %v766_v63, %v763_v3 }
 0x2cc   : > { %s7563_s1 = sld [smem:[#allocation139_spill]] }
 0x2cd   : > { %7560 = sst [smem:[#allocation112_spill]] %s5072_s22 }
 0x2ce   : > { %s5080_s18 = sld [smem:[#allocation2 + $0x11e]]  ;;  %v824_v2 = vstv %s7561_s27 }
 0x2cf   : > { %7562 = sst [smem:[#allocation98_spill]] %s5076_s24  ;;  %v825_v14 = vmul.f32 %v824_v2, %v4868_v21 }
 0x2d0   : > { %s7565_s6 = sld [smem:[#allocation159_spill]] }
 0x2d1   : > { %s5085_s10 = sld [smem:[#allocation2 + $0x11f]]  ;;  %v826_v38 = vadd.f32 %v825_v14, %v822_v11 }
 0x2d2   : > { %s7567_s23 = sld [smem:[#allocation20_spill]]  ;;  %v769_v4 = vstv %s7563_s1 }
 0x2d3   : > { %s5090_s5 = sld [smem:[#allocation2 + $0x27a]]  ;;  %v770_v22 = vmul.f32 %v769_v4, %v5000_v32 }
 0x2d4   : > { %7564 = sst [smem:[#allocation128_spill]] %s5080_s18 }
 0x2d5   : > { %s7569_s18 = sld [smem:[#allocation140_spill]]  ;;  %v771_v56 = vadd.f32 %v770_v22, %v767_v35 }
 0x2d6   : > { %s7570_s24 = sld [smem:[#allocation153_spill]]  ;;  %v883_v16 = vstv %s7565_s6 }
 0x2d7   : > { %7566 = sst [smem:[#allocation99_spill]] %s5085_s10  ;;  %v884_v12 = vmul.f32 %v883_v16, %v4861_v17 }
 0x2d8   : > { %s5094_s25 = sld [smem:[#allocation2 + $0x120]]  ;;  %v985_v19 = vstv %s7567_s23 }
 0x2d9   : > { %7568 = sst [smem:[#allocation101_spill]] %s5090_s5  ;;  %v986_v33 = vmul.f32 %v985_v19, %v4634_v62  ;;  %v885_v48 = vadd.f32 %v884_v12, %v881_v45 }
 0x2da   : > { %s7571_s10 = sld [smem:[#allocation160_spill]] }
 0x2db   : > { %s5099_s22 = sld [smem:[#allocation2 + $0x121]]  ;;  %v773_v31 = vstv %s7569_s18  ;;  %v987_v54 = vadd.f32 %v986_v33, %v983_v25 }
 0x2dc   : > { %s7572_s27 = sld [smem:[#allocation15_spill]]  ;;  %v828_v41 = vstv %s7570_s24  ;;  %v774_v46 = vmul.f32 %v773_v31, %v5039_v7 }
 0x2dd   : > { %s5104_s1 = sld [smem:[#allocation2 + $0x122]]  ;;  %v829_v40 = vmul.f32 %v828_v41, %v4883_v36 }
 0x2de   : > { %s7573_s6 = sld [smem:[#allocation27_spill]]  ;;  %v775_v11 = vadd.f32 %v774_v46, %v771_v56 }
 0x2df   : > { %s5109_s5 = sld [smem:[#allocation2 + $0x123]]  ;;  %v830_v57 = vadd.f32 %v829_v40, %v826_v38 }
 0x2e0   : > { %s7575_s9 = sld [smem:[#allocation124_spill]]  ;;  %v887_v53 = vstv %s7571_s10 }
 0x2e1   : > { %s7576_s15 = sld [smem:[#allocation154_spill]]  ;;  %v888_v49 = vmul.f32 %v887_v53, %v4863_v18 }
 0x2e2   : > { %s5114_s20 = sld [smem:[#allocation2 + $0x124]]  ;;  %v942_v24 = vstv %s7572_s27 }
 0x2e3   : > { %s7578_s23 = sld [smem:[#allocation161_spill]]  ;;  %v943_v51 = vmul.f32 %v942_v24, %v4815_v34  ;;  %v889_v3 = vadd.f32 %v888_v49, %v885_v48 }
 0x2e4   : > { %s5119_s24 = sld [smem:[#allocation2 + $0x125]]  ;;  %v989_v42 = vstv %s7573_s6 }
 0x2e5   : > { %7574 = sst [smem:[#allocation102_spill]] %s5109_s5  ;;  %v990_v55 = vmul.f32 %v989_v42, %v4663_v28  ;;  %v944_v16 = vadd.f32 %v943_v51, %v940_v10 }
 0x2e6   : > { %s7580_s18 = sld [smem:[#allocation16_spill]]  ;;  %v710_v44 = vstv %s7575_s9 }
 0x2e7   : > { %s5123_s10 = sld [smem:[#allocation2 + $0x126]]  ;;  %v832_v47 = vstv %s7576_s15  ;;  %v5143_v60 = vadd.f32 %v710_v44, %v708_v43  ;;  %v991_v8 = vadd.f32 %v990_v55, %v987_v54 }
 0x2e8   : > { %7577 = sst [smem:[#allocation142_spill]] %s5114_s20  ;;  %v833_v58 = vmul.f32 %v832_v47, %v4929_v20 }
 0x2e9   : > { %s7582_s27 = sld [smem:[#allocation38_spill]]  ;;  %v891_v50 = vstv %s7578_s23 }
 0x2ea   : > { %7579 = sst [smem:[#allocation113_spill]] %s5119_s24  ;;  %v892_v4 = vmul.f32 %v891_v50, %v4868_v21  ;;  %v834_v14 = vadd.f32 %v833_v58, %v830_v57 }
 0x2eb   : > { %s5128_s3 = sld [smem:[#allocation2 + $0x127]] }
 0x2ec   : > { %s7584_s20 = sld [smem:[#allocation141_spill]]  ;;  %v946_v52 = vstv %s7580_s18  ;;  %v893_v45 = vadd.f32 %v892_v4, %v889_v3 }
 0x2ed   : > { %7581 = sst [smem:[#allocation129_spill]] %s5123_s10  ;;  %v947_v0 = vmul.f32 %v946_v52, %v4821_v39 }
 0x2ee   : > { %s7585_s24 = sld [smem:[#allocation155_spill]] }
 0x2ef   : > { %s7586_s0 = sld [smem:[#allocation156_spill]]  ;;  %v993_v59 = vstv %s7582_s27  ;;  %v948_v6 = vadd.f32 %v947_v0, %v944_v16 }
 0x2f0   : > { %s5133_s6 = sld [smem:[#allocation2 + $0x128]]  ;;  %v994_v9 = vmul.f32 %v993_v59, %v4665_v29 }
 0x2f1   : > { %7583 = sst [smem:[#allocation103_spill]] %s5128_s3 }
 0x2f2   : > { %s7588_s9 = sld [smem:[#allocation162_spill]]  ;;  %v777_v61 = vstv %s7584_s20  ;;  %v995_v25 = vadd.f32 %v994_v9, %v991_v8 }
 0x2f3   : > { %s5137_s15 = sld [smem:[#allocation2 + $0x129]]  ;;  %v5178_v35 = vadd.f32 %v777_v61, %v775_v11 }
 0x2f4   : > { %s7590_s3 = sld [smem:[#allocation18_spill]]  ;;  %v836_v63 = vstv %s7585_s24 }
 0x2f5   : > { %s5141_s23 = sld [smem:[#allocation2 + $0x12a]]  ;;  %v840_v2 = vstv %s7586_s0  ;;  %v837_v15 = vmul.f32 %v836_v63, %v5000_v32 }
 0x2f6   : > { %7587 = sst [smem:[#allocation143_spill]] %s5133_s6  ;;  %v841_v22 = vmul.f32 %v840_v2, %v5039_v7 }
 0x2f7   : > { %s7592_s6 = sld [smem:[#allocation39_spill]]  ;;  %v838_v38 = vadd.f32 %v837_v15, %v834_v14 }
 0x2f8   : > { %s5148_s18 = sld [smem:[#allocation2 + $0x12b]]  ;;  %v895_v5 = vstv %s7588_s9 }
 0x2f9   : > { %7589 = sst [smem:[#allocation114_spill]] %s5137_s15  ;;  %v896_v31 = vmul.f32 %v895_v5, %v4883_v36  ;;  %v842_v57 = vadd.f32 %v841_v22, %v838_v38 }
 0x2fa   : > { %s7594_s15 = sld [smem:[#allocation163_spill]]  ;;  %v950_v1 = vstv %s7590_s3 }
 0x2fb   : > { %7591 = sst [smem:[#allocation100_spill]] %s5141_s23  ;;  %v951_v12 = vmul.f32 %v950_v1, %v4861_v17  ;;  %v897_v48 = vadd.f32 %v896_v31, %v893_v45 }
 0x2fc   : > { %s5153_s10 = sld [smem:[#allocation2 + $0x12c]] }
 0x2fd   : > { %s7596_s27 = sld [smem:[#allocation47_spill]]  ;;  %v997_v19 = vstv %s7592_s6  ;;  %v952_v10 = vadd.f32 %v951_v12, %v948_v6 }
 0x2fe   : > { %7593 = sst [smem:[#allocation130_spill]] %s5148_s18  ;;  %v998_v33 = vmul.f32 %v997_v19, %v4785_v13 }
 0x2ff   : > { %s7597_s20 = sld [smem:[#allocation36_spill]] }
 0x300   : > { %s5157_s24 = sld [smem:[#allocation2 + $0x12d]]  ;;  %v899_v41 = vstv %s7594_s15  ;;  %v999_v54 = vadd.f32 %v998_v33, %v995_v25 }
 0x301   : > { %s7599_s0 = sld [smem:[#allocation22_spill]]  ;;  %v900_v43 = vmul.f32 %v899_v41, %v4929_v20 }
 0x302   : > { %7595 = sst [smem:[#allocation104_spill]] %s5153_s10 }
 0x303   : > { %s5161_s9 = sld [smem:[#allocation2 + $0x12e]]  ;;  %v1049_v53 = vstv %s7596_s27  ;;  %v901_v4 = vadd.f32 %v900_v43, %v897_v48 }
 0x304   : > { %s7601_s3 = sld [smem:[#allocation157_spill]]  ;;  %v1050_v46 = vmul.f32 %v1049_v53, %v4595_v30 }
 0x305   : > { %s7602_s10 = sld [smem:[#allocation33_spill]]  ;;  %v1052_v23 = vstv %s7597_s20 }
 0x306   : > { %7598 = sst [smem:[#allocation115_spill]] %s5157_s24  ;;  %v1053_v47 = vmul.f32 %v1052_v23, %v4634_v62 }
 0x307   : > { %s5167_s18 = sld [smem:[#allocation2 + $0x12f]]  ;;  %v954_v24 = vstv %s7599_s0 }
 0x308   : > { %s7604_s24 = sld [smem:[#allocation164_spill]]  ;;  %v955_v50 = vmul.f32 %v954_v24, %v4863_v18  ;;  %v1054_v61 = vadd.f32 %v1053_v47, %v1050_v46 }
 0x309   : > { %7600 = sst [smem:[#allocation144_spill]] %s5161_s9 }
 0x30a   : > { %s5172_s6 = sld [smem:[#allocation2 + $0x27b]]  ;;  %v844_v40 = vstv %s7601_s3  ;;  %v956_v1 = vadd.f32 %v955_v50, %v952_v10 }
 0x30b   : > { %s7606_s9 = sld [smem:[#allocation165_spill]]  ;;  %v1001_v42 = vstv %s7602_s10  ;;  %v5218_v14 = vadd.f32 %v844_v40, %v842_v57 }
 0x30c   : > { %s7607_s23 = sld [smem:[#allocation42_spill]]  ;;  %v1002_v55 = vmul.f32 %v1001_v42, %v4807_v26 }
 0x30d   : > { %7603 = sst [smem:[#allocation131_spill]] %s5167_s18 }
 0x30e   : > { %s5176_s5 = sld [smem:[#allocation2 + $0x130]]  ;;  %v903_v44 = vstv %s7604_s24  ;;  %v1003_v9 = vadd.f32 %v1002_v55, %v999_v54 }
 0x30f   : > { %s7608_s15 = sld [smem:[#allocation26_spill]]  ;;  %v904_v58 = vmul.f32 %v903_v44, %v5000_v32 }
 0x310   : > { %7605 = sst [smem:[#allocation105_spill]] %s5172_s6 }
 0x311   : > { %s5182_s18 = sld [smem:[#allocation2 + $0x131]]  ;;  %v907_v49 = vstv %s7606_s9  ;;  %v905_v53 = vadd.f32 %v904_v58, %v901_v4 }
 0x312   : > { %s7610_s27 = sld [smem:[#allocation24_spill]]  ;;  %v1056_v51 = vstv %s7607_s23  ;;  %v908_v5 = vmul.f32 %v907_v49, %v5039_v7 }
 0x313   : > { %s5188_s20 = sld [smem:[#allocation2 + $0x132]]  ;;  %v1057_v63 = vmul.f32 %v1056_v51, %v4663_v28 }
 0x314   : > { %s7612_s0 = sld [smem:[#allocation67_spill]]  ;;  %v909_v51 = vadd.f32 %v908_v5, %v905_v53 }
 0x315   : > { %s7613_s6 = sld [smem:[#allocation50_spill]]  ;;  %v958_v52 = vstv %s7608_s15  ;;  %v1058_v41 = vadd.f32 %v1057_v63, %v1054_v61 }
 0x316   : > { %s5193_s10 = sld [smem:[#allocation2 + $0x133]]  ;;  %v959_v0 = vmul.f32 %v958_v52, %v4868_v21 }
 0x317   : > { %7609 = sst [smem:[#allocation116_spill]] %s5182_s18 }
 0x318   : > { %s7615_s24 = sld [smem:[#allocation52_spill]]  ;;  %v1005_v59 = vstv %s7610_s27  ;;  %v960_v25 = vadd.f32 %v959_v0, %v956_v1 }
 0x319   : > { %7611 = sst [smem:[#allocation145_spill]] %s5188_s20  ;;  %v1006_v11 = vmul.f32 %v1005_v59, %v4809_v27 }
 0x31a   : > { %s5197_s3 = sld [smem:[#allocation2 + $0x134]]  ;;  %v1116_v2 = vstv %s7612_s0 }
 0x31b   : > { %s7617_s20 = sld [smem:[#allocation19_spill]]  ;;  %v1119_v3 = vstv %s7613_s6  ;;  %v1117_v19 = vmul.f32 %v1116_v2, %v4595_v30  ;;  %v1007_v38 = vadd.f32 %v1006_v11, %v1003_v9  ;;  %v1183_v2 = vstv %s4844_s19 }
 0x31c   : > { %7614 = sst [smem:[#allocation132_spill]] %s5193_s10  ;;  %v1120_v22 = vmul.f32 %v1119_v3, %v4634_v62  ;;  %v1186_v3 = vstv %s4848_s4 }
 0x31d   : > { %s5202_s9 = sld [smem:[#allocation2 + $0x135]] }
 0x31e   : > { %s7619_s23 = sld [smem:[#allocation28_spill]]  ;;  %v1060_v16 = vstv %s7615_s24  ;;  %v1121_v44 = vadd.f32 %v1120_v22, %v1117_v19  ;;  %v1184_v22 = vmul.f32 %v1183_v2, %v4595_v30 }
 0x31f   : > { %s5207_s15 = sld [smem:[#allocation2 + $0x136]]  ;;  %v1061_v45 = vmul.f32 %v1060_v16, %v4665_v29 }
 0x320   : > { %7616 = sst [smem:[#allocation106_spill]] %s5197_s3 }
 0x321   : > { %s7621_s10 = sld [smem:[#allocation166_spill]]  ;;  %v962_v8 = vstv %s7617_s20  ;;  %v1062_v48 = vadd.f32 %v1061_v45, %v1058_v41  ;;  %v1187_v41 = vmul.f32 %v1186_v3, %v4634_v62 }
 0x322   : > { %s7622_s3 = sld [smem:[#allocation56_spill]]  ;;  %v963_v23 = vmul.f32 %v962_v8, %v4883_v36 }
 0x323   : > { %7618 = sst [smem:[#allocation117_spill]] %s5202_s9 }
 0x324   : > { %s5212_s18 = sld [smem:[#allocation2 + $0x137]]  ;;  %v1009_v15 = vstv %s7619_s23  ;;  %v964_v55 = vadd.f32 %v963_v23, %v960_v25 }
 0x325   : > { %7620 = sst [smem:[#allocation146_spill]] %s5207_s15  ;;  %v1010_v40 = vmul.f32 %v1009_v15, %v4815_v34 }
 0x326   : > { %s7624_s27 = sld [smem:[#allocation31_spill]] }
 0x327   : > { %s7625_s9 = sld [smem:[#allocation53_spill]]  ;;  %v911_v31 = vstv %s7621_s10  ;;  %v1011_v57 = vadd.f32 %v1010_v40, %v1007_v38 }
 0x328   : > { %s5216_s6 = sld [smem:[#allocation2 + $0x138]]  ;;  %v1123_v12 = vstv %s7622_s3  ;;  %v5270_v1 = vadd.f32 %v911_v31, %v909_v51 }
 0x329   : > { %s7627_s0 = sld [smem:[#allocation32_spill]]  ;;  %v1124_v46 = vmul.f32 %v1123_v12, %v4663_v28 }
 0x32a   : > { %7623 = sst [smem:[#allocation133_spill]] %s5212_s18 }
 0x32b   : > { %s5223_s24 = sld [smem:[#allocation2 + $0x139]]  ;;  %v1125_v61 = vadd.f32 %v1124_v46, %v1121_v44 }
 0x32c   : > { %s7629_s18 = sld [smem:[#allocation40_spill]]  ;;  %v966_v6 = vstv %s7624_s27 }
 0x32d   : > { %s5228_s20 = sld [smem:[#allocation2 + $0x13a]]  ;;  %v1064_v24 = vstv %s7625_s9  ;;  %v967_v47 = vmul.f32 %v966_v6, %v4929_v20 }
 0x32e   : > { %7626 = sst [smem:[#allocation107_spill]] %s5216_s6  ;;  %v1065_v49 = vmul.f32 %v1064_v24, %v4785_v13 }
 0x32f   : > { %s7631_s6 = sld [smem:[#allocation73_spill]]  ;;  %v970_v33 = vstv %s7627_s0  ;;  %v968_v45 = vadd.f32 %v967_v47, %v964_v55  ;;  %v1188_v47 = vadd.f32 %v1187_v41, %v1184_v22  ;;  %v1250_v41 = vstv %s4933_s16 }
 0x330   : > { %s5233_s23 = sld [smem:[#allocation2 + $0x13b]]  ;;  %v971_v10 = vmul.f32 %v970_v33, %v5000_v32  ;;  %v1066_v5 = vadd.f32 %v1065_v49, %v1062_v48 }
 0x331   : > { %7628 = sst [smem:[#allocation118_spill]] %s5223_s24 }
 0x332   : > { %s7633_s15 = sld [smem:[#allocation23_spill]]  ;;  %v1013_v43 = vstv %s7629_s18 }
 0x333   : > { %7630 = sst [smem:[#allocation147_spill]] %s5228_s20  ;;  %v1014_v58 = vmul.f32 %v1013_v43, %v4821_v39 }
 0x334   : > { %s7634_s10 = sld [smem:[#allocation30_spill]] }
 0x335   : > { %s5237_s24 = sld [smem:[#allocation2 + $0x13c]]  ;;  %v1127_v50 = vstv %s7631_s6  ;;  %v1015_v15 = vadd.f32 %v1014_v58, %v1011_v57 }
 0x336   : > { %7632 = sst [smem:[#allocation134_spill]] %s5233_s23  ;;  %v1128_v63 = vmul.f32 %v1127_v50, %v4665_v29 }
 0x337   : > { %s7636_s3 = sld [smem:[#allocation34_spill]] }
 0x338   : > { %s5242_s27 = sld [smem:[#allocation2 + $0x13d]]  ;;  %v974_v52 = vstv %s7633_s15  ;;  %v1129_v31 = vadd.f32 %v1128_v63, %v1125_v61 }
 0x339   : > { %s5247_s9 = sld [smem:[#allocation2 + $0x13e]]  ;;  %v5264_v4 = vmul.f32 %v974_v52, %v5039_v7 }
 0x33a   : > { %s7639_s18 = sld [smem:[#allocation74_spill]]  ;;  %v1068_v54 = vstv %s7634_s10 }
 0x33b   : > { %7635 = sst [smem:[#allocation119_spill]] %s5237_s24  ;;  %v1069_v0 = vmul.f32 %v1068_v54, %v4807_v26  ;;  %v972_v54 = vadd.f32 %v971_v10, %v968_v45  ;;  %v1253_v45 = vstv %s4938_s12 }
 0x33c   : > { %s5252_s0 = sld [smem:[#allocation2 + $0x13f]] }
 0x33d   : > { %s7642_s24 = sld [smem:[#allocation48_spill]]  ;;  %v1017_v59 = vstv %s7636_s3  ;;  %v1070_v6 = vadd.f32 %v1069_v0, %v1066_v5 }
 0x33e   : > { %7637 = sst [smem:[#allocation148_spill]] %s5242_s27  ;;  %v1018_v9 = vmul.f32 %v1017_v59, %v4861_v17 }
 0x33f   : > { %7638 = sst [smem:[#allocation135_spill]] %s5247_s9 }
 0x340   : > { %s7641_s27 = sld [smem:[#allocation17_spill]]  ;;  %v1131_v16 = vstv %s7639_s18  ;;  %v1019_v44 = vadd.f32 %v1018_v9, %v1015_v15 }
 0x341   : > { %s5256_s23 = sld [smem:[#allocation2 + $0x27c]]  ;;  %v1132_v12 = vmul.f32 %v1131_v16, %v4785_v13 }
 0x342   : > { %7640 = sst [smem:[#allocation120_spill]] %s5252_s0 }
 0x343   : > { %s7644_s6 = sld [smem:[#allocation29_spill]]  ;;  %v1072_v11 = vstv %s7642_s24  ;;  %v1133_v50 = vadd.f32 %v1132_v12, %v1129_v31  ;;  %v976_v31 = vadd.f32 %v5264_v4, %v972_v54 }
 0x344   : > { %s5261_s15 = sld [smem:[#allocation2 + $0x140]]  ;;  %v1073_v24 = vmul.f32 %v1072_v11, %v4809_v27 }
 0x345   : > { %s7645_s10 = sld [smem:[#allocation58_spill]] }
 0x346   : > { %s5268_s0 = sld [smem:[#allocation2 + $0x141]]  ;;  %v978_v8 = vstv %s7641_s27  ;;  %v1074_v55 = vadd.f32 %v1073_v24, %v1070_v6 }
 0x347   : > { %7643 = sst [smem:[#allocation149_spill]] %s5256_s23 }
 0x348   : > { %s7647_s3 = sld [smem:[#allocation45_spill]] }
 0x349   : > { %s7648_s19 = sld [smem:[#allocation62_spill]]  ;;  %v1021_v19 = vstv %s7644_s6 }
 0x34a   : > { %s5275_s4 = sld [smem:[#allocation2 + $0x142]]  ;;  %v1022_v38 = vmul.f32 %v1021_v19, %v4863_v18 }
 0x34b   : > { %s7650_s23 = sld [smem:[#allocation46_spill]]  ;;  %v1190_v53 = vstv %s7645_s10 }
 0x34c   : > { %7646 = sst [smem:[#allocation136_spill]] %s5268_s0  ;;  %v1191_v48 = vmul.f32 %v1190_v53, %v4663_v28  ;;  %v1023_v10 = vadd.f32 %v1022_v38, %v1019_v44  ;;  %v1254_v44 = vmul.f32 %v1253_v45, %v4634_v62 }
 0x34d   : > { %s7651_s9 = sld [smem:[#allocation43_spill]] }
 0x34e   : > { %s5280_s18 = sld [smem:[#allocation2 + $0x143]]  ;;  %v1025_v23 = vstv %s7647_s3  ;;  %v1192_v5 = vadd.f32 %v1191_v48, %v1188_v47 }
 0x34f   : > { %s7653_s20 = sld [smem:[#allocation21_spill]]  ;;  %v1135_v25 = vstv %s7648_s19  ;;  %v1026_v49 = vmul.f32 %v1025_v23, %v4868_v21 }
 0x350   : > { %7649 = sst [smem:[#allocation158_spill]] %s5275_s4  ;;  %v1136_v51 = vmul.f32 %v1135_v25, %v4807_v26 }
 0x351   : > { %s5284_s0 = sld [smem:[#allocation2 + $0x144]]  ;;  %v1029_v40 = vstv %s7650_s23 }
 0x352   : > { %s7655_s24 = sld [smem:[#allocation70_spill]]  ;;  %v1030_v59 = vmul.f32 %v1029_v40, %v4883_v36  ;;  %v1137_v16 = vadd.f32 %v1136_v51, %v1133_v50  ;;  %v1257_v50 = vstv %s4942_s2  ;;  %v5358_v51 = vadd.f32 %v978_v8, %v976_v31 }
 0x353   : > { %s5289_s6 = sld [smem:[#allocation2 + $0x145]]  ;;  %v1076_v43 = vstv %s7651_s9 }
 0x354   : > { %7652 = sst [smem:[#allocation121_spill]] %s5280_s18  ;;  %v1077_v57 = vmul.f32 %v1076_v43, %v4815_v34  ;;  %v1251_v43 = vmul.f32 %v1250_v41, %v4595_v30 }
 0x355   : > { %s7656_s18 = sld [smem:[#allocation68_spill]]  ;;  %v1033_v46 = vstv %s7653_s20 }
 0x356   : > { %s5295_s4 = sld [smem:[#allocation2 + $0x146]]  ;;  %v5312_v61 = vmul.f32 %v1033_v46, %v4929_v20  ;;  %v1078_v19 = vadd.f32 %v1077_v57, %v1074_v55  ;;  %v1027_v46 = vadd.f32 %v1026_v49, %v1023_v10  ;;  %v1255_v10 = vadd.f32 %v1254_v44, %v1251_v43 }
 0x357   : > { %7654 = sst [smem:[#allocation150_spill]] %s5284_s0 }
 0x358   : > { %s7658_s10 = sld [smem:[#allocation41_spill]]  ;;  %v1194_v52 = vstv %s7655_s24 }
 0x359   : > { %s7659_s3 = sld [smem:[#allocation37_spill]]  ;;  %v1195_v0 = vmul.f32 %v1194_v52, %v4665_v29 }
 0x35a   : > { %s5299_s0 = sld [smem:[#allocation2 + $0x147]] }
 0x35b   : > { %s7661_s19 = sld [smem:[#allocation25_spill]]  ;;  %v1139_v58 = vstv %s7656_s18  ;;  %v1196_v25 = vadd.f32 %v1195_v0, %v1192_v5  ;;  %v1031_v5 = vadd.f32 %v1030_v59, %v1027_v46 }
 0x35c   : > { %7657 = sst [smem:[#allocation137_spill]] %s5295_s4  ;;  %v1140_v9 = vmul.f32 %v1139_v58, %v4809_v27 }
 0x35d   : > { %s5304_s23 = sld [smem:[#allocation2 + $0x148]]  ;;  %v1035_v44 = vadd.f32 %v5312_v61, %v1031_v5  ;;  %v1214_v61 = vstv %s4888_s26 }
 0x35e   : > { %s7663_s20 = sld [smem:[#allocation80_spill]]  ;;  %v1037_v63 = vstv %s7658_s10  ;;  %v1141_v38 = vadd.f32 %v1140_v9, %v1137_v16  ;;  %v1261_v9 = vstv %s4947_s14 }
 0x35f   : > { %s7664_s9 = sld [smem:[#allocation77_spill]]  ;;  %v1080_v2 = vstv %s7659_s3  ;;  %v5334_v12 = vmul.f32 %v1037_v63, %v5000_v32 }
 0x360   : > { %7660 = sst [smem:[#allocation122_spill]] %s5299_s0  ;;  %v1081_v22 = vmul.f32 %v1080_v2, %v4821_v39 }
 0x361   : > { %s5308_s4 = sld [smem:[#allocation2 + $0x149]]  ;;  %v1041_v3 = vstv %s7661_s19  ;;  %v1039_v5 = vadd.f32 %v5334_v12, %v1035_v44 }
 0x362   : > { %s5316_s24 = sld [smem:[#allocation2 + $0x14a]]  ;;  %v5337_v53 = vmul.f32 %v1041_v3, %v5039_v7  ;;  %v1082_v47 = vadd.f32 %v1081_v22, %v1078_v19  ;;  %v1258_v3 = vmul.f32 %v1257_v50, %v4663_v28  ;;  %v1317_v19 = vstv %s5014_s21 }
 0x363   : > { %7662 = sst [smem:[#allocation123_spill]] %s5304_s23  ;;  %v1320_v22 = vstv %s5018_s13 }
 0x364   : > { %s7666_s23 = sld [smem:[#allocation54_spill]]  ;;  %v1143_v11 = vstv %s7663_s20  ;;  %v1321_v43 = vmul.f32 %v1320_v22, %v4634_v62  ;;  %v1215_v22 = vmul.f32 %v1214_v61, %v4821_v39 }
 0x365   : > { %s5320_s18 = sld [smem:[#allocation2 + $0x14b]]  ;;  %v1198_v15 = vstv %s7664_s9  ;;  %v1144_v6 = vmul.f32 %v1143_v11, %v4815_v34 }
 0x366   : > { %s5325_s0 = sld [smem:[#allocation2 + $0x14c]]  ;;  %v1199_v4 = vmul.f32 %v1198_v15, %v4785_v13 }
 0x367   : > { %7665 = sst [smem:[#allocation151_spill]] %s5308_s4  ;;  %v1145_v2 = vadd.f32 %v1144_v6, %v1141_v38  ;;  %v1265_v38 = vstv %s4952_s11 }
 0x368   : > { %s7667_s4 = sld [smem:[#allocation81_spill]]  ;;  %v1200_v58 = vadd.f32 %v1199_v4, %v1196_v25  ;;  %v1262_v25 = vmul.f32 %v1261_v9, %v4665_v29  ;;  %v1328_v9 = vstv %s5028_s17 }
 0x369   : > { %s7669_s10 = sld [smem:[#allocation83_spill]] }
 0x36a   : > { %s5330_s3 = sld [smem:[#allocation2 + $0x14d]]  ;;  %v1084_v23 = vstv %s7666_s23 }
 0x36b   : > { %s5340_s19 = sld [smem:[#allocation2 + $0x14e]]  ;;  %v1085_v48 = vmul.f32 %v1084_v23, %v4861_v17 }
 0x36c   : > { %7668 = sst [smem:[#allocation138_spill]] %s5325_s0 }
 0x36d   : > { %s7672_s20 = sld [smem:[#allocation35_spill]]  ;;  %v1086_v0 = vadd.f32 %v1085_v48, %v1082_v47  ;;  %v1324_v48 = vstv %s5023_s30 }
 0x36e   : > { %v1147_v24 = vstv %s7667_s4  ;;  %s7673_s16 = sld [smem:[#allocation59_spill]] }
 0x36f   : > { %s7674_s12 = sld [smem:[#allocation60_spill]]  ;;  %v1202_v40 = vstv %s7669_s10  ;;  %v1148_v57 = vmul.f32 %v1147_v24, %v4821_v39  ;;  %v1259_v24 = vadd.f32 %v1258_v3, %v1255_v10  ;;  %v1325_v3 = vmul.f32 %v1324_v48, %v4663_v28 }
 0x370   : > { %7670 = sst [smem:[#allocation152_spill]] %s5330_s3  ;;  %v1203_v63 = vmul.f32 %v1202_v40, %v4807_v26  ;;  %v1318_v40 = vmul.f32 %v1317_v19, %v4595_v30 }
 0x371   : > { %7671 = sst [smem:[#allocation139_spill]] %s5340_s19  ;;  %v1149_v23 = vadd.f32 %v1148_v57, %v1145_v2 }
 0x372   : > { %s5345_s9 = sld [smem:[#allocation2 + $0x14f]]  ;;  %v1204_v59 = vadd.f32 %v1203_v63, %v1200_v58  ;;  %v1263_v58 = vadd.f32 %v1262_v25, %v1259_v24  ;;  %v1266_v63 = vmul.f32 %v1265_v38, %v4785_v13  ;;  %v1322_v10 = vadd.f32 %v1321_v43, %v1318_v40 }
 0x373   : > { %s7676_s3 = sld [smem:[#allocation57_spill]]  ;;  %v1045_v52 = vstv %s7672_s20  ;;  %v1329_v24 = vmul.f32 %v1328_v9, %v4665_v29  ;;  %v5437_v25 = vadd.f32 %v5337_v53, %v1039_v5  ;;  %v1332_v40 = vstv %s5033_s29 }
 0x374   : > { %s5350_s23 = sld [smem:[#allocation2 + $0x27d]]  ;;  %v1088_v54 = vstv %s7673_s16  ;;  %v1333_v61 = vmul.f32 %v1332_v40, %v4785_v13  ;;  %v1384_v5 = vstv %s5094_s25 }
 0x375   : > { %s7678_s19 = sld [smem:[#allocation87_spill]]  ;;  %v1092_v55 = vstv %s7674_s12  ;;  %v1089_v16 = vmul.f32 %v1088_v54, %v4863_v18 }
 0x376   : > { %s5354_s4 = sld [smem:[#allocation2 + $0x150]]  ;;  %v1093_v11 = vmul.f32 %v1092_v55, %v4868_v21 }
 0x377   : > { %s5363_s10 = sld [smem:[#allocation2 + $0x151]]  ;;  %v1090_v4 = vadd.f32 %v1089_v16, %v1086_v0 }
 0x378   : > { %7675 = sst [smem:[#allocation159_spill]] %s5345_s9 }
 0x379   : > { %v1151_v49 = vstv %s7676_s3  ;;  %s5368_s2 = sld [smem:[#allocation2 + $0x152]]  ;;  %v1094_v2 = vadd.f32 %v1093_v11, %v1090_v4 }
 0x37a   : > { %7677 = sst [smem:[#allocation20_spill]] %s5350_s23  ;;  %v1152_v41 = vmul.f32 %v1151_v49, %v4861_v17 }
 0x37b   : > { %s7679_s23 = sld [smem:[#allocation49_spill]]  ;;  %v1206_v8 = vstv %s7678_s19 }
 0x37c   : > { %s7680_s27 = sld [smem:[#allocation75_spill]]  ;;  %v1207_v31 = vmul.f32 %v1206_v8, %v4809_v27  ;;  %v1153_v49 = vadd.f32 %v1152_v41, %v1149_v23 }
 0x37d   : > { %s5372_s16 = sld [smem:[#allocation2 + $0x153]] }
 0x37e   : > { %s7681_s12 = sld [smem:[#allocation88_spill]]  ;;  %v1208_v55 = vadd.f32 %v1207_v31, %v1204_v59 }
 0x37f   : > { %s5376_s3 = sld [smem:[#allocation2 + $0x154]] }
 0x380   : > { %s5382_s19 = sld [smem:[#allocation2 + $0x155]] }
 0x381   : > { %v1096_v15 = vstv %s7679_s23  ;;  %s7682_s9 = sld [smem:[#allocation55_spill]] }
 0x382   : > { %v1155_v45 = vstv %s7680_s27  ;;  %s5387_s0 = sld [smem:[#allocation2 + $0x156]]  ;;  %v1097_v46 = vmul.f32 %v1096_v15, %v4883_v36 }
 0x383   : > { %s7683_s14 = sld [smem:[#allocation63_spill]]  ;;  %v1156_v50 = vmul.f32 %v1155_v45, %v4863_v18  ;;  %v1267_v45 = vadd.f32 %v1266_v63, %v1263_v58 }
 0x384   : > { %v1210_v6 = vstv %s7681_s12  ;;  %s5391_s21 = sld [smem:[#allocation2 + $0x157]]  ;;  %v1098_v31 = vadd.f32 %v1097_v46, %v1094_v2 }
 0x385   : > { %s5396_s13 = sld [smem:[#allocation2 + $0x158]]  ;;  %v1211_v57 = vmul.f32 %v1210_v6, %v4815_v34  ;;  %v1157_v41 = vadd.f32 %v1156_v50, %v1153_v49  ;;  %v1326_v6 = vadd.f32 %v1325_v3, %v1322_v10 }
 0x386   : > { %s7685_s23 = sld [smem:[#allocation109_spill]] }
 0x387   : > { %v1100_v47 = vstv %s7682_s9  ;;  %s5402_s27 = sld [smem:[#allocation2 + $0x159]]  ;;  %v1212_v11 = vadd.f32 %v1211_v57, %v1208_v55  ;;  %v1330_v49 = vadd.f32 %v1329_v24, %v1326_v6 }
 0x388   : > { %s7687_s12 = sld [smem:[#allocation44_spill]]  ;;  %v1101_v0 = vmul.f32 %v1100_v47, %v4929_v20 }
 0x389   : > { %v1159_v54 = vstv %s7683_s14  ;;  %s5407_s11 = sld [smem:[#allocation2 + $0x15a]]  ;;  %v1216_v46 = vadd.f32 %v1215_v22, %v1212_v11  ;;  %v1281_v22 = vstv %s4971_s28 }
 0x38a   : > { %s5411_s9 = sld [smem:[#allocation2 + $0x15b]]  ;;  %v1160_v15 = vmul.f32 %v1159_v54, %v4868_v21  ;;  %v1102_v55 = vadd.f32 %v1101_v0, %v1098_v31  ;;  %v1387_v0 = vstv %s5099_s22  ;;  %v1385_v31 = vmul.f32 %v1384_v5, %v4595_v30 }
 0x38b   : > { %7684 = sst [smem:[#allocation140_spill]] %s5396_s13 }
 0x38c   : > { %s7689_s13 = sld [smem:[#allocation51_spill]]  ;;  %v1269_v8 = vstv %s7685_s23  ;;  %v1161_v48 = vadd.f32 %v1160_v15, %v1157_v41  ;;  %v1334_v41 = vadd.f32 %v1333_v61, %v1330_v49 }
 0x38d   : > { %7686 = sst [smem:[#allocation153_spill]] %s5402_s27  ;;  %v1270_v59 = vmul.f32 %v1269_v8, %v4807_v26  ;;  %v1336_v8 = vstv %s5037_s8 }
 0x38e   : > { %s7691_s30 = sld [smem:[#allocation71_spill]]  ;;  %v1104_v16 = vstv %s7687_s12 }
 0x38f   : > { %7688 = sst [smem:[#allocation160_spill]] %s5407_s11  ;;  %v1105_v4 = vmul.f32 %v1104_v16, %v5000_v32  ;;  %v1271_v50 = vadd.f32 %v1270_v59, %v1267_v45  ;;  %v1340_v59 = vstv %s5043_s7 }
 0x390   : > { %7690 = sst [smem:[#allocation15_spill]] %s5411_s9 }
 0x391   : > { %s5415_s14 = sld [smem:[#allocation2 + $0x15c]]  ;;  %v1106_v11 = vadd.f32 %v1105_v4, %v1102_v55 }
 0x392   : > { %s7693_s11 = sld [smem:[#allocation72_spill]]  ;;  %v1163_v19 = vstv %s7689_s13 }
 0x393   : > { %s5421_s26 = sld [smem:[#allocation2 + $0x15d]]  ;;  %v1164_v43 = vmul.f32 %v1163_v19, %v4883_v36 }
 0x394   : > { %s7695_s9 = sld [smem:[#allocation61_spill]]  ;;  %v1218_v12 = vstv %s7691_s30 }
 0x395   : > { %s5426_s23 = sld [smem:[#allocation2 + $0x15e]]  ;;  %v1219_v47 = vmul.f32 %v1218_v12, %v4861_v17  ;;  %v1165_v16 = vadd.f32 %v1164_v43, %v1161_v48  ;;  %v1337_v12 = vmul.f32 %v1336_v8, %v4807_v26 }
 0x396   : > { %s5430_s12 = sld [smem:[#allocation2 + $0x15f]] }
 0x397   : > { %7692 = sst [smem:[#allocation27_spill]] %s5415_s14  ;;  %v1220_v10 = vadd.f32 %v1219_v47, %v1216_v46  ;;  %v1282_v46 = vmul.f32 %v1281_v22, %v4821_v39 }
 0x398   : > { %s7697_s14 = sld [smem:[#allocation69_spill]]  ;;  %v1273_v23 = vstv %s7693_s11 }
 0x399   : > { %7694 = sst [smem:[#allocation124_spill]] %s5421_s26  ;;  %v1274_v54 = vmul.f32 %v1273_v23, %v4809_v27  ;;  %v1388_v23 = vmul.f32 %v1387_v0, %v4634_v62 }
 0x39a   : > { %s7699_s17 = sld [smem:[#allocation78_spill]]  ;;  %v1108_v38 = vstv %s7695_s9 }
 0x39b   : > { %7696 = sst [smem:[#allocation154_spill]] %s5426_s23  ;;  %v1109_v58 = vmul.f32 %v1108_v38, %v5039_v7  ;;  %v1275_v15 = vadd.f32 %v1274_v54, %v1271_v50  ;;  %v1391_v38 = vstv %s5104_s1  ;;  %v1341_v50 = vmul.f32 %v1340_v59, %v4809_v27 }
 0x39c   : > { %7698 = sst [smem:[#allocation161_spill]] %s5430_s12  ;;  %v1392_v49 = vmul.f32 %v1391_v38, %v4663_v28 }
 0x39d   : > { %s5434_s13 = sld [smem:[#allocation2 + $0x27e]]  ;;  %v1110_v54 = vadd.f32 %v1109_v58, %v1106_v11 }
 0x39e   : > { %s7701_s23 = sld [smem:[#allocation79_spill]]  ;;  %v1167_v44 = vstv %s7697_s14 }
 0x39f   : > { %s5442_s30 = sld [smem:[#allocation2 + $0x160]]  ;;  %v1168_v63 = vmul.f32 %v1167_v44, %v4929_v20 }
 0x3a0   : > { %s7702_s12 = sld [smem:[#allocation82_spill]]  ;;  %v1222_v53 = vstv %s7699_s17 }
 0x3a1   : > { %s5447_s11 = sld [smem:[#allocation2 + $0x161]]  ;;  %v1223_v3 = vmul.f32 %v1222_v53, %v4863_v18  ;;  %v1169_v40 = vadd.f32 %v1168_v63, %v1165_v16  ;;  %v1338_v53 = vadd.f32 %v1337_v12, %v1334_v41 }
 0x3a2   : > { %s5451_s29 = sld [smem:[#allocation2 + $0x162]] }
 0x3a3   : > { %7700 = sst [smem:[#allocation16_spill]] %s5434_s13  ;;  %v1224_v24 = vadd.f32 %v1223_v3, %v1220_v10 }
 0x3a4   : > { %s7703_s9 = sld [smem:[#allocation84_spill]]  ;;  %v1277_v57 = vstv %s7701_s23 }
 0x3a5   : > { %s5455_s14 = sld [smem:[#allocation2 + $0x163]]  ;;  %v1278_v19 = vmul.f32 %v1277_v57, %v4815_v34  ;;  %v1389_v57 = vadd.f32 %v1388_v23, %v1385_v31 }
 0x3a6   : > { %v1171_v2 = vstv %s7702_s12  ;;  %s5461_s17 = sld [smem:[#allocation2 + $0x164]] }
 0x3a7   : > { %s5466_s23 = sld [smem:[#allocation2 + $0x165]]  ;;  %v1172_v45 = vmul.f32 %v1171_v2, %v5000_v32  ;;  %v1279_v44 = vadd.f32 %v1278_v19, %v1275_v15  ;;  %v5517_v19 = vadd.f32 %v1045_v52, %v5437_v25  ;;  %v1393_v22 = vadd.f32 %v1392_v49, %v1389_v57 }
 0x3a8   : > { %s7705_s13 = sld [smem:[#allocation76_spill]] }
 0x3a9   : > { %s5470_s26 = sld [smem:[#allocation2 + $0x166]]  ;;  %v1173_v10 = vadd.f32 %v1172_v45, %v1169_v40  ;;  %v1283_v58 = vadd.f32 %v1282_v46, %v1279_v44 }
 0x3aa   : > { %v1226_v9 = vstv %s7703_s9  ;;  %s7707_s8 = sld [smem:[#allocation89_spill]] }
 0x3ab   : > { %s5474_s12 = sld [smem:[#allocation2 + $0x167]]  ;;  %v1227_v4 = vmul.f32 %v1226_v9, %v4868_v21  ;;  %v1342_v9 = vadd.f32 %v1341_v50, %v1338_v53 }
 0x3ac   : > { %s7709_s22 = sld [smem:[#allocation66_spill]] }
 0x3ad   : > { %7704 = sst [smem:[#allocation38_spill]] %s5466_s23  ;;  %v1228_v63 = vadd.f32 %v1227_v4, %v1224_v24 }
 0x3ae   : > { %s7710_s25 = sld [smem:[#allocation91_spill]]  ;;  %v1175_v6 = vstv %s7705_s13 }
 0x3af   : > { %7706 = sst [smem:[#allocation141_spill]] %s5470_s26  ;;  %v1176_v61 = vmul.f32 %v1175_v6, %v5039_v7 }
 0x3b0   : > { %s5480_s9 = sld [smem:[#allocation2 + $0x168]]  ;;  %v1230_v43 = vstv %s7707_s8 }
 0x3b1   : > { %7708 = sst [smem:[#allocation155_spill]] %s5474_s12  ;;  %v1231_v2 = vmul.f32 %v1230_v43, %v4883_v36  ;;  %v1177_v23 = vadd.f32 %v1176_v61, %v1173_v10 }
 0x3b2   : > { %s7712_s26 = sld [smem:[#allocation96_spill]]  ;;  %v1112_v47 = vstv %s7709_s22 }
 0x3b3   : > { %s5485_s28 = sld [smem:[#allocation2 + $0x169]]  ;;  %v5523_v12 = vadd.f32 %v1112_v47, %v1110_v54  ;;  %v1232_v45 = vadd.f32 %v1231_v2, %v1228_v63 }
 0x3b4   : > { %s7714_s12 = sld [smem:[#allocation102_spill]]  ;;  %v1285_v48 = vstv %s7710_s25 }
 0x3b5   : > { %s5489_s7 = sld [smem:[#allocation2 + $0x16a]]  ;;  %v1286_v5 = vmul.f32 %v1285_v48, %v4861_v17 }
 0x3b6   : > { %7711 = sst [smem:[#allocation156_spill]] %s5480_s9 }
 0x3b7   : > { %s7716_s27 = sld [smem:[#allocation85_spill]]  ;;  %v1287_v52 = vadd.f32 %v1286_v5, %v1283_v58  ;;  %v1451_v5 = vstv %s5176_s5 }
 0x3b8   : > { %s5494_s13 = sld [smem:[#allocation2 + $0x16b]]  ;;  %v1344_v55 = vstv %s7712_s26 }
 0x3b9   : > { %7713 = sst [smem:[#allocation162_spill]] %s5485_s28  ;;  %v1345_v15 = vmul.f32 %v1344_v55, %v4815_v34 }
 0x3ba   : > { %s7718_s1 = sld [smem:[#allocation94_spill]]  ;;  %v1395_v8 = vstv %s7714_s12 }
 0x3bb   : > { %7715 = sst [smem:[#allocation18_spill]] %s5489_s7  ;;  %v1396_v41 = vmul.f32 %v1395_v8, %v4665_v29  ;;  %v1346_v38 = vadd.f32 %v1345_v15, %v1342_v9 }
 0x3bc   : > { %s5498_s8 = sld [smem:[#allocation2 + $0x16c]] }
 0x3bd   : > { %s7720_s7 = sld [smem:[#allocation111_spill]]  ;;  %v1234_v3 = vstv %s7716_s27  ;;  %v1397_v46 = vadd.f32 %v1396_v41, %v1393_v22 }
 0x3be   : > { %7717 = sst [smem:[#allocation39_spill]] %s5494_s13  ;;  %v1235_v59 = vmul.f32 %v1234_v3, %v4929_v20 }
 0x3bf   : > { %s5503_s22 = sld [smem:[#allocation2 + $0x16d]] }
 0x3c0   : > { %s7722_s26 = sld [smem:[#allocation142_spill]]  ;;  %v1289_v16 = vstv %s7718_s1  ;;  %v1236_v53 = vadd.f32 %v1235_v59, %v1232_v45 }
 0x3c1   : > { %s5507_s25 = sld [smem:[#allocation2 + $0x16e]]  ;;  %v1290_v25 = vmul.f32 %v1289_v16, %v4863_v18 }
 0x3c2   : > { %7719 = sst [smem:[#allocation163_spill]] %s5498_s8 }
 0x3c3   : > { %s7724_s8 = sld [smem:[#allocation65_spill]]  ;;  %v1348_v11 = vstv %s7720_s7  ;;  %v1291_v49 = vadd.f32 %v1290_v25, %v1287_v52  ;;  %v1452_v52 = vmul.f32 %v1451_v5, %v4595_v30 }
 0x3c4   : > { %s5512_s13 = sld [smem:[#allocation2 + $0x16f]]  ;;  %v1349_v40 = vmul.f32 %v1348_v11, %v4821_v39 }
 0x3c5   : > { %7721 = sst [smem:[#allocation47_spill]] %s5503_s22 }
 0x3c6   : > { %s7726_s12 = sld [smem:[#allocation64_spill]]  ;;  %v1399_v31 = vstv %s7722_s26  ;;  %v1350_v2 = vadd.f32 %v1349_v40, %v1346_v38 }
 0x3c7   : > { %7723 = sst [smem:[#allocation36_spill]] %s5507_s25  ;;  %v1400_v47 = vmul.f32 %v1399_v31, %v4785_v13 }
 0x3c8   : > { %s7727_s27 = sld [smem:[#allocation95_spill]] }
 0x3c9   : > { %s5521_s25 = sld [smem:[#allocation2 + $0x27f]]  ;;  %v1238_v6 = vstv %s7724_s8  ;;  %v1401_v3 = vadd.f32 %v1400_v47, %v1397_v46 }
 0x3ca   : > { %7725 = sst [smem:[#allocation22_spill]] %s5512_s13  ;;  %v1239_v50 = vmul.f32 %v1238_v6, %v5000_v32 }
 0x3cb   : > { %s7729_s1 = sld [smem:[#allocation127_spill]] }
 0x3cc   : > { %s5527_s13 = sld [smem:[#allocation2 + $0x170]]  ;;  %v1179_v24 = vstv %s7726_s12  ;;  %v1240_v9 = vadd.f32 %v1239_v50, %v1236_v53 }
 0x3cd   : > { %s7730_s20 = sld [smem:[#allocation113_spill]]  ;;  %v5548_v55 = vadd.f32 %v1179_v24, %v1177_v23 }
 0x3ce   : > { %s5531_s7 = sld [smem:[#allocation2 + $0x171]]  ;;  %v1293_v4 = vstv %s7727_s27 }
 0x3cf   : > { %7728 = sst [smem:[#allocation157_spill]] %s5521_s25  ;;  %v1294_v61 = vmul.f32 %v1293_v4, %v4868_v21 }
 0x3d0   : > { %s7731_s22 = sld [smem:[#allocation90_spill]] }
 0x3d1   : > { %s5536_s25 = sld [smem:[#allocation2 + $0x172]]  ;;  %v1352_v44 = vstv %s7729_s1  ;;  %v1295_v41 = vadd.f32 %v1294_v61, %v1291_v49 }
 0x3d2   : > { %s7733_s26 = sld [smem:[#allocation110_spill]]  ;;  %v1353_v8 = vmul.f32 %v1352_v44, %v4861_v17 }
 0x3d3   : > { %s7734_s8 = sld [smem:[#allocation97_spill]]  ;;  %v1403_v54 = vstv %s7730_s20 }
 0x3d4   : > { %s5541_s28 = sld [smem:[#allocation2 + $0x173]]  ;;  %v1404_v58 = vmul.f32 %v1403_v54, %v4807_v26  ;;  %v1354_v23 = vadd.f32 %v1353_v8, %v1350_v2 }
 0x3d5   : > { %s7736_s12 = sld [smem:[#allocation116_spill]] }
 0x3d6   : > { %s5546_s27 = sld [smem:[#allocation2 + $0x174]]  ;;  %v1242_v57 = vstv %s7731_s22  ;;  %v1405_v4 = vadd.f32 %v1404_v58, %v1401_v3 }
 0x3d7   : > { %7732 = sst [smem:[#allocation33_spill]] %s5536_s25  ;;  %v1243_v15 = vmul.f32 %v1242_v57, %v5039_v7  ;;  %v1518_v57 = vstv %s5261_s15 }
 0x3d8   : > { %s7737_s1 = sld [smem:[#allocation108_spill]]  ;;  %v1297_v63 = vstv %s7733_s26 }
 0x3d9   : > { %s7738_s9 = sld [smem:[#allocation129_spill]]  ;;  %v1356_v10 = vstv %s7734_s8  ;;  %v1298_v45 = vmul.f32 %v1297_v63, %v4883_v36  ;;  %v1244_v44 = vadd.f32 %v1243_v15, %v1240_v9  ;;  %v1519_v15 = vmul.f32 %v1518_v57, %v4595_v30 }
 0x3da   : > { %7735 = sst [smem:[#allocation164_spill]] %s5541_s28  ;;  %v1357_v31 = vmul.f32 %v1356_v10, %v4863_v18 }
 0x3db   : > { %s5552_s23 = sld [smem:[#allocation2 + $0x175]]  ;;  %v1454_v16 = vstv %s7736_s12  ;;  %v1299_v50 = vadd.f32 %v1298_v45, %v1295_v41 }
 0x3dc   : > { %s7740_s28 = sld [smem:[#allocation86_spill]]  ;;  %v1455_v25 = vmul.f32 %v1454_v16, %v4634_v62  ;;  %v1358_v61 = vadd.f32 %v1357_v31, %v1354_v23 }
 0x3dd   : > { %s5557_s25 = sld [smem:[#allocation2 + $0x176]] }
 0x3de   : > { %s7742_s20 = sld [smem:[#allocation93_spill]]  ;;  %v1246_v11 = vstv %s7737_s1  ;;  %v1456_v2 = vadd.f32 %v1455_v25, %v1452_v52 }
 0x3df   : > { %s5562_s22 = sld [smem:[#allocation2 + $0x177]]  ;;  %v1407_v22 = vstv %s7738_s9  ;;  %v5609_v41 = vadd.f32 %v1246_v11, %v1244_v44 }
 0x3e0   : > { %s7744_s26 = sld [smem:[#allocation145_spill]]  ;;  %v1408_v38 = vmul.f32 %v1407_v22, %v4809_v27 }
 0x3e1   : > { %7739 = sst [smem:[#allocation165_spill]] %s5552_s23 }
 0x3e2   : > { %s5567_s23 = sld [smem:[#allocation2 + $0x178]]  ;;  %v1301_v59 = vstv %s7740_s28  ;;  %v1409_v3 = vadd.f32 %v1408_v38, %v1405_v4 }
 0x3e3   : > { %7741 = sst [smem:[#allocation42_spill]] %s5557_s25  ;;  %v1302_v46 = vmul.f32 %v1301_v59, %v4929_v20 }
 0x3e4   : > { %s7746_s8 = sld [smem:[#allocation125_spill]]  ;;  %v1360_v6 = vstv %s7742_s20 }
 0x3e5   : > { %7743 = sst [smem:[#allocation26_spill]] %s5562_s22  ;;  %v1361_v54 = vmul.f32 %v1360_v6, %v4868_v21  ;;  %v1303_v45 = vadd.f32 %v1302_v46, %v1299_v50 }
 0x3e6   : > { %s7747_s25 = sld [smem:[#allocation103_spill]]  ;;  %v1458_v40 = vstv %s7744_s26 }
 0x3e7   : > { %s5572_s5 = sld [smem:[#allocation2 + $0x179]]  ;;  %v1459_v8 = vmul.f32 %v1458_v40, %v4663_v28  ;;  %v1362_v23 = vadd.f32 %v1361_v54, %v1358_v61 }
 0x3e8   : > { %7745 = sst [smem:[#allocation24_spill]] %s5567_s23 }
 0x3e9   : > { %s7749_s12 = sld [smem:[#allocation136_spill]]  ;;  %v1460_v52 = vadd.f32 %v1459_v8, %v1456_v2 }
 0x3ea   : > { %s5577_s9 = sld [smem:[#allocation2 + $0x17a]]  ;;  %v1305_v47 = vstv %s7746_s8 }
 0x3eb   : > { %s7751_s1 = sld [smem:[#allocation112_spill]]  ;;  %v1306_v10 = vmul.f32 %v1305_v47, %v5000_v32 }
 0x3ec   : > { %s5582_s28 = sld [smem:[#allocation2 + $0x17b]]  ;;  %v1411_v53 = vstv %s7747_s25 }
 0x3ed   : > { %7748 = sst [smem:[#allocation67_spill]] %s5572_s5  ;;  %v1412_v58 = vmul.f32 %v1411_v53, %v4815_v34  ;;  %v1307_v54 = vadd.f32 %v1306_v10, %v1303_v45 }
 0x3ee   : > { %s7753_s20 = sld [smem:[#allocation132_spill]] }
 0x3ef   : > { %s5587_s5 = sld [smem:[#allocation2 + $0x17c]]  ;;  %v1521_v49 = vstv %s7749_s12  ;;  %v1413_v11 = vadd.f32 %v1412_v58, %v1409_v3 }
 0x3f0   : > { %7750 = sst [smem:[#allocation50_spill]] %s5577_s9  ;;  %v1522_v22 = vmul.f32 %v1521_v49, %v4634_v62 }
 0x3f1   : > { %s7755_s23 = sld [smem:[#allocation126_spill]]  ;;  %v1364_v63 = vstv %s7751_s1 }
 0x3f2   : > { %7752 = sst [smem:[#allocation52_spill]] %s5582_s28  ;;  %v1365_v59 = vmul.f32 %v1364_v63, %v4883_v36  ;;  %v1523_v47 = vadd.f32 %v1522_v22, %v1519_v15  ;;  %v1585_v15 = vstv %s5354_s4  ;;  %v1588_v22 = vstv %s5363_s10 }
 0x3f3   : > { %s7756_s9 = sld [smem:[#allocation143_spill]] }
 0x3f4   : > { %s5592_s22 = sld [smem:[#allocation2 + $0x17d]]  ;;  %v1462_v5 = vstv %s7753_s20  ;;  %v1366_v61 = vadd.f32 %v1365_v59, %v1362_v23 }
 0x3f5   : > { %7754 = sst [smem:[#allocation19_spill]] %s5587_s5  ;;  %v1463_v25 = vmul.f32 %v1462_v5, %v4665_v29 }
 0x3f6   : > { %s7758_s26 = sld [smem:[#allocation158_spill]] }
 0x3f7   : > { %s5596_s8 = sld [smem:[#allocation2 + $0x17e]]  ;;  %v1309_v16 = vstv %s7755_s23  ;;  %v1464_v2 = vadd.f32 %v1463_v25, %v1460_v52 }
 0x3f8   : > { %s7760_s25 = sld [smem:[#allocation98_spill]]  ;;  %v1310_v4 = vmul.f32 %v1309_v16, %v5039_v7 }
 0x3f9   : > { %s5601_s5 = sld [smem:[#allocation2 + $0x17f]]  ;;  %v1415_v9 = vstv %s7756_s9 }
 0x3fa   : > { %7757 = sst [smem:[#allocation28_spill]] %s5592_s22  ;;  %v1416_v38 = vmul.f32 %v1415_v9, %v4821_v39  ;;  %v1311_v45 = vadd.f32 %v1310_v4, %v1307_v54 }
 0x3fb   : > { %s7762_s15 = sld [smem:[#allocation106_spill]] }
 0x3fc   : > { %s5607_s12 = sld [smem:[#allocation2 + $0x280]]  ;;  %v1525_v31 = vstv %s7758_s26  ;;  %v1417_v3 = vadd.f32 %v1416_v38, %v1413_v11 }
 0x3fd   : > { %7759 = sst [smem:[#allocation166_spill]] %s5596_s8  ;;  %v1526_v53 = vmul.f32 %v1525_v31, %v4663_v28 }
 0x3fe   : > { %s7764_s1 = sld [smem:[#allocation92_spill]]  ;;  %v1368_v6 = vstv %s7760_s25 }
 0x3ff   : > { %7761 = sst [smem:[#allocation56_spill]] %s5601_s5  ;;  %v1369_v57 = vmul.f32 %v1368_v6, %v4929_v20  ;;  %v1527_v16 = vadd.f32 %v1526_v53, %v1523_v47 }
 0x400   : > { %s7765_s8 = sld [smem:[#allocation114_spill]] }
 0x401   : > { %s5613_s20 = sld [smem:[#allocation2 + $0x180]]  ;;  %v1466_v40 = vstv %s7762_s15  ;;  %v1370_v47 = vadd.f32 %v1369_v57, %v1366_v61 }
 0x402   : > { %7763 = sst [smem:[#allocation31_spill]] %s5607_s12  ;;  %v1467_v8 = vmul.f32 %v1466_v40, %v4785_v13  ;;  %v1586_v40 = vmul.f32 %v1585_v15, %v4595_v30 }
 0x403   : > { %s7766_s23 = sld [smem:[#allocation121_spill]] }
 0x404   : > { %s5617_s9 = sld [smem:[#allocation2 + $0x181]]  ;;  %v1313_v44 = vstv %s7764_s1  ;;  %v1468_v25 = vadd.f32 %v1467_v8, %v1464_v2 }
 0x405   : > { %s7767_s12 = sld [smem:[#allocation128_spill]] }
 0x406   : > { %s5622_s5 = sld [smem:[#allocation2 + $0x182]]  ;;  %v1419_v46 = vstv %s7765_s8 }
 0x407   : > { %s7769_s26 = sld [smem:[#allocation100_spill]]  ;;  %v1420_v10 = vmul.f32 %v1419_v46, %v4861_v17  ;;  %v1589_v46 = vmul.f32 %v1588_v22, %v4634_v62 }
 0x408   : > { %s7770_s25 = sld [smem:[#allocation117_spill]] }
 0x409   : > { %s5627_s22 = sld [smem:[#allocation2 + $0x183]]  ;;  %v1529_v49 = vstv %s7766_s23  ;;  %v1421_v38 = vadd.f32 %v1420_v10, %v1417_v3  ;;  %v1537_v3 = vstv %s5289_s6 }
 0x40a   : > { %s5632_s15 = sld [smem:[#allocation2 + $0x184]]  ;;  %v1530_v9 = vmul.f32 %v1529_v49, %v4665_v29  ;;  %v1592_v49 = vstv %s5368_s2 }
 0x40b   : > { %v1372_v63 = vstv %s7767_s12  ;;  %s7772_s8 = sld [smem:[#allocation99_spill]] }
 0x40c   : > { %7768 = sst [smem:[#allocation53_spill]] %s5622_s5  ;;  %v1373_v59 = vmul.f32 %v1372_v63, %v5000_v32  ;;  %v1531_v53 = vadd.f32 %v1530_v9, %v1527_v16  ;;  %v5667_v63 = vadd.f32 %v1313_v44, %v1311_v45  ;;  %v1590_v16 = vadd.f32 %v1589_v46, %v1586_v40 }
 0x40d   : > { %s7773_s1 = sld [smem:[#allocation150_spill]]  ;;  %v1423_v58 = vstv %s7769_s26  ;;  %v1593_v9 = vmul.f32 %v1592_v49, %v4663_v28  ;;  %v1538_v45 = vmul.f32 %v1537_v3, %v4807_v26 }
 0x40e   : > { %s5636_s28 = sld [smem:[#allocation2 + $0x185]]  ;;  %v1470_v5 = vstv %s7770_s25  ;;  %v1424_v6 = vmul.f32 %v1423_v58, %v4863_v18  ;;  %v1374_v15 = vadd.f32 %v1373_v59, %v1370_v47 }
 0x40f   : > { %7771 = sst [smem:[#allocation32_spill]] %s5627_s22  ;;  %v1471_v11 = vmul.f32 %v1470_v5, %v4807_v26  ;;  %v1594_v47 = vadd.f32 %v1593_v9, %v1590_v16  ;;  %v1652_v16 = vstv %s5442_s30  ;;  %v1655_v9 = vstv %s5447_s11 }
 0x410   : > { %s7775_s22 = sld [smem:[#allocation130_spill]]  ;;  %v1425_v44 = vadd.f32 %v1424_v6, %v1421_v38 }
 0x411   : > { %s5641_s5 = sld [smem:[#allocation2 + $0x186]]  ;;  %v1376_v31 = vstv %s7772_s8  ;;  %v1472_v57 = vadd.f32 %v1471_v11, %v1468_v25 }
 0x412   : > { %s7776_s23 = sld [smem:[#allocation146_spill]]  ;;  %v1377_v2 = vmul.f32 %v1376_v31, %v5039_v7  ;;  %v1596_v31 = vstv %s5372_s16 }
 0x413   : > { %s5646_s12 = sld [smem:[#allocation2 + $0x187]]  ;;  %v1533_v23 = vstv %s7773_s1 }
 0x414   : > { %7774 = sst [smem:[#allocation40_spill]] %s5636_s28  ;;  %v1534_v54 = vmul.f32 %v1533_v23, %v4785_v13 }
 0x415   : > { %s5651_s28 = sld [smem:[#allocation2 + $0x188]] }
 0x416   : > { %v1427_v52 = vstv %s7775_s22  ;;  %s7777_s26 = sld [smem:[#allocation101_spill]]  ;;  %v1535_v22 = vadd.f32 %v1534_v54, %v1531_v53  ;;  %v1597_v53 = vmul.f32 %v1596_v31, %v4665_v29  ;;  %v1378_v54 = vadd.f32 %v1377_v2, %v1374_v15 }
 0x417   : > { %s5656_s4 = sld [smem:[#allocation2 + $0x189]]  ;;  %v1428_v10 = vmul.f32 %v1427_v52, %v4868_v21 }
 0x418   : > { %s7779_s10 = sld [smem:[#allocation104_spill]]  ;;  %v1474_v4 = vstv %s7776_s23  ;;  %v1539_v49 = vadd.f32 %v1538_v45, %v1535_v22  ;;  %v1598_v45 = vadd.f32 %v1597_v53, %v1594_v47  ;;  %v1659_v53 = vstv %s5451_s29 }
 0x419   : > { %s5661_s25 = sld [smem:[#allocation2 + $0x18a]]  ;;  %v1475_v61 = vmul.f32 %v1474_v4, %v4809_v27  ;;  %v1429_v40 = vadd.f32 %v1428_v10, %v1425_v44 }
 0x41a   : > { %s7781_s8 = sld [smem:[#allocation133_spill]] }
 0x41b   : > { %s5665_s22 = sld [smem:[#allocation2 + $0x18b]]  ;;  %v1476_v4 = vadd.f32 %v1475_v61, %v1472_v57 }
 0x41c   : > { %v1380_v8 = vstv %s7777_s26  ;;  %s5672_s1 = sld [smem:[#allocation2 + $0x18c]] }
 0x41d   : > { %7778 = sst [smem:[#allocation73_spill]] %s5656_s4 }
 0x41e   : > { %v1431_v58 = vstv %s7779_s10  ;;  %s7784_s23 = sld [smem:[#allocation115_spill]] }
 0x41f   : > { %7780 = sst [smem:[#allocation23_spill]] %s5661_s25  ;;  %v1432_v52 = vmul.f32 %v1431_v58, %v4883_v36  ;;  %v1600_v58 = vstv %s5376_s3 }
 0x420   : > { %s7785_s25 = sld [smem:[#allocation137_spill]]  ;;  %v1478_v5 = vstv %s7781_s8  ;;  %v1601_v31 = vmul.f32 %v1600_v58, %v4785_v13 }
 0x421   : > { %7782 = sst [smem:[#allocation30_spill]] %s5665_s22  ;;  %v1479_v59 = vmul.f32 %v1478_v5, %v4815_v34  ;;  %v1433_v15 = vadd.f32 %v1432_v52, %v1429_v40  ;;  %v1653_v52 = vmul.f32 %v1652_v16, %v4595_v30  ;;  %v1656_v40 = vmul.f32 %v1655_v9, %v4634_v62 }
 0x422   : > { %7783 = sst [smem:[#allocation34_spill]] %s5672_s1  ;;  %v1608_v16 = vstv %s5387_s0 }
 0x423   : > { %s5677_s2 = sld [smem:[#allocation2 + $0x18d]]  ;;  %v1480_v2 = vadd.f32 %v1479_v59, %v1476_v4 }
 0x424   : > { %s7787_s22 = sld [smem:[#allocation144_spill]]  ;;  %v1435_v6 = vstv %s7784_s23 }
 0x425   : > { %s7788_s4 = sld [smem:[#allocation131_spill]]  ;;  %v1436_v57 = vmul.f32 %v1435_v6, %v4929_v20  ;;  %v5723_v6 = vadd.f32 %v1380_v8, %v1378_v54 }
 0x426   : > { %s5681_s6 = sld [smem:[#allocation2 + $0x18e]]  ;;  %v1541_v25 = vstv %s7785_s25 }
 0x427   : > { %s7790_s26 = sld [smem:[#allocation107_spill]]  ;;  %v1542_v3 = vmul.f32 %v1541_v25, %v4809_v27  ;;  %v1437_v54 = vadd.f32 %v1436_v57, %v1433_v15  ;;  %v1657_v15 = vadd.f32 %v1656_v40, %v1653_v52  ;;  %v1609_v52 = vmul.f32 %v1608_v16, %v4809_v27 }
 0x428   : > { %s5685_s10 = sld [smem:[#allocation2 + $0x18f]] }
 0x429   : > { %7786 = sst [smem:[#allocation74_spill]] %s5677_s2  ;;  %v1543_v25 = vadd.f32 %v1542_v3, %v1539_v49  ;;  %v1602_v3 = vadd.f32 %v1601_v31, %v1598_v45 }
 0x42a   : > { %s5691_s8 = sld [smem:[#allocation2 + $0x281]]  ;;  %v1439_v11 = vstv %s7787_s22 }
 0x42b   : > { %v1443_v38 = vstv %s7788_s4  ;;  %s5696_s2 = sld [smem:[#allocation2 + $0x190]]  ;;  %v1440_v10 = vmul.f32 %v1439_v11, %v5000_v32 }
 0x42c   : > { %7789 = sst [smem:[#allocation17_spill]] %s5681_s6  ;;  %v5709_v61 = vmul.f32 %v1443_v38, %v5039_v7  ;;  %v1604_v38 = vstv %s5382_s19 }
 0x42d   : > { %s7793_s6 = sld [smem:[#allocation122_spill]]  ;;  %v1482_v46 = vstv %s7790_s26  ;;  %v1605_v58 = vmul.f32 %v1604_v38, %v4807_v26  ;;  %v1441_v38 = vadd.f32 %v1440_v10, %v1437_v54  ;;  %v1719_v54 = vstv %s5527_s13 }
 0x42e   : > { %7791 = sst [smem:[#allocation48_spill]] %s5685_s10  ;;  %v1483_v5 = vmul.f32 %v1482_v46, %v4821_v39 }
 0x42f   : > { %s5700_s16 = sld [smem:[#allocation2 + $0x191]] }
 0x430   : > { %7792 = sst [smem:[#allocation29_spill]] %s5691_s8  ;;  %v1484_v46 = vadd.f32 %v1483_v5, %v1480_v2 }
 0x431   : > { %s7794_s25 = sld [smem:[#allocation118_spill]] }
 0x432   : > { %s5704_s4 = sld [smem:[#allocation2 + $0x192]] }
 0x433   : > { %v1545_v44 = vstv %s7793_s6  ;;  %s5712_s22 = sld [smem:[#allocation2 + $0x193]] }
 0x434   : > { %s7795_s23 = sld [smem:[#allocation105_spill]]  ;;  %v1546_v11 = vmul.f32 %v1545_v44, %v4815_v34 }
 0x435   : > { %s7796_s26 = sld [smem:[#allocation123_spill]] }
 0x436   : > { %s5717_s3 = sld [smem:[#allocation2 + $0x194]]  ;;  %v1547_v2 = vadd.f32 %v1546_v11, %v1543_v25  ;;  %v1663_v11 = vstv %s5455_s14 }
 0x437   : > { %v1486_v22 = vstv %s7794_s25  ;;  %s7797_s8 = sld [smem:[#allocation147_spill]]  ;;  %v1664_v10 = vmul.f32 %v1663_v11, %v4665_v29  ;;  %v1561_v11 = vstv %s5320_s18 }
 0x438   : > { %s5721_s10 = sld [smem:[#allocation2 + $0x195]]  ;;  %v1487_v8 = vmul.f32 %v1486_v22, %v4861_v17  ;;  %v1660_v22 = vmul.f32 %v1659_v53, %v4663_v28  ;;  %v1612_v53 = vstv %s5391_s21 }
 0x439   : > { %s7798_s6 = sld [smem:[#allocation134_spill]] }
 0x43a   : > { %s5727_s30 = sld [smem:[#allocation2 + $0x196]]  ;;  %v1447_v4 = vstv %s7795_s23  ;;  %v1488_v45 = vadd.f32 %v1487_v8, %v1484_v46  ;;  %v1557_v8 = vstv %s5316_s24 }
 0x43b   : > { %v1549_v59 = vstv %s7796_s26  ;;  %s5733_s11 = sld [smem:[#allocation2 + $0x197]]  ;;  %v1558_v44 = vmul.f32 %v1557_v8, %v4863_v18  ;;  %v1445_v8 = vadd.f32 %v5709_v61, %v1441_v38 }
 0x43c   : > { %s7800_s25 = sld [smem:[#allocation151_spill]]  ;;  %v1550_v5 = vmul.f32 %v1549_v59, %v4821_v39 }
 0x43d   : > { %v1490_v47 = vstv %s7797_s8  ;;  %s5738_s1 = sld [smem:[#allocation2 + $0x198]] }
 0x43e   : > { %s7801_s19 = sld [smem:[#allocation119_spill]]  ;;  %v1491_v9 = vmul.f32 %v1490_v47, %v4863_v18  ;;  %v1606_v47 = vadd.f32 %v1605_v58, %v1602_v3  ;;  %v1551_v40 = vadd.f32 %v1550_v5, %v1547_v2  ;;  %v1722_v3 = vstv %s5531_s7 }
 0x43f   : > { %v1494_v49 = vstv %s7798_s6  ;;  %s5742_s26 = sld [smem:[#allocation2 + $0x199]]  ;;  %v1667_v5 = vstv %s5461_s17 }
 0x440   : > { %s5747_s8 = sld [smem:[#allocation2 + $0x19a]]  ;;  %v1495_v31 = vmul.f32 %v1494_v49, %v4868_v21  ;;  %v1661_v49 = vadd.f32 %v1660_v22, %v1657_v15  ;;  %v1492_v58 = vadd.f32 %v1491_v9, %v1488_v45  ;;  %v1610_v15 = vadd.f32 %v1609_v52, %v1606_v47 }
 0x441   : > { %7799 = sst [smem:[#allocation58_spill]] %s5733_s11  ;;  %v1613_v22 = vmul.f32 %v1612_v53, %v4815_v34  ;;  %v1720_v45 = vmul.f32 %v1719_v54, %v4595_v30  ;;  %v1668_v47 = vmul.f32 %v1667_v5, %v4785_v13 }
 0x442   : > { %s7803_s11 = sld [smem:[#allocation148_spill]]  ;;  %v1553_v57 = vstv %s7800_s25  ;;  %v1665_v23 = vadd.f32 %v1664_v10, %v1661_v49  ;;  %v1496_v53 = vadd.f32 %v1495_v31, %v1492_v58 }
 0x443   : > { %s5752_s29 = sld [smem:[#allocation2 + $0x19b]]  ;;  %v1554_v46 = vmul.f32 %v1553_v57, %v4861_v17 }
 0x444   : > { %v1498_v25 = vstv %s7801_s19  ;;  %s5757_s0 = sld [smem:[#allocation2 + $0x19c]]  ;;  %v1669_v5 = vadd.f32 %v1668_v47, %v1665_v23 }
 0x445   : > { %7802 = sst [smem:[#allocation45_spill]] %s5742_s26  ;;  %v1499_v16 = vmul.f32 %v1498_v25, %v4883_v36  ;;  %v1723_v25 = vmul.f32 %v1722_v3, %v4634_v62 }
 0x446   : > { %7804 = sst [smem:[#allocation62_spill]] %s5747_s8 }
 0x447   : > { %s5761_s6 = sld [smem:[#allocation2 + $0x19d]]  ;;  %v1724_v31 = vadd.f32 %v1723_v25, %v1720_v45 }
 0x448   : > { %v1502_v59 = vstv %s7803_s11  ;;  %s7808_s25 = sld [smem:[#allocation135_spill]] }
 0x449   : > { %7805 = sst [smem:[#allocation46_spill]] %s5752_s29  ;;  %v1503_v2 = vmul.f32 %v1502_v59, %v4929_v20  ;;  %v1555_v59 = vadd.f32 %v1554_v46, %v1551_v40  ;;  %v1562_v40 = vmul.f32 %v1561_v11, %v4868_v21  ;;  %v1614_v46 = vadd.f32 %v1613_v22, %v1610_v15 }
 0x44a   : > { %7806 = sst [smem:[#allocation43_spill]] %s5757_s0  ;;  %v5814_v22 = vadd.f32 %v1447_v4, %v1445_v8  ;;  %v1500_v11 = vadd.f32 %v1499_v16, %v1496_v53 }
 0x44b   : > { %s5766_s29 = sld [smem:[#allocation2 + $0x19e]]  ;;  %v1559_v58 = vadd.f32 %v1558_v44, %v1555_v59 }
 0x44c   : > { %s7810_s14 = sld [smem:[#allocation140_spill]] }
 0x44d   : > { %7807 = sst [smem:[#allocation21_spill]] %s5761_s6  ;;  %v1563_v8 = vadd.f32 %v1562_v40, %v1559_v58 }
 0x44e   : > { %s5771_s11 = sld [smem:[#allocation2 + $0x19f]]  ;;  %v1506_v57 = vstv %s7808_s25 }
 0x44f   : > { %s7812_s19 = sld [smem:[#allocation33_spill]]  ;;  %v1507_v50 = vmul.f32 %v1506_v57, %v5000_v32 }
 0x450   : > { %s5776_s24 = sld [smem:[#allocation2 + $0x282]] }
 0x451   : > { %7809 = sst [smem:[#allocation70_spill]] %s5766_s29 }
 0x452   : > { %s7814_s21 = sld [smem:[#allocation38_spill]]  ;;  %v1616_v9 = vstv %s7810_s14 }
 0x453   : > { %s5781_s13 = sld [smem:[#allocation2 + $0x1a0]]  ;;  %v1617_v49 = vmul.f32 %v1616_v9, %v4821_v39 }
 0x454   : > { %7811 = sst [smem:[#allocation68_spill]] %s5771_s11 }
 0x455   : > { %s7815_s7 = sld [smem:[#allocation120_spill]]  ;;  %v1726_v52 = vstv %s7812_s19  ;;  %v1618_v44 = vadd.f32 %v1617_v49, %v1614_v46  ;;  %v1504_v49 = vadd.f32 %v1503_v2, %v1500_v11  ;;  %v1786_v2 = vstv %s5613_s20 }
 0x456   : > { %7813 = sst [smem:[#allocation41_spill]] %s5776_s24  ;;  %v1727_v38 = vmul.f32 %v1726_v52, %v4663_v28 }
 0x457   : > { %s5787_s11 = sld [smem:[#allocation2 + $0x1a1]] }
 0x458   : > { %s7816_s17 = sld [smem:[#allocation138_spill]]  ;;  %v1671_v54 = vstv %s7814_s21  ;;  %v1728_v47 = vadd.f32 %v1727_v38, %v1724_v31 }
 0x459   : > { %s7817_s25 = sld [smem:[#allocation153_spill]]  ;;  %v1672_v57 = vmul.f32 %v1671_v54, %v4807_v26 }
 0x45a   : > { %s5791_s24 = sld [smem:[#allocation2 + $0x1a2]] }
 0x45b   : > { %s7818_s18 = sld [smem:[#allocation164_spill]]  ;;  %v1510_v3 = vstv %s7815_s7  ;;  %v1673_v53 = vadd.f32 %v1672_v57, %v1669_v5 }
 0x45c   : > { %s5796_s14 = sld [smem:[#allocation2 + $0x1a3]]  ;;  %v1511_v9 = vmul.f32 %v1510_v3, %v5039_v7  ;;  %v1734_v3 = vstv %s5546_s27 }
 0x45d   : > { %s7819_s29 = sld [smem:[#allocation141_spill]]  ;;  %v1735_v57 = vmul.f32 %v1734_v3, %v4785_v13 }
 0x45e   : > { %s5801_s19 = sld [smem:[#allocation2 + $0x1a4]]  ;;  %v1565_v10 = vstv %s7816_s17 }
 0x45f   : > { %s7820_s6 = sld [smem:[#allocation149_spill]]  ;;  %v1620_v61 = vstv %s7817_s25  ;;  %v1566_v59 = vmul.f32 %v1565_v10, %v4883_v36 }
 0x460   : > { %s7821_s0 = sld [smem:[#allocation152_spill]]  ;;  %v1621_v23 = vmul.f32 %v1620_v61, %v4861_v17 }
 0x461   : > { %s5806_s21 = sld [smem:[#allocation2 + $0x1a5]]  ;;  %v1730_v15 = vstv %s7818_s18  ;;  %v1567_v11 = vadd.f32 %v1566_v59, %v1563_v8  ;;  %v1787_v59 = vmul.f32 %v1786_v2, %v4595_v30 }
 0x462   : > { %s7822_s8 = sld [smem:[#allocation160_spill]]  ;;  %v1731_v16 = vmul.f32 %v1730_v15, %v4665_v29  ;;  %v1622_v38 = vadd.f32 %v1621_v23, %v1618_v44  ;;  %v1789_v15 = vstv %s5617_s9  ;;  %v1508_v23 = vadd.f32 %v1507_v50, %v1504_v49 }
 0x463   : > { %s5810_s7 = sld [smem:[#allocation2 + $0x1a6]]  ;;  %v1675_v45 = vstv %s7819_s29  ;;  %v1790_v8 = vmul.f32 %v1789_v15, %v4634_v62 }
 0x464   : > { %s5818_s17 = sld [smem:[#allocation2 + $0x1a7]]  ;;  %v1676_v54 = vmul.f32 %v1675_v45, %v4809_v27  ;;  %v1732_v5 = vadd.f32 %v1731_v16, %v1728_v47  ;;  %v1512_v2 = vadd.f32 %v1511_v9, %v1508_v23 }
 0x465   : > { %v1514_v25 = vstv %s7820_s6  ;;  %s7825_s25 = sld [smem:[#allocation155_spill]] }
 0x466   : > { %v1569_v52 = vstv %s7821_s0  ;;  %s5823_s26 = sld [smem:[#allocation2 + $0x1a8]]  ;;  %v1677_v45 = vadd.f32 %v1676_v54, %v1673_v53  ;;  %v1736_v50 = vadd.f32 %v1735_v57, %v1732_v5 }
 0x467   : > { %s7827_s18 = sld [smem:[#allocation139_spill]]  ;;  %v1570_v10 = vmul.f32 %v1569_v52, %v4929_v20 }
 0x468   : > { %v1624_v4 = vstv %s7822_s8  ;;  %s7828_s23 = sld [smem:[#allocation15_spill]] }
 0x469   : > { %7823 = sst [smem:[#allocation37_spill]] %s5810_s7  ;;  %v1625_v40 = vmul.f32 %v1624_v4, %v4863_v18 }
 0x46a   : > { %7824 = sst [smem:[#allocation25_spill]] %s5818_s17 }
 0x46b   : > { %s5828_s7 = sld [smem:[#allocation2 + $0x1a9]]  ;;  %v1679_v61 = vstv %s7825_s25  ;;  %v1626_v53 = vadd.f32 %v1625_v40, %v1622_v38 }
 0x46c   : > { %7826 = sst [smem:[#allocation80_spill]] %s5823_s26  ;;  %v1680_v52 = vmul.f32 %v1679_v61, %v4815_v34  ;;  %v1571_v61 = vadd.f32 %v1570_v10, %v1567_v11  ;;  %v1791_v10 = vadd.f32 %v1790_v8, %v1787_v59 }
 0x46d   : > { %s5832_s29 = sld [smem:[#allocation2 + $0x1aa]]  ;;  %v1573_v31 = vstv %s7827_s18 }
 0x46e   : > { %s7831_s8 = sld [smem:[#allocation165_spill]]  ;;  %v1628_v58 = vstv %s7828_s23  ;;  %v1574_v4 = vmul.f32 %v1573_v31, %v5000_v32  ;;  %v1681_v31 = vadd.f32 %v1680_v52, %v1677_v45 }
 0x46f   : > { %s5837_s0 = sld [smem:[#allocation2 + $0x1ab]]  ;;  %v1629_v16 = vmul.f32 %v1628_v58, %v4868_v21 }
 0x470   : > { %s7834_s26 = sld [smem:[#allocation156_spill]]  ;;  %v1575_v52 = vadd.f32 %v1574_v4, %v1571_v61  ;;  %v1801_v61 = vstv %s5632_s15 }
 0x471   : > { %7829 = sst [smem:[#allocation77_spill]] %s5828_s7  ;;  %v1630_v11 = vadd.f32 %v1629_v16, %v1626_v53  ;;  %v1853_v53 = vstv %s5696_s2 }
 0x472   : > { %s7833_s7 = sld [smem:[#allocation159_spill]] }
 0x473   : > { %7830 = sst [smem:[#allocation54_spill]] %s5832_s29 }
 0x474   : > { %s5842_s17 = sld [smem:[#allocation2 + $0x1ac]]  ;;  %v1738_v44 = vstv %s7831_s8 }
 0x475   : > { %7832 = sst [smem:[#allocation81_spill]] %s5837_s0  ;;  %v1739_v54 = vmul.f32 %v1738_v44, %v4807_v26 }
 0x476   : > { %s7836_s27 = sld [smem:[#allocation27_spill]]  ;;  %v1683_v47 = vstv %s7834_s26 }
 0x477   : > { %s5847_s29 = sld [smem:[#allocation2 + $0x1ad]]  ;;  %v1684_v58 = vmul.f32 %v1683_v47, %v4821_v39  ;;  %v1740_v9 = vadd.f32 %v1739_v54, %v1736_v50  ;;  %v1856_v50 = vstv %s5700_s16 }
 0x478   : > { %s7838_s25 = sld [smem:[#allocation53_spill]]  ;;  %v1577_v46 = vstv %s7833_s7 }
 0x479   : > { %s5851_s18 = sld [smem:[#allocation2 + $0x1ae]]  ;;  %v1578_v15 = vmul.f32 %v1577_v46, %v5039_v7  ;;  %v1685_v44 = vadd.f32 %v1684_v58, %v1681_v31 }
 0x47a   : > { %7835 = sst [smem:[#allocation83_spill]] %s5842_s17 }
 0x47b   : > { %s7840_s23 = sld [smem:[#allocation42_spill]]  ;;  %v1579_v31 = vadd.f32 %v1578_v15, %v1575_v52 }
 0x47c   : > { %s5856_s17 = sld [smem:[#allocation2 + $0x1af]]  ;;  %v1632_v3 = vstv %s7836_s27 }
 0x47d   : > { %7837 = sst [smem:[#allocation35_spill]] %s5847_s29  ;;  %v1633_v40 = vmul.f32 %v1632_v3, %v4883_v36  ;;  %v5892_v3 = vadd.f32 %v1514_v25, %v1512_v2 }
 0x47e   : > { %s7842_s20 = sld [smem:[#allocation20_spill]]  ;;  %v1793_v49 = vstv %s7838_s25 }
 0x47f   : > { %7839 = sst [smem:[#allocation59_spill]] %s5851_s18  ;;  %v1794_v57 = vmul.f32 %v1793_v49, %v4663_v28  ;;  %v1634_v54 = vadd.f32 %v1633_v40, %v1630_v11  ;;  %v1854_v40 = vmul.f32 %v1853_v53, %v4595_v30 }
 0x480   : > { %s7843_s9 = sld [smem:[#allocation162_spill]] }
 0x481   : > { %s5862_s8 = sld [smem:[#allocation2 + $0x283]]  ;;  %v1742_v24 = vstv %s7840_s23  ;;  %v1795_v8 = vadd.f32 %v1794_v57, %v1791_v10  ;;  %v1857_v57 = vmul.f32 %v1856_v50, %v4634_v62 }
 0x482   : > { %7841 = sst [smem:[#allocation60_spill]] %s5856_s17  ;;  %v1743_v46 = vmul.f32 %v1742_v24, %v4809_v27 }
 0x483   : > { %s7845_s18 = sld [smem:[#allocation124_spill]]  ;;  %v1858_v53 = vadd.f32 %v1857_v57, %v1854_v40 }
 0x484   : > { %s5866_s26 = sld [smem:[#allocation2 + $0x1b0]]  ;;  %v1581_v48 = vstv %s7842_s20  ;;  %v1744_v49 = vadd.f32 %v1743_v46, %v1740_v9  ;;  %v1802_v9 = vmul.f32 %v1801_v61, %v4785_v13  ;;  %v1860_v46 = vstv %s5704_s4 }
 0x485   : > { %s7846_s7 = sld [smem:[#allocation32_spill]]  ;;  %v1861_v50 = vmul.f32 %v1860_v46, %v4663_v28  ;;  %v1864_v61 = vstv %s5712_s22 }
 0x486   : > { %s5870_s27 = sld [smem:[#allocation2 + $0x1b1]]  ;;  %v1687_v38 = vstv %s7843_s9 }
 0x487   : > { %7844 = sst [smem:[#allocation57_spill]] %s5862_s8  ;;  %v1688_v23 = vmul.f32 %v1687_v38, %v4861_v17 }
 0x488   : > { %s7847_s8 = sld [smem:[#allocation26_spill]] }
 0x489   : > { %s5875_s17 = sld [smem:[#allocation2 + $0x1b2]]  ;;  %v1636_v5 = vstv %s7845_s18  ;;  %v1689_v58 = vadd.f32 %v1688_v23, %v1685_v44 }
 0x48a   : > { %s7848_s25 = sld [smem:[#allocation154_spill]]  ;;  %v1637_v16 = vmul.f32 %v1636_v5, %v4929_v20 }
 0x48b   : > { %s7849_s29 = sld [smem:[#allocation18_spill]]  ;;  %v1797_v45 = vstv %s7846_s7 }
 0x48c   : > { %s5880_s23 = sld [smem:[#allocation2 + $0x1b3]]  ;;  %v1798_v4 = vmul.f32 %v1797_v45, %v4665_v29  ;;  %v1638_v45 = vadd.f32 %v1637_v16, %v1634_v54  ;;  %v5939_v54 = vadd.f32 %v1581_v48, %v1579_v31 }
 0x48d   : > { %s5884_s9 = sld [smem:[#allocation2 + $0x1b4]] }
 0x48e   : > { %v1746_v47 = vstv %s7847_s8  ;;  %s5888_s18 = sld [smem:[#allocation2 + $0x1b5]]  ;;  %v1799_v15 = vadd.f32 %v1798_v4, %v1795_v8 }
 0x48f   : > { %s7852_s0 = sld [smem:[#allocation24_spill]]  ;;  %v1747_v25 = vmul.f32 %v1746_v47, %v4815_v34  ;;  %v1884_v47 = vstv %s5738_s1 }
 0x490   : > { %v1640_v59 = vstv %s7848_s25  ;;  %s7853_s7 = sld [smem:[#allocation39_spill]] }
 0x491   : > { %v1691_v24 = vstv %s7849_s29  ;;  %s7854_s8 = sld [smem:[#allocation161_spill]]  ;;  %v1641_v5 = vmul.f32 %v1640_v59, %v5000_v32  ;;  %v1748_v52 = vadd.f32 %v1747_v25, %v1744_v49  ;;  %v1803_v49 = vadd.f32 %v1802_v9, %v1799_v15 }
 0x492   : > { %7850 = sst [smem:[#allocation87_spill]] %s5880_s23  ;;  %v1692_v2 = vmul.f32 %v1691_v24, %v4863_v18  ;;  %v1862_v9 = vadd.f32 %v1861_v50, %v1858_v53 }
 0x493   : > { %7851 = sst [smem:[#allocation49_spill]] %s5884_s9 }
 0x494   : > { %s5897_s23 = sld [smem:[#allocation2 + $0x1b6]]  ;;  %v1693_v59 = vadd.f32 %v1692_v2, %v1689_v58  ;;  %v1642_v58 = vadd.f32 %v1641_v5, %v1638_v45  ;;  %v1865_v5 = vmul.f32 %v1864_v61, %v4665_v29  ;;  %v1920_v61 = vstv %s5781_s13 }
 0x495   : > { %s5902_s9 = sld [smem:[#allocation2 + $0x1b7]]  ;;  %v1750_v38 = vstv %s7852_s0 }
 0x496   : > { %s5906_s6 = sld [smem:[#allocation2 + $0x1b8]]  ;;  %v1695_v10 = vstv %s7853_s7  ;;  %v1751_v44 = vmul.f32 %v1750_v38, %v4821_v39 }
 0x497   : > { %s7856_s29 = sld [smem:[#allocation40_spill]]  ;;  %v1644_v11 = vstv %s7854_s8  ;;  %v1696_v24 = vmul.f32 %v1695_v10, %v4868_v21  ;;  %v1809_v10 = vstv %s5641_s5 }
 0x498   : > { %s5910_s25 = sld [smem:[#allocation2 + $0x1b9]]  ;;  %v1645_v4 = vmul.f32 %v1644_v11, %v5039_v7  ;;  %v1752_v2 = vadd.f32 %v1751_v44, %v1748_v52  ;;  %v1810_v52 = vmul.f32 %v1809_v10, %v4809_v27  ;;  %v1868_v44 = vstv %s5717_s3 }
 0x499   : > { %s7857_s2 = sld [smem:[#allocation67_spill]]  ;;  %v1697_v57 = vadd.f32 %v1696_v24, %v1693_v59 }
 0x49a   : > { %s5916_s16 = sld [smem:[#allocation2 + $0x1ba]] }
 0x49b   : > { %s7858_s15 = sld [smem:[#allocation163_spill]] }
 0x49c   : > { %7855 = sst [smem:[#allocation75_spill]] %s5906_s6 }
 0x49d   : > { %s5921_s6 = sld [smem:[#allocation2 + $0x1bb]]  ;;  %v1805_v23 = vstv %s7856_s29 }
 0x49e   : > { %s5925_s0 = sld [smem:[#allocation2 + $0x1bc]]  ;;  %v1806_v25 = vmul.f32 %v1805_v23, %v4807_v26  ;;  %v1646_v23 = vadd.f32 %v1645_v4, %v1642_v58  ;;  %v1869_v4 = vmul.f32 %v1868_v44, %v4785_v13  ;;  %v1923_v58 = vstv %s5787_s11 }
 0x49f   : > { %v1754_v8 = vstv %s7857_s2  ;;  %s5930_s7 = sld [smem:[#allocation2 + $0x1bd]] }
 0x4a0   : > { %s7862_s4 = sld [smem:[#allocation16_spill]]  ;;  %v1755_v38 = vmul.f32 %v1754_v8, %v4861_v17  ;;  %v1807_v45 = vadd.f32 %v1806_v25, %v1803_v49  ;;  %v1813_v8 = vstv %s5646_s12  ;;  %v1866_v25 = vadd.f32 %v1865_v5, %v1862_v9 }
 0x4a1   : > { %v1699_v16 = vstv %s7858_s15  ;;  %s7863_s8 = sld [smem:[#allocation50_spill]]  ;;  %v1814_v10 = vmul.f32 %v1813_v8, %v4815_v34 }
 0x4a2   : > { %s5935_s29 = sld [smem:[#allocation2 + $0x1be]]  ;;  %v1700_v48 = vmul.f32 %v1699_v16, %v4883_v36  ;;  %v1756_v59 = vadd.f32 %v1755_v38, %v1752_v2  ;;  %v1811_v38 = vadd.f32 %v1810_v52, %v1807_v45  ;;  %v1921_v45 = vmul.f32 %v1920_v61, %v4595_v30 }
 0x4a3   : > { %7859 = sst [smem:[#allocation88_spill]] %s5921_s6  ;;  %v1924_v52 = vmul.f32 %v1923_v58, %v4634_v62  ;;  %v1870_v44 = vadd.f32 %v1869_v4, %v1866_v25 }
 0x4a4   : > { %7860 = sst [smem:[#allocation55_spill]] %s5925_s0  ;;  %v1701_v16 = vadd.f32 %v1700_v48, %v1697_v57  ;;  %v1872_v57 = vstv %s5721_s10  ;;  %v1815_v8 = vadd.f32 %v1814_v10, %v1811_v38 }
 0x4a5   : > { %7861 = sst [smem:[#allocation63_spill]] %s5930_s7  ;;  %v1925_v38 = vadd.f32 %v1924_v52, %v1921_v45 }
 0x4a6   : > { %s7865_s0 = sld [smem:[#allocation47_spill]]  ;;  %v1648_v40 = vstv %s7862_s4 }
 0x4a7   : > { %s7866_s6 = sld [smem:[#allocation36_spill]]  ;;  %v1758_v31 = vstv %s7863_s8  ;;  %v5983_v48 = vadd.f32 %v1648_v40, %v1646_v23  ;;  %v1873_v23 = vmul.f32 %v1872_v57, %v4807_v26 }
 0x4a8   : > { %7864 = sst [smem:[#allocation109_spill]] %s5935_s29  ;;  %v1759_v24 = vmul.f32 %v1758_v31, %v4863_v18 }
 0x4a9   : > { %s5943_s2 = sld [smem:[#allocation2 + $0x1bf]] }
 0x4aa   : > { %s5947_s15 = sld [smem:[#allocation2 + $0x284]]  ;;  %v1760_v31 = vadd.f32 %v1759_v24, %v1756_v59  ;;  %v1927_v59 = vstv %s5791_s24 }
 0x4ab   : > { %s5952_s20 = sld [smem:[#allocation2 + $0x1c0]]  ;;  %v1928_v10 = vmul.f32 %v1927_v59, %v4663_v28  ;;  %v1987_v59 = vstv %s5866_s26 }
 0x4ac   : > { %v1703_v11 = vstv %s7865_s0  ;;  %s7869_s22 = sld [smem:[#allocation52_spill]] }
 0x4ad   : > { %v1707_v15 = vstv %s7866_s6  ;;  %s5962_s5 = sld [smem:[#allocation2 + $0x1c2]]  ;;  %v1704_v53 = vmul.f32 %v1703_v11, %v4929_v20  ;;  %v1929_v46 = vadd.f32 %v1928_v10, %v1925_v38 }
 0x4ae   : > { %s7870_s4 = sld [smem:[#allocation22_spill]]  ;;  %v1708_v50 = vmul.f32 %v1707_v15, %v5000_v32  ;;  %v1817_v15 = vstv %s5651_s28 }
 0x4af   : > { %7867 = sst [smem:[#allocation44_spill]] %s5943_s2  ;;  %v1705_v9 = vadd.f32 %v1704_v53, %v1701_v16  ;;  %v1818_v16 = vmul.f32 %v1817_v15, %v4821_v39  ;;  %v1876_v53 = vstv %s5727_s30  ;;  %v1931_v15 = vstv %s5796_s14 }
 0x4b0   : > { %7868 = sst [smem:[#allocation51_spill]] %s5947_s15 }
 0x4b1   : > { %s5957_s2 = sld [smem:[#allocation2 + $0x1c1]]  ;;  %v1819_v4 = vadd.f32 %v1818_v16, %v1815_v8  ;;  %v1932_v8 = vmul.f32 %v1931_v15, %v4665_v29 }
 0x4b2   : > { %s5966_s6 = sld [smem:[#allocation2 + $0x1c3]]  ;;  %v1762_v49 = vstv %s7869_s22 }
 0x4b3   : > { %s5971_s0 = sld [smem:[#allocation2 + $0x1c4]]  ;;  %v1763_v11 = vmul.f32 %v1762_v49, %v4868_v21  ;;  %v1933_v15 = vadd.f32 %v1932_v8, %v1929_v46 }
 0x4b4   : > { %s7871_s3 = sld [smem:[#allocation19_spill]]  ;;  %v1711_v2 = vstv %s7870_s4 }
 0x4b5   : > { %s5976_s8 = sld [smem:[#allocation2 + $0x1c5]]  ;;  %v1712_v40 = vmul.f32 %v1711_v2, %v5039_v7  ;;  %v1764_v49 = vadd.f32 %v1763_v11, %v1760_v31  ;;  %v1709_v2 = vadd.f32 %v1708_v50, %v1705_v9  ;;  %v1874_v31 = vadd.f32 %v1873_v23, %v1870_v44 }
 0x4b6   : > { %s5981_s12 = sld [smem:[#allocation2 + $0x1c6]]  ;;  %v1877_v11 = vmul.f32 %v1876_v53, %v4809_v27  ;;  %v1990_v44 = vstv %s5870_s27 }
 0x4b7   : > { %s7872_s15 = sld [smem:[#allocation157_spill]]  ;;  %v1713_v23 = vadd.f32 %v1712_v40, %v1709_v2  ;;  %v1988_v40 = vmul.f32 %v1987_v59, %v4595_v30  ;;  %v1991_v2 = vmul.f32 %v1990_v44, %v4634_v62 }
 0x4b8   : > { %s5987_s13 = sld [smem:[#allocation2 + $0x1c7]] }
 0x4b9   : > { %s7873_s11 = sld [smem:[#allocation28_spill]]  ;;  %v1992_v44 = vadd.f32 %v1991_v2, %v1988_v40 }
 0x4ba   : > { %v1766_v5 = vstv %s7871_s3  ;;  %s7874_s22 = sld [smem:[#allocation73_spill]] }
 0x4bb   : > { %s5992_s10 = sld [smem:[#allocation2 + $0x1c8]]  ;;  %v1767_v61 = vmul.f32 %v1766_v5, %v4883_v36  ;;  %v2073_v42 = vstv %s5976_s8 }
 0x4bc   : > { %s5997_s4 = sld [smem:[#allocation2 + $0x1c9]] }
 0x4bd   : > { %s7876_s28 = sld [smem:[#allocation23_spill]]  ;;  %v1715_v24 = vstv %s7872_s15  ;;  %v1768_v45 = vadd.f32 %v1767_v61, %v1764_v49  ;;  %v1935_v61 = vstv %s5801_s19 }
 0x4be   : > { %s6002_s3 = sld [smem:[#allocation2 + $0x1ca]] }
 0x4bf   : > { %v1770_v58 = vstv %s7873_s11  ;;  %s7878_s29 = sld [smem:[#allocation58_spill]] }
 0x4c0   : > { %v1821_v25 = vstv %s7874_s22  ;;  %s6007_s7 = sld [smem:[#allocation2 + $0x1cb]]  ;;  %v1771_v5 = vmul.f32 %v1770_v58, %v4929_v20  ;;  %v1878_v58 = vadd.f32 %v1877_v11, %v1874_v31  ;;  %v1994_v31 = vstv %s5875_s17 }
 0x4c1   : > { %s7880_s24 = sld [smem:[#allocation166_spill]]  ;;  %v1822_v50 = vmul.f32 %v1821_v25, %v4861_v17  ;;  %v6047_v11 = vadd.f32 %v1715_v24, %v1713_v23  ;;  %v1995_v23 = vmul.f32 %v1994_v31, %v4663_v28 }
 0x4c2   : > { %7875 = sst [smem:[#allocation71_spill]] %s5997_s4  ;;  %v1772_v38 = vadd.f32 %v1771_v5, %v1768_v45  ;;  %v1885_v45 = vmul.f32 %v1884_v47, %v4821_v39 }
 0x4c3   : > { %s6011_s30 = sld [smem:[#allocation2 + $0x1cc]]  ;;  %v1825_v57 = vstv %s7876_s28  ;;  %v1823_v25 = vadd.f32 %v1822_v50, %v1819_v4  ;;  %v1936_v50 = vmul.f32 %v1935_v61, %v4785_v13  ;;  %v1996_v31 = vadd.f32 %v1995_v23, %v1992_v44 }
 0x4c4   : > { %7877 = sst [smem:[#allocation72_spill]] %s6002_s3  ;;  %v1826_v53 = vmul.f32 %v1825_v57, %v4863_v18 }
 0x4c5   : > { %s6016_s15 = sld [smem:[#allocation2 + $0x1cd]]  ;;  %v1880_v9 = vstv %s7878_s29 }
 0x4c6   : > { %7879 = sst [smem:[#allocation61_spill]] %s6007_s7  ;;  %v1881_v49 = vmul.f32 %v1880_v9, %v4815_v34  ;;  %v1827_v59 = vadd.f32 %v1826_v53, %v1823_v25  ;;  %v1937_v53 = vadd.f32 %v1936_v50, %v1933_v15 }
 0x4c7   : > { %s7883_s11 = sld [smem:[#allocation30_spill]]  ;;  %v1774_v52 = vstv %s7880_s24 }
 0x4c8   : > { %s6021_s22 = sld [smem:[#allocation2 + $0x1ce]]  ;;  %v1775_v10 = vmul.f32 %v1774_v52, %v5000_v32  ;;  %v1882_v5 = vadd.f32 %v1881_v49, %v1878_v58  ;;  %v1939_v52 = vstv %s5806_s21 }
 0x4c9   : > { %7881 = sst [smem:[#allocation69_spill]] %s6011_s30  ;;  %v1940_v49 = vmul.f32 %v1939_v52, %v4807_v26 }
 0x4ca   : > { %s6026_s28 = sld [smem:[#allocation2 + $0x1cf]]  ;;  %v1776_v46 = vadd.f32 %v1775_v10, %v1772_v38  ;;  %v1886_v40 = vadd.f32 %v1885_v45, %v1882_v5 }
 0x4cb   : > { %7882 = sst [smem:[#allocation78_spill]] %s6016_s15  ;;  %v1941_v52 = vadd.f32 %v1940_v49, %v1937_v53 }
 0x4cc   : > { %s7886_s14 = sld [smem:[#allocation56_spill]] }
 0x4cd   : > { %s6030_s15 = sld [smem:[#allocation2 + $0x285]]  ;;  %v1829_v16 = vstv %s7883_s11 }
 0x4ce   : > { %7884 = sst [smem:[#allocation79_spill]] %s6021_s22  ;;  %v1830_v4 = vmul.f32 %v1829_v16, %v4868_v21 }
 0x4cf   : > { %s6035_s29 = sld [smem:[#allocation2 + $0x1d0]] }
 0x4d0   : > { %7885 = sst [smem:[#allocation82_spill]] %s6026_s28  ;;  %v1831_v10 = vadd.f32 %v1830_v4, %v1827_v59  ;;  %v2054_v4 = vstv %s5952_s20  ;;  %v2057_v59 = vstv %s5957_s2 }
 0x4d1   : > { %s7888_s26 = sld [smem:[#allocation34_spill]] }
 0x4d2   : > { %s6040_s27 = sld [smem:[#allocation2 + $0x1d1]]  ;;  %v1778_v57 = vstv %s7886_s14 }
 0x4d3   : > { %7887 = sst [smem:[#allocation84_spill]] %s6030_s15  ;;  %v1779_v8 = vmul.f32 %v1778_v57, %v5039_v7 }
 0x4d4   : > { %s7889_s24 = sld [smem:[#allocation45_spill]] }
 0x4d5   : > { %s6045_s11 = sld [smem:[#allocation2 + $0x1d2]]  ;;  %v1780_v50 = vadd.f32 %v1779_v8, %v1776_v46 }
 0x4d6   : > { %s7890_s1 = sld [smem:[#allocation31_spill]] }
 0x4d7   : > { %s7891_s19 = sld [smem:[#allocation87_spill]]  ;;  %v1833_v9 = vstv %s7888_s26 }
 0x4d8   : > { %s6051_s15 = sld [smem:[#allocation2 + $0x1d3]]  ;;  %v1834_v25 = vmul.f32 %v1833_v9, %v4883_v36 }
 0x4d9   : > { %s7892_s28 = sld [smem:[#allocation74_spill]] }
 0x4da   : > { %s6056_s17 = sld [smem:[#allocation2 + $0x1d4]]  ;;  %v1888_v24 = vstv %s7889_s24  ;;  %v1835_v8 = vadd.f32 %v1834_v25, %v1831_v10 }
 0x4db   : > { %s7893_s14 = sld [smem:[#allocation37_spill]]  ;;  %v1889_v2 = vmul.f32 %v1888_v24, %v4861_v17 }
 0x4dc   : > { %s6060_s22 = sld [smem:[#allocation2 + $0x1d5]]  ;;  %v1782_v16 = vstv %s7890_s1 }
 0x4dd   : > { %s7894_s30 = sld [smem:[#allocation62_spill]]  ;;  %v1998_v61 = vstv %s7891_s19  ;;  %v1890_v23 = vadd.f32 %v1889_v2, %v1886_v40  ;;  %v2055_v40 = vmul.f32 %v2054_v4, %v4595_v30  ;;  %v2058_v2 = vmul.f32 %v2057_v59, %v4634_v62 }
 0x4de   : > { %s6065_s26 = sld [smem:[#allocation2 + $0x1d6]]  ;;  %v1999_v15 = vmul.f32 %v1998_v61, %v4665_v29 }
 0x4df   : > { %v1837_v58 = vstv %s7892_s28  ;;  %s7895_s21 = sld [smem:[#allocation17_spill]] }
 0x4e0   : > { %s7896_s24 = sld [smem:[#allocation49_spill]]  ;;  %v1838_v9 = vmul.f32 %v1837_v58, %v4929_v20  ;;  %v2000_v47 = vadd.f32 %v1999_v15, %v1996_v31  ;;  %v2061_v31 = vstv %s5962_s5 }
 0x4e1   : > { %s6070_s7 = sld [smem:[#allocation2 + $0x1d7]]  ;;  %v1943_v38 = vstv %s7893_s14 }
 0x4e2   : > { %s6075_s1 = sld [smem:[#allocation2 + $0x1d8]]  ;;  %v1944_v24 = vmul.f32 %v1943_v38, %v4809_v27  ;;  %v2006_v38 = vstv %s5888_s18  ;;  %v1839_v59 = vadd.f32 %v1838_v9, %v1835_v8 }
 0x4e3   : > { %s7898_s19 = sld [smem:[#allocation48_spill]]  ;;  %v1892_v57 = vstv %s7894_s30 }
 0x4e4   : > { %s7899_s28 = sld [smem:[#allocation25_spill]]  ;;  %v1893_v61 = vmul.f32 %v1892_v57, %v4863_v18  ;;  %v6106_v57 = vadd.f32 %v1782_v16, %v1780_v50  ;;  %v1945_v25 = vadd.f32 %v1944_v24, %v1941_v52  ;;  %v2007_v50 = vmul.f32 %v2006_v38, %v4807_v26 }
 0x4e5   : > { %s6079_s3 = sld [smem:[#allocation2 + $0x1d9]]  ;;  %v1841_v5 = vstv %s7895_s21  ;;  %v2010_v24 = vstv %s5897_s23 }
 0x4e6   : > { %v2002_v45 = vstv %s7896_s24  ;;  %s6084_s4 = sld [smem:[#allocation2 + $0x1da]]  ;;  %v1842_v49 = vmul.f32 %v1841_v5, %v5000_v32  ;;  %v1894_v5 = vadd.f32 %v1893_v61, %v1890_v23 }
 0x4e7   : > { %7897 = sst [smem:[#allocation76_spill]] %s6070_s7  ;;  %v2003_v53 = vmul.f32 %v2002_v45, %v4785_v13 }
 0x4e8   : > { %s7900_s7 = sld [smem:[#allocation46_spill]] }
 0x4e9   : > { %s6089_s30 = sld [smem:[#allocation2 + $0x1db]]  ;;  %v1845_v44 = vstv %s7898_s19  ;;  %v2004_v16 = vadd.f32 %v2003_v53, %v2000_v47  ;;  %v2065_v47 = vstv %s5966_s6 }
 0x4ea   : > { %v1947_v46 = vstv %s7899_s28  ;;  %s6094_s14 = sld [smem:[#allocation2 + $0x1dc]]  ;;  %v1846_v15 = vmul.f32 %v1845_v44, %v5039_v7  ;;  %v2062_v44 = vmul.f32 %v2061_v31, %v4663_v28 }
 0x4eb   : > { %s7902_s21 = sld [smem:[#allocation80_spill]]  ;;  %v1948_v10 = vmul.f32 %v1947_v46, %v4815_v34  ;;  %v2059_v46 = vadd.f32 %v2058_v2, %v2055_v40  ;;  %v1843_v40 = vadd.f32 %v1842_v49, %v1839_v59  ;;  %v2008_v2 = vadd.f32 %v2007_v50, %v2004_v16 }
 0x4ec   : > { %s6098_s24 = sld [smem:[#allocation2 + $0x1dd]]  ;;  %v2069_v16 = vstv %s5971_s0 }
 0x4ed   : > { %s7904_s2 = sld [smem:[#allocation43_spill]]  ;;  %v1949_v61 = vadd.f32 %v1948_v10, %v1945_v25  ;;  %v2011_v25 = vmul.f32 %v2010_v24, %v4809_v27  ;;  %v2014_v10 = vstv %s5902_s9  ;;  %v2063_v31 = vadd.f32 %v2062_v44, %v2059_v46 }
 0x4ee   : > { %v1896_v58 = vstv %s7900_s7  ;;  %s6104_s20 = sld [smem:[#allocation2 + $0x1de]]  ;;  %v2015_v44 = vmul.f32 %v2014_v10, %v4815_v34 }
 0x4ef   : > { %s7906_s19 = sld [smem:[#allocation29_spill]]  ;;  %v1897_v45 = vmul.f32 %v1896_v58, %v4868_v21 }
 0x4f0   : > { %7901 = sst [smem:[#allocation89_spill]] %s6094_s14 }
 0x4f1   : > { %s6110_s7 = sld [smem:[#allocation2 + $0x1df]]  ;;  %v1951_v4 = vstv %s7902_s21  ;;  %v1898_v8 = vadd.f32 %v1897_v45, %v1894_v5  ;;  %v2066_v5 = vmul.f32 %v2065_v47, %v4665_v29  ;;  %v2124_v45 = vstv %s6040_s27 }
 0x4f2   : > { %7903 = sst [smem:[#allocation66_spill]] %s6098_s24  ;;  %v1952_v9 = vmul.f32 %v1951_v4, %v4821_v39 }
 0x4f3   : > { %s6115_s18 = sld [smem:[#allocation2 + $0x286]]  ;;  %v1900_v43 = vstv %s7904_s2 }
 0x4f4   : > { %7905 = sst [smem:[#allocation91_spill]] %s6104_s20  ;;  %v1901_v58 = vmul.f32 %v1900_v43, %v4883_v36  ;;  %v2121_v43 = vstv %s6035_s29  ;;  %v1953_v49 = vadd.f32 %v1952_v9, %v1949_v61  ;;  %v2125_v61 = vmul.f32 %v2124_v45, %v4634_v62 }
 0x4f5   : > { %s7909_s28 = sld [smem:[#allocation21_spill]]  ;;  %v1849_v52 = vstv %s7906_s19  ;;  %v2122_v0 = vmul.f32 %v2121_v43, %v4595_v30  ;;  %v2012_v9 = vadd.f32 %v2011_v25, %v2008_v2 }
 0x4f6   : > { %s7910_s20 = sld [smem:[#allocation77_spill]]  ;;  %v1902_v50 = vadd.f32 %v1901_v58, %v1898_v8  ;;  %v2070_v8 = vmul.f32 %v2069_v16, %v4785_v13  ;;  %v2128_v58 = vstv %s6045_s11 }
 0x4f7   : > { %7907 = sst [smem:[#allocation96_spill]] %s6110_s7 }
 0x4f8   : > { %s6119_s24 = sld [smem:[#allocation2 + $0x1e0]] }
 0x4f9   : > { %7908 = sst [smem:[#allocation102_spill]] %s6115_s18 }
 0x4fa   : > { %s6124_s5 = sld [smem:[#allocation2 + $0x1e1]] }
 0x4fb   : > { %s6129_s21 = sld [smem:[#allocation2 + $0x1e2]]  ;;  %v1904_v53 = vstv %s7909_s28 }
 0x4fc   : > { %v1955_v38 = vstv %s7910_s20  ;;  %s6134_s23 = sld [smem:[#allocation2 + $0x1e3]]  ;;  %v1905_v4 = vmul.f32 %v1904_v53, %v4929_v20  ;;  %v2067_v53 = vadd.f32 %v2066_v5, %v2063_v31  ;;  %v2129_v5 = vmul.f32 %v2128_v58, %v4663_v28 }
 0x4fd   : > { %s7911_s2 = sld [smem:[#allocation70_spill]]  ;;  %v1956_v59 = vmul.f32 %v1955_v38, %v4861_v17  ;;  %v1847_v38 = vadd.f32 %v1846_v15, %v1843_v40  ;;  %v2022_v15 = vstv %s5910_s25  ;;  %v2126_v40 = vadd.f32 %v2125_v61, %v2122_v0 }
 0x4fe   : > { %s7912_s18 = sld [smem:[#allocation68_spill]]  ;;  %v1906_v43 = vadd.f32 %v1905_v4, %v1902_v50  ;;  %v2016_v4 = vadd.f32 %v2015_v44, %v2012_v9  ;;  %v2077_v0 = vstv %s5981_s12  ;;  %v2026_v9 = vstv %s5916_s16 }
 0x4ff   : > { %s7913_s7 = sld [smem:[#allocation54_spill]]  ;;  %v1957_v33 = vadd.f32 %v1956_v59, %v1953_v49  ;;  %v2071_v49 = vadd.f32 %v2070_v8, %v2067_v53  ;;  %v2132_v59 = vstv %s6051_s15  ;;  %v6185_v16 = vadd.f32 %v1849_v52, %v1847_v38 }
 0x500   : > { %s6138_s14 = sld [smem:[#allocation2 + $0x1e4]]  ;;  %v2130_v52 = vadd.f32 %v2129_v5, %v2126_v40  ;;  %v2078_v58 = vmul.f32 %v2077_v0, %v4809_v27  ;;  %v2136_v38 = vstv %s6056_s17  ;;  %v2140_v0 = vstv %s6060_s22 }
 0x501   : > { %s7914_s6 = sld [smem:[#allocation75_spill]] }
 0x502   : > { %s6143_s28 = sld [smem:[#allocation2 + $0x1e5]] }
 0x503   : > { %s6148_s20 = sld [smem:[#allocation2 + $0x1e6]]  ;;  %v1908_v24 = vstv %s7911_s2 }
 0x504   : > { %v1912_v23 = vstv %s7912_s18  ;;  %s6153_s9 = sld [smem:[#allocation2 + $0x1e7]]  ;;  %v1909_v45 = vmul.f32 %v1908_v24, %v5000_v32 }
 0x505   : > { %v1959_v46 = vstv %s7913_s7  ;;  %s7915_s29 = sld [smem:[#allocation81_spill]]  ;;  %v1913_v2 = vmul.f32 %v1912_v23, %v5039_v7  ;;  %v2074_v23 = vmul.f32 %v2073_v42, %v4807_v26  ;;  %v2023_v42 = vmul.f32 %v2022_v15, %v4861_v17 }
 0x506   : > { %s6159_s27 = sld [smem:[#allocation2 + $0x1e8]]  ;;  %v1960_v10 = vmul.f32 %v1959_v46, %v4863_v18  ;;  %v1910_v46 = vadd.f32 %v1909_v45, %v1906_v43 }
 0x507   : > { %v2018_v47 = vstv %s7914_s6  ;;  %s6163_s0 = sld [smem:[#allocation2 + $0x1e9]]  ;;  %v2075_v8 = vadd.f32 %v2074_v23, %v2071_v49 }
 0x508   : > { %s6167_s7 = sld [smem:[#allocation2 + $0x1ea]]  ;;  %v2019_v31 = vmul.f32 %v2018_v47, %v4821_v39  ;;  %v1961_v50 = vadd.f32 %v1960_v10, %v1957_v33  ;;  %v2133_v33 = vmul.f32 %v2132_v59, %v4665_v29  ;;  %v1914_v15 = vadd.f32 %v1913_v2, %v1910_v46 }
 0x509   : > { %s6172_s18 = sld [smem:[#allocation2 + $0x1eb]]  ;;  %v2137_v59 = vmul.f32 %v2136_v38, %v4785_v13  ;;  %v2079_v2 = vadd.f32 %v2078_v58, %v2075_v8 }
 0x50a   : > { %s7917_s11 = sld [smem:[#allocation41_spill]]  ;;  %v2020_v53 = vadd.f32 %v2019_v31, %v2016_v4  ;;  %v2027_v4 = vmul.f32 %v2026_v9, %v4863_v18  ;;  %v2134_v23 = vadd.f32 %v2133_v33, %v2130_v52  ;;  %v2085_v9 = vstv %s5992_s10 }
 0x50b   : > { %v1963_v25 = vstv %s7915_s29  ;;  %s7918_s2 = sld [smem:[#allocation83_spill]]  ;;  %v2188_v33 = vstv %s6119_s24 }
 0x50c   : > { %s7919_s8 = sld [smem:[#allocation35_spill]]  ;;  %v1964_v24 = vmul.f32 %v1963_v25, %v4868_v21  ;;  %v2081_v25 = vstv %s5987_s13  ;;  %v2138_v38 = vadd.f32 %v2137_v59, %v2134_v23 }
 0x50d   : > { %s6177_s6 = sld [smem:[#allocation2 + $0x1ec]] }
 0x50e   : > { %s6181_s29 = sld [smem:[#allocation2 + $0x1ed]]  ;;  %v1965_v43 = vadd.f32 %v1964_v24, %v1961_v50  ;;  %v2024_v50 = vadd.f32 %v2023_v42, %v2020_v53  ;;  %v2082_v24 = vmul.f32 %v2081_v25, %v4815_v34  ;;  %v2191_v53 = vstv %s6124_s5 }
 0x50f   : > { %7916 = sst [smem:[#allocation85_spill]] %s6172_s18  ;;  %v2192_v23 = vmul.f32 %v2191_v53, %v4634_v62 }
 0x510   : > { %s6189_s25 = sld [smem:[#allocation2 + $0x1ee]]  ;;  %v1916_v47 = vstv %s7917_s11  ;;  %v2083_v25 = vadd.f32 %v2082_v24, %v2079_v2  ;;  %v2195_v2 = vstv %s6129_s21 }
 0x511   : > { %v1967_v44 = vstv %s7918_s2  ;;  %s7924_s15 = sld [smem:[#allocation59_spill]]  ;;  %v6229_v52 = vadd.f32 %v1916_v47, %v1914_v15  ;;  %v2086_v47 = vmul.f32 %v2085_v9, %v4821_v39  ;;  %v2144_v15 = vstv %s6065_s26 }
 0x512   : > { %v1971_v61 = vstv %s7919_s8  ;;  %s7925_s19 = sld [smem:[#allocation60_spill]]  ;;  %v1968_v45 = vmul.f32 %v1967_v44, %v4883_v36 }
 0x513   : > { %7920 = sst [smem:[#allocation94_spill]] %s6177_s6  ;;  %v1972_v40 = vmul.f32 %v1971_v61, %v4929_v20  ;;  %7930 = vst [vmem:[#allocation167_spill] sm:$0xff] %v6229_v52 }
 0x514   : > { %7921 = sst [smem:[#allocation111_spill]] %s6181_s29  ;;  %v1969_v46 = vadd.f32 %v1968_v45, %v1965_v43  ;;  %v2141_v43 = vmul.f32 %v2140_v0, %v4807_v26  ;;  %v2028_v45 = vadd.f32 %v2027_v4, %v2024_v50 }
 0x515   : > { %s6194_s6 = sld [smem:[#allocation2 + $0x1ef]] }
 0x516   : > { %7922 = sst [smem:[#allocation142_spill]] %s6189_s25  ;;  %v2142_v24 = vadd.f32 %v2141_v43, %v2138_v38  ;;  %v2196_v38 = vmul.f32 %v2195_v2, %v4663_v28 }
 0x517   : > { %s6199_s29 = sld [smem:[#allocation2 + $0x287]]  ;;  %v1975_v31 = vstv %s7924_s15 }
 0x518   : > { %s7927_s12 = sld [smem:[#allocation88_spill]]  ;;  %v1979_v5 = vstv %s7925_s19  ;;  %v1976_v44 = vmul.f32 %v1975_v31, %v5000_v32  ;;  %v1973_v31 = vadd.f32 %v1972_v40, %v1969_v46  ;;  %v2145_v40 = vmul.f32 %v2144_v15, %v4809_v27 }
 0x519   : > { %s6203_s11 = sld [smem:[#allocation2 + $0x1f0]]  ;;  %v1980_v61 = vmul.f32 %v1979_v5, %v5039_v7  ;;  %v2199_v15 = vstv %s6134_s23 }
 0x51a   : > { %s6208_s16 = sld [smem:[#allocation2 + $0x1f1]] }
 0x51b   : > { %7923 = sst [smem:[#allocation65_spill]] %s6194_s6 }
 0x51c   : > { %s6213_s2 = sld [smem:[#allocation2 + $0x1f2]] }
 0x51d   : > { %7926 = sst [smem:[#allocation64_spill]] %s6199_s29 }
 0x51e   : > { %s7928_s17 = sld [smem:[#allocation57_spill]]  ;;  %v2030_v49 = vstv %s7927_s12 }
 0x51f   : > { %s6218_s13 = sld [smem:[#allocation2 + $0x1f3]]  ;;  %v2031_v8 = vmul.f32 %v2030_v49, %v4868_v21  ;;  %v2189_v49 = vmul.f32 %v2188_v33, %v4595_v30  ;;  %v2255_v0 = vstv %s6203_s11  ;;  %v2087_v33 = vadd.f32 %v2086_v47, %v2083_v25 }
 0x520   : > { %s7929_s8 = sld [smem:[#allocation55_spill]]  ;;  %v2258_v46 = vstv %s6208_s16 }
 0x521   : > { %s6222_s15 = sld [smem:[#allocation2 + $0x1f4]]  ;;  %v2032_v9 = vadd.f32 %v2031_v8, %v2028_v45  ;;  %v2193_v56 = vadd.f32 %v2192_v23, %v2189_v49  ;;  %v2256_v8 = vmul.f32 %v2255_v0, %v4595_v30  ;;  %v2259_v45 = vmul.f32 %v2258_v46, %v4634_v62 }
 0x522   : > { %s6227_s19 = sld [smem:[#allocation2 + $0x1f5]] }
 0x523   : > { %s7931_s12 = sld [smem:[#allocation71_spill]]  ;;  %v2197_v46 = vadd.f32 %v2196_v38, %v2193_v56 }
 0x524   : > { %v1983_v42 = vstv %s7928_s17  ;;  %s6234_s29 = sld [smem:[#allocation2 + $0x1f6]] }
 0x525   : > { %s7932_s22 = sld [smem:[#allocation63_spill]] }
 0x526   : > { %v2034_v58 = vstv %s7929_s8  ;;  %s6239_s6 = sld [smem:[#allocation2 + $0x1f7]] }
 0x527   : > { %s6243_s10 = sld [smem:[#allocation2 + $0x1f8]]  ;;  %v2035_v4 = vmul.f32 %v2034_v58, %v4883_v36  ;;  %v1977_v58 = vadd.f32 %v1976_v44, %v1973_v31  ;;  %v2146_v44 = vadd.f32 %v2145_v40, %v2142_v24  ;;  %v2262_v31 = vstv %s6213_s2 }
 0x528   : > { %s7933_s24 = sld [smem:[#allocation76_spill]]  ;;  %v2200_v24 = vmul.f32 %v2199_v15, %v4665_v29  ;;  %v2260_v40 = vadd.f32 %v2259_v45, %v2256_v8  ;;  %v2156_v15 = vstv %s6079_s3 }
 0x529   : > { %v2089_v5 = vstv %s7931_s12  ;;  %s6248_s5 = sld [smem:[#allocation2 + $0x1f9]]  ;;  %v1981_v2 = vadd.f32 %v1980_v61, %v1977_v58 }
 0x52a   : > { %s7934_s8 = sld [smem:[#allocation72_spill]]  ;;  %v2090_v53 = vmul.f32 %v2089_v5, %v4861_v17  ;;  %v2036_v5 = vadd.f32 %v2035_v4, %v2032_v9  ;;  %v2203_v4 = vstv %s6138_s14 }
 0x52b   : > { %v2038_v50 = vstv %s7932_s22  ;;  %s6254_s25 = sld [smem:[#allocation2 + $0x1fa]]  ;;  %v6304_v8 = vadd.f32 %v1983_v42, %v1981_v2 }
 0x52c   : > { %s6259_s26 = sld [smem:[#allocation2 + $0x1fb]]  ;;  %v2039_v43 = vmul.f32 %v2038_v50, %v4929_v20  ;;  %v2091_v49 = vadd.f32 %v2090_v53, %v2087_v33  ;;  %v2152_v50 = vstv %s6075_s1  ;;  %v2266_v33 = vstv %s6218_s13 }
 0x52d   : > { %s7935_s12 = sld [smem:[#allocation109_spill]]  ;;  %v2153_v56 = vmul.f32 %v2152_v50, %v4821_v39  ;;  %7941 = vst [vmem:[#allocation168_spill] sm:$0xff] %v6304_v8  ;;  %v2270_v50 = vstv %s6222_s15 }
 0x52e   : > { %v2148_v59 = vstv %s7933_s24  ;;  %s6263_s18 = sld [smem:[#allocation2 + $0x1fc]]  ;;  %v2040_v53 = vadd.f32 %v2039_v43, %v2036_v5  ;;  %v2207_v43 = vstv %s6143_s28  ;;  %v2267_v5 = vmul.f32 %v2266_v33, %v4665_v29 }
 0x52f   : > { %s6267_s21 = sld [smem:[#allocation2 + $0x1fd]]  ;;  %v2149_v47 = vmul.f32 %v2148_v59, %v4815_v34  ;;  %v2271_v33 = vmul.f32 %v2270_v50, %v4785_v13 }
 0x530   : > { %v2093_v10 = vstv %s7934_s8  ;;  %s7936_s11 = sld [smem:[#allocation61_spill]] }
 0x531   : > { %s6273_s16 = sld [smem:[#allocation2 + $0x1fe]]  ;;  %v2094_v23 = vmul.f32 %v2093_v10, %v4863_v18  ;;  %v2263_v10 = vmul.f32 %v2262_v31, %v4663_v28  ;;  %v2150_v61 = vadd.f32 %v2149_v47, %v2146_v44  ;;  %v2204_v44 = vmul.f32 %v2203_v4, %v4785_v13 }
 0x532   : > { %s6278_s22 = sld [smem:[#allocation2 + $0x1ff]] }
 0x533   : > { %v2042_v25 = vstv %s7935_s12  ;;  %s7937_s24 = sld [smem:[#allocation44_spill]]  ;;  %v2095_v58 = vadd.f32 %v2094_v23, %v2091_v49  ;;  %v2264_v31 = vadd.f32 %v2263_v10, %v2260_v40  ;;  %v2154_v42 = vadd.f32 %v2153_v56, %v2150_v61 }
 0x534   : > { %s6282_s23 = sld [smem:[#allocation2 + $0x288]]  ;;  %v2043_v59 = vmul.f32 %v2042_v25, %v5000_v32  ;;  %v2201_v25 = vadd.f32 %v2200_v24, %v2197_v46  ;;  %v2157_v23 = vmul.f32 %v2156_v15, %v4861_v17  ;;  %v2160_v24 = vstv %s6084_s4 }
 0x535   : > { %s6286_s8 = sld [smem:[#allocation2 + $0x200]]  ;;  %v2268_v56 = vadd.f32 %v2267_v5, %v2264_v31  ;;  %v2274_v15 = vstv %s6227_s19 }
 0x536   : > { %v2097_v0 = vstv %s7936_s11  ;;  %s7939_s2 = sld [smem:[#allocation69_spill]]  ;;  %v2044_v2 = vadd.f32 %v2043_v59, %v2040_v53  ;;  %v2205_v10 = vadd.f32 %v2204_v44, %v2201_v25  ;;  %v2211_v59 = vstv %s6148_s20 }
 0x537   : > { %s6291_s12 = sld [smem:[#allocation2 + $0x201]]  ;;  %v2098_v38 = vmul.f32 %v2097_v0, %v4868_v21  ;;  %v2212_v5 = vmul.f32 %v2211_v59, %v4809_v27 }
 0x538   : > { %s6296_s1 = sld [smem:[#allocation2 + $0x202]] }
 0x539   : > { %v2046_v9 = vstv %s7937_s24  ;;  %s7940_s11 = sld [smem:[#allocation78_spill]]  ;;  %v2099_v0 = vadd.f32 %v2098_v38, %v2095_v58  ;;  %v2158_v58 = vadd.f32 %v2157_v23, %v2154_v42  ;;  %v2161_v38 = vmul.f32 %v2160_v24, %v4863_v18 }
 0x53a   : > { %7938 = sst [smem:[#allocation95_spill]] %s6282_s23  ;;  %v2047_v47 = vmul.f32 %v2046_v9, %v5039_v7  ;;  %v2208_v9 = vmul.f32 %v2207_v43, %v4807_v26  ;;  %v2164_v43 = vstv %s6089_s30  ;;  %v2215_v23 = vstv %s6153_s9 }
 0x53b   : > { %s6300_s14 = sld [smem:[#allocation2 + $0x203]]  ;;  %v2272_v24 = vadd.f32 %v2271_v33, %v2268_v56 }
 0x53c   : > { %v2101_v45 = vstv %s7939_s2  ;;  %s6308_s13 = sld [smem:[#allocation2 + $0x204]]  ;;  %v2209_v31 = vadd.f32 %v2208_v9, %v2205_v10  ;;  %v2278_v10 = vstv %s6234_s29 }
 0x53d   : > { %s7942_s24 = sld [smem:[#allocation51_spill]]  ;;  %v2102_v46 = vmul.f32 %v2101_v45, %v4883_v36  ;;  %v2048_v45 = vadd.f32 %v2047_v47, %v2044_v2  ;;  %v2325_v50 = vstv %s6291_s12  ;;  %v2275_v47 = vmul.f32 %v2274_v15, %v4807_v26 }
 0x53e   : > { %s6313_s3 = sld [smem:[#allocation2 + $0x205]]  ;;  %v2326_v33 = vmul.f32 %v2325_v50, %v4634_v62  ;;  %v2213_v15 = vadd.f32 %v2212_v5, %v2209_v31  ;;  %v2223_v5 = vstv %s6163_s0 }
 0x53f   : > { %v2105_v49 = vstv %s7940_s11  ;;  %s6318_s17 = sld [smem:[#allocation2 + $0x206]]  ;;  %v2103_v25 = vadd.f32 %v2102_v46, %v2099_v0  ;;  %v2162_v0 = vadd.f32 %v2161_v38, %v2158_v58  ;;  %v2165_v46 = vmul.f32 %v2164_v43, %v4868_v21 }
 0x540   : > { %s7943_s2 = sld [smem:[#allocation79_spill]]  ;;  %v2106_v61 = vmul.f32 %v2105_v49, %v4929_v20  ;;  %v2322_v49 = vstv %s6286_s8  ;;  %v2216_v58 = vmul.f32 %v2215_v23, %v4815_v34  ;;  %v2329_v38 = vstv %s6296_s1 }
 0x541   : > { %s6322_s28 = sld [smem:[#allocation2 + $0x207]]  ;;  %v2323_v56 = vmul.f32 %v2322_v49, %v4595_v30  ;;  %v2279_v43 = vmul.f32 %v2278_v10, %v4809_v27  ;;  %v2166_v49 = vadd.f32 %v2165_v46, %v2162_v0  ;;  %v2333_v10 = vstv %s6300_s14 }
 0x542   : > { %s7944_s11 = sld [smem:[#allocation82_spill]]  ;;  %v2217_v0 = vadd.f32 %v2216_v58, %v2213_v15  ;;  %v2227_v15 = vstv %s6167_s7 }
 0x543   : > { %v2050_v40 = vstv %s7942_s24  ;;  %s6327_s15 = sld [smem:[#allocation2 + $0x208]]  ;;  %v2327_v23 = vadd.f32 %v2326_v33, %v2323_v56 }
 0x544   : > { %s6332_s4 = sld [smem:[#allocation2 + $0x209]]  ;;  %v6358_v9 = vadd.f32 %v2050_v40, %v2048_v45  ;;  %v2219_v40 = vstv %s6159_s27  ;;  %v2276_v45 = vadd.f32 %v2275_v47, %v2272_v24  ;;  %v2330_v24 = vmul.f32 %v2329_v38, %v4663_v28 }
 0x545   : > { %s6337_s24 = sld [smem:[#allocation2 + $0x20a]]  ;;  %v2220_v46 = vmul.f32 %v2219_v40, %v4821_v39  ;;  %v2334_v40 = vmul.f32 %v2333_v10, %v4665_v29 }
 0x546   : > { %v2109_v53 = vstv %s7943_s2  ;;  %s6341_s20 = sld [smem:[#allocation2 + $0x20b]]  ;;  %7947 = vst [vmem:[#allocation169_spill] sm:$0xff] %v6358_v9  ;;  %v2280_v4 = vadd.f32 %v2279_v43, %v2276_v45  ;;  %v2331_v58 = vadd.f32 %v2330_v24, %v2327_v23  ;;  %v2337_v43 = vstv %s6308_s13 }
 0x547   : > { %s7945_s23 = sld [smem:[#allocation89_spill]]  ;;  %v2110_v42 = vmul.f32 %v2109_v53, %v5000_v32  ;;  %v2107_v53 = vadd.f32 %v2106_v61, %v2103_v25  ;;  %v2282_v25 = vstv %s6239_s6  ;;  %v2221_v45 = vadd.f32 %v2220_v46, %v2217_v0 }
 0x548   : > { %v2113_v44 = vstv %s7944_s11  ;;  %s6346_s2 = sld [smem:[#allocation2 + $0x20c]]  ;;  %v2283_v56 = vmul.f32 %v2282_v25, %v4815_v34  ;;  %v2290_v46 = vstv %s6248_s5 }
 0x549   : > { %s6351_s19 = sld [smem:[#allocation2 + $0x20d]]  ;;  %v2114_v2 = vmul.f32 %v2113_v44, %v5039_v7  ;;  %v2111_v47 = vadd.f32 %v2110_v42, %v2107_v53  ;;  %v2224_v42 = vmul.f32 %v2223_v5, %v4861_v17  ;;  %v2286_v53 = vstv %s6243_s10 }
 0x54a   : > { %s7946_s30 = sld [smem:[#allocation84_spill]]  ;;  %v2287_v5 = vmul.f32 %v2286_v53, %v4821_v39 }
 0x54b   : > { %s6356_s8 = sld [smem:[#allocation2 + $0x20e]]  ;;  %v2115_v24 = vadd.f32 %v2114_v2, %v2111_v47  ;;  %v2225_v47 = vadd.f32 %v2224_v42, %v2221_v45  ;;  %v2361_v8 = vstv %s6337_s24 }
 0x54c   : > { %s7948_s9 = sld [smem:[#allocation66_spill]] }
 0x54d   : > { %v2168_v59 = vstv %s7945_s23  ;;  %s6363_s12 = sld [smem:[#allocation2 + $0x20f]] }
 0x54e   : > { %s6367_s29 = sld [smem:[#allocation2 + $0x289]]  ;;  %v2169_v50 = vmul.f32 %v2168_v59, %v4883_v36 }
 0x54f   : > { %s6372_s23 = sld [smem:[#allocation2 + $0x210]] }
 0x550   : > { %s7951_s11 = sld [smem:[#allocation91_spill]]  ;;  %v2170_v33 = vadd.f32 %v2169_v50, %v2166_v49  ;;  %v2284_v50 = vadd.f32 %v2283_v56, %v2280_v4  ;;  %v2338_v4 = vmul.f32 %v2337_v43, %v4785_v13 }
 0x551   : > { %s7952_s1 = sld [smem:[#allocation96_spill]] }
 0x552   : > { %v2172_v61 = vstv %s7948_s9  ;;  %s6382_s27 = sld [smem:[#allocation2 + $0x212]] }
 0x553   : > { %7949 = sst [smem:[#allocation127_spill]] %s6363_s12  ;;  %v2173_v59 = vmul.f32 %v2172_v61, %v4929_v20 }
 0x554   : > { %7950 = sst [smem:[#allocation113_spill]] %s6367_s29 }
 0x555   : > { %s6377_s12 = sld [smem:[#allocation2 + $0x211]]  ;;  %v2389_v61 = vstv %s6372_s23 }
 0x556   : > { %s6386_s6 = sld [smem:[#allocation2 + $0x213]]  ;;  %v2176_v31 = vstv %s7951_s11  ;;  %v2390_v25 = vmul.f32 %v2389_v61, %v4595_v30  ;;  %v2335_v61 = vadd.f32 %v2334_v40, %v2331_v58  ;;  %v2288_v58 = vadd.f32 %v2287_v5, %v2284_v50 }
 0x557   : > { %s6391_s0 = sld [smem:[#allocation2 + $0x214]]  ;;  %v2180_v38 = vstv %s7952_s1  ;;  %v2177_v0 = vmul.f32 %v2176_v31, %v5000_v32  ;;  %v2228_v31 = vmul.f32 %v2227_v15, %v4863_v18  ;;  %v7956_v40 = vstv %s7946_s30 }
 0x558   : > { %s6396_s9 = sld [smem:[#allocation2 + $0x215]]  ;;  %v2396_v23 = vstv %s6382_s27  ;;  %v2181_v2 = vmul.f32 %v2180_v38, %v5039_v7  ;;  %v6433_v43 = vadd.f32 %v7956_v40, %v2115_v24  ;;  %v2294_v38 = vstv %s6254_s25 }
 0x559   : > { %s6401_s14 = sld [smem:[#allocation2 + $0x216]]  ;;  %v2397_v10 = vmul.f32 %v2396_v23, %v4663_v28  ;;  %v2174_v23 = vadd.f32 %v2173_v59, %v2170_v33  ;;  %v2339_v59 = vadd.f32 %v2338_v4, %v2335_v61  ;;  %v2229_v50 = vadd.f32 %v2228_v31, %v2225_v47 }
 0x55a   : > { %s6406_s11 = sld [smem:[#allocation2 + $0x217]]  ;;  %7957 = vst [vmem:[#allocation170_spill] sm:$0xff] %v6433_v43  ;;  %v2295_v61 = vmul.f32 %v2294_v38, %v4863_v18 }
 0x55b   : > { %v2392_v49 = vstv %s6377_s12  ;;  %s6411_s7 = sld [smem:[#allocation2 + $0x218]] }
 0x55c   : > { %v2393_v37 = vmul.f32 %v2392_v49, %v4634_v62  ;;  %s7953_s10 = sld [smem:[#allocation85_spill]]  ;;  %v2400_v53 = vstv %s6386_s6  ;;  %v2341_v49 = vstv %s6313_s3 }
 0x55d   : > { %s6416_s13 = sld [smem:[#allocation2 + $0x219]]  ;;  %v2401_v15 = vmul.f32 %v2400_v53, %v4665_v29  ;;  %v2342_v33 = vmul.f32 %v2341_v49, %v4807_v26  ;;  %v2298_v49 = vstv %s6259_s26 }
 0x55e   : > { %v2394_v56 = vadd.f32 %v2393_v37, %v2390_v25  ;;  %s6420_s12 = sld [smem:[#allocation2 + $0x21a]]  ;;  %v2291_v37 = vmul.f32 %v2290_v46, %v4861_v17  ;;  %v2404_v25 = vstv %s6391_s0  ;;  %v2345_v46 = vstv %s6318_s17 }
 0x55f   : > { %s7954_s23 = sld [smem:[#allocation102_spill]]  ;;  %v2343_v31 = vadd.f32 %v2342_v33, %v2339_v59  ;;  %v2299_v59 = vmul.f32 %v2298_v49, %v4868_v21  ;;  %v2302_v33 = vstv %s6263_s18 }
 0x560   : > { %s6425_s5 = sld [smem:[#allocation2 + $0x21b]]  ;;  %v2398_v42 = vadd.f32 %v2397_v10, %v2394_v56  ;;  %v2178_v10 = vadd.f32 %v2177_v0, %v2174_v23  ;;  %v2292_v53 = vadd.f32 %v2291_v37, %v2288_v58  ;;  %v2346_v0 = vmul.f32 %v2345_v46, %v4809_v27 }
 0x561   : > { %s7955_s1 = sld [smem:[#allocation94_spill]]  ;;  %v2408_v23 = vstv %s6396_s9  ;;  %v2303_v49 = vmul.f32 %v2302_v33, %v4883_v36 }
 0x562   : > { %v2231_v44 = vstv %s7953_s10  ;;  %s6429_s27 = sld [smem:[#allocation2 + $0x21c]]  ;;  %v2402_v40 = vadd.f32 %v2401_v15, %v2398_v42  ;;  %v2349_v42 = vstv %s6322_s28  ;;  %v6468_v15 = vadd.f32 %v2181_v2, %v2178_v10 }
 0x563   : > { %s7958_s6 = sld [smem:[#allocation111_spill]]  ;;  %v2232_v5 = vmul.f32 %v2231_v44, %v4868_v21  ;;  %v2405_v44 = vmul.f32 %v2404_v25, %v4785_v13  ;;  %v2296_v25 = vadd.f32 %v2295_v61, %v2292_v53  ;;  %v2409_v46 = vmul.f32 %v2408_v23, %v4807_v26 }
 0x564   : > { %s6437_s3 = sld [smem:[#allocation2 + $0x21d]]  ;;  %v2347_v2 = vadd.f32 %v2346_v0, %v2343_v31  ;;  %v2350_v10 = vmul.f32 %v2349_v42, %v4815_v34  ;;  %v2412_v53 = vstv %s6401_s14 }
 0x565   : > { %s6442_s10 = sld [smem:[#allocation2 + $0x21e]]  ;;  %v2233_v58 = vadd.f32 %v2232_v5, %v2229_v50  ;;  %v2353_v5 = vstv %s6327_s15 }
 0x566   : > { %s7959_s29 = sld [smem:[#allocation142_spill]]  ;;  %v2354_v23 = vmul.f32 %v2353_v5, %v4821_v39  ;;  %v2351_v4 = vadd.f32 %v2350_v10, %v2347_v2  ;;  %v2310_v2 = vstv %s6273_s16 }
 0x567   : > { %v2235_v24 = vstv %s7955_s1  ;;  %s6447_s25 = sld [smem:[#allocation2 + $0x21f]] }
 0x568   : > { %s6451_s30 = sld [smem:[#allocation2 + $0x28a]]  ;;  %v2236_v37 = vmul.f32 %v2235_v24, %v4883_v36  ;;  %v2406_v24 = vadd.f32 %v2405_v44, %v2402_v40  ;;  %v2300_v44 = vadd.f32 %v2299_v59, %v2296_v25  ;;  %v2416_v25 = vstv %s6406_s11 }
 0x569   : > { %v2239_v56 = vstv %s7958_s6  ;;  %s6456_s0 = sld [smem:[#allocation2 + $0x220]]  ;;  %v2417_v43 = vmul.f32 %v2416_v25, %v4815_v34 }
 0x56a   : > { %s6461_s17 = sld [smem:[#allocation2 + $0x221]]  ;;  %v2240_v38 = vmul.f32 %v2239_v56, %v4929_v20  ;;  %v2237_v61 = vadd.f32 %v2236_v37, %v2233_v58  ;;  %v2410_v42 = vadd.f32 %v2409_v46, %v2406_v24  ;;  %v2413_v58 = vmul.f32 %v2412_v53, %v4809_v27 }
 0x56b   : > { %s7960_s1 = sld [smem:[#allocation65_spill]] }
 0x56c   : > { %v2243_v47 = vstv %s7959_s29  ;;  %s6466_s26 = sld [smem:[#allocation2 + $0x222]]  ;;  %v2241_v53 = vadd.f32 %v2240_v38, %v2237_v61  ;;  %v2420_v38 = vstv %s6411_s7 }
 0x56d   : > { %s6472_s29 = sld [smem:[#allocation2 + $0x223]]  ;;  %v2244_v50 = vmul.f32 %v2243_v47, %v5000_v32  ;;  %v2306_v47 = vstv %s6267_s21 }
 0x56e   : > { %s6477_s28 = sld [smem:[#allocation2 + $0x224]] }
 0x56f   : > { %s6482_s9 = sld [smem:[#allocation2 + $0x225]]  ;;  %v2456_v40 = vstv %s6456_s0 }
 0x570   : > { %s6487_s18 = sld [smem:[#allocation2 + $0x226]]  ;;  %v2457_v31 = vmul.f32 %v2456_v40, %v4595_v30  ;;  %v2459_v0 = vstv %s6461_s17  ;;  %v2357_v40 = vstv %s6332_s4 }
 0x571   : > { %v2247_v56 = vstv %s7960_s1  ;;  %s6492_s15 = sld [smem:[#allocation2 + $0x227]]  ;;  %v2460_v37 = vmul.f32 %v2459_v0, %v4634_v62  ;;  %v2307_v0 = vmul.f32 %v2306_v47, %v4929_v20  ;;  %v2304_v47 = vadd.f32 %v2303_v49, %v2300_v44 }
 0x572   : > { %v2463_v33 = vstv %s6466_s26  ;;  %s6497_s21 = sld [smem:[#allocation2 + $0x228]]  ;;  %v2421_v49 = vmul.f32 %v2420_v38, %v4821_v39 }
 0x573   : > { %v2464_v59 = vmul.f32 %v2463_v33, %v4663_v28  ;;  %v2467_v5 = vstv %s6472_s29  ;;  %s6502_s14 = sld [smem:[#allocation2 + $0x229]]  ;;  %v2461_v45 = vadd.f32 %v2460_v37, %v2457_v31  ;;  %v2414_v33 = vadd.f32 %v2413_v58, %v2410_v42 }
 0x574   : > { %v2468_v24 = vmul.f32 %v2467_v5, %v4665_v29  ;;  %v2471_v46 = vstv %s6477_s28  ;;  %s6507_s6 = sld [smem:[#allocation2 + $0x22a]]  ;;  %v2355_v37 = vadd.f32 %v2354_v23, %v2351_v4  ;;  %v2358_v5 = vmul.f32 %v2357_v40, %v4861_v17 }
 0x575   : > { %v2475_v10 = vstv %s6482_s9  ;;  %s6512_s11 = sld [smem:[#allocation2 + $0x22b]]  ;;  %v2465_v9 = vadd.f32 %v2464_v59, %v2461_v45  ;;  %v2472_v31 = vmul.f32 %v2471_v46, %v4785_v13  ;;  %v2245_v45 = vadd.f32 %v2244_v50, %v2241_v53 }
 0x576   : > { %s6516_s4 = sld [smem:[#allocation2 + $0x22c]]  ;;  %v2479_v61 = vstv %s6487_s18  ;;  %v2476_v42 = vmul.f32 %v2475_v10, %v4807_v26  ;;  %v2248_v58 = vmul.f32 %v2247_v56, %v5039_v7  ;;  %v2311_v4 = vmul.f32 %v2310_v2, %v5000_v32 }
 0x577   : > { %s6521_s0 = sld [smem:[#allocation2 + $0x22d]]  ;;  %v2469_v52 = vadd.f32 %v2468_v24, %v2465_v9  ;;  %v2483_v23 = vstv %s6492_s15  ;;  %v2418_v25 = vadd.f32 %v2417_v43, %v2414_v33  ;;  %v2480_v44 = vmul.f32 %v2479_v61, %v4809_v27 }
 0x578   : > { %s6525_s16 = sld [smem:[#allocation2 + $0x22e]]  ;;  %v2314_v50 = vstv %s6278_s22  ;;  %v2359_v59 = vadd.f32 %v2358_v5, %v2355_v37  ;;  %v2362_v56 = vmul.f32 %v2361_v8, %v4863_v18  ;;  %v2424_v40 = vstv %s6416_s13 }
 0x579   : > { %s6530_s7 = sld [smem:[#allocation2 + $0x22f]]  ;;  %v2473_v9 = vadd.f32 %v2472_v31, %v2469_v52  ;;  %v2308_v24 = vadd.f32 %v2307_v0, %v2304_v47  ;;  %v2365_v46 = vstv %s6341_s20  ;;  %v2484_v53 = vmul.f32 %v2483_v23, %v4815_v34 }
 0x57a   : > { %s7961_s24 = sld [smem:[#allocation64_spill]]  ;;  %v7962_v52 = vstv %s7954_s23  ;;  %v6550_v10 = vadd.f32 %v2248_v58, %v2245_v45  ;;  %v2487_v8 = vstv %s6497_s21  ;;  %v2369_v31 = vstv %s6346_s2 }
 0x57b   : > { %s6534_s17 = sld [smem:[#allocation2 + $0x28b]]  ;;  %v2477_v43 = vadd.f32 %v2476_v42, %v2473_v9  ;;  %v6548_v2 = vadd.f32 %v7962_v52, %v6468_v15  ;;  %v2422_v0 = vadd.f32 %v2421_v49, %v2418_v25  ;;  %v2425_v37 = vmul.f32 %v2424_v40, %v4861_v17 }
 0x57c   : > { %s6539_s1 = sld [smem:[#allocation2 + $0x230]]  ;;  %v2315_v15 = vmul.f32 %v2314_v50, %v5039_v7  ;;  %v2363_v38 = vadd.f32 %v2362_v56, %v2359_v59  ;;  %v2366_v61 = vmul.f32 %v2365_v46, %v4868_v21  ;;  %v2428_v47 = vstv %s6420_s12 }
 0x57d   : > { %s6543_s26 = sld [smem:[#allocation2 + $0x231]]  ;;  %v2481_v5 = vadd.f32 %v2480_v44, %v2477_v43  ;;  %v2312_v42 = vadd.f32 %v2311_v4, %v2308_v24  ;;  %v2488_v23 = vmul.f32 %v2487_v8, %v4821_v39  ;;  %v2370_v25 = vmul.f32 %v2369_v31, %v4883_v36 }
 0x57e   : > { %s7963_s29 = sld [smem:[#allocation95_spill]]  ;;  %v2373_v49 = vstv %s6351_s19  ;;  %v2491_v9 = vstv %s6502_s14  ;;  %v2426_v50 = vadd.f32 %v2425_v37, %v2422_v0  ;;  %v2429_v4 = vmul.f32 %v2428_v47, %v4863_v18 }
 0x57f   : > { %s6554_s22 = sld [smem:[#allocation2 + $0x232]]  ;;  %v2485_v58 = vadd.f32 %v2484_v53, %v2481_v5  ;;  %v2367_v40 = vadd.f32 %v2366_v61, %v2363_v38  ;;  %v2432_v24 = vstv %s6425_s5  ;;  %v2492_v52 = vmul.f32 %v2491_v9, %v4861_v17 }
 0x580   : > { %v2251_v33 = vstv %s7961_s24  ;;  %s6558_s20 = sld [smem:[#allocation2 + $0x233]]  ;;  %v2495_v0 = vstv %s6507_s6  ;;  %v2374_v61 = vmul.f32 %v2373_v49, %v4929_v20  ;;  %v2430_v47 = vadd.f32 %v2429_v4, %v2426_v50 }
 0x581   : > { %s6563_s13 = sld [smem:[#allocation2 + $0x234]]  ;;  %v2489_v53 = vadd.f32 %v2488_v23, %v2485_v58  ;;  %v2433_v58 = vmul.f32 %v2432_v24, %v4868_v21  ;;  %v2377_v9 = vstv %s6356_s8  ;;  %v2496_v49 = vmul.f32 %v2495_v0, %v4863_v18 }
 0x582   : > { %s6567_s2 = sld [smem:[#allocation2 + $0x235]]  ;;  %v2523_v44 = vstv %s6539_s1  ;;  %v6609_v4 = vadd.f32 %v2315_v15, %v2312_v42  ;;  %v2499_v24 = vstv %s6512_s11 }
 0x583   : > { %s6573_s23 = sld [smem:[#allocation2 + $0x236]]  ;;  %v2524_v59 = vmul.f32 %v2523_v44, %v4595_v30  ;;  %v2526_v56 = vstv %s6543_s26  ;;  %v2436_v44 = vstv %s6429_s27 }
 0x584   : > { %v2318_v45 = vstv %s7963_s29  ;;  %s6578_s12 = sld [smem:[#allocation2 + $0x237]]  ;;  %v2527_v46 = vmul.f32 %v2526_v56, %v4634_v62 }
 0x585   : > { %v2530_v43 = vstv %s6554_s22  ;;  %s6583_s19 = sld [smem:[#allocation2 + $0x238]] }
 0x586   : > { %v2531_v8 = vmul.f32 %v2530_v43, %v4663_v28  ;;  %v2534_v31 = vstv %s6558_s20  ;;  %s6588_s28 = sld [smem:[#allocation2 + $0x239]]  ;;  %v2528_v37 = vadd.f32 %v2527_v46, %v2524_v59  ;;  %v2371_v46 = vadd.f32 %v2370_v25, %v2367_v40 }
 0x587   : > { %v2535_v5 = vmul.f32 %v2534_v31, %v4665_v29  ;;  %v2538_v38 = vstv %s6563_s13  ;;  %s6593_s5 = sld [smem:[#allocation2 + $0x23a]]  ;;  %v2493_v43 = vadd.f32 %v2492_v52, %v2489_v53  ;;  %v2437_v25 = vmul.f32 %v2436_v44, %v4883_v36 }
 0x588   : > { %v2542_v23 = vstv %s6567_s2  ;;  %s6598_s9 = sld [smem:[#allocation2 + $0x23b]]  ;;  %v2532_v56 = vadd.f32 %v2531_v8, %v2528_v37  ;;  %v2539_v59 = vmul.f32 %v2538_v38, %v4785_v13  ;;  %v2434_v38 = vadd.f32 %v2433_v58, %v2430_v47 }
 0x589   : > { %s7964_s18 = sld [smem:[#allocation127_spill]]  ;;  %v2546_v50 = vstv %s6573_s23  ;;  %v2543_v8 = vmul.f32 %v2542_v23, %v4807_v26  ;;  %v2378_v53 = vmul.f32 %v2377_v9, %v5000_v32  ;;  %v2440_v52 = vstv %s6437_s3 }
 0x58a   : > { %s6603_s15 = sld [smem:[#allocation2 + $0x23c]]  ;;  %v2536_v31 = vadd.f32 %v2535_v5, %v2532_v56  ;;  %v2550_v40 = vstv %s6578_s12  ;;  %v2547_v42 = vmul.f32 %v2546_v50, %v4809_v27  ;;  %v2375_v0 = vadd.f32 %v2374_v61, %v2371_v46 }
 0x58b   : > { %s6607_s21 = sld [smem:[#allocation2 + $0x23d]]  ;;  %v2497_v5 = vadd.f32 %v2496_v49, %v2493_v43  ;;  %v2500_v47 = vmul.f32 %v2499_v24, %v4868_v21  ;;  %v2554_v58 = vstv %s6583_s19  ;;  %v2503_v9 = vstv %s6516_s4 }
 0x58c   : > { %s6613_s8 = sld [smem:[#allocation2 + $0x23e]]  ;;  %v2540_v15 = vadd.f32 %v2539_v59, %v2536_v31  ;;  %v2551_v56 = vmul.f32 %v2550_v40, %v4815_v34  ;;  %v2438_v59 = vadd.f32 %v2437_v25, %v2434_v38  ;;  %v2441_v50 = vmul.f32 %v2440_v52, %v4929_v20 }
 0x58d   : > { %s6618_s27 = sld [smem:[#allocation2 + $0x23f]]  ;;  %v2444_v61 = vstv %s6442_s10  ;;  %v2558_v46 = vstv %s6588_s28  ;;  %v2507_v49 = vstv %s6521_s0  ;;  %v2555_v31 = vmul.f32 %v2554_v58, %v4821_v39 }
 0x58e   : > { %s6623_s14 = sld [smem:[#allocation2 + $0x28c]]  ;;  %v2544_v44 = vadd.f32 %v2543_v8, %v2540_v15  ;;  %v2379_v8 = vadd.f32 %v2378_v53, %v2375_v0  ;;  %v2504_v38 = vmul.f32 %v2503_v9, %v4883_v36  ;;  %v2562_v25 = vstv %s6593_s5 }
 0x58f   : > { %v2381_v37 = vstv %s7964_s18  ;;  %s7965_s6 = sld [smem:[#allocation113_spill]]  ;;  %v2445_v40 = vmul.f32 %v2444_v61, %v5000_v32  ;;  %v2559_v15 = vmul.f32 %v2558_v46, %v4861_v17  ;;  %v2442_v58 = vadd.f32 %v2441_v50, %v2438_v59 }
 0x590   : > { %s6627_s11 = sld [smem:[#allocation2 + $0x240]]  ;;  %v2382_v23 = vmul.f32 %v2381_v37, %v5039_v7  ;;  %v2548_v24 = vadd.f32 %v2547_v42, %v2544_v44  ;;  %v2501_v37 = vadd.f32 %v2500_v47, %v2497_v5  ;;  %v2566_v42 = vstv %s6598_s9 }
 0x591   : > { %s6632_s3 = sld [smem:[#allocation2 + $0x241]]  ;;  %v2448_v44 = vstv %s6447_s25  ;;  %v2508_v53 = vmul.f32 %v2507_v49, %v4929_v20  ;;  %v2563_v47 = vmul.f32 %v2562_v25, %v4863_v18  ;;  %v2567_v59 = vmul.f32 %v2566_v42, %v4868_v21 }
 0x592   : > { %s6637_s1 = sld [smem:[#allocation2 + $0x242]]  ;;  %v2552_v52 = vadd.f32 %v2551_v56, %v2548_v24  ;;  %v2505_v61 = vadd.f32 %v2504_v38, %v2501_v37  ;;  %v2570_v24 = vstv %s6603_s15  ;;  %v2383_v42 = vadd.f32 %v2382_v23, %v2379_v8 }
 0x593   : > { %s6642_s4 = sld [smem:[#allocation2 + $0x243]]  ;;  %v2574_v43 = vstv %s6607_s21 }
 0x594   : > { %s6646_s10 = sld [smem:[#allocation2 + $0x244]]  ;;  %v2556_v5 = vadd.f32 %v2555_v31, %v2552_v52  ;;  %v2511_v52 = vstv %s6525_s16 }
 0x595   : > { %s6651_s0 = sld [smem:[#allocation2 + $0x245]]  ;;  %v2512_v23 = vmul.f32 %v2511_v52, %v5000_v32 }
 0x596   : > { %v2590_v0 = vstv %s6627_s11  ;;  %s6656_s26 = sld [smem:[#allocation2 + $0x246]]  ;;  %v2560_v49 = vadd.f32 %v2559_v15, %v2556_v5 }
 0x597   : > { %v2591_v9 = vmul.f32 %v2590_v0, %v4595_v30  ;;  %v2593_v56 = vstv %s6632_s3  ;;  %s6661_s22 = sld [smem:[#allocation2 + $0x247]] }
 0x598   : > { %v2594_v50 = vmul.f32 %v2593_v56, %v4634_v62  ;;  %v2597_v46 = vstv %s6637_s1  ;;  %s6666_s25 = sld [smem:[#allocation2 + $0x248]]  ;;  %v2449_v56 = vmul.f32 %v2448_v44, %v5039_v7  ;;  %v2564_v15 = vadd.f32 %v2563_v47, %v2560_v49 }
 0x599   : > { %v2598_v31 = vmul.f32 %v2597_v46, %v4663_v28  ;;  %v2601_v25 = vstv %s6642_s4  ;;  %s6671_s20 = sld [smem:[#allocation2 + $0x249]]  ;;  %v2571_v46 = vmul.f32 %v2570_v24, %v4883_v36  ;;  %v2446_v47 = vadd.f32 %v2445_v40, %v2442_v58 }
 0x59a   : > { %v2595_v0 = vadd.f32 %v2594_v50, %v2591_v9  ;;  %v2602_v37 = vmul.f32 %v2601_v25, %v4665_v29  ;;  %v2605_v38 = vstv %s6646_s10  ;;  %s6676_s13 = sld [smem:[#allocation2 + $0x24a]]  ;;  %v2509_v25 = vadd.f32 %v2508_v53, %v2505_v61 }
 0x59b   : > { %v2609_v5 = vstv %s6651_s0  ;;  %s6680_s2 = sld [smem:[#allocation2 + $0x24b]]  ;;  %v2606_v50 = vmul.f32 %v2605_v38, %v4785_v13  ;;  %v2568_v8 = vadd.f32 %v2567_v59, %v2564_v15  ;;  %v2515_v49 = vstv %s6530_s7 }
 0x59c   : > { %v2599_v9 = vadd.f32 %v2598_v31, %v2595_v0  ;;  %s6685_s16 = sld [smem:[#allocation2 + $0x24c]]  ;;  %v2613_v44 = vstv %s6656_s26  ;;  %v2610_v31 = vmul.f32 %v2609_v5, %v4807_v26  ;;  %v6698_v0 = vadd.f32 %v2251_v33, %v6550_v10 }
 0x59d   : > { %s6689_s23 = sld [smem:[#allocation2 + $0x24d]]  ;;  %v6703_v53 = vadd.f32 %v2318_v45, %v6609_v4  ;;  %v2575_v61 = vmul.f32 %v2574_v43, %v4929_v20  ;;  %v2617_v59 = vstv %s6661_s22  ;;  %v2572_v40 = vadd.f32 %v2571_v46, %v2568_v8 }
 0x59e   : > { %v2603_v24 = vadd.f32 %v2602_v37, %v2599_v9  ;;  %s6693_s12 = sld [smem:[#allocation2 + $0x24e]]  ;;  %v2578_v58 = vstv %s6613_s8  ;;  %v2614_v37 = vmul.f32 %v2613_v44, %v4809_v27  ;;  %v7966_v10 = vstv %s7965_s6 }
 0x59f   : > { %s6707_s19 = sld [smem:[#allocation2 + $0x24f]]  ;;  %v6715_v33 = vadd.f32 %v7966_v10, %v2383_v42  ;;  %v2513_v45 = vadd.f32 %v2512_v23, %v2509_v25  ;;  %v2516_v4 = vmul.f32 %v2515_v49, %v5039_v7  ;;  %v2621_v43 = vstv %s6666_s25 }
 0x5a0   : > { %v2607_v52 = vadd.f32 %v2606_v50, %v2603_v24  ;;  %s6711_s7 = sld [smem:[#allocation2 + $0x28d]]  ;;  %v2450_v15 = vadd.f32 %v2449_v56, %v2446_v47  ;;  %v2618_v46 = vmul.f32 %v2617_v59, %v4815_v34  ;;  %v2452_v9 = vstv %s6451_s30 }
 0x5a1   : > { %s6719_s24 = sld [smem:[#allocation2 + $0x250]]  ;;  %v2579_v42 = vmul.f32 %v2578_v58, %v5000_v32  ;;  %v2582_v50 = vstv %s6618_s27  ;;  %v2625_v25 = vstv %s6671_s20  ;;  %v2576_v23 = vadd.f32 %v2575_v61, %v2572_v40 }
 0x5a2   : > { %v2611_v5 = vadd.f32 %v2610_v31, %v2607_v52  ;;  %s6723_s29 = sld [smem:[#allocation2 + $0x251]]  ;;  %v2622_v44 = vmul.f32 %v2621_v43, %v4821_v39  ;;  %v2629_v56 = vstv %s6676_s13  ;;  %v2517_v31 = vadd.f32 %v2516_v4, %v2513_v45 }
 0x5a3   : > { %s6729_s28 = sld [smem:[#allocation2 + $0x252]]  ;;  %v6740_v59 = vadd.f32 %v2452_v9, %v2450_v15  ;;  %v2519_v61 = vstv %s6534_s17  ;;  %v2626_v58 = vmul.f32 %v2625_v25, %v4861_v17  ;;  %v2583_v52 = vmul.f32 %v2582_v50, %v5039_v7 }
 0x5a4   : > { %v2615_v8 = vadd.f32 %v2614_v37, %v2611_v5  ;;  %s6733_s5 = sld [smem:[#allocation2 + $0x253]]  ;;  %v2630_v37 = vmul.f32 %v2629_v56, %v4863_v18  ;;  %v2633_v10 = vstv %s6680_s2  ;;  %v2580_v45 = vadd.f32 %v2579_v42, %v2576_v23 }
 0x5a5   : > { %s6738_s30 = sld [smem:[#allocation2 + $0x254]]  ;;  %v2637_v9 = vstv %s6685_s16  ;;  %v2634_v42 = vmul.f32 %v2633_v10, %v4868_v21  ;;  %v2641_v56 = vstv %s6689_s23  ;;  %v2586_v10 = vstv %s6623_s14 }
 0x5a6   : > { %v2619_v40 = vadd.f32 %v2618_v46, %v2615_v8  ;;  %s6744_s9 = sld [smem:[#allocation2 + $0x255]]  ;;  %v6756_v46 = vadd.f32 %v2519_v61, %v2517_v31  ;;  %v2649_v49 = vstv %s6707_s19 }
 0x5a7   : > { %v2657_v43 = vstv %s6719_s24  ;;  %s6750_s18 = sld [smem:[#allocation2 + $0x256]] }
 0x5a8   : > { %v2623_v4 = vadd.f32 %v2622_v44, %v2619_v40  ;;  %v2658_v15 = vmul.f32 %v2657_v43, %v4595_v30  ;;  %v2660_v5 = vstv %s6723_s29  ;;  %s6754_s17 = sld [smem:[#allocation2 + $0x257]]  ;;  %v2584_v43 = vadd.f32 %v2583_v52, %v2580_v45 }
 0x5a9   : > { %v2661_v50 = vmul.f32 %v2660_v5, %v4634_v62  ;;  %v2664_v25 = vstv %s6729_s28  ;;  %s6761_s15 = sld [smem:[#allocation2 + $0x258]] }
 0x5aa   : > { %v2627_v8 = vadd.f32 %v2626_v58, %v2623_v4  ;;  %v2665_v23 = vmul.f32 %v2664_v25, %v4663_v28  ;;  %v2668_v44 = vstv %s6733_s5  ;;  %s6766_s21 = sld [smem:[#allocation2 + $0x259]]  ;;  %v2638_v58 = vmul.f32 %v2637_v9, %v4883_v36 }
 0x5ab   : > { %v2662_v31 = vadd.f32 %v2661_v50, %v2658_v15  ;;  %v2669_v61 = vmul.f32 %v2668_v44, %v4665_v29  ;;  %v2672_v40 = vstv %s6738_s30  ;;  %s6771_s8 = sld [smem:[#allocation2 + $0x25a]]  ;;  %v2645_v25 = vstv %s6693_s12 }
 0x5ac   : > { %v2631_v5 = vadd.f32 %v2630_v37, %v2627_v8  ;;  %v2676_v4 = vstv %s6744_s9  ;;  %s6775_s27 = sld [smem:[#allocation2 + $0x25b]]  ;;  %v2673_v15 = vmul.f32 %v2672_v40, %v4785_v13  ;;  %v2642_v44 = vmul.f32 %v2641_v56, %v4929_v20 }
 0x5ad   : > { %v2666_v24 = vadd.f32 %v2665_v23, %v2662_v31  ;;  %s6780_s6 = sld [smem:[#allocation2 + $0x25c]]  ;;  %v2680_v52 = vstv %s6750_s18  ;;  %v2677_v8 = vmul.f32 %v2676_v4, %v4807_v26  ;;  %v2646_v56 = vmul.f32 %v2645_v25, %v5000_v32 }
 0x5ae   : > { %v2635_v50 = vadd.f32 %v2634_v42, %v2631_v5  ;;  %s6785_s11 = sld [smem:[#allocation2 + $0x25d]]  ;;  %v6792_v42 = vadd.f32 %v2586_v10, %v2584_v43  ;;  %v2684_v31 = vstv %s6754_s17  ;;  %v2650_v40 = vmul.f32 %v2649_v49, %v5039_v7 }
 0x5af   : > { %v2670_v9 = vadd.f32 %v2669_v61, %v2666_v24  ;;  %s6790_s14 = sld [smem:[#allocation2 + $0x25e]]  ;;  %v2681_v24 = vmul.f32 %v2680_v52, %v4809_v27  ;;  %v2688_v61 = vstv %s6761_s15  ;;  %v2653_v43 = vstv %s6711_s7 }
 0x5b0   : > { %v2639_v23 = vadd.f32 %v2638_v58, %v2635_v50  ;;  %s6796_s3 = sld [smem:[#allocation2 + $0x25f]]  ;;  %v2692_v10 = vstv %s6766_s21  ;;  %v2685_v50 = vmul.f32 %v2684_v31, %v4815_v34 }
 0x5b1   : > { %v2674_v5 = vadd.f32 %v2673_v15, %v2670_v9  ;;  %s6801_s1 = sld [smem:[#allocation2 + $0x28e]]  ;;  %v2696_v58 = vstv %s6771_s8  ;;  %v2689_v9 = vmul.f32 %v2688_v61, %v4821_v39  ;;  %v2693_v37 = vmul.f32 %v2692_v10, %v4861_v17 }
 0x5b2   : > { %v2643_v4 = vadd.f32 %v2642_v44, %v2639_v23  ;;  %s6806_s4 = sld [smem:[#allocation2 + $0x260]]  ;;  %v2700_v45 = vstv %s6775_s27 }
 0x5b3   : > { %v2678_v25 = vadd.f32 %v2677_v8, %v2674_v5  ;;  %v2704_v49 = vstv %s6780_s6  ;;  %s6811_s10 = sld [smem:[#allocation2 + $0x261]]  ;;  %v2697_v8 = vmul.f32 %v2696_v58, %v4863_v18  ;;  %v2701_v47 = vmul.f32 %v2700_v45, %v4868_v21 }
 0x5b4   : > { %v2647_v52 = vadd.f32 %v2646_v56, %v2643_v4  ;;  %v2708_v44 = vstv %s6785_s11  ;;  %s6816_s0 = sld [smem:[#allocation2 + $0x262]]  ;;  %v2705_v56 = vmul.f32 %v2704_v49, %v4883_v36  ;;  %v7967_v58 = vmax.f32 %v5143_v60, 0.0 }
 0x5b5   : > { %v2682_v23 = vadd.f32 %v2681_v24, %v2678_v25  ;;  %v2712_v31 = vstv %s6790_s14  ;;  %s6821_s26 = sld [smem:[#allocation2 + $0x263]]  ;;  %v2709_v24 = vmul.f32 %v2708_v44, %v4929_v20 }
 0x5b6   : > { %v2651_v5 = vadd.f32 %v2650_v40, %v2647_v52  ;;  %v2716_v4 = vstv %s6796_s3  ;;  %s6826_s22 = sld [smem:[#allocation2 + $0x264]]  ;;  %v6830_v10 = vmul.f32 %v2712_v31, %v5000_v32  ;;  %v2791_v25 = vsel %vm2790_vm0, %v7967_v58, -inf }
 0x5b7   : > { %v2686_v61 = vadd.f32 %v2685_v50, %v2682_v23  ;;  %s6832_s25 = sld [smem:[#allocation2 + $0x265]]  ;;  %v6835_v40 = vmul.f32 %v2716_v4, %v5039_v7  ;;  %v7968_v50 = vmax.f32 %v5178_v35, 0.0  ;;  %v2792_v31 = vrot.slane %v2791_v25, 4 }
 0x5b8   : > { %v2724_v45 = vstv %s6806_s4  ;;  %s6838_s20 = sld [smem:[#allocation2 + $0x266]]  ;;  %v6850_v4 = vadd.f32 %v2653_v43, %v2651_v5 }
 0x5b9   : > { %v2798_v49 = vsel %vm2790_vm0, %v7968_v50, -inf  ;;  %v2690_v52 = vadd.f32 %v2689_v9, %v2686_v61  ;;  %v2725_v44 = vmul.f32 %v2724_v45, %v4595_v30  ;;  %v2727_v23 = vstv %s6811_s10  ;;  %s6848_s13 = sld [smem:[#allocation2 + $0x267]] }
 0x5ba   : > { %v2728_v15 = vmul.f32 %v2727_v23, %v4634_v62  ;;  %v2731_v60 = vstv %s6816_s0  ;;  %s6854_s2 = sld [smem:[#allocation2 + $0x268]]  ;;  %v2799_v35 = vrot.slane %v2798_v49, 4  ;;  %v2793_v61 = vmax.f32 %v2791_v25, %v2792_v31 }
 0x5bb   : > { %v2694_v58 = vadd.f32 %v2693_v37, %v2690_v52  ;;  %v2732_v9 = vmul.f32 %v2731_v60, %v4663_v28  ;;  %v2735_v30 = vstv %s6821_s26  ;;  %s6858_s16 = sld [smem:[#allocation2 + $0x269]]  ;;  %v2720_v23 = vstv %s6801_s1 }
 0x5bc   : > { %v2729_v45 = vadd.f32 %v2728_v15, %v2725_v44  ;;  %v2736_v43 = vmul.f32 %v2735_v30, %v4665_v29  ;;  %v2739_v5 = vstv %s6826_s22  ;;  %s6862_s23 = sld [smem:[#allocation2 + $0x26a]]  ;;  %v2800_v62 = vmax.f32 %v2798_v49, %v2799_v35 }
 0x5bd   : > { %v2698_v50 = vadd.f32 %v2697_v8, %v2694_v58  ;;  %v2743_v38 = vstv %s6832_s25  ;;  %s6866_s12 = sld [smem:[#allocation2 + $0x26b]]  ;;  %v2794_v28 = vrot.slane %v2793_v61, 2  ;;  %v2740_v52 = vmul.f32 %v2739_v5, %v4785_v13 }
 0x5be   : > { %v2733_v37 = vadd.f32 %v2732_v9, %v2729_v45  ;;  %v2747_v25 = vstv %s6838_s20  ;;  %s6870_s19 = sld [smem:[#allocation2 + $0x26c]]  ;;  %v2801_v29 = vrot.slane %v2800_v62, 2  ;;  %v2655_v15 = vmax.f32 %v6850_v4, 0.0 }
 0x5bf   : > { %v2702_v44 = vadd.f32 %v2701_v47, %v2698_v50  ;;  %v2751_v49 = vstv %s6848_s13  ;;  %s6874_s7 = sld [smem:[#allocation2 + $0x26d]]  ;;  %v2795_v8 = vmax.f32 %v2793_v61, %v2794_v28  ;;  %v2744_v60 = vmul.f32 %v2743_v38, %v4807_v26 }
 0x5c0   : > { %v2737_v31 = vadd.f32 %v2736_v43, %v2733_v37  ;;  %v2755_v35 = vstv %s6854_s2  ;;  %s6878_s24 = sld [smem:[#allocation2 + $0x26e]]  ;;  %v2802_v13 = vmax.f32 %v2800_v62, %v2801_v29  ;;  %v2748_v9 = vmul.f32 %v2747_v25, %v4809_v27 }
 0x5c1   : > { %v2706_v58 = vadd.f32 %v2705_v56, %v2702_v44  ;;  %v2759_v30 = vstv %s6858_s16  ;;  %s6882_s29 = sld [smem:[#allocation2 + $0x26f]]  ;;  %v2796_v47 = vrot.slane %v2795_v8, 1  ;;  %v2752_v61 = vmul.f32 %v2751_v49, %v4815_v34 }
 0x5c2   : > { %v2741_v45 = vadd.f32 %v2740_v52, %v2737_v31  ;;  %v2763_v43 = vstv %s6862_s23  ;;  %v2803_v26 = vrot.slane %v2802_v13, 1  ;;  %v2756_v5 = vmul.f32 %v2755_v35, %v4821_v39  ;;  %s6889_s28 = sld [smem:[#allocation2 + $0x28f]] }
 0x5c3   : > { %v2710_v38 = vadd.f32 %v2709_v24, %v2706_v58  ;;  %v2760_v62 = vmul.f32 %v2759_v30, %v4861_v17  ;;  %v2767_v56 = vstv %s6866_s12  ;;  %v2764_v50 = vmul.f32 %v2763_v43, %v4863_v18  ;;  %s7998_s5 = sld [smem:[#allocation10_spill]] }
 0x5c4   : > { %v2745_v27 = vadd.f32 %v2744_v60, %v2741_v45  ;;  %v2771_v28 = vstv %s6870_s19  ;;  %v6893_v37 = vmax.f32 %v2795_v8, %v2796_v47  ;;  %v2768_v52 = vmul.f32 %v2767_v56, %v4868_v21  ;;  %s8001_s17 = sld [smem:[#allocation173_spill]] }
 0x5c5   : > { %v2714_v34 = vadd.f32 %v6830_v10, %v2710_v38  ;;  %v2775_v25 = vstv %s6874_s7  ;;  %v7969_v24 = vmax.f32 %v5218_v14, 0.0  ;;  %v6902_v44 = vmax.f32 %v2802_v13, %v2803_v26 }
 0x5c6   : > { %v2749_v17 = vadd.f32 %v2748_v9, %v2745_v27  ;;  %v2779_v29 = vstv %s6878_s24  ;;  %v2772_v31 = vmul.f32 %v2771_v28, %v4883_v36  ;;  %v2776_v18 = vmul.f32 %v2775_v25, %v4929_v20 }
 0x5c7   : > { %v2805_v39 = vsel %vm2790_vm0, %v7969_v24, -inf  ;;  %v2783_v8 = vstv %s6882_s29  ;;  %v7970_v10 = vmax.f32 %v5270_v1, 0.0  ;;  %v2718_v60 = vadd.f32 %v6835_v40, %v2714_v34 }
 0x5c8   : > { %v2806_v49 = vrot.slane %v2805_v39, 4  ;;  %v2753_v14 = vadd.f32 %v2752_v61, %v2749_v17  ;;  %v2780_v35 = vmul.f32 %v2779_v29, %v5000_v32  ;;  %v2784_v13 = vmul.f32 %v2783_v8, %v5039_v7 }
 0x5c9   : > { %v2812_v21 = vsel %vm2790_vm0, %v7970_v10, -inf  ;;  %v7971_v30 = vmax.f32 %v5358_v51, 0.0  ;;  %v7972_v20 = vmax.f32 %v5517_v19, 0.0  ;;  %v2787_v61 = vstv %s6889_s28  ;;  %p195_p1 = scmp.lt.s32.totalorder %s7998_s5, 1 }
 0x5ca   : > { %v2807_v58 = vmax.f32 %v2805_v39, %v2806_v49  ;;  %v2813_v9 = vrot.slane %v2812_v21, 4  ;;  %v2757_v1 = vadd.f32 %v2756_v5, %v2753_v14  ;;  %v7973_v32 = vmax.f32 %v5523_v12, 0.0 }
 0x5cb   : > { %v2819_v36 = vsel %vm2790_vm0, %v7971_v30, -inf  ;;  %v2826_v47 = vsel %vm2790_vm0, %v7972_v20, -inf  ;;  %v7974_v38 = vmax.f32 %v5548_v55, 0.0  ;;  %v7975_v24 = vmax.f32 %v5609_v41, 0.0  ;;  %s8011_s5 = smov (!%p195_p1, %s7998_s5), 1 }
 0x5cc   : > { %v2808_v45 = vrot.slane %v2807_v58, 2  ;;  %v2820_v43 = vrot.slane %v2819_v36, 4  ;;  %v2827_v40 = vrot.slane %v2826_v47, 4  ;;  %v2814_v26 = vmax.f32 %v2812_v21, %v2813_v9  ;;  %s3829_s30 = sshll.u32 %s8011_s5, 5 }
 0x5cd   : > { %v2833_v7 = vsel %vm2790_vm0, %v7973_v32, -inf  ;;  %v2840_v51 = vsel %vm2790_vm0, %v7974_v38, -inf  ;;  %v2761_v56 = vadd.f32 %v2760_v62, %v2757_v1  ;;  %v2847_v39 = vsel %vm2790_vm0, %v7975_v24, -inf  ;;  %s7070_s15 = scalar_lea.vmem %s8001_s17, %s3829_s30 }
 0x5ce   : > { %v2809_v27 = vmax.f32 %v2807_v58, %v2808_v45  ;;  %v2821_v19 = vmax.f32 %v2819_v36, %v2820_v43  ;;  %v2828_v28 = vmax.f32 %v2826_v47, %v2827_v40  ;;  %v2815_v34 = vrot.slane %v2814_v26, 2 }
 0x5cf   : > { %v2834_v5 = vrot.slane %v2833_v7, 4  ;;  %v2841_v25 = vrot.slane %v2840_v51, 4  ;;  %v6931_v17 = vadd.f32 %v2720_v23, %v2718_v60  ;;  %v2765_v12 = vadd.f32 %v2764_v50, %v2761_v56 }
 0x5d0   : > { %v2822_v29 = vrot.slane %v2821_v19, 2  ;;  %v2829_v49 = vrot.slane %v2828_v28, 2  ;;  %v2816_v55 = vmax.f32 %v2814_v26, %v2815_v34  ;;  %v2848_v62 = vrot.slane %v2847_v39, 4 }
 0x5d1   : > { %v2835_v8 = vmax.f32 %v2833_v7, %v2834_v5  ;;  %v2842_v10 = vmax.f32 %v2840_v51, %v2841_v25  ;;  %v2769_v21 = vadd.f32 %v2768_v52, %v2765_v12  ;;  %v2810_v14 = vrot.slane %v2809_v27, 1 }
 0x5d2   : > { %v2823_v58 = vmax.f32 %v2821_v19, %v2822_v29  ;;  %v2830_v9 = vmax.f32 %v2828_v28, %v2829_v49  ;;  %v2817_v30 = vrot.slane %v2816_v55, 1  ;;  %v2849_v41 = vmax.f32 %v2847_v39, %v2848_v62 }
 0x5d3   : > { %v2836_v36 = vrot.slane %v2835_v8, 2  ;;  %v2843_v20 = vrot.slane %v2842_v10, 2  ;;  %v2722_v47 = vmax.f32 %v6931_v17, 0.0  ;;  %v2773_v1 = vadd.f32 %v2772_v31, %v2769_v21 }
 0x5d4   : > { %v2824_v23 = vrot.slane %v2823_v58, 1  ;;  %v7976_v50 = vmax.f32 %v5667_v63, 0.0  ;;  %v2831_v45 = vrot.slane %v2830_v9, 1  ;;  %v2850_v26 = vrot.slane %v2849_v41, 2 }
 0x5d5   : > { %v2837_v43 = vmax.f32 %v2835_v8, %v2836_v36  ;;  %v2844_v40 = vmax.f32 %v2842_v10, %v2843_v20  ;;  %v2777_v52 = vadd.f32 %v2776_v18, %v2773_v1  ;;  %v6937_v32 = vmax.f32 %v2809_v27, %v2810_v14 }
 0x5d6   : > { %v2854_v60 = vsel %vm2790_vm0, %v7976_v50, -inf  ;;  %v6939_v7 = vmax.f32 %v2816_v55, %v2817_v30  ;;  %v6941_v51 = vmax.f32 %v2823_v58, %v2824_v23  ;;  %v2851_v19 = vmax.f32 %v2849_v41, %v2850_v26 }
 0x5d7   : > { %v2855_v38 = vrot.slane %v2854_v60, 4  ;;  %v2838_v56 = vrot.slane %v2837_v43, 1  ;;  %v7977_v31 = vmax.f32 %v5723_v6, 0.0  ;;  %v2781_v28 = vadd.f32 %v2780_v35, %v2777_v52 }
 0x5d8   : > { %v7978_v25 = vmax.f32 %v5814_v22, 0.0  ;;  %v6949_v27 = vmax.f32 %v2830_v9, %v2831_v45  ;;  %v2845_v39 = vrot.slane %v2844_v40, 1  ;;  %v7979_v6 = vmax.f32 %v5892_v3, 0.0 }
 0x5d9   : > { %v2861_v63 = vsel %vm2790_vm0, %v7977_v31, -inf  ;;  %v2856_v34 = vmax.f32 %v2854_v60, %v2855_v38  ;;  %v6951_v24 = vmax.f32 %v2837_v43, %v2838_v56  ;;  %v2785_v29 = vadd.f32 %v2784_v13, %v2781_v28 }
 0x5da   : > { %v2862_v5 = vrot.slane %v2861_v63, 4  ;;  %v2868_v18 = vsel %vm2790_vm0, %v7978_v25, -inf  ;;  %v2875_v8 = vsel %vm2790_vm0, %v7979_v6, -inf  ;;  %v2852_v35 = vrot.slane %v2851_v19, 1 }
 0x5db   : > { %v2869_v12 = vrot.slane %v2868_v18, 4  ;;  %v2857_v49 = vrot.slane %v2856_v34, 2  ;;  %v2876_v62 = vrot.slane %v2875_v8, 4  ;;  %v7980_v22 = vmax.f32 %v5939_v54, 0.0 }
 0x5dc   : > { %v2863_v55 = vmax.f32 %v2861_v63, %v2862_v5  ;;  %v6959_v14 = vadd.f32 %v2787_v61, %v2785_v29  ;;  %v7981_v20 = vmax.f32 %v5983_v48, 0.0  ;;  %v7982_v41 = vmax.f32 %v6047_v11, 0.0 }
 0x5dd   : > { %v2870_v10 = vmax.f32 %v2868_v18, %v2869_v12  ;;  %v2882_v21 = vsel %vm2790_vm0, %v7980_v22, -inf  ;;  %v2858_v58 = vmax.f32 %v2856_v34, %v2857_v49  ;;  %v2877_v13 = vmax.f32 %v2875_v8, %v2876_v62  ;;  %v7985_v8 = vld [vmem:[#allocation167_spill] sm:$0xff] }
 0x5de   : > { %v2864_v9 = vrot.slane %v2863_v55, 2  ;;  %v2883_v30 = vrot.slane %v2882_v21, 4  ;;  %v2889_v3 = vsel %vm2790_vm0, %v7981_v20, -inf  ;;  %v2896_v1 = vsel %vm2790_vm0, %v7982_v41, -inf }
 0x5df   : > { %v2871_v36 = vrot.slane %v2870_v10, 2  ;;  %v6967_v23 = vmax.f32 %v2844_v40, %v2845_v39  ;;  %v2859_v54 = vrot.slane %v2858_v58, 1  ;;  %v2878_v45 = vrot.slane %v2877_v13, 2 }
 0x5e0   : > { %v2865_v50 = vmax.f32 %v2863_v55, %v2864_v9  ;;  %v2884_v60 = vmax.f32 %v2882_v21, %v2883_v30  ;;  %v2890_v43 = vrot.slane %v2889_v3, 4  ;;  %v2897_v26 = vrot.slane %v2896_v1, 4 }
 0x5e1   : > { %v2872_v61 = vmax.f32 %v2870_v10, %v2871_v36  ;;  %v6969_v52 = vmax.f32 %v2851_v19, %v2852_v35  ;;  %v7983_v48 = vmax.f32 %v6106_v57, 0.0  ;;  %v2789_v11 = vmax.f32 %v6959_v14, 0.0  ;;  %v7987_v36 = vld [vmem:[#allocation168_spill] sm:$0xff] }
 0x5e2   : > { %v2866_v38 = vrot.slane %v2865_v50, 1  ;;  %v2885_v56 = vrot.slane %v2884_v60, 2  ;;  %v2879_v63 = vmax.f32 %v2877_v13, %v2878_v45  ;;  %v2891_v40 = vmax.f32 %v2889_v3, %v2890_v43  ;;  %v7989_v45 = vld [vmem:[#allocation169_spill] sm:$0xff] }
 0x5e3   : > { %v2903_v31 = vsel %vm2790_vm0, %v7983_v48, -inf  ;;  %v2898_v28 = vmax.f32 %v2896_v1, %v2897_v26  ;;  %v2873_v34 = vrot.slane %v2872_v61, 1  ;;  %v7984_v18 = vmax.f32 %v6185_v16, 0.0 }
 0x5e4   : > { %v2886_v5 = vmax.f32 %v2884_v60, %v2885_v56  ;;  %v2904_v25 = vrot.slane %v2903_v31, 4  ;;  %v6978_v19 = vmax.f32 %v2858_v58, %v2859_v54  ;;  %v6980_v12 = vmax.f32 %v2865_v50, %v2866_v38  ;;  %v7991_v38 = vld [vmem:[#allocation170_spill] sm:$0xff] }
 0x5e5   : > { %v2910_v39 = vsel %vm2790_vm0, %v7984_v18, -inf  ;;  %v2892_v29 = vrot.slane %v2891_v40, 2  ;;  %v2899_v57 = vrot.slane %v2898_v28, 2  ;;  %v2880_v49 = vrot.slane %v2879_v63, 1 }
 0x5e6   : > { %v2905_v55 = vmax.f32 %v2903_v31, %v2904_v25  ;;  %v2911_v6 = vrot.slane %v2910_v39, 4  ;;  %v7986_v35 = vmax.f32 %v7985_v8, 0.0  ;;  %v2887_v62 = vrot.slane %v2886_v5, 1 }
 0x5e7   : > { %v2893_v22 = vmax.f32 %v2891_v40, %v2892_v29  ;;  %v2900_v21 = vmax.f32 %v2898_v28, %v2899_v57  ;;  %v6985_v16 = vmax.f32 %v2872_v61, %v2873_v34  ;;  %v7988_v13 = vmax.f32 %v7987_v36, 0.0 }
 0x5e8   : > { %v2917_v10 = vsel %vm2790_vm0, %v7986_v35, -inf  ;;  %v2906_v30 = vrot.slane %v2905_v55, 2  ;;  %v2912_v58 = vmax.f32 %v2910_v39, %v2911_v6  ;;  %v7990_v43 = vmax.f32 %v7989_v45, 0.0 }
 0x5e9   : > { %v2918_v9 = vrot.slane %v2917_v10, 4  ;;  %v2924_v20 = vsel %vm2790_vm0, %v7988_v13, -inf  ;;  %v2894_v3 = vrot.slane %v2893_v22, 1  ;;  %v2901_v41 = vrot.slane %v2900_v21, 1 }
 0x5ea   : > { %v2925_v54 = vrot.slane %v2924_v20, 4  ;;  %v2907_v50 = vmax.f32 %v2905_v55, %v2906_v30  ;;  %v2913_v60 = vrot.slane %v2912_v58, 2  ;;  %v2931_v26 = vsel %vm2790_vm0, %v7990_v43, -inf }
 0x5eb   : > { %v2919_v1 = vmax.f32 %v2917_v10, %v2918_v9  ;;  %v7992_v56 = vmax.f32 %v7991_v38, 0.0  ;;  %v6996_v48 = vmax.f32 %v2879_v63, %v2880_v49  ;;  %v6998_v31 = vmax.f32 %v2886_v5, %v2887_v62 }
 0x5ec   : > { %v2926_v28 = vmax.f32 %v2924_v20, %v2925_v54  ;;  %v2908_v34 = vrot.slane %v2907_v50, 1  ;;  %v2914_v25 = vmax.f32 %v2912_v58, %v2913_v60  ;;  %v2932_v18 = vrot.slane %v2931_v26, 4 }
 0x5ed   : > { %v2938_v61 = vsel %vm2790_vm0, %v7992_v56, -inf  ;;  %v2920_v40 = vrot.slane %v2919_v1, 2  ;;  %v7993_v55 = vmax.f32 %v6548_v2, 0.0  ;;  %v7994_v8 = vmax.f32 %v6698_v0, 0.0 }
 0x5ee   : > { %v2939_v39 = vrot.slane %v2938_v61, 4  ;;  %v2927_v57 = vrot.slane %v2926_v28, 2  ;;  %v7006_v63 = vmax.f32 %v2893_v22, %v2894_v3  ;;  %v7008_v5 = vmax.f32 %v2900_v21, %v2901_v41 }
 0x5ef   : > { %v2921_v29 = vmax.f32 %v2919_v1, %v2920_v40  ;;  %v2945_v6 = vsel %vm2790_vm0, %v7993_v55, -inf  ;;  %v2952_v35 = vsel %vm2790_vm0, %v7994_v8, -inf  ;;  %v2933_v49 = vmax.f32 %v2931_v26, %v2932_v18 }
 0x5f0   : > { %v2940_v10 = vmax.f32 %v2938_v61, %v2939_v39  ;;  %v2915_v62 = vrot.slane %v2914_v25, 1  ;;  %v2928_v9 = vmax.f32 %v2926_v28, %v2927_v57  ;;  %v2946_v30 = vrot.slane %v2945_v6, 4 }
 0x5f1   : > { %v2953_v58 = vrot.slane %v2952_v35, 4  ;;  %v7010_v36 = vmax.f32 %v2907_v50, %v2908_v34  ;;  %v2934_v13 = vrot.slane %v2933_v49, 2  ;;  %v7995_v20 = vmax.f32 %v6703_v53, 0.0 }
 0x5f2   : > { %v2941_v2 = vrot.slane %v2940_v10, 2  ;;  %v2922_v1 = vrot.slane %v2921_v29, 1  ;;  %v2929_v54 = vrot.slane %v2928_v9, 1  ;;  %v2947_v22 = vmax.f32 %v2945_v6, %v2946_v30 }
 0x5f3   : > { %v2959_v0 = vsel %vm2790_vm0, %v7995_v20, -inf  ;;  %v2954_v3 = vmax.f32 %v2952_v35, %v2953_v58  ;;  %v2935_v21 = vmax.f32 %v2933_v49, %v2934_v13  ;;  %v7996_v45 = vmax.f32 %v6715_v33, 0.0 }
 0x5f4   : > { %v2942_v41 = vmax.f32 %v2940_v10, %v2941_v2  ;;  %v2960_v60 = vrot.slane %v2959_v0, 4  ;;  %v7018_v26 = vmax.f32 %v2914_v25, %v2915_v62  ;;  %v2948_v50 = vrot.slane %v2947_v22, 2 }
 0x5f5   : > { %v2966_v43 = vsel %vm2790_vm0, %v7996_v45, -inf  ;;  %v2955_v38 = vrot.slane %v2954_v3, 2  ;;  %v2936_v61 = vrot.slane %v2935_v21, 1  ;;  %v7997_v28 = vmax.f32 %v6740_v59, 0.0 }
 0x5f6   : > { %v2967_v56 = vrot.slane %v2966_v43, 4  ;;  %v2943_v53 = vrot.slane %v2942_v41, 1  ;;  %v2961_v40 = vmax.f32 %v2959_v0, %v2960_v60  ;;  %v2949_v18 = vmax.f32 %v2947_v22, %v2948_v50 }
 0x5f7   : > { %v2973_v34 = vsel %vm2790_vm0, %v7997_v28, -inf  ;;  %v7023_v39 = vmax.f32 %v2954_v3, %v2955_v38  ;;  %v7025_v33 = vmax.f32 %v2921_v29, %v2922_v1  ;;  %v7027_v25 = vmax.f32 %v2928_v9, %v2929_v54 }
 0x5f8   : > { %v2968_v57 = vmax.f32 %v2966_v43, %v2967_v56  ;;  %v2974_v55 = vrot.slane %v2973_v34, 4  ;;  %v2962_v6 = vrot.slane %v2961_v40, 2  ;;  %v7999_v8 = vmax.f32 %v6756_v46, 0.0 }
 0x5f9   : > { %v7032_v49 = vmax.f32 %v2935_v21, %v2936_v61  ;;  %v2950_v59 = vrot.slane %v2949_v18, 1  ;;  %v8000_v13 = vmax.f32 %v6792_v42, 0.0  ;;  %v2994_v9 = vsel %vm2790_vm0, %v2655_v15, -inf }
 0x5fa   : > { %v2980_v35 = vsel %vm2790_vm0, %v7999_v8, -inf  ;;  %v2969_v10 = vrot.slane %v2968_v57, 2  ;;  %v2975_v62 = vmax.f32 %v2973_v34, %v2974_v55  ;;  %v2963_v30 = vmax.f32 %v2961_v40, %v2962_v6 }
 0x5fb   : > { %v2981_v58 = vrot.slane %v2980_v35, 4  ;;  %v2987_v29 = vsel %vm2790_vm0, %v8000_v13, -inf  ;;  %v7040_v2 = vmax.f32 %v2942_v41, %v2943_v53  ;;  %v2957_v46 = vrot.slane %v7023_v39, 1 }
 0x5fc   : > { %v2970_v20 = vmax.f32 %v2968_v57, %v2969_v10  ;;  %v2976_v0 = vrot.slane %v2975_v62, 2  ;;  %v2964_v1 = vrot.slane %v2963_v30, 1  ;;  %v2988_v22 = vrot.slane %v2987_v29, 4 }
 0x5fd   : > { %v2982_v54 = vmax.f32 %v2980_v35, %v2981_v58  ;;  %v2995_v3 = vrot.slane %v2994_v9, 4  ;;  %v3001_v4 = vsel %vm2790_vm0, %v2722_v47, -inf  ;;  %v3008_v15 = vsel %vm2790_vm0, %v2789_v11, -inf }
 0x5fe   : > { %v2971_v42 = vrot.slane %v2970_v20, 1  ;;  %v2977_v21 = vmax.f32 %v2975_v62, %v2976_v0  ;;  %v7050_v41 = vmax.f32 %v2949_v18, %v2950_v59  ;;  %v2989_v45 = vmax.f32 %v2987_v29, %v2988_v22 }
 0x5ff   : > { %v2983_v60 = vrot.slane %v2982_v54, 2  ;;  %v2996_v43 = vmax.f32 %v2994_v9, %v2995_v3  ;;  %v2965_v50 = vmax.f32 %v2963_v30, %v2964_v1  ;;  %v3002_v56 = vrot.slane %v3001_v4, 4 }
 0x600   : > { %v2978_v38 = vrot.slane %v2977_v21, 1  ;;  %v3009_v61 = vrot.slane %v3008_v15, 4  ;;  %v2990_v17 = vrot.slane %v2989_v45, 2  ;;  %v2972_v14 = vmax.f32 %v2970_v20, %v2971_v42 }
 0x601   : > { %v2984_v53 = vmax.f32 %v2982_v54, %v2983_v60  ;;  %v2997_v47 = vrot.slane %v2996_v43, 2  ;;  %v3003_v40 = vmax.f32 %v3001_v4, %v3002_v56  ;;  %v3016_v28 = vsel %vm3015_vm1, %v6893_v37, %v6902_v44 }
 0x602   : > { %v3010_v11 = vmax.f32 %v3008_v15, %v3009_v61  ;;  %v2991_v18 = vmax.f32 %v2989_v45, %v2990_v17  ;;  %v3018_v8 = vsel %vm3017_vm2, %v3016_v28, %v6937_v32  ;;  %v2979_v35 = vmax.f32 %v2977_v21, %v2978_v38 }
 0x603   : > { %v2985_v34 = vrot.slane %v2984_v53, 1  ;;  %v2998_v57 = vmax.f32 %v2996_v43, %v2997_v47  ;;  %v3004_v55 = vrot.slane %v3003_v40, 2  ;;  %v3020_v62 = vsel %vm3019_vm3, %v3018_v8, %v6939_v7 }
 0x604   : > { %v3011_v6 = vrot.slane %v3010_v11, 2  ;;  %v2992_v59 = vrot.slane %v2991_v18, 1  ;;  %v3022_v13 = vsel %vm3021_vm4, %v3020_v62, %v6941_v51  ;;  %v3029_v51 = vsel %vm3015_vm1, %v6969_v52, %v6978_v19 }
 0x605   : > { %v2999_v10 = vrot.slane %v2998_v57, 1  ;;  %v3005_v30 = vmax.f32 %v3003_v40, %v3004_v55  ;;  %v2986_v37 = vmax.f32 %v2984_v53, %v2985_v34  ;;  %v3024_v7 = vsel %vm3023_vm5, %v3022_v13, %v6949_v27 }
 0x606   : > { %v3012_v58 = vmax.f32 %v3010_v11, %v3011_v6  ;;  %v2993_v44 = vmax.f32 %v2991_v18, %v2992_v59  ;;  %v3026_v9 = vsel %vm3025_vm6, %v3024_v7, %v6951_v24  ;;  %v3036_v20 = vsel %vm3015_vm1, %v7010_v36, %v7018_v26 }
 0x607   : > { %v3006_v32 = vrot.slane %v3005_v30, 1  ;;  %v3043_v0 = vsel %vm3015_vm1, %v2965_v50, %v2972_v14  ;;  %v2958_v1 = vmax.f32 %v7023_v39, %v2957_v46  ;;  %v3000_v54 = vmax.f32 %v2998_v57, %v2999_v10 }
 0x608   : > { %v3013_v29 = vrot.slane %v3012_v58, 1  ;;  %v3028_v27 = vsel %vm3027_vm7, %v3026_v9, %v6967_v23  ;;  %v3030_v22 = vsel %vm3017_vm2, %v3029_v51, %v6980_v12  ;;  %v3037_v52 = vsel %vm3017_vm2, %v3036_v20, %v7025_v33 }
 0x609   : > { %v3007_v24 = vmax.f32 %v3005_v30, %v3006_v32  ;;  %v3031_v3 = vsel %vm3019_vm3, %v3030_v22, %v6985_v16  ;;  %v3044_v19 = vsel %vm3017_vm2, %v3043_v0, %v2979_v35  ;;  %3050 = vst.msk [vmem:[%s7070_s15] sm:$0xff] %vm2790_vm0, %v3028_v27  ;;  %v3038_v12 = vsel %vm3019_vm3, %v3037_v52, %v7027_v25 }
 0x60a   : > { %v3014_v36 = vmax.f32 %v3012_v58, %v3013_v29  ;;  %v3032_v23 = vsel %vm3021_vm4, %v3031_v3, %v6996_v48  ;;  %v3045_v26 = vsel %vm3019_vm3, %v3044_v19, %v2986_v37  ;;  %v3039_v39 = vsel %vm3021_vm4, %v3038_v12, %v7032_v49 }
 0x60b   : > { %v3033_v16 = vsel %vm3023_vm5, %v3032_v23, %v6998_v31  ;;  %v3046_v33 = vsel %vm3021_vm4, %v3045_v26, %v2993_v44  ;;  %v3040_v48 = vsel %vm3023_vm5, %v3039_v39, %v7040_v2 }
 0x60c   : > { %v3034_v46 = vsel %vm3025_vm6, %v3033_v16, %v7006_v63  ;;  %v3047_v42 = vsel %vm3023_vm5, %v3046_v33, %v3000_v54  ;;  %v3041_v21 = vsel %vm3025_vm6, %v3040_v48, %v7050_v41 }
 0x60d   : > { %v3035_v25 = vsel %vm3027_vm7, %v3034_v46, %v7008_v5  ;;  %v3048_v31 = vsel %vm3025_vm6, %v3047_v42, %v3007_v24  ;;  %v3042_v49 = vsel %vm3027_vm7, %v3041_v21, %v2958_v1 }
 0x60e   : > { %v3049_v4 = vsel %vm3027_vm7, %v3048_v31, %v3014_v36  ;;  %3051 = vst.msk [vmem:[%s7070_s15 + $0x8] sm:$0xff] %vm2790_vm0, %v3035_v25 }
 0x60f   : > { %3052 = vst.msk [vmem:[%s7070_s15 + $0x10] sm:$0xff] %vm2790_vm0, %v3042_v49 }
 0x610   : > { %3053 = vst.msk [vmem:[%s7070_s15 + $0x18] sm:$0xff] %vm2790_vm0, %v3049_v4 }
 0x611 PF: > { %s8002_s21 = sld [smem:[#allocation12_spill]] }
 0x612   : > { %s8003_s9 = sld [smem:[#allocation8_spill]] }
 0x613   : > { %s8004_s10 = sld [smem:[#allocation9_spill]] }
 0x614   : > { %s8005_s11 = sld [smem:[#allocation14_spill]] }
 0x615   : > { %s8006_s12 = sld [smem:[#allocation11_spill]] }
 0x616   : > { %s8007_s13 = sld [smem:[#allocation13_spill]] }
 0x617   : > { %s16_s14 = sadd.s32 1, %s8002_s21  }
 0x618   : > { %p13_p2 = scmp.ge.s32.totalorder %s16_s14, 4  }
 0x61a   :  { %15 = sbr.rel (!%p13_p2) target bundleno = 9 (0x9), region = 78 }
 0x61f   :  { %3081 = vsyncpa [#allocation3], 1 }
 0x620   :  { %3083 = vsyncpa [#allocation3 + $0x1], 1 }
 0x621   :  { %3084 = vsyncpa [#allocation4], 1 }
 0x622   :  { %3086 = vsyncpa [#allocation4 + $0x1], 1 }

</bundles_post_ra>
